<compile_context>
chip_gen: v7x
topology: tpu7x:2x2x1
jax: 0.10.0
libtpu: 0.0.40
codegen_flags: <defaults>
</compile_context>

<pallas_src>
import functools
import math

import jax
import jax.numpy as jnp
from jax import lax
from jax.experimental import pallas as pl
from jax.experimental.pallas import tpu as pltpu


# ----------------------------- hardware heuristic --------------------------- #

def _tensorcores_per_chip():
    # Best-effort TC-per-device count; only used to pick batch-grid (multi-TC)
    # vs. batch-in-block (single-TC). Falls back to 1 (safe everywhere).
    try:
        kind = jax.devices()[0].device_kind.lower()
    except Exception:
        return 1
    return 2 if ("v7" in kind or "7x" in kind) else 1


# ----------------------------- fused Pallas kernel -------------------------- #

def _transformer_cnn_kernel(
        xpad_ref, wfused_ref, bfused_ref, pe_ref,
        wq_ref, wk_ref, wv_ref, bq_ref, bk_ref, bv_ref,
        wo_ref, bo_ref, ln1g_ref, ln1b_ref,
        w1_ref, b1_ref, w2_ref, b2_ref, ln2g_ref, ln2b_ref,
        o_ref, *, K, S, Cin, num_layers, num_heads, eps):
    # xpad_ref : (bpb, S+K-1, Cin)          fused conv/embed weight: (K*Cin, H)
    # pe_ref   : (S, H)                      per-head weights stacked over layers
    # o_ref    : (bpb, S, H)
    bpb = xpad_ref.shape[0]
    H = pe_ref.shape[-1]
    dh = H // num_heads
    scale = 1.0 / math.sqrt(dh)

    # Hoisted once per block: fused conv/embed bias + positional encoding.
    bias0 = bfused_ref[...] + pe_ref[...]                                # (S, H)

    for b in range(bpb):                       # static batch loop within block
        # --- Conv1d ∘ embedding Linear (one folded linear map) -------------
        # h = sum_k xpad[t+k, :] @ Wfused[k*Cin:(k+1)*Cin, :]  (+ bias + PE)
        h = bias0
        for k in range(K):                     # static K (=3), unrolled
            h = h + jnp.dot(xpad_ref[b, k:k + S, :],
                            wfused_ref[k * Cin:(k + 1) * Cin, :],
                            preferred_element_type=jnp.float32)

        # --- num_layers x post-norm TransformerEncoderLayer (VMEM-resident) -
        for l in range(num_layers):            # static, unrolled
            x = h

            # self-attention: per-head weight blocks; per-head wo row block
            # accumulates directly into the (S, H) result (no head concat).
            attn = None
            for hh in range(num_heads):        # static, unrolled
                q = jnp.dot(x, wq_ref[l, hh, :, :],
                            preferred_element_type=jnp.float32) + bq_ref[l, hh, :, :]
                kk = jnp.dot(x, wk_ref[l, hh, :, :],
                             preferred_element_type=jnp.float32) + bk_ref[l, hh, :, :]
                v = jnp.dot(x, wv_ref[l, hh, :, :],
                            preferred_element_type=jnp.float32) + bv_ref[l, hh, :, :]
                # contract last dims of q and k directly on the MXU (no .T)
                s = lax.dot_general(q * scale, kk, (((1,), (1,)), ((), ())),
                                    preferred_element_type=jnp.float32)   # (S, S)
                s = s - jnp.max(s, axis=-1, keepdims=True)
                p = jnp.exp(s)
                p = p * pl.reciprocal(jnp.sum(p, axis=-1, keepdims=True),
                                      approx=False)
                hv = jnp.dot(p, v, preferred_element_type=jnp.float32)    # (S, dh)
                contrib = jnp.dot(hv, wo_ref[l, hh, :, :],
                                  preferred_element_type=jnp.float32)     # (S, H)
                attn = contrib if attn is None else attn + contrib
            attn = attn + bo_ref[l, :, :]

            # residual + LayerNorm 1
            h1 = x + attn
            mu = jnp.mean(h1, axis=-1, keepdims=True)
            var = jnp.mean((h1 - mu) ** 2, axis=-1, keepdims=True)
            h1 = (h1 - mu) * lax.rsqrt(var + eps) * ln1g_ref[l, :, :] + ln1b_ref[l, :, :]

            # feed-forward (ReLU)
            f = jnp.dot(h1, w1_ref[l, :, :],
                        preferred_element_type=jnp.float32) + b1_ref[l, :, :]
            f = jnp.maximum(f, 0.0)
            f = jnp.dot(f, w2_ref[l, :, :],
                        preferred_element_type=jnp.float32) + b2_ref[l, :, :]

            # residual + LayerNorm 2
            h2 = h1 + f
            mu2 = jnp.mean(h2, axis=-1, keepdims=True)
            var2 = jnp.mean((h2 - mu2) ** 2, axis=-1, keepdims=True)
            h = (h2 - mu2) * lax.rsqrt(var2 + eps) * ln2g_ref[l, :, :] + ln2b_ref[l, :, :]

        o_ref[b, :, :] = h


# ----------------------------- wrapper / param packing ---------------------- #

def transformer_cnn_forward(x, params, num_heads, eps=1e-5):
    # x: (B, S, input_size) channel-last; the NCW permutes of the PyTorch
    # reference are pure layout and folded away here. Returns (B, S, H).
    B, S, Cin = x.shape
    conv_w = params["conv_w"]                       # (K, Cin, Cout)
    K, _, Cout = conv_w.shape
    emb_w = params["emb_w"]                         # (Cout, H)
    H = emb_w.shape[1]
    L = len(params["layers"])
    F = params["layers"][0]["w1"].shape[1]
    nh, dh = num_heads, H // num_heads

    # Algebraic fold: Conv1d -> Linear with no nonlinearity between them (dropout
    # is identity in eval) is one linear map.  (f32 re-association vs. reference.)
    wfused = conv_w.reshape(K * Cin, Cout) @ emb_w                       # (K*Cin, H)
    bfused = params["conv_b"] @ emb_w + params["emb_b"]                  # (1, H)

    pad = K // 2                                    # 'same' padding (PyTorch padding=K//2)
    xpad = jnp.pad(x, ((0, 0), (pad, pad), (0, 0)))
    Sp = S + 2 * pad

    # Head-major restructuring of attention params + stacking over layers.
    def per_layer(lyr):
        wqkv, bqkv = lyr["wqkv"], lyr["bqkv"]        # (H, 3H), (1, 3H)
        wq = wqkv[:, :H].reshape(H, nh, dh).transpose(1, 0, 2)           # (nh, H, dh)
        wk = wqkv[:, H:2 * H].reshape(H, nh, dh).transpose(1, 0, 2)
        wv = wqkv[:, 2 * H:].reshape(H, nh, dh).transpose(1, 0, 2)
        bq = bqkv[:, :H].reshape(nh, 1, dh)                               # (nh, 1, dh)
        bk = bqkv[:, H:2 * H].reshape(nh, 1, dh)
        bv = bqkv[:, 2 * H:].reshape(nh, 1, dh)
        wo = lyr["wo"].reshape(nh, dh, H)                                 # per-head row blocks
        return wq, wk, wv, bq, bk, bv, wo

    parts = [per_layer(lyr) for lyr in params["layers"]]
    wq = jnp.stack([p[0] for p in parts])            # (L, nh, H, dh)
    wk = jnp.stack([p[1] for p in parts])
    wv = jnp.stack([p[2] for p in parts])
    bq = jnp.stack([p[3] for p in parts])            # (L, nh, 1, dh)
    bk = jnp.stack([p[4] for p in parts])
    bv = jnp.stack([p[5] for p in parts])
    wo = jnp.stack([p[6] for p in parts])            # (L, nh, dh, H)

    stack = lambda name: jnp.stack([lyr[name] for lyr in params["layers"]])
    bo = stack("bo")                                  # (L, 1, H)
    ln1g, ln1b = stack("ln1_g"), stack("ln1_b")       # (L, 1, H)
    w1, b1 = stack("w1"), stack("b1")                 # (L, H, F), (L, 1, F)
    w2, b2 = stack("w2"), stack("b2")                 # (L, F, H), (L, 1, H)
    ln2g, ln2b = stack("ln2_g"), stack("ln2_b")       # (L, 1, H)

    # Generation-aware batch handling: split batch over the grid on multi-TC
    # chips (v7x), fold it into one block on single-TC chips (v5e/v6e).
    n_tc = _tensorcores_per_chip()
    bpb = 1 if (n_tc > 1 and B > 1) else B
    grid = (B // bpb,)

    def full_spec(arr):
        nd = arr.ndim
        return pl.BlockSpec(arr.shape, lambda bb, _n=nd: (0,) * _n)

    kernel = functools.partial(
        _transformer_cnn_kernel,
        K=K, S=S, Cin=Cin, num_layers=L, num_heads=num_heads, eps=eps)

    return pl.pallas_call(
        kernel,
        out_shape=jax.ShapeDtypeStruct((B, S, H), jnp.float32),
        grid=grid,
        in_specs=[
            pl.BlockSpec((bpb, Sp, Cin), lambda bb: (bb, 0, 0)),   # xpad
            full_spec(wfused), full_spec(bfused), full_spec(params["pe"]),
            full_spec(wq), full_spec(wk), full_spec(wv),
            full_spec(bq), full_spec(bk), full_spec(bv),
            full_spec(wo), full_spec(bo),
            full_spec(ln1g), full_spec(ln1b),
            full_spec(w1), full_spec(b1), full_spec(w2), full_spec(b2),
            full_spec(ln2g), full_spec(ln2b),
        ],
        out_specs=pl.BlockSpec((bpb, S, H), lambda bb: (bb, 0, 0)),
        compiler_params=pltpu.CompilerParams(dimension_semantics=("parallel",)),
    )(xpad, wfused, bfused, params["pe"],
      wq, wk, wv, bq, bk, bv, wo, bo, ln1g, ln1b,
      w1, b1, w2, b2, ln2g, ln2b)


# ----------------------------- deterministic init --------------------------- #

def make_positional_encoding(max_len, d_model):
    pos = jnp.arange(max_len, dtype=jnp.float32)[:, None]
    div = jnp.exp(jnp.arange(0, d_model, 2, dtype=jnp.float32)
                  * (-math.log(10000.0) / d_model))
    pe = jnp.zeros((max_len, d_model), jnp.float32)
    pe = pe.at[:, 0::2].set(jnp.sin(pos * div))
    pe = pe.at[:, 1::2].set(jnp.cos(pos * div))
    return pe


def init_params(key, *, input_size, cnn_out, hidden, ff, num_layers,
                kernel_size, seq_len):
    n_random_per_layer = 7                      # wqkv,bqkv,wo,bo,w1,b1,w2
    ks = jax.random.split(key, 4 + n_random_per_layer * num_layers)
    scale = 0.05
    it = iter(ks)

    def nrm(k, shape):
        return (scale * jax.random.normal(k, shape)).astype(jnp.float32)

    params = {
        # Conv1d weight (Cout, Cin, K) stored as (K, Cin, Cout)
        "conv_w": nrm(next(it), (kernel_size, input_size, cnn_out)),
        "conv_b": nrm(next(it), (1, cnn_out)),
        # embedding Linear(cnn_out -> hidden) stored transposed
        "emb_w": nrm(next(it), (cnn_out, hidden)),
        "emb_b": nrm(next(it), (1, hidden)),
        "pe": make_positional_encoding(seq_len, hidden),
        "layers": [],
    }
    for _ in range(num_layers):
        lyr = {
            "wqkv": nrm(next(it), (hidden, 3 * hidden)),
            "bqkv": nrm(next(it), (1, 3 * hidden)),
            "wo": nrm(next(it), (hidden, hidden)),
            "bo": nrm(next(it), (1, hidden)),
            "ln1_g": jnp.ones((1, hidden), jnp.float32),
            "ln1_b": jnp.zeros((1, hidden), jnp.float32),
            "w1": nrm(next(it), (hidden, ff)),
            "b1": nrm(next(it), (1, ff)),
            "w2": nrm(next(it), (ff, hidden)),
            "b2": jnp.zeros((1, hidden), jnp.float32),
            "ln2_g": jnp.ones((1, hidden), jnp.float32),
            "ln2_b": jnp.zeros((1, hidden), jnp.float32),
        }
        params["layers"].append(lyr)
    return params


# ----------------------------- main ------------------------------------------ #

if __name__ == "__main__":
    # Small config consistent with the module (hidden == dim_feedforward,
    # cnn_out_channels == hidden_size, kernel_size=3, num_layers=2).
    B, S = 2, 16
    INPUT_SIZE = 32
    CNN_OUT = 32
    HIDDEN = 32
    NUM_HEADS = 4
    NUM_LAYERS = 2
    KSIZE = 3

    root = jax.random.PRNGKey(0)
    k_in, k_par = jax.random.split(root)
    x = jax.random.normal(k_in, (B, S, INPUT_SIZE), dtype=jnp.float32)

    params = init_params(
        k_par,
        input_size=INPUT_SIZE, cnn_out=CNN_OUT, hidden=HIDDEN, ff=HIDDEN,
        num_layers=NUM_LAYERS, kernel_size=KSIZE, seq_len=S,
    )

    out = transformer_cnn_forward(x, params, NUM_HEADS)
    out = jax.block_until_ready(out)
    assert out.shape == (B, S, HIDDEN) and out.dtype == jnp.float32
    assert bool(jnp.all(jnp.isfinite(out)))
    print("KERNEL_OK")
</pallas_src>

<mosaic_0001>
module attributes {stable_mosaic.version = 11 : i64} {
  func.func @_transformer_cnn_kernel(%arg0: i32, %arg1: memref<2x18x32xf32, #tpu.memory_space<vmem>>, %arg2: memref<96x32xf32, #tpu.memory_space<vmem>>, %arg3: memref<1x32xf32, #tpu.memory_space<vmem>>, %arg4: memref<16x32xf32, #tpu.memory_space<vmem>>, %arg5: memref<2x4x32x8xf32, #tpu.memory_space<vmem>>, %arg6: memref<2x4x32x8xf32, #tpu.memory_space<vmem>>, %arg7: memref<2x4x32x8xf32, #tpu.memory_space<vmem>>, %arg8: memref<2x4x1x8xf32, #tpu.memory_space<vmem>>, %arg9: memref<2x4x1x8xf32, #tpu.memory_space<vmem>>, %arg10: memref<2x4x1x8xf32, #tpu.memory_space<vmem>>, %arg11: memref<2x4x8x32xf32, #tpu.memory_space<vmem>>, %arg12: memref<2x1x32xf32, #tpu.memory_space<vmem>>, %arg13: memref<2x1x32xf32, #tpu.memory_space<vmem>>, %arg14: memref<2x1x32xf32, #tpu.memory_space<vmem>>, %arg15: memref<2x32x32xf32, #tpu.memory_space<vmem>>, %arg16: memref<2x1x32xf32, #tpu.memory_space<vmem>>, %arg17: memref<2x32x32xf32, #tpu.memory_space<vmem>>, %arg18: memref<2x1x32xf32, #tpu.memory_space<vmem>>, %arg19: memref<2x1x32xf32, #tpu.memory_space<vmem>>, %arg20: memref<2x1x32xf32, #tpu.memory_space<vmem>>, %arg21: memref<2x16x32xf32, #tpu.memory_space<vmem>>) attributes {dimension_semantics = [#tpu.dimension_semantics<parallel>], iteration_bounds = array<i64: 1>, scalar_prefetch = 0 : i64, scratch_operands = 0 : i64, tpu.core_type = #tpu.core_type<tc>, window_params = [{transform_indices = @transform_0, window_bounds = array<i64: 2, 18, 32>}, {pipeline_mode = #tpu.pipeline_mode<synchronous>, transform_indices = @transform_1, window_bounds = array<i64: 96, 32>}, {pipeline_mode = #tpu.pipeline_mode<synchronous>, transform_indices = @transform_2, window_bounds = array<i64: 1, 32>}, {pipeline_mode = #tpu.pipeline_mode<synchronous>, transform_indices = @transform_3, window_bounds = array<i64: 16, 32>}, {pipeline_mode = #tpu.pipeline_mode<synchronous>, transform_indices = @transform_4, window_bounds = array<i64: 2, 4, 32, 8>}, {pipeline_mode = #tpu.pipeline_mode<synchronous>, transform_indices = @transform_5, window_bounds = array<i64: 2, 4, 32, 8>}, {pipeline_mode = #tpu.pipeline_mode<synchronous>, transform_indices = @transform_6, window_bounds = array<i64: 2, 4, 32, 8>}, {pipeline_mode = #tpu.pipeline_mode<synchronous>, transform_indices = @transform_7, window_bounds = array<i64: 2, 4, 1, 8>}, {pipeline_mode = #tpu.pipeline_mode<synchronous>, transform_indices = @transform_8, window_bounds = array<i64: 2, 4, 1, 8>}, {pipeline_mode = #tpu.pipeline_mode<synchronous>, transform_indices = @transform_9, window_bounds = array<i64: 2, 4, 1, 8>}, {pipeline_mode = #tpu.pipeline_mode<synchronous>, transform_indices = @transform_10, window_bounds = array<i64: 2, 4, 8, 32>}, {pipeline_mode = #tpu.pipeline_mode<synchronous>, transform_indices = @transform_11, window_bounds = array<i64: 2, 1, 32>}, {pipeline_mode = #tpu.pipeline_mode<synchronous>, transform_indices = @transform_12, window_bounds = array<i64: 2, 1, 32>}, {pipeline_mode = #tpu.pipeline_mode<synchronous>, transform_indices = @transform_13, window_bounds = array<i64: 2, 1, 32>}, {pipeline_mode = #tpu.pipeline_mode<synchronous>, transform_indices = @transform_14, window_bounds = array<i64: 2, 32, 32>}, {pipeline_mode = #tpu.pipeline_mode<synchronous>, transform_indices = @transform_15, window_bounds = array<i64: 2, 1, 32>}, {pipeline_mode = #tpu.pipeline_mode<synchronous>, transform_indices = @transform_16, window_bounds = array<i64: 2, 32, 32>}, {pipeline_mode = #tpu.pipeline_mode<synchronous>, transform_indices = @transform_17, window_bounds = array<i64: 2, 1, 32>}, {pipeline_mode = #tpu.pipeline_mode<synchronous>, transform_indices = @transform_18, window_bounds = array<i64: 2, 1, 32>}, {pipeline_mode = #tpu.pipeline_mode<synchronous>, transform_indices = @transform_19, window_bounds = array<i64: 2, 1, 32>}, {transform_indices = @transform_20, window_bounds = array<i64: 2, 16, 32>}]} {
    %c0 = arith.constant 0 : index
    %c0_0 = arith.constant 0 : index
    %0 = vector.load %arg3[%c0, %c0_0] : memref<1x32xf32, #tpu.memory_space<vmem>>, vector<1x32xf32>
    %c0_1 = arith.constant 0 : index
    %c0_2 = arith.constant 0 : index
    %1 = vector.load %arg4[%c0_1, %c0_2] : memref<16x32xf32, #tpu.memory_space<vmem>>, vector<16x32xf32>
    %2 = vector.broadcast %0 : vector<1x32xf32> to vector<16x32xf32>
    %3 = arith.addf %2, %1 : vector<16x32xf32>
    %c0_3 = arith.constant 0 : index
    %c0_4 = arith.constant 0 : index
    %c0_5 = arith.constant 0 : index
    %4 = vector.load %arg1[%c0_3, %c0_4, %c0_5] : memref<2x18x32xf32, #tpu.memory_space<vmem>>, vector<1x16x32xf32>
    %5 = vector.shape_cast %4 : vector<1x16x32xf32> to vector<16x32xf32>
    %c0_6 = arith.constant 0 : index
    %c0_7 = arith.constant 0 : index
    %6 = vector.load %arg2[%c0_6, %c0_7] : memref<96x32xf32, #tpu.memory_space<vmem>>, vector<32x32xf32>
    %cst = arith.constant dense<0.000000e+00> : vector<16x32xf32>
    %7 = tpu.matmul %5, %6, %cst {dimension_numbers = #tpu.dot_dimension_numbers<[1], [0], [0], [1], [0, 0, 1, 1], [], []>} : vector<16x32xf32>, vector<32x32xf32>, vector<16x32xf32> -> vector<16x32xf32>
    %8 = arith.addf %3, %7 : vector<16x32xf32>
    %c0_8 = arith.constant 0 : index
    %c1 = arith.constant 1 : index
    %c0_9 = arith.constant 0 : index
    %9 = vector.load %arg1[%c0_8, %c1, %c0_9] : memref<2x18x32xf32, #tpu.memory_space<vmem>>, vector<1x16x32xf32>
    %10 = vector.shape_cast %9 : vector<1x16x32xf32> to vector<16x32xf32>
    %c32 = arith.constant 32 : index
    %c0_10 = arith.constant 0 : index
    %11 = vector.load %arg2[%c32, %c0_10] : memref<96x32xf32, #tpu.memory_space<vmem>>, vector<32x32xf32>
    %cst_11 = arith.constant dense<0.000000e+00> : vector<16x32xf32>
    %12 = tpu.matmul %10, %11, %cst_11 {dimension_numbers = #tpu.dot_dimension_numbers<[1], [0], [0], [1], [0, 0, 1, 1], [], []>} : vector<16x32xf32>, vector<32x32xf32>, vector<16x32xf32> -> vector<16x32xf32>
    %13 = arith.addf %8, %12 : vector<16x32xf32>
    %c0_12 = arith.constant 0 : index
    %c2 = arith.constant 2 : index
    %c0_13 = arith.constant 0 : index
    %14 = vector.load %arg1[%c0_12, %c2, %c0_13] : memref<2x18x32xf32, #tpu.memory_space<vmem>>, vector<1x16x32xf32>
    %15 = vector.shape_cast %14 : vector<1x16x32xf32> to vector<16x32xf32>
    %c64 = arith.constant 64 : index
    %c0_14 = arith.constant 0 : index
    %16 = vector.load %arg2[%c64, %c0_14] : memref<96x32xf32, #tpu.memory_space<vmem>>, vector<32x32xf32>
    %cst_15 = arith.constant dense<0.000000e+00> : vector<16x32xf32>
    %17 = tpu.matmul %15, %16, %cst_15 {dimension_numbers = #tpu.dot_dimension_numbers<[1], [0], [0], [1], [0, 0, 1, 1], [], []>} : vector<16x32xf32>, vector<32x32xf32>, vector<16x32xf32> -> vector<16x32xf32>
    %18 = arith.addf %13, %17 : vector<16x32xf32>
    %c0_16 = arith.constant 0 : index
    %c0_17 = arith.constant 0 : index
    %c0_18 = arith.constant 0 : index
    %c0_19 = arith.constant 0 : index
    %19 = vector.load %arg5[%c0_16, %c0_17, %c0_18, %c0_19] : memref<2x4x32x8xf32, #tpu.memory_space<vmem>>, vector<1x1x32x8xf32>
    %20 = vector.shape_cast %19 : vector<1x1x32x8xf32> to vector<32x8xf32>
    %cst_20 = arith.constant dense<0.000000e+00> : vector<16x8xf32>
    %21 = tpu.matmul %18, %20, %cst_20 {dimension_numbers = #tpu.dot_dimension_numbers<[1], [0], [0], [1], [0, 0, 1, 1], [], []>} : vector<16x32xf32>, vector<32x8xf32>, vector<16x8xf32> -> vector<16x8xf32>
    %c0_21 = arith.constant 0 : index
    %c0_22 = arith.constant 0 : index
    %c0_23 = arith.constant 0 : index
    %c0_24 = arith.constant 0 : index
    %22 = vector.load %arg8[%c0_21, %c0_22, %c0_23, %c0_24] : memref<2x4x1x8xf32, #tpu.memory_space<vmem>>, vector<1x1x1x8xf32>
    %23 = vector.shape_cast %22 : vector<1x1x1x8xf32> to vector<1x8xf32>
    %24 = vector.broadcast %23 : vector<1x8xf32> to vector<16x8xf32>
    %25 = arith.addf %21, %24 : vector<16x8xf32>
    %c0_25 = arith.constant 0 : index
    %c0_26 = arith.constant 0 : index
    %c0_27 = arith.constant 0 : index
    %c0_28 = arith.constant 0 : index
    %26 = vector.load %arg6[%c0_25, %c0_26, %c0_27, %c0_28] : memref<2x4x32x8xf32, #tpu.memory_space<vmem>>, vector<1x1x32x8xf32>
    %27 = vector.shape_cast %26 : vector<1x1x32x8xf32> to vector<32x8xf32>
    %cst_29 = arith.constant dense<0.000000e+00> : vector<16x8xf32>
    %28 = tpu.matmul %18, %27, %cst_29 {dimension_numbers = #tpu.dot_dimension_numbers<[1], [0], [0], [1], [0, 0, 1, 1], [], []>} : vector<16x32xf32>, vector<32x8xf32>, vector<16x8xf32> -> vector<16x8xf32>
    %c0_30 = arith.constant 0 : index
    %c0_31 = arith.constant 0 : index
    %c0_32 = arith.constant 0 : index
    %c0_33 = arith.constant 0 : index
    %29 = vector.load %arg9[%c0_30, %c0_31, %c0_32, %c0_33] : memref<2x4x1x8xf32, #tpu.memory_space<vmem>>, vector<1x1x1x8xf32>
    %30 = vector.shape_cast %29 : vector<1x1x1x8xf32> to vector<1x8xf32>
    %31 = vector.broadcast %30 : vector<1x8xf32> to vector<16x8xf32>
    %32 = arith.addf %28, %31 : vector<16x8xf32>
    %c0_34 = arith.constant 0 : index
    %c0_35 = arith.constant 0 : index
    %c0_36 = arith.constant 0 : index
    %c0_37 = arith.constant 0 : index
    %33 = vector.load %arg7[%c0_34, %c0_35, %c0_36, %c0_37] : memref<2x4x32x8xf32, #tpu.memory_space<vmem>>, vector<1x1x32x8xf32>
    %34 = vector.shape_cast %33 : vector<1x1x32x8xf32> to vector<32x8xf32>
    %cst_38 = arith.constant dense<0.000000e+00> : vector<16x8xf32>
    %35 = tpu.matmul %18, %34, %cst_38 {dimension_numbers = #tpu.dot_dimension_numbers<[1], [0], [0], [1], [0, 0, 1, 1], [], []>} : vector<16x32xf32>, vector<32x8xf32>, vector<16x8xf32> -> vector<16x8xf32>
    %c0_39 = arith.constant 0 : index
    %c0_40 = arith.constant 0 : index
    %c0_41 = arith.constant 0 : index
    %c0_42 = arith.constant 0 : index
    %36 = vector.load %arg10[%c0_39, %c0_40, %c0_41, %c0_42] : memref<2x4x1x8xf32, #tpu.memory_space<vmem>>, vector<1x1x1x8xf32>
    %37 = vector.shape_cast %36 : vector<1x1x1x8xf32> to vector<1x8xf32>
    %38 = vector.broadcast %37 : vector<1x8xf32> to vector<16x8xf32>
    %39 = arith.addf %35, %38 : vector<16x8xf32>
    %cst_43 = arith.constant 0.353553385 : f32
    %40 = vector.broadcast %cst_43 : f32 to vector<16x8xf32>
    %41 = arith.mulf %25, %40 : vector<16x8xf32>
    %cst_44 = arith.constant dense<0.000000e+00> : vector<16x16xf32>
    %42 = tpu.matmul %41, %32, %cst_44 {dimension_numbers = #tpu.dot_dimension_numbers<[1], [1], [0], [0], [0, 0, 1, 0], [], []>} : vector<16x8xf32>, vector<16x8xf32>, vector<16x16xf32> -> vector<16x16xf32>
    %cst_45 = arith.constant dense<0xFF800000> : vector<16xf32>
    %43 = vector.multi_reduction <maximumf>, %42, %cst_45 [1] : vector<16x16xf32> to vector<16xf32>
    %44 = vector.shape_cast %43 : vector<16xf32> to vector<16x1xf32>
    %45 = vector.broadcast %44 : vector<16x1xf32> to vector<16x16xf32>
    %46 = arith.subf %42, %45 : vector<16x16xf32>
    %47 = math.exp %46 : vector<16x16xf32>
    %cst_46 = arith.constant dense<0.000000e+00> : vector<16xf32>
    %48 = vector.multi_reduction <add>, %47, %cst_46 [1] : vector<16x16xf32> to vector<16xf32>
    %49 = vector.shape_cast %48 : vector<16xf32> to vector<16x1xf32>
    %50 = tpu.reciprocal %49 : vector<16x1xf32> -> vector<16x1xf32>
    %51 = vector.broadcast %50 : vector<16x1xf32> to vector<16x16xf32>
    %52 = arith.mulf %47, %51 : vector<16x16xf32>
    %cst_47 = arith.constant dense<0.000000e+00> : vector<16x8xf32>
    %53 = tpu.matmul %52, %39, %cst_47 {dimension_numbers = #tpu.dot_dimension_numbers<[1], [0], [0], [1], [0, 0, 1, 1], [], []>} : vector<16x16xf32>, vector<16x8xf32>, vector<16x8xf32> -> vector<16x8xf32>
    %c0_48 = arith.constant 0 : index
    %c0_49 = arith.constant 0 : index
    %c0_50 = arith.constant 0 : index
    %c0_51 = arith.constant 0 : index
    %54 = vector.load %arg11[%c0_48, %c0_49, %c0_50, %c0_51] : memref<2x4x8x32xf32, #tpu.memory_space<vmem>>, vector<1x1x8x32xf32>
    %55 = vector.shape_cast %54 : vector<1x1x8x32xf32> to vector<8x32xf32>
    %cst_52 = arith.constant dense<0.000000e+00> : vector<16x32xf32>
    %56 = tpu.matmul %53, %55, %cst_52 {dimension_numbers = #tpu.dot_dimension_numbers<[1], [0], [0], [1], [0, 0, 1, 1], [], []>} : vector<16x8xf32>, vector<8x32xf32>, vector<16x32xf32> -> vector<16x32xf32>
    %c0_53 = arith.constant 0 : index
    %c1_54 = arith.constant 1 : index
    %c0_55 = arith.constant 0 : index
    %c0_56 = arith.constant 0 : index
    %57 = vector.load %arg5[%c0_53, %c1_54, %c0_55, %c0_56] : memref<2x4x32x8xf32, #tpu.memory_space<vmem>>, vector<1x1x32x8xf32>
    %58 = vector.shape_cast %57 : vector<1x1x32x8xf32> to vector<32x8xf32>
    %cst_57 = arith.constant dense<0.000000e+00> : vector<16x8xf32>
    %59 = tpu.matmul %18, %58, %cst_57 {dimension_numbers = #tpu.dot_dimension_numbers<[1], [0], [0], [1], [0, 0, 1, 1], [], []>} : vector<16x32xf32>, vector<32x8xf32>, vector<16x8xf32> -> vector<16x8xf32>
    %c0_58 = arith.constant 0 : index
    %c1_59 = arith.constant 1 : index
    %c0_60 = arith.constant 0 : index
    %c0_61 = arith.constant 0 : index
    %60 = vector.load %arg8[%c0_58, %c1_59, %c0_60, %c0_61] : memref<2x4x1x8xf32, #tpu.memory_space<vmem>>, vector<1x1x1x8xf32>
    %61 = vector.shape_cast %60 : vector<1x1x1x8xf32> to vector<1x8xf32>
    %62 = vector.broadcast %61 : vector<1x8xf32> to vector<16x8xf32>
    %63 = arith.addf %59, %62 : vector<16x8xf32>
    %c0_62 = arith.constant 0 : index
    %c1_63 = arith.constant 1 : index
    %c0_64 = arith.constant 0 : index
    %c0_65 = arith.constant 0 : index
    %64 = vector.load %arg6[%c0_62, %c1_63, %c0_64, %c0_65] : memref<2x4x32x8xf32, #tpu.memory_space<vmem>>, vector<1x1x32x8xf32>
    %65 = vector.shape_cast %64 : vector<1x1x32x8xf32> to vector<32x8xf32>
    %cst_66 = arith.constant dense<0.000000e+00> : vector<16x8xf32>
    %66 = tpu.matmul %18, %65, %cst_66 {dimension_numbers = #tpu.dot_dimension_numbers<[1], [0], [0], [1], [0, 0, 1, 1], [], []>} : vector<16x32xf32>, vector<32x8xf32>, vector<16x8xf32> -> vector<16x8xf32>
    %c0_67 = arith.constant 0 : index
    %c1_68 = arith.constant 1 : index
    %c0_69 = arith.constant 0 : index
    %c0_70 = arith.constant 0 : index
    %67 = vector.load %arg9[%c0_67, %c1_68, %c0_69, %c0_70] : memref<2x4x1x8xf32, #tpu.memory_space<vmem>>, vector<1x1x1x8xf32>
    %68 = vector.shape_cast %67 : vector<1x1x1x8xf32> to vector<1x8xf32>
    %69 = vector.broadcast %68 : vector<1x8xf32> to vector<16x8xf32>
    %70 = arith.addf %66, %69 : vector<16x8xf32>
    %c0_71 = arith.constant 0 : index
    %c1_72 = arith.constant 1 : index
    %c0_73 = arith.constant 0 : index
    %c0_74 = arith.constant 0 : index
    %71 = vector.load %arg7[%c0_71, %c1_72, %c0_73, %c0_74] : memref<2x4x32x8xf32, #tpu.memory_space<vmem>>, vector<1x1x32x8xf32>
    %72 = vector.shape_cast %71 : vector<1x1x32x8xf32> to vector<32x8xf32>
    %cst_75 = arith.constant dense<0.000000e+00> : vector<16x8xf32>
    %73 = tpu.matmul %18, %72, %cst_75 {dimension_numbers = #tpu.dot_dimension_numbers<[1], [0], [0], [1], [0, 0, 1, 1], [], []>} : vector<16x32xf32>, vector<32x8xf32>, vector<16x8xf32> -> vector<16x8xf32>
    %c0_76 = arith.constant 0 : index
    %c1_77 = arith.constant 1 : index
    %c0_78 = arith.constant 0 : index
    %c0_79 = arith.constant 0 : index
    %74 = vector.load %arg10[%c0_76, %c1_77, %c0_78, %c0_79] : memref<2x4x1x8xf32, #tpu.memory_space<vmem>>, vector<1x1x1x8xf32>
    %75 = vector.shape_cast %74 : vector<1x1x1x8xf32> to vector<1x8xf32>
    %76 = vector.broadcast %75 : vector<1x8xf32> to vector<16x8xf32>
    %77 = arith.addf %73, %76 : vector<16x8xf32>
    %cst_80 = arith.constant 0.353553385 : f32
    %78 = vector.broadcast %cst_80 : f32 to vector<16x8xf32>
    %79 = arith.mulf %63, %78 : vector<16x8xf32>
    %cst_81 = arith.constant dense<0.000000e+00> : vector<16x16xf32>
    %80 = tpu.matmul %79, %70, %cst_81 {dimension_numbers = #tpu.dot_dimension_numbers<[1], [1], [0], [0], [0, 0, 1, 0], [], []>} : vector<16x8xf32>, vector<16x8xf32>, vector<16x16xf32> -> vector<16x16xf32>
    %cst_82 = arith.constant dense<0xFF800000> : vector<16xf32>
    %81 = vector.multi_reduction <maximumf>, %80, %cst_82 [1] : vector<16x16xf32> to vector<16xf32>
    %82 = vector.shape_cast %81 : vector<16xf32> to vector<16x1xf32>
    %83 = vector.broadcast %82 : vector<16x1xf32> to vector<16x16xf32>
    %84 = arith.subf %80, %83 : vector<16x16xf32>
    %85 = math.exp %84 : vector<16x16xf32>
    %cst_83 = arith.constant dense<0.000000e+00> : vector<16xf32>
    %86 = vector.multi_reduction <add>, %85, %cst_83 [1] : vector<16x16xf32> to vector<16xf32>
    %87 = vector.shape_cast %86 : vector<16xf32> to vector<16x1xf32>
    %88 = tpu.reciprocal %87 : vector<16x1xf32> -> vector<16x1xf32>
    %89 = vector.broadcast %88 : vector<16x1xf32> to vector<16x16xf32>
    %90 = arith.mulf %85, %89 : vector<16x16xf32>
    %cst_84 = arith.constant dense<0.000000e+00> : vector<16x8xf32>
    %91 = tpu.matmul %90, %77, %cst_84 {dimension_numbers = #tpu.dot_dimension_numbers<[1], [0], [0], [1], [0, 0, 1, 1], [], []>} : vector<16x16xf32>, vector<16x8xf32>, vector<16x8xf32> -> vector<16x8xf32>
    %c0_85 = arith.constant 0 : index
    %c1_86 = arith.constant 1 : index
    %c0_87 = arith.constant 0 : index
    %c0_88 = arith.constant 0 : index
    %92 = vector.load %arg11[%c0_85, %c1_86, %c0_87, %c0_88] : memref<2x4x8x32xf32, #tpu.memory_space<vmem>>, vector<1x1x8x32xf32>
    %93 = vector.shape_cast %92 : vector<1x1x8x32xf32> to vector<8x32xf32>
    %cst_89 = arith.constant dense<0.000000e+00> : vector<16x32xf32>
    %94 = tpu.matmul %91, %93, %cst_89 {dimension_numbers = #tpu.dot_dimension_numbers<[1], [0], [0], [1], [0, 0, 1, 1], [], []>} : vector<16x8xf32>, vector<8x32xf32>, vector<16x32xf32> -> vector<16x32xf32>
    %95 = arith.addf %56, %94 : vector<16x32xf32>
    %c0_90 = arith.constant 0 : index
    %c2_91 = arith.constant 2 : index
    %c0_92 = arith.constant 0 : index
    %c0_93 = arith.constant 0 : index
    %96 = vector.load %arg5[%c0_90, %c2_91, %c0_92, %c0_93] : memref<2x4x32x8xf32, #tpu.memory_space<vmem>>, vector<1x1x32x8xf32>
    %97 = vector.shape_cast %96 : vector<1x1x32x8xf32> to vector<32x8xf32>
    %cst_94 = arith.constant dense<0.000000e+00> : vector<16x8xf32>
    %98 = tpu.matmul %18, %97, %cst_94 {dimension_numbers = #tpu.dot_dimension_numbers<[1], [0], [0], [1], [0, 0, 1, 1], [], []>} : vector<16x32xf32>, vector<32x8xf32>, vector<16x8xf32> -> vector<16x8xf32>
    %c0_95 = arith.constant 0 : index
    %c2_96 = arith.constant 2 : index
    %c0_97 = arith.constant 0 : index
    %c0_98 = arith.constant 0 : index
    %99 = vector.load %arg8[%c0_95, %c2_96, %c0_97, %c0_98] : memref<2x4x1x8xf32, #tpu.memory_space<vmem>>, vector<1x1x1x8xf32>
    %100 = vector.shape_cast %99 : vector<1x1x1x8xf32> to vector<1x8xf32>
    %101 = vector.broadcast %100 : vector<1x8xf32> to vector<16x8xf32>
    %102 = arith.addf %98, %101 : vector<16x8xf32>
    %c0_99 = arith.constant 0 : index
    %c2_100 = arith.constant 2 : index
    %c0_101 = arith.constant 0 : index
    %c0_102 = arith.constant 0 : index
    %103 = vector.load %arg6[%c0_99, %c2_100, %c0_101, %c0_102] : memref<2x4x32x8xf32, #tpu.memory_space<vmem>>, vector<1x1x32x8xf32>
    %104 = vector.shape_cast %103 : vector<1x1x32x8xf32> to vector<32x8xf32>
    %cst_103 = arith.constant dense<0.000000e+00> : vector<16x8xf32>
    %105 = tpu.matmul %18, %104, %cst_103 {dimension_numbers = #tpu.dot_dimension_numbers<[1], [0], [0], [1], [0, 0, 1, 1], [], []>} : vector<16x32xf32>, vector<32x8xf32>, vector<16x8xf32> -> vector<16x8xf32>
    %c0_104 = arith.constant 0 : index
    %c2_105 = arith.constant 2 : index
    %c0_106 = arith.constant 0 : index
    %c0_107 = arith.constant 0 : index
    %106 = vector.load %arg9[%c0_104, %c2_105, %c0_106, %c0_107] : memref<2x4x1x8xf32, #tpu.memory_space<vmem>>, vector<1x1x1x8xf32>
    %107 = vector.shape_cast %106 : vector<1x1x1x8xf32> to vector<1x8xf32>
    %108 = vector.broadcast %107 : vector<1x8xf32> to vector<16x8xf32>
    %109 = arith.addf %105, %108 : vector<16x8xf32>
    %c0_108 = arith.constant 0 : index
    %c2_109 = arith.constant 2 : index
    %c0_110 = arith.constant 0 : index
    %c0_111 = arith.constant 0 : index
    %110 = vector.load %arg7[%c0_108, %c2_109, %c0_110, %c0_111] : memref<2x4x32x8xf32, #tpu.memory_space<vmem>>, vector<1x1x32x8xf32>
    %111 = vector.shape_cast %110 : vector<1x1x32x8xf32> to vector<32x8xf32>
    %cst_112 = arith.constant dense<0.000000e+00> : vector<16x8xf32>
    %112 = tpu.matmul %18, %111, %cst_112 {dimension_numbers = #tpu.dot_dimension_numbers<[1], [0], [0], [1], [0, 0, 1, 1], [], []>} : vector<16x32xf32>, vector<32x8xf32>, vector<16x8xf32> -> vector<16x8xf32>
    %c0_113 = arith.constant 0 : index
    %c2_114 = arith.constant 2 : index
    %c0_115 = arith.constant 0 : index
    %c0_116 = arith.constant 0 : index
    %113 = vector.load %arg10[%c0_113, %c2_114, %c0_115, %c0_116] : memref<2x4x1x8xf32, #tpu.memory_space<vmem>>, vector<1x1x1x8xf32>
    %114 = vector.shape_cast %113 : vector<1x1x1x8xf32> to vector<1x8xf32>
    %115 = vector.broadcast %114 : vector<1x8xf32> to vector<16x8xf32>
    %116 = arith.addf %112, %115 : vector<16x8xf32>
    %cst_117 = arith.constant 0.353553385 : f32
    %117 = vector.broadcast %cst_117 : f32 to vector<16x8xf32>
    %118 = arith.mulf %102, %117 : vector<16x8xf32>
    %cst_118 = arith.constant dense<0.000000e+00> : vector<16x16xf32>
    %119 = tpu.matmul %118, %109, %cst_118 {dimension_numbers = #tpu.dot_dimension_numbers<[1], [1], [0], [0], [0, 0, 1, 0], [], []>} : vector<16x8xf32>, vector<16x8xf32>, vector<16x16xf32> -> vector<16x16xf32>
    %cst_119 = arith.constant dense<0xFF800000> : vector<16xf32>
    %120 = vector.multi_reduction <maximumf>, %119, %cst_119 [1] : vector<16x16xf32> to vector<16xf32>
    %121 = vector.shape_cast %120 : vector<16xf32> to vector<16x1xf32>
    %122 = vector.broadcast %121 : vector<16x1xf32> to vector<16x16xf32>
    %123 = arith.subf %119, %122 : vector<16x16xf32>
    %124 = math.exp %123 : vector<16x16xf32>
    %cst_120 = arith.constant dense<0.000000e+00> : vector<16xf32>
    %125 = vector.multi_reduction <add>, %124, %cst_120 [1] : vector<16x16xf32> to vector<16xf32>
    %126 = vector.shape_cast %125 : vector<16xf32> to vector<16x1xf32>
    %127 = tpu.reciprocal %126 : vector<16x1xf32> -> vector<16x1xf32>
    %128 = vector.broadcast %127 : vector<16x1xf32> to vector<16x16xf32>
    %129 = arith.mulf %124, %128 : vector<16x16xf32>
    %cst_121 = arith.constant dense<0.000000e+00> : vector<16x8xf32>
    %130 = tpu.matmul %129, %116, %cst_121 {dimension_numbers = #tpu.dot_dimension_numbers<[1], [0], [0], [1], [0, 0, 1, 1], [], []>} : vector<16x16xf32>, vector<16x8xf32>, vector<16x8xf32> -> vector<16x8xf32>
    %c0_122 = arith.constant 0 : index
    %c2_123 = arith.constant 2 : index
    %c0_124 = arith.constant 0 : index
    %c0_125 = arith.constant 0 : index
    %131 = vector.load %arg11[%c0_122, %c2_123, %c0_124, %c0_125] : memref<2x4x8x32xf32, #tpu.memory_space<vmem>>, vector<1x1x8x32xf32>
    %132 = vector.shape_cast %131 : vector<1x1x8x32xf32> to vector<8x32xf32>
    %cst_126 = arith.constant dense<0.000000e+00> : vector<16x32xf32>
    %133 = tpu.matmul %130, %132, %cst_126 {dimension_numbers = #tpu.dot_dimension_numbers<[1], [0], [0], [1], [0, 0, 1, 1], [], []>} : vector<16x8xf32>, vector<8x32xf32>, vector<16x32xf32> -> vector<16x32xf32>
    %134 = arith.addf %95, %133 : vector<16x32xf32>
    %c0_127 = arith.constant 0 : index
    %c3 = arith.constant 3 : index
    %c0_128 = arith.constant 0 : index
    %c0_129 = arith.constant 0 : index
    %135 = vector.load %arg5[%c0_127, %c3, %c0_128, %c0_129] : memref<2x4x32x8xf32, #tpu.memory_space<vmem>>, vector<1x1x32x8xf32>
    %136 = vector.shape_cast %135 : vector<1x1x32x8xf32> to vector<32x8xf32>
    %cst_130 = arith.constant dense<0.000000e+00> : vector<16x8xf32>
    %137 = tpu.matmul %18, %136, %cst_130 {dimension_numbers = #tpu.dot_dimension_numbers<[1], [0], [0], [1], [0, 0, 1, 1], [], []>} : vector<16x32xf32>, vector<32x8xf32>, vector<16x8xf32> -> vector<16x8xf32>
    %c0_131 = arith.constant 0 : index
    %c3_132 = arith.constant 3 : index
    %c0_133 = arith.constant 0 : index
    %c0_134 = arith.constant 0 : index
    %138 = vector.load %arg8[%c0_131, %c3_132, %c0_133, %c0_134] : memref<2x4x1x8xf32, #tpu.memory_space<vmem>>, vector<1x1x1x8xf32>
    %139 = vector.shape_cast %138 : vector<1x1x1x8xf32> to vector<1x8xf32>
    %140 = vector.broadcast %139 : vector<1x8xf32> to vector<16x8xf32>
    %141 = arith.addf %137, %140 : vector<16x8xf32>
    %c0_135 = arith.constant 0 : index
    %c3_136 = arith.constant 3 : index
    %c0_137 = arith.constant 0 : index
    %c0_138 = arith.constant 0 : index
    %142 = vector.load %arg6[%c0_135, %c3_136, %c0_137, %c0_138] : memref<2x4x32x8xf32, #tpu.memory_space<vmem>>, vector<1x1x32x8xf32>
    %143 = vector.shape_cast %142 : vector<1x1x32x8xf32> to vector<32x8xf32>
    %cst_139 = arith.constant dense<0.000000e+00> : vector<16x8xf32>
    %144 = tpu.matmul %18, %143, %cst_139 {dimension_numbers = #tpu.dot_dimension_numbers<[1], [0], [0], [1], [0, 0, 1, 1], [], []>} : vector<16x32xf32>, vector<32x8xf32>, vector<16x8xf32> -> vector<16x8xf32>
    %c0_140 = arith.constant 0 : index
    %c3_141 = arith.constant 3 : index
    %c0_142 = arith.constant 0 : index
    %c0_143 = arith.constant 0 : index
    %145 = vector.load %arg9[%c0_140, %c3_141, %c0_142, %c0_143] : memref<2x4x1x8xf32, #tpu.memory_space<vmem>>, vector<1x1x1x8xf32>
    %146 = vector.shape_cast %145 : vector<1x1x1x8xf32> to vector<1x8xf32>
    %147 = vector.broadcast %146 : vector<1x8xf32> to vector<16x8xf32>
    %148 = arith.addf %144, %147 : vector<16x8xf32>
    %c0_144 = arith.constant 0 : index
    %c3_145 = arith.constant 3 : index
    %c0_146 = arith.constant 0 : index
    %c0_147 = arith.constant 0 : index
    %149 = vector.load %arg7[%c0_144, %c3_145, %c0_146, %c0_147] : memref<2x4x32x8xf32, #tpu.memory_space<vmem>>, vector<1x1x32x8xf32>
    %150 = vector.shape_cast %149 : vector<1x1x32x8xf32> to vector<32x8xf32>
    %cst_148 = arith.constant dense<0.000000e+00> : vector<16x8xf32>
    %151 = tpu.matmul %18, %150, %cst_148 {dimension_numbers = #tpu.dot_dimension_numbers<[1], [0], [0], [1], [0, 0, 1, 1], [], []>} : vector<16x32xf32>, vector<32x8xf32>, vector<16x8xf32> -> vector<16x8xf32>
    %c0_149 = arith.constant 0 : index
    %c3_150 = arith.constant 3 : index
    %c0_151 = arith.constant 0 : index
    %c0_152 = arith.constant 0 : index
    %152 = vector.load %arg10[%c0_149, %c3_150, %c0_151, %c0_152] : memref<2x4x1x8xf32, #tpu.memory_space<vmem>>, vector<1x1x1x8xf32>
    %153 = vector.shape_cast %152 : vector<1x1x1x8xf32> to vector<1x8xf32>
    %154 = vector.broadcast %153 : vector<1x8xf32> to vector<16x8xf32>
    %155 = arith.addf %151, %154 : vector<16x8xf32>
    %cst_153 = arith.constant 0.353553385 : f32
    %156 = vector.broadcast %cst_153 : f32 to vector<16x8xf32>
    %157 = arith.mulf %141, %156 : vector<16x8xf32>
    %cst_154 = arith.constant dense<0.000000e+00> : vector<16x16xf32>
    %158 = tpu.matmul %157, %148, %cst_154 {dimension_numbers = #tpu.dot_dimension_numbers<[1], [1], [0], [0], [0, 0, 1, 0], [], []>} : vector<16x8xf32>, vector<16x8xf32>, vector<16x16xf32> -> vector<16x16xf32>
    %cst_155 = arith.constant dense<0xFF800000> : vector<16xf32>
    %159 = vector.multi_reduction <maximumf>, %158, %cst_155 [1] : vector<16x16xf32> to vector<16xf32>
    %160 = vector.shape_cast %159 : vector<16xf32> to vector<16x1xf32>
    %161 = vector.broadcast %160 : vector<16x1xf32> to vector<16x16xf32>
    %162 = arith.subf %158, %161 : vector<16x16xf32>
    %163 = math.exp %162 : vector<16x16xf32>
    %cst_156 = arith.constant dense<0.000000e+00> : vector<16xf32>
    %164 = vector.multi_reduction <add>, %163, %cst_156 [1] : vector<16x16xf32> to vector<16xf32>
    %165 = vector.shape_cast %164 : vector<16xf32> to vector<16x1xf32>
    %166 = tpu.reciprocal %165 : vector<16x1xf32> -> vector<16x1xf32>
    %167 = vector.broadcast %166 : vector<16x1xf32> to vector<16x16xf32>
    %168 = arith.mulf %163, %167 : vector<16x16xf32>
    %cst_157 = arith.constant dense<0.000000e+00> : vector<16x8xf32>
    %169 = tpu.matmul %168, %155, %cst_157 {dimension_numbers = #tpu.dot_dimension_numbers<[1], [0], [0], [1], [0, 0, 1, 1], [], []>} : vector<16x16xf32>, vector<16x8xf32>, vector<16x8xf32> -> vector<16x8xf32>
    %c0_158 = arith.constant 0 : index
    %c3_159 = arith.constant 3 : index
    %c0_160 = arith.constant 0 : index
    %c0_161 = arith.constant 0 : index
    %170 = vector.load %arg11[%c0_158, %c3_159, %c0_160, %c0_161] : memref<2x4x8x32xf32, #tpu.memory_space<vmem>>, vector<1x1x8x32xf32>
    %171 = vector.shape_cast %170 : vector<1x1x8x32xf32> to vector<8x32xf32>
    %cst_162 = arith.constant dense<0.000000e+00> : vector<16x32xf32>
    %172 = tpu.matmul %169, %171, %cst_162 {dimension_numbers = #tpu.dot_dimension_numbers<[1], [0], [0], [1], [0, 0, 1, 1], [], []>} : vector<16x8xf32>, vector<8x32xf32>, vector<16x32xf32> -> vector<16x32xf32>
    %173 = arith.addf %134, %172 : vector<16x32xf32>
    %c0_163 = arith.constant 0 : index
    %c0_164 = arith.constant 0 : index
    %c0_165 = arith.constant 0 : index
    %174 = vector.load %arg12[%c0_163, %c0_164, %c0_165] : memref<2x1x32xf32, #tpu.memory_space<vmem>>, vector<1x1x32xf32>
    %175 = vector.shape_cast %174 : vector<1x1x32xf32> to vector<1x32xf32>
    %176 = vector.broadcast %175 : vector<1x32xf32> to vector<16x32xf32>
    %177 = arith.addf %173, %176 : vector<16x32xf32>
    %178 = arith.addf %18, %177 : vector<16x32xf32>
    %cst_166 = arith.constant dense<0.000000e+00> : vector<16xf32>
    %179 = vector.multi_reduction <add>, %178, %cst_166 [1] : vector<16x32xf32> to vector<16xf32>
    %180 = vector.shape_cast %179 : vector<16xf32> to vector<16x1xf32>
    %cst_167 = arith.constant 3.200000e+01 : f32
    %181 = vector.broadcast %cst_167 : f32 to vector<16x1xf32>
    %182 = arith.divf %180, %181 : vector<16x1xf32>
    %183 = vector.broadcast %182 : vector<16x1xf32> to vector<16x32xf32>
    %184 = arith.subf %178, %183 : vector<16x32xf32>
    %185 = arith.mulf %184, %184 : vector<16x32xf32>
    %cst_168 = arith.constant dense<0.000000e+00> : vector<16xf32>
    %186 = vector.multi_reduction <add>, %185, %cst_168 [1] : vector<16x32xf32> to vector<16xf32>
    %187 = vector.shape_cast %186 : vector<16xf32> to vector<16x1xf32>
    %cst_169 = arith.constant 3.200000e+01 : f32
    %188 = vector.broadcast %cst_169 : f32 to vector<16x1xf32>
    %189 = arith.divf %187, %188 : vector<16x1xf32>
    %190 = vector.broadcast %182 : vector<16x1xf32> to vector<16x32xf32>
    %191 = arith.subf %178, %190 : vector<16x32xf32>
    %cst_170 = arith.constant 9.99999974E-6 : f32
    %192 = vector.broadcast %cst_170 : f32 to vector<16x1xf32>
    %193 = arith.addf %189, %192 : vector<16x1xf32>
    %194 = math.rsqrt %193 : vector<16x1xf32>
    %195 = vector.broadcast %194 : vector<16x1xf32> to vector<16x32xf32>
    %196 = arith.mulf %191, %195 : vector<16x32xf32>
    %c0_171 = arith.constant 0 : index
    %c0_172 = arith.constant 0 : index
    %c0_173 = arith.constant 0 : index
    %197 = vector.load %arg13[%c0_171, %c0_172, %c0_173] : memref<2x1x32xf32, #tpu.memory_space<vmem>>, vector<1x1x32xf32>
    %198 = vector.shape_cast %197 : vector<1x1x32xf32> to vector<1x32xf32>
    %199 = vector.broadcast %198 : vector<1x32xf32> to vector<16x32xf32>
    %200 = arith.mulf %196, %199 : vector<16x32xf32>
    %c0_174 = arith.constant 0 : index
    %c0_175 = arith.constant 0 : index
    %c0_176 = arith.constant 0 : index
    %201 = vector.load %arg14[%c0_174, %c0_175, %c0_176] : memref<2x1x32xf32, #tpu.memory_space<vmem>>, vector<1x1x32xf32>
    %202 = vector.shape_cast %201 : vector<1x1x32xf32> to vector<1x32xf32>
    %203 = vector.broadcast %202 : vector<1x32xf32> to vector<16x32xf32>
    %204 = arith.addf %200, %203 : vector<16x32xf32>
    %c0_177 = arith.constant 0 : index
    %c0_178 = arith.constant 0 : index
    %c0_179 = arith.constant 0 : index
    %205 = vector.load %arg15[%c0_177, %c0_178, %c0_179] : memref<2x32x32xf32, #tpu.memory_space<vmem>>, vector<1x32x32xf32>
    %206 = vector.shape_cast %205 : vector<1x32x32xf32> to vector<32x32xf32>
    %cst_180 = arith.constant dense<0.000000e+00> : vector<16x32xf32>
    %207 = tpu.matmul %204, %206, %cst_180 {dimension_numbers = #tpu.dot_dimension_numbers<[1], [0], [0], [1], [0, 0, 1, 1], [], []>} : vector<16x32xf32>, vector<32x32xf32>, vector<16x32xf32> -> vector<16x32xf32>
    %c0_181 = arith.constant 0 : index
    %c0_182 = arith.constant 0 : index
    %c0_183 = arith.constant 0 : index
    %208 = vector.load %arg16[%c0_181, %c0_182, %c0_183] : memref<2x1x32xf32, #tpu.memory_space<vmem>>, vector<1x1x32xf32>
    %209 = vector.shape_cast %208 : vector<1x1x32xf32> to vector<1x32xf32>
    %210 = vector.broadcast %209 : vector<1x32xf32> to vector<16x32xf32>
    %211 = arith.addf %207, %210 : vector<16x32xf32>
    %cst_184 = arith.constant 0.000000e+00 : f32
    %212 = vector.broadcast %cst_184 : f32 to vector<16x32xf32>
    %213 = arith.maximumf %211, %212 : vector<16x32xf32>
    %c0_185 = arith.constant 0 : index
    %c0_186 = arith.constant 0 : index
    %c0_187 = arith.constant 0 : index
    %214 = vector.load %arg17[%c0_185, %c0_186, %c0_187] : memref<2x32x32xf32, #tpu.memory_space<vmem>>, vector<1x32x32xf32>
    %215 = vector.shape_cast %214 : vector<1x32x32xf32> to vector<32x32xf32>
    %cst_188 = arith.constant dense<0.000000e+00> : vector<16x32xf32>
    %216 = tpu.matmul %213, %215, %cst_188 {dimension_numbers = #tpu.dot_dimension_numbers<[1], [0], [0], [1], [0, 0, 1, 1], [], []>} : vector<16x32xf32>, vector<32x32xf32>, vector<16x32xf32> -> vector<16x32xf32>
    %c0_189 = arith.constant 0 : index
    %c0_190 = arith.constant 0 : index
    %c0_191 = arith.constant 0 : index
    %217 = vector.load %arg18[%c0_189, %c0_190, %c0_191] : memref<2x1x32xf32, #tpu.memory_space<vmem>>, vector<1x1x32xf32>
    %218 = vector.shape_cast %217 : vector<1x1x32xf32> to vector<1x32xf32>
    %219 = vector.broadcast %218 : vector<1x32xf32> to vector<16x32xf32>
    %220 = arith.addf %216, %219 : vector<16x32xf32>
    %221 = arith.addf %204, %220 : vector<16x32xf32>
    %cst_192 = arith.constant dense<0.000000e+00> : vector<16xf32>
    %222 = vector.multi_reduction <add>, %221, %cst_192 [1] : vector<16x32xf32> to vector<16xf32>
    %223 = vector.shape_cast %222 : vector<16xf32> to vector<16x1xf32>
    %cst_193 = arith.constant 3.200000e+01 : f32
    %224 = vector.broadcast %cst_193 : f32 to vector<16x1xf32>
    %225 = arith.divf %223, %224 : vector<16x1xf32>
    %226 = vector.broadcast %225 : vector<16x1xf32> to vector<16x32xf32>
    %227 = arith.subf %221, %226 : vector<16x32xf32>
    %228 = arith.mulf %227, %227 : vector<16x32xf32>
    %cst_194 = arith.constant dense<0.000000e+00> : vector<16xf32>
    %229 = vector.multi_reduction <add>, %228, %cst_194 [1] : vector<16x32xf32> to vector<16xf32>
    %230 = vector.shape_cast %229 : vector<16xf32> to vector<16x1xf32>
    %cst_195 = arith.constant 3.200000e+01 : f32
    %231 = vector.broadcast %cst_195 : f32 to vector<16x1xf32>
    %232 = arith.divf %230, %231 : vector<16x1xf32>
    %233 = vector.broadcast %225 : vector<16x1xf32> to vector<16x32xf32>
    %234 = arith.subf %221, %233 : vector<16x32xf32>
    %cst_196 = arith.constant 9.99999974E-6 : f32
    %235 = vector.broadcast %cst_196 : f32 to vector<16x1xf32>
    %236 = arith.addf %232, %235 : vector<16x1xf32>
    %237 = math.rsqrt %236 : vector<16x1xf32>
    %238 = vector.broadcast %237 : vector<16x1xf32> to vector<16x32xf32>
    %239 = arith.mulf %234, %238 : vector<16x32xf32>
    %c0_197 = arith.constant 0 : index
    %c0_198 = arith.constant 0 : index
    %c0_199 = arith.constant 0 : index
    %240 = vector.load %arg19[%c0_197, %c0_198, %c0_199] : memref<2x1x32xf32, #tpu.memory_space<vmem>>, vector<1x1x32xf32>
    %241 = vector.shape_cast %240 : vector<1x1x32xf32> to vector<1x32xf32>
    %242 = vector.broadcast %241 : vector<1x32xf32> to vector<16x32xf32>
    %243 = arith.mulf %239, %242 : vector<16x32xf32>
    %c0_200 = arith.constant 0 : index
    %c0_201 = arith.constant 0 : index
    %c0_202 = arith.constant 0 : index
    %244 = vector.load %arg20[%c0_200, %c0_201, %c0_202] : memref<2x1x32xf32, #tpu.memory_space<vmem>>, vector<1x1x32xf32>
    %245 = vector.shape_cast %244 : vector<1x1x32xf32> to vector<1x32xf32>
    %246 = vector.broadcast %245 : vector<1x32xf32> to vector<16x32xf32>
    %247 = arith.addf %243, %246 : vector<16x32xf32>
    %c1_203 = arith.constant 1 : index
    %c0_204 = arith.constant 0 : index
    %c0_205 = arith.constant 0 : index
    %c0_206 = arith.constant 0 : index
    %248 = vector.load %arg5[%c1_203, %c0_204, %c0_205, %c0_206] : memref<2x4x32x8xf32, #tpu.memory_space<vmem>>, vector<1x1x32x8xf32>
    %249 = vector.shape_cast %248 : vector<1x1x32x8xf32> to vector<32x8xf32>
    %cst_207 = arith.constant dense<0.000000e+00> : vector<16x8xf32>
    %250 = tpu.matmul %247, %249, %cst_207 {dimension_numbers = #tpu.dot_dimension_numbers<[1], [0], [0], [1], [0, 0, 1, 1], [], []>} : vector<16x32xf32>, vector<32x8xf32>, vector<16x8xf32> -> vector<16x8xf32>
    %c1_208 = arith.constant 1 : index
    %c0_209 = arith.constant 0 : index
    %c0_210 = arith.constant 0 : index
    %c0_211 = arith.constant 0 : index
    %251 = vector.load %arg8[%c1_208, %c0_209, %c0_210, %c0_211] : memref<2x4x1x8xf32, #tpu.memory_space<vmem>>, vector<1x1x1x8xf32>
    %252 = vector.shape_cast %251 : vector<1x1x1x8xf32> to vector<1x8xf32>
    %253 = vector.broadcast %252 : vector<1x8xf32> to vector<16x8xf32>
    %254 = arith.addf %250, %253 : vector<16x8xf32>
    %c1_212 = arith.constant 1 : index
    %c0_213 = arith.constant 0 : index
    %c0_214 = arith.constant 0 : index
    %c0_215 = arith.constant 0 : index
    %255 = vector.load %arg6[%c1_212, %c0_213, %c0_214, %c0_215] : memref<2x4x32x8xf32, #tpu.memory_space<vmem>>, vector<1x1x32x8xf32>
    %256 = vector.shape_cast %255 : vector<1x1x32x8xf32> to vector<32x8xf32>
    %cst_216 = arith.constant dense<0.000000e+00> : vector<16x8xf32>
    %257 = tpu.matmul %247, %256, %cst_216 {dimension_numbers = #tpu.dot_dimension_numbers<[1], [0], [0], [1], [0, 0, 1, 1], [], []>} : vector<16x32xf32>, vector<32x8xf32>, vector<16x8xf32> -> vector<16x8xf32>
    %c1_217 = arith.constant 1 : index
    %c0_218 = arith.constant 0 : index
    %c0_219 = arith.constant 0 : index
    %c0_220 = arith.constant 0 : index
    %258 = vector.load %arg9[%c1_217, %c0_218, %c0_219, %c0_220] : memref<2x4x1x8xf32, #tpu.memory_space<vmem>>, vector<1x1x1x8xf32>
    %259 = vector.shape_cast %258 : vector<1x1x1x8xf32> to vector<1x8xf32>
    %260 = vector.broadcast %259 : vector<1x8xf32> to vector<16x8xf32>
    %261 = arith.addf %257, %260 : vector<16x8xf32>
    %c1_221 = arith.constant 1 : index
    %c0_222 = arith.constant 0 : index
    %c0_223 = arith.constant 0 : index
    %c0_224 = arith.constant 0 : index
    %262 = vector.load %arg7[%c1_221, %c0_222, %c0_223, %c0_224] : memref<2x4x32x8xf32, #tpu.memory_space<vmem>>, vector<1x1x32x8xf32>
    %263 = vector.shape_cast %262 : vector<1x1x32x8xf32> to vector<32x8xf32>
    %cst_225 = arith.constant dense<0.000000e+00> : vector<16x8xf32>
    %264 = tpu.matmul %247, %263, %cst_225 {dimension_numbers = #tpu.dot_dimension_numbers<[1], [0], [0], [1], [0, 0, 1, 1], [], []>} : vector<16x32xf32>, vector<32x8xf32>, vector<16x8xf32> -> vector<16x8xf32>
    %c1_226 = arith.constant 1 : index
    %c0_227 = arith.constant 0 : index
    %c0_228 = arith.constant 0 : index
    %c0_229 = arith.constant 0 : index
    %265 = vector.load %arg10[%c1_226, %c0_227, %c0_228, %c0_229] : memref<2x4x1x8xf32, #tpu.memory_space<vmem>>, vector<1x1x1x8xf32>
    %266 = vector.shape_cast %265 : vector<1x1x1x8xf32> to vector<1x8xf32>
    %267 = vector.broadcast %266 : vector<1x8xf32> to vector<16x8xf32>
    %268 = arith.addf %264, %267 : vector<16x8xf32>
    %cst_230 = arith.constant 0.353553385 : f32
    %269 = vector.broadcast %cst_230 : f32 to vector<16x8xf32>
    %270 = arith.mulf %254, %269 : vector<16x8xf32>
    %cst_231 = arith.constant dense<0.000000e+00> : vector<16x16xf32>
    %271 = tpu.matmul %270, %261, %cst_231 {dimension_numbers = #tpu.dot_dimension_numbers<[1], [1], [0], [0], [0, 0, 1, 0], [], []>} : vector<16x8xf32>, vector<16x8xf32>, vector<16x16xf32> -> vector<16x16xf32>
    %cst_232 = arith.constant dense<0xFF800000> : vector<16xf32>
    %272 = vector.multi_reduction <maximumf>, %271, %cst_232 [1] : vector<16x16xf32> to vector<16xf32>
    %273 = vector.shape_cast %272 : vector<16xf32> to vector<16x1xf32>
    %274 = vector.broadcast %273 : vector<16x1xf32> to vector<16x16xf32>
    %275 = arith.subf %271, %274 : vector<16x16xf32>
    %276 = math.exp %275 : vector<16x16xf32>
    %cst_233 = arith.constant dense<0.000000e+00> : vector<16xf32>
    %277 = vector.multi_reduction <add>, %276, %cst_233 [1] : vector<16x16xf32> to vector<16xf32>
    %278 = vector.shape_cast %277 : vector<16xf32> to vector<16x1xf32>
    %279 = tpu.reciprocal %278 : vector<16x1xf32> -> vector<16x1xf32>
    %280 = vector.broadcast %279 : vector<16x1xf32> to vector<16x16xf32>
    %281 = arith.mulf %276, %280 : vector<16x16xf32>
    %cst_234 = arith.constant dense<0.000000e+00> : vector<16x8xf32>
    %282 = tpu.matmul %281, %268, %cst_234 {dimension_numbers = #tpu.dot_dimension_numbers<[1], [0], [0], [1], [0, 0, 1, 1], [], []>} : vector<16x16xf32>, vector<16x8xf32>, vector<16x8xf32> -> vector<16x8xf32>
    %c1_235 = arith.constant 1 : index
    %c0_236 = arith.constant 0 : index
    %c0_237 = arith.constant 0 : index
    %c0_238 = arith.constant 0 : index
    %283 = vector.load %arg11[%c1_235, %c0_236, %c0_237, %c0_238] : memref<2x4x8x32xf32, #tpu.memory_space<vmem>>, vector<1x1x8x32xf32>
    %284 = vector.shape_cast %283 : vector<1x1x8x32xf32> to vector<8x32xf32>
    %cst_239 = arith.constant dense<0.000000e+00> : vector<16x32xf32>
    %285 = tpu.matmul %282, %284, %cst_239 {dimension_numbers = #tpu.dot_dimension_numbers<[1], [0], [0], [1], [0, 0, 1, 1], [], []>} : vector<16x8xf32>, vector<8x32xf32>, vector<16x32xf32> -> vector<16x32xf32>
    %c1_240 = arith.constant 1 : index
    %c1_241 = arith.constant 1 : index
    %c0_242 = arith.constant 0 : index
    %c0_243 = arith.constant 0 : index
    %286 = vector.load %arg5[%c1_240, %c1_241, %c0_242, %c0_243] : memref<2x4x32x8xf32, #tpu.memory_space<vmem>>, vector<1x1x32x8xf32>
    %287 = vector.shape_cast %286 : vector<1x1x32x8xf32> to vector<32x8xf32>
    %cst_244 = arith.constant dense<0.000000e+00> : vector<16x8xf32>
    %288 = tpu.matmul %247, %287, %cst_244 {dimension_numbers = #tpu.dot_dimension_numbers<[1], [0], [0], [1], [0, 0, 1, 1], [], []>} : vector<16x32xf32>, vector<32x8xf32>, vector<16x8xf32> -> vector<16x8xf32>
    %c1_245 = arith.constant 1 : index
    %c1_246 = arith.constant 1 : index
    %c0_247 = arith.constant 0 : index
    %c0_248 = arith.constant 0 : index
    %289 = vector.load %arg8[%c1_245, %c1_246, %c0_247, %c0_248] : memref<2x4x1x8xf32, #tpu.memory_space<vmem>>, vector<1x1x1x8xf32>
    %290 = vector.shape_cast %289 : vector<1x1x1x8xf32> to vector<1x8xf32>
    %291 = vector.broadcast %290 : vector<1x8xf32> to vector<16x8xf32>
    %292 = arith.addf %288, %291 : vector<16x8xf32>
    %c1_249 = arith.constant 1 : index
    %c1_250 = arith.constant 1 : index
    %c0_251 = arith.constant 0 : index
    %c0_252 = arith.constant 0 : index
    %293 = vector.load %arg6[%c1_249, %c1_250, %c0_251, %c0_252] : memref<2x4x32x8xf32, #tpu.memory_space<vmem>>, vector<1x1x32x8xf32>
    %294 = vector.shape_cast %293 : vector<1x1x32x8xf32> to vector<32x8xf32>
    %cst_253 = arith.constant dense<0.000000e+00> : vector<16x8xf32>
    %295 = tpu.matmul %247, %294, %cst_253 {dimension_numbers = #tpu.dot_dimension_numbers<[1], [0], [0], [1], [0, 0, 1, 1], [], []>} : vector<16x32xf32>, vector<32x8xf32>, vector<16x8xf32> -> vector<16x8xf32>
    %c1_254 = arith.constant 1 : index
    %c1_255 = arith.constant 1 : index
    %c0_256 = arith.constant 0 : index
    %c0_257 = arith.constant 0 : index
    %296 = vector.load %arg9[%c1_254, %c1_255, %c0_256, %c0_257] : memref<2x4x1x8xf32, #tpu.memory_space<vmem>>, vector<1x1x1x8xf32>
    %297 = vector.shape_cast %296 : vector<1x1x1x8xf32> to vector<1x8xf32>
    %298 = vector.broadcast %297 : vector<1x8xf32> to vector<16x8xf32>
    %299 = arith.addf %295, %298 : vector<16x8xf32>
    %c1_258 = arith.constant 1 : index
    %c1_259 = arith.constant 1 : index
    %c0_260 = arith.constant 0 : index
    %c0_261 = arith.constant 0 : index
    %300 = vector.load %arg7[%c1_258, %c1_259, %c0_260, %c0_261] : memref<2x4x32x8xf32, #tpu.memory_space<vmem>>, vector<1x1x32x8xf32>
    %301 = vector.shape_cast %300 : vector<1x1x32x8xf32> to vector<32x8xf32>
    %cst_262 = arith.constant dense<0.000000e+00> : vector<16x8xf32>
    %302 = tpu.matmul %247, %301, %cst_262 {dimension_numbers = #tpu.dot_dimension_numbers<[1], [0], [0], [1], [0, 0, 1, 1], [], []>} : vector<16x32xf32>, vector<32x8xf32>, vector<16x8xf32> -> vector<16x8xf32>
    %c1_263 = arith.constant 1 : index
    %c1_264 = arith.constant 1 : index
    %c0_265 = arith.constant 0 : index
    %c0_266 = arith.constant 0 : index
    %303 = vector.load %arg10[%c1_263, %c1_264, %c0_265, %c0_266] : memref<2x4x1x8xf32, #tpu.memory_space<vmem>>, vector<1x1x1x8xf32>
    %304 = vector.shape_cast %303 : vector<1x1x1x8xf32> to vector<1x8xf32>
    %305 = vector.broadcast %304 : vector<1x8xf32> to vector<16x8xf32>
    %306 = arith.addf %302, %305 : vector<16x8xf32>
    %cst_267 = arith.constant 0.353553385 : f32
    %307 = vector.broadcast %cst_267 : f32 to vector<16x8xf32>
    %308 = arith.mulf %292, %307 : vector<16x8xf32>
    %cst_268 = arith.constant dense<0.000000e+00> : vector<16x16xf32>
    %309 = tpu.matmul %308, %299, %cst_268 {dimension_numbers = #tpu.dot_dimension_numbers<[1], [1], [0], [0], [0, 0, 1, 0], [], []>} : vector<16x8xf32>, vector<16x8xf32>, vector<16x16xf32> -> vector<16x16xf32>
    %cst_269 = arith.constant dense<0xFF800000> : vector<16xf32>
    %310 = vector.multi_reduction <maximumf>, %309, %cst_269 [1] : vector<16x16xf32> to vector<16xf32>
    %311 = vector.shape_cast %310 : vector<16xf32> to vector<16x1xf32>
    %312 = vector.broadcast %311 : vector<16x1xf32> to vector<16x16xf32>
    %313 = arith.subf %309, %312 : vector<16x16xf32>
    %314 = math.exp %313 : vector<16x16xf32>
    %cst_270 = arith.constant dense<0.000000e+00> : vector<16xf32>
    %315 = vector.multi_reduction <add>, %314, %cst_270 [1] : vector<16x16xf32> to vector<16xf32>
    %316 = vector.shape_cast %315 : vector<16xf32> to vector<16x1xf32>
    %317 = tpu.reciprocal %316 : vector<16x1xf32> -> vector<16x1xf32>
    %318 = vector.broadcast %317 : vector<16x1xf32> to vector<16x16xf32>
    %319 = arith.mulf %314, %318 : vector<16x16xf32>
    %cst_271 = arith.constant dense<0.000000e+00> : vector<16x8xf32>
    %320 = tpu.matmul %319, %306, %cst_271 {dimension_numbers = #tpu.dot_dimension_numbers<[1], [0], [0], [1], [0, 0, 1, 1], [], []>} : vector<16x16xf32>, vector<16x8xf32>, vector<16x8xf32> -> vector<16x8xf32>
    %c1_272 = arith.constant 1 : index
    %c1_273 = arith.constant 1 : index
    %c0_274 = arith.constant 0 : index
    %c0_275 = arith.constant 0 : index
    %321 = vector.load %arg11[%c1_272, %c1_273, %c0_274, %c0_275] : memref<2x4x8x32xf32, #tpu.memory_space<vmem>>, vector<1x1x8x32xf32>
    %322 = vector.shape_cast %321 : vector<1x1x8x32xf32> to vector<8x32xf32>
    %cst_276 = arith.constant dense<0.000000e+00> : vector<16x32xf32>
    %323 = tpu.matmul %320, %322, %cst_276 {dimension_numbers = #tpu.dot_dimension_numbers<[1], [0], [0], [1], [0, 0, 1, 1], [], []>} : vector<16x8xf32>, vector<8x32xf32>, vector<16x32xf32> -> vector<16x32xf32>
    %324 = arith.addf %285, %323 : vector<16x32xf32>
    %c1_277 = arith.constant 1 : index
    %c2_278 = arith.constant 2 : index
    %c0_279 = arith.constant 0 : index
    %c0_280 = arith.constant 0 : index
    %325 = vector.load %arg5[%c1_277, %c2_278, %c0_279, %c0_280] : memref<2x4x32x8xf32, #tpu.memory_space<vmem>>, vector<1x1x32x8xf32>
    %326 = vector.shape_cast %325 : vector<1x1x32x8xf32> to vector<32x8xf32>
    %cst_281 = arith.constant dense<0.000000e+00> : vector<16x8xf32>
    %327 = tpu.matmul %247, %326, %cst_281 {dimension_numbers = #tpu.dot_dimension_numbers<[1], [0], [0], [1], [0, 0, 1, 1], [], []>} : vector<16x32xf32>, vector<32x8xf32>, vector<16x8xf32> -> vector<16x8xf32>
    %c1_282 = arith.constant 1 : index
    %c2_283 = arith.constant 2 : index
    %c0_284 = arith.constant 0 : index
    %c0_285 = arith.constant 0 : index
    %328 = vector.load %arg8[%c1_282, %c2_283, %c0_284, %c0_285] : memref<2x4x1x8xf32, #tpu.memory_space<vmem>>, vector<1x1x1x8xf32>
    %329 = vector.shape_cast %328 : vector<1x1x1x8xf32> to vector<1x8xf32>
    %330 = vector.broadcast %329 : vector<1x8xf32> to vector<16x8xf32>
    %331 = arith.addf %327, %330 : vector<16x8xf32>
    %c1_286 = arith.constant 1 : index
    %c2_287 = arith.constant 2 : index
    %c0_288 = arith.constant 0 : index
    %c0_289 = arith.constant 0 : index
    %332 = vector.load %arg6[%c1_286, %c2_287, %c0_288, %c0_289] : memref<2x4x32x8xf32, #tpu.memory_space<vmem>>, vector<1x1x32x8xf32>
    %333 = vector.shape_cast %332 : vector<1x1x32x8xf32> to vector<32x8xf32>
    %cst_290 = arith.constant dense<0.000000e+00> : vector<16x8xf32>
    %334 = tpu.matmul %247, %333, %cst_290 {dimension_numbers = #tpu.dot_dimension_numbers<[1], [0], [0], [1], [0, 0, 1, 1], [], []>} : vector<16x32xf32>, vector<32x8xf32>, vector<16x8xf32> -> vector<16x8xf32>
    %c1_291 = arith.constant 1 : index
    %c2_292 = arith.constant 2 : index
    %c0_293 = arith.constant 0 : index
    %c0_294 = arith.constant 0 : index
    %335 = vector.load %arg9[%c1_291, %c2_292, %c0_293, %c0_294] : memref<2x4x1x8xf32, #tpu.memory_space<vmem>>, vector<1x1x1x8xf32>
    %336 = vector.shape_cast %335 : vector<1x1x1x8xf32> to vector<1x8xf32>
    %337 = vector.broadcast %336 : vector<1x8xf32> to vector<16x8xf32>
    %338 = arith.addf %334, %337 : vector<16x8xf32>
    %c1_295 = arith.constant 1 : index
    %c2_296 = arith.constant 2 : index
    %c0_297 = arith.constant 0 : index
    %c0_298 = arith.constant 0 : index
    %339 = vector.load %arg7[%c1_295, %c2_296, %c0_297, %c0_298] : memref<2x4x32x8xf32, #tpu.memory_space<vmem>>, vector<1x1x32x8xf32>
    %340 = vector.shape_cast %339 : vector<1x1x32x8xf32> to vector<32x8xf32>
    %cst_299 = arith.constant dense<0.000000e+00> : vector<16x8xf32>
    %341 = tpu.matmul %247, %340, %cst_299 {dimension_numbers = #tpu.dot_dimension_numbers<[1], [0], [0], [1], [0, 0, 1, 1], [], []>} : vector<16x32xf32>, vector<32x8xf32>, vector<16x8xf32> -> vector<16x8xf32>
    %c1_300 = arith.constant 1 : index
    %c2_301 = arith.constant 2 : index
    %c0_302 = arith.constant 0 : index
    %c0_303 = arith.constant 0 : index
    %342 = vector.load %arg10[%c1_300, %c2_301, %c0_302, %c0_303] : memref<2x4x1x8xf32, #tpu.memory_space<vmem>>, vector<1x1x1x8xf32>
    %343 = vector.shape_cast %342 : vector<1x1x1x8xf32> to vector<1x8xf32>
    %344 = vector.broadcast %343 : vector<1x8xf32> to vector<16x8xf32>
    %345 = arith.addf %341, %344 : vector<16x8xf32>
    %cst_304 = arith.constant 0.353553385 : f32
    %346 = vector.broadcast %cst_304 : f32 to vector<16x8xf32>
    %347 = arith.mulf %331, %346 : vector<16x8xf32>
    %cst_305 = arith.constant dense<0.000000e+00> : vector<16x16xf32>
    %348 = tpu.matmul %347, %338, %cst_305 {dimension_numbers = #tpu.dot_dimension_numbers<[1], [1], [0], [0], [0, 0, 1, 0], [], []>} : vector<16x8xf32>, vector<16x8xf32>, vector<16x16xf32> -> vector<16x16xf32>
    %cst_306 = arith.constant dense<0xFF800000> : vector<16xf32>
    %349 = vector.multi_reduction <maximumf>, %348, %cst_306 [1] : vector<16x16xf32> to vector<16xf32>
    %350 = vector.shape_cast %349 : vector<16xf32> to vector<16x1xf32>
    %351 = vector.broadcast %350 : vector<16x1xf32> to vector<16x16xf32>
    %352 = arith.subf %348, %351 : vector<16x16xf32>
    %353 = math.exp %352 : vector<16x16xf32>
    %cst_307 = arith.constant dense<0.000000e+00> : vector<16xf32>
    %354 = vector.multi_reduction <add>, %353, %cst_307 [1] : vector<16x16xf32> to vector<16xf32>
    %355 = vector.shape_cast %354 : vector<16xf32> to vector<16x1xf32>
    %356 = tpu.reciprocal %355 : vector<16x1xf32> -> vector<16x1xf32>
    %357 = vector.broadcast %356 : vector<16x1xf32> to vector<16x16xf32>
    %358 = arith.mulf %353, %357 : vector<16x16xf32>
    %cst_308 = arith.constant dense<0.000000e+00> : vector<16x8xf32>
    %359 = tpu.matmul %358, %345, %cst_308 {dimension_numbers = #tpu.dot_dimension_numbers<[1], [0], [0], [1], [0, 0, 1, 1], [], []>} : vector<16x16xf32>, vector<16x8xf32>, vector<16x8xf32> -> vector<16x8xf32>
    %c1_309 = arith.constant 1 : index
    %c2_310 = arith.constant 2 : index
    %c0_311 = arith.constant 0 : index
    %c0_312 = arith.constant 0 : index
    %360 = vector.load %arg11[%c1_309, %c2_310, %c0_311, %c0_312] : memref<2x4x8x32xf32, #tpu.memory_space<vmem>>, vector<1x1x8x32xf32>
    %361 = vector.shape_cast %360 : vector<1x1x8x32xf32> to vector<8x32xf32>
    %cst_313 = arith.constant dense<0.000000e+00> : vector<16x32xf32>
    %362 = tpu.matmul %359, %361, %cst_313 {dimension_numbers = #tpu.dot_dimension_numbers<[1], [0], [0], [1], [0, 0, 1, 1], [], []>} : vector<16x8xf32>, vector<8x32xf32>, vector<16x32xf32> -> vector<16x32xf32>
    %363 = arith.addf %324, %362 : vector<16x32xf32>
    %c1_314 = arith.constant 1 : index
    %c3_315 = arith.constant 3 : index
    %c0_316 = arith.constant 0 : index
    %c0_317 = arith.constant 0 : index
    %364 = vector.load %arg5[%c1_314, %c3_315, %c0_316, %c0_317] : memref<2x4x32x8xf32, #tpu.memory_space<vmem>>, vector<1x1x32x8xf32>
    %365 = vector.shape_cast %364 : vector<1x1x32x8xf32> to vector<32x8xf32>
    %cst_318 = arith.constant dense<0.000000e+00> : vector<16x8xf32>
    %366 = tpu.matmul %247, %365, %cst_318 {dimension_numbers = #tpu.dot_dimension_numbers<[1], [0], [0], [1], [0, 0, 1, 1], [], []>} : vector<16x32xf32>, vector<32x8xf32>, vector<16x8xf32> -> vector<16x8xf32>
    %c1_319 = arith.constant 1 : index
    %c3_320 = arith.constant 3 : index
    %c0_321 = arith.constant 0 : index
    %c0_322 = arith.constant 0 : index
    %367 = vector.load %arg8[%c1_319, %c3_320, %c0_321, %c0_322] : memref<2x4x1x8xf32, #tpu.memory_space<vmem>>, vector<1x1x1x8xf32>
    %368 = vector.shape_cast %367 : vector<1x1x1x8xf32> to vector<1x8xf32>
    %369 = vector.broadcast %368 : vector<1x8xf32> to vector<16x8xf32>
    %370 = arith.addf %366, %369 : vector<16x8xf32>
    %c1_323 = arith.constant 1 : index
    %c3_324 = arith.constant 3 : index
    %c0_325 = arith.constant 0 : index
    %c0_326 = arith.constant 0 : index
    %371 = vector.load %arg6[%c1_323, %c3_324, %c0_325, %c0_326] : memref<2x4x32x8xf32, #tpu.memory_space<vmem>>, vector<1x1x32x8xf32>
    %372 = vector.shape_cast %371 : vector<1x1x32x8xf32> to vector<32x8xf32>
    %cst_327 = arith.constant dense<0.000000e+00> : vector<16x8xf32>
    %373 = tpu.matmul %247, %372, %cst_327 {dimension_numbers = #tpu.dot_dimension_numbers<[1], [0], [0], [1], [0, 0, 1, 1], [], []>} : vector<16x32xf32>, vector<32x8xf32>, vector<16x8xf32> -> vector<16x8xf32>
    %c1_328 = arith.constant 1 : index
    %c3_329 = arith.constant 3 : index
    %c0_330 = arith.constant 0 : index
    %c0_331 = arith.constant 0 : index
    %374 = vector.load %arg9[%c1_328, %c3_329, %c0_330, %c0_331] : memref<2x4x1x8xf32, #tpu.memory_space<vmem>>, vector<1x1x1x8xf32>
    %375 = vector.shape_cast %374 : vector<1x1x1x8xf32> to vector<1x8xf32>
    %376 = vector.broadcast %375 : vector<1x8xf32> to vector<16x8xf32>
    %377 = arith.addf %373, %376 : vector<16x8xf32>
    %c1_332 = arith.constant 1 : index
    %c3_333 = arith.constant 3 : index
    %c0_334 = arith.constant 0 : index
    %c0_335 = arith.constant 0 : index
    %378 = vector.load %arg7[%c1_332, %c3_333, %c0_334, %c0_335] : memref<2x4x32x8xf32, #tpu.memory_space<vmem>>, vector<1x1x32x8xf32>
    %379 = vector.shape_cast %378 : vector<1x1x32x8xf32> to vector<32x8xf32>
    %cst_336 = arith.constant dense<0.000000e+00> : vector<16x8xf32>
    %380 = tpu.matmul %247, %379, %cst_336 {dimension_numbers = #tpu.dot_dimension_numbers<[1], [0], [0], [1], [0, 0, 1, 1], [], []>} : vector<16x32xf32>, vector<32x8xf32>, vector<16x8xf32> -> vector<16x8xf32>
    %c1_337 = arith.constant 1 : index
    %c3_338 = arith.constant 3 : index
    %c0_339 = arith.constant 0 : index
    %c0_340 = arith.constant 0 : index
    %381 = vector.load %arg10[%c1_337, %c3_338, %c0_339, %c0_340] : memref<2x4x1x8xf32, #tpu.memory_space<vmem>>, vector<1x1x1x8xf32>
    %382 = vector.shape_cast %381 : vector<1x1x1x8xf32> to vector<1x8xf32>
    %383 = vector.broadcast %382 : vector<1x8xf32> to vector<16x8xf32>
    %384 = arith.addf %380, %383 : vector<16x8xf32>
    %cst_341 = arith.constant 0.353553385 : f32
    %385 = vector.broadcast %cst_341 : f32 to vector<16x8xf32>
    %386 = arith.mulf %370, %385 : vector<16x8xf32>
    %cst_342 = arith.constant dense<0.000000e+00> : vector<16x16xf32>
    %387 = tpu.matmul %386, %377, %cst_342 {dimension_numbers = #tpu.dot_dimension_numbers<[1], [1], [0], [0], [0, 0, 1, 0], [], []>} : vector<16x8xf32>, vector<16x8xf32>, vector<16x16xf32> -> vector<16x16xf32>
    %cst_343 = arith.constant dense<0xFF800000> : vector<16xf32>
    %388 = vector.multi_reduction <maximumf>, %387, %cst_343 [1] : vector<16x16xf32> to vector<16xf32>
    %389 = vector.shape_cast %388 : vector<16xf32> to vector<16x1xf32>
    %390 = vector.broadcast %389 : vector<16x1xf32> to vector<16x16xf32>
    %391 = arith.subf %387, %390 : vector<16x16xf32>
    %392 = math.exp %391 : vector<16x16xf32>
    %cst_344 = arith.constant dense<0.000000e+00> : vector<16xf32>
    %393 = vector.multi_reduction <add>, %392, %cst_344 [1] : vector<16x16xf32> to vector<16xf32>
    %394 = vector.shape_cast %393 : vector<16xf32> to vector<16x1xf32>
    %395 = tpu.reciprocal %394 : vector<16x1xf32> -> vector<16x1xf32>
    %396 = vector.broadcast %395 : vector<16x1xf32> to vector<16x16xf32>
    %397 = arith.mulf %392, %396 : vector<16x16xf32>
    %cst_345 = arith.constant dense<0.000000e+00> : vector<16x8xf32>
    %398 = tpu.matmul %397, %384, %cst_345 {dimension_numbers = #tpu.dot_dimension_numbers<[1], [0], [0], [1], [0, 0, 1, 1], [], []>} : vector<16x16xf32>, vector<16x8xf32>, vector<16x8xf32> -> vector<16x8xf32>
    %c1_346 = arith.constant 1 : index
    %c3_347 = arith.constant 3 : index
    %c0_348 = arith.constant 0 : index
    %c0_349 = arith.constant 0 : index
    %399 = vector.load %arg11[%c1_346, %c3_347, %c0_348, %c0_349] : memref<2x4x8x32xf32, #tpu.memory_space<vmem>>, vector<1x1x8x32xf32>
    %400 = vector.shape_cast %399 : vector<1x1x8x32xf32> to vector<8x32xf32>
    %cst_350 = arith.constant dense<0.000000e+00> : vector<16x32xf32>
    %401 = tpu.matmul %398, %400, %cst_350 {dimension_numbers = #tpu.dot_dimension_numbers<[1], [0], [0], [1], [0, 0, 1, 1], [], []>} : vector<16x8xf32>, vector<8x32xf32>, vector<16x32xf32> -> vector<16x32xf32>
    %402 = arith.addf %363, %401 : vector<16x32xf32>
    %c1_351 = arith.constant 1 : index
    %c0_352 = arith.constant 0 : index
    %c0_353 = arith.constant 0 : index
    %403 = vector.load %arg12[%c1_351, %c0_352, %c0_353] : memref<2x1x32xf32, #tpu.memory_space<vmem>>, vector<1x1x32xf32>
    %404 = vector.shape_cast %403 : vector<1x1x32xf32> to vector<1x32xf32>
    %405 = vector.broadcast %404 : vector<1x32xf32> to vector<16x32xf32>
    %406 = arith.addf %402, %405 : vector<16x32xf32>
    %407 = arith.addf %247, %406 : vector<16x32xf32>
    %cst_354 = arith.constant dense<0.000000e+00> : vector<16xf32>
    %408 = vector.multi_reduction <add>, %407, %cst_354 [1] : vector<16x32xf32> to vector<16xf32>
    %409 = vector.shape_cast %408 : vector<16xf32> to vector<16x1xf32>
    %cst_355 = arith.constant 3.200000e+01 : f32
    %410 = vector.broadcast %cst_355 : f32 to vector<16x1xf32>
    %411 = arith.divf %409, %410 : vector<16x1xf32>
    %412 = vector.broadcast %411 : vector<16x1xf32> to vector<16x32xf32>
    %413 = arith.subf %407, %412 : vector<16x32xf32>
    %414 = arith.mulf %413, %413 : vector<16x32xf32>
    %cst_356 = arith.constant dense<0.000000e+00> : vector<16xf32>
    %415 = vector.multi_reduction <add>, %414, %cst_356 [1] : vector<16x32xf32> to vector<16xf32>
    %416 = vector.shape_cast %415 : vector<16xf32> to vector<16x1xf32>
    %cst_357 = arith.constant 3.200000e+01 : f32
    %417 = vector.broadcast %cst_357 : f32 to vector<16x1xf32>
    %418 = arith.divf %416, %417 : vector<16x1xf32>
    %419 = vector.broadcast %411 : vector<16x1xf32> to vector<16x32xf32>
    %420 = arith.subf %407, %419 : vector<16x32xf32>
    %cst_358 = arith.constant 9.99999974E-6 : f32
    %421 = vector.broadcast %cst_358 : f32 to vector<16x1xf32>
    %422 = arith.addf %418, %421 : vector<16x1xf32>
    %423 = math.rsqrt %422 : vector<16x1xf32>
    %424 = vector.broadcast %423 : vector<16x1xf32> to vector<16x32xf32>
    %425 = arith.mulf %420, %424 : vector<16x32xf32>
    %c1_359 = arith.constant 1 : index
    %c0_360 = arith.constant 0 : index
    %c0_361 = arith.constant 0 : index
    %426 = vector.load %arg13[%c1_359, %c0_360, %c0_361] : memref<2x1x32xf32, #tpu.memory_space<vmem>>, vector<1x1x32xf32>
    %427 = vector.shape_cast %426 : vector<1x1x32xf32> to vector<1x32xf32>
    %428 = vector.broadcast %427 : vector<1x32xf32> to vector<16x32xf32>
    %429 = arith.mulf %425, %428 : vector<16x32xf32>
    %c1_362 = arith.constant 1 : index
    %c0_363 = arith.constant 0 : index
    %c0_364 = arith.constant 0 : index
    %430 = vector.load %arg14[%c1_362, %c0_363, %c0_364] : memref<2x1x32xf32, #tpu.memory_space<vmem>>, vector<1x1x32xf32>
    %431 = vector.shape_cast %430 : vector<1x1x32xf32> to vector<1x32xf32>
    %432 = vector.broadcast %431 : vector<1x32xf32> to vector<16x32xf32>
    %433 = arith.addf %429, %432 : vector<16x32xf32>
    %c1_365 = arith.constant 1 : index
    %c0_366 = arith.constant 0 : index
    %c0_367 = arith.constant 0 : index
    %434 = vector.load %arg15[%c1_365, %c0_366, %c0_367] : memref<2x32x32xf32, #tpu.memory_space<vmem>>, vector<1x32x32xf32>
    %435 = vector.shape_cast %434 : vector<1x32x32xf32> to vector<32x32xf32>
    %cst_368 = arith.constant dense<0.000000e+00> : vector<16x32xf32>
    %436 = tpu.matmul %433, %435, %cst_368 {dimension_numbers = #tpu.dot_dimension_numbers<[1], [0], [0], [1], [0, 0, 1, 1], [], []>} : vector<16x32xf32>, vector<32x32xf32>, vector<16x32xf32> -> vector<16x32xf32>
    %c1_369 = arith.constant 1 : index
    %c0_370 = arith.constant 0 : index
    %c0_371 = arith.constant 0 : index
    %437 = vector.load %arg16[%c1_369, %c0_370, %c0_371] : memref<2x1x32xf32, #tpu.memory_space<vmem>>, vector<1x1x32xf32>
    %438 = vector.shape_cast %437 : vector<1x1x32xf32> to vector<1x32xf32>
    %439 = vector.broadcast %438 : vector<1x32xf32> to vector<16x32xf32>
    %440 = arith.addf %436, %439 : vector<16x32xf32>
    %cst_372 = arith.constant 0.000000e+00 : f32
    %441 = vector.broadcast %cst_372 : f32 to vector<16x32xf32>
    %442 = arith.maximumf %440, %441 : vector<16x32xf32>
    %c1_373 = arith.constant 1 : index
    %c0_374 = arith.constant 0 : index
    %c0_375 = arith.constant 0 : index
    %443 = vector.load %arg17[%c1_373, %c0_374, %c0_375] : memref<2x32x32xf32, #tpu.memory_space<vmem>>, vector<1x32x32xf32>
    %444 = vector.shape_cast %443 : vector<1x32x32xf32> to vector<32x32xf32>
    %cst_376 = arith.constant dense<0.000000e+00> : vector<16x32xf32>
    %445 = tpu.matmul %442, %444, %cst_376 {dimension_numbers = #tpu.dot_dimension_numbers<[1], [0], [0], [1], [0, 0, 1, 1], [], []>} : vector<16x32xf32>, vector<32x32xf32>, vector<16x32xf32> -> vector<16x32xf32>
    %c1_377 = arith.constant 1 : index
    %c0_378 = arith.constant 0 : index
    %c0_379 = arith.constant 0 : index
    %446 = vector.load %arg18[%c1_377, %c0_378, %c0_379] : memref<2x1x32xf32, #tpu.memory_space<vmem>>, vector<1x1x32xf32>
    %447 = vector.shape_cast %446 : vector<1x1x32xf32> to vector<1x32xf32>
    %448 = vector.broadcast %447 : vector<1x32xf32> to vector<16x32xf32>
    %449 = arith.addf %445, %448 : vector<16x32xf32>
    %450 = arith.addf %433, %449 : vector<16x32xf32>
    %cst_380 = arith.constant dense<0.000000e+00> : vector<16xf32>
    %451 = vector.multi_reduction <add>, %450, %cst_380 [1] : vector<16x32xf32> to vector<16xf32>
    %452 = vector.shape_cast %451 : vector<16xf32> to vector<16x1xf32>
    %cst_381 = arith.constant 3.200000e+01 : f32
    %453 = vector.broadcast %cst_381 : f32 to vector<16x1xf32>
    %454 = arith.divf %452, %453 : vector<16x1xf32>
    %455 = vector.broadcast %454 : vector<16x1xf32> to vector<16x32xf32>
    %456 = arith.subf %450, %455 : vector<16x32xf32>
    %457 = arith.mulf %456, %456 : vector<16x32xf32>
    %cst_382 = arith.constant dense<0.000000e+00> : vector<16xf32>
    %458 = vector.multi_reduction <add>, %457, %cst_382 [1] : vector<16x32xf32> to vector<16xf32>
    %459 = vector.shape_cast %458 : vector<16xf32> to vector<16x1xf32>
    %cst_383 = arith.constant 3.200000e+01 : f32
    %460 = vector.broadcast %cst_383 : f32 to vector<16x1xf32>
    %461 = arith.divf %459, %460 : vector<16x1xf32>
    %462 = vector.broadcast %454 : vector<16x1xf32> to vector<16x32xf32>
    %463 = arith.subf %450, %462 : vector<16x32xf32>
    %cst_384 = arith.constant 9.99999974E-6 : f32
    %464 = vector.broadcast %cst_384 : f32 to vector<16x1xf32>
    %465 = arith.addf %461, %464 : vector<16x1xf32>
    %466 = math.rsqrt %465 : vector<16x1xf32>
    %467 = vector.broadcast %466 : vector<16x1xf32> to vector<16x32xf32>
    %468 = arith.mulf %463, %467 : vector<16x32xf32>
    %c1_385 = arith.constant 1 : index
    %c0_386 = arith.constant 0 : index
    %c0_387 = arith.constant 0 : index
    %469 = vector.load %arg19[%c1_385, %c0_386, %c0_387] : memref<2x1x32xf32, #tpu.memory_space<vmem>>, vector<1x1x32xf32>
    %470 = vector.shape_cast %469 : vector<1x1x32xf32> to vector<1x32xf32>
    %471 = vector.broadcast %470 : vector<1x32xf32> to vector<16x32xf32>
    %472 = arith.mulf %468, %471 : vector<16x32xf32>
    %c1_388 = arith.constant 1 : index
    %c0_389 = arith.constant 0 : index
    %c0_390 = arith.constant 0 : index
    %473 = vector.load %arg20[%c1_388, %c0_389, %c0_390] : memref<2x1x32xf32, #tpu.memory_space<vmem>>, vector<1x1x32xf32>
    %474 = vector.shape_cast %473 : vector<1x1x32xf32> to vector<1x32xf32>
    %475 = vector.broadcast %474 : vector<1x32xf32> to vector<16x32xf32>
    %476 = arith.addf %472, %475 : vector<16x32xf32>
    %c0_391 = arith.constant 0 : index
    %c0_392 = arith.constant 0 : index
    %c0_393 = arith.constant 0 : index
    %477 = vector.load %arg21[%c0_391, %c0_392, %c0_393] : memref<2x16x32xf32, #tpu.memory_space<vmem>>, vector<1x16x32xf32>
    %478 = vector.shape_cast %477 : vector<1x16x32xf32> to vector<16x32xf32>
    %479 = vector.shape_cast %476 : vector<16x32xf32> to vector<1x16x32xf32>
    tpu.vector_store %arg21[%c0_391, %c0_392, %c0_393], %479 {strides = array<i32>} : memref<2x16x32xf32, #tpu.memory_space<vmem>>, vector<1x16x32xf32>,
    %c1_394 = arith.constant 1 : index
    %c0_395 = arith.constant 0 : index
    %c0_396 = arith.constant 0 : index
    %480 = vector.load %arg1[%c1_394, %c0_395, %c0_396] : memref<2x18x32xf32, #tpu.memory_space<vmem>>, vector<1x16x32xf32>
    %481 = vector.shape_cast %480 : vector<1x16x32xf32> to vector<16x32xf32>
    %c0_397 = arith.constant 0 : index
    %c0_398 = arith.constant 0 : index
    %482 = vector.load %arg2[%c0_397, %c0_398] : memref<96x32xf32, #tpu.memory_space<vmem>>, vector<32x32xf32>
    %cst_399 = arith.constant dense<0.000000e+00> : vector<16x32xf32>
    %483 = tpu.matmul %481, %482, %cst_399 {dimension_numbers = #tpu.dot_dimension_numbers<[1], [0], [0], [1], [0, 0, 1, 1], [], []>} : vector<16x32xf32>, vector<32x32xf32>, vector<16x32xf32> -> vector<16x32xf32>
    %484 = arith.addf %3, %483 : vector<16x32xf32>
    %c1_400 = arith.constant 1 : index
    %c1_401 = arith.constant 1 : index
    %c0_402 = arith.constant 0 : index
    %485 = vector.load %arg1[%c1_400, %c1_401, %c0_402] : memref<2x18x32xf32, #tpu.memory_space<vmem>>, vector<1x16x32xf32>
    %486 = vector.shape_cast %485 : vector<1x16x32xf32> to vector<16x32xf32>
    %c32_403 = arith.constant 32 : index
    %c0_404 = arith.constant 0 : index
    %487 = vector.load %arg2[%c32_403, %c0_404] : memref<96x32xf32, #tpu.memory_space<vmem>>, vector<32x32xf32>
    %cst_405 = arith.constant dense<0.000000e+00> : vector<16x32xf32>
    %488 = tpu.matmul %486, %487, %cst_405 {dimension_numbers = #tpu.dot_dimension_numbers<[1], [0], [0], [1], [0, 0, 1, 1], [], []>} : vector<16x32xf32>, vector<32x32xf32>, vector<16x32xf32> -> vector<16x32xf32>
    %489 = arith.addf %484, %488 : vector<16x32xf32>
    %c1_406 = arith.constant 1 : index
    %c2_407 = arith.constant 2 : index
    %c0_408 = arith.constant 0 : index
    %490 = vector.load %arg1[%c1_406, %c2_407, %c0_408] : memref<2x18x32xf32, #tpu.memory_space<vmem>>, vector<1x16x32xf32>
    %491 = vector.shape_cast %490 : vector<1x16x32xf32> to vector<16x32xf32>
    %c64_409 = arith.constant 64 : index
    %c0_410 = arith.constant 0 : index
    %492 = vector.load %arg2[%c64_409, %c0_410] : memref<96x32xf32, #tpu.memory_space<vmem>>, vector<32x32xf32>
    %cst_411 = arith.constant dense<0.000000e+00> : vector<16x32xf32>
    %493 = tpu.matmul %491, %492, %cst_411 {dimension_numbers = #tpu.dot_dimension_numbers<[1], [0], [0], [1], [0, 0, 1, 1], [], []>} : vector<16x32xf32>, vector<32x32xf32>, vector<16x32xf32> -> vector<16x32xf32>
    %494 = arith.addf %489, %493 : vector<16x32xf32>
    %c0_412 = arith.constant 0 : index
    %c0_413 = arith.constant 0 : index
    %c0_414 = arith.constant 0 : index
    %c0_415 = arith.constant 0 : index
    %495 = vector.load %arg5[%c0_412, %c0_413, %c0_414, %c0_415] : memref<2x4x32x8xf32, #tpu.memory_space<vmem>>, vector<1x1x32x8xf32>
    %496 = vector.shape_cast %495 : vector<1x1x32x8xf32> to vector<32x8xf32>
    %cst_416 = arith.constant dense<0.000000e+00> : vector<16x8xf32>
    %497 = tpu.matmul %494, %496, %cst_416 {dimension_numbers = #tpu.dot_dimension_numbers<[1], [0], [0], [1], [0, 0, 1, 1], [], []>} : vector<16x32xf32>, vector<32x8xf32>, vector<16x8xf32> -> vector<16x8xf32>
    %c0_417 = arith.constant 0 : index
    %c0_418 = arith.constant 0 : index
    %c0_419 = arith.constant 0 : index
    %c0_420 = arith.constant 0 : index
    %498 = vector.load %arg8[%c0_417, %c0_418, %c0_419, %c0_420] : memref<2x4x1x8xf32, #tpu.memory_space<vmem>>, vector<1x1x1x8xf32>
    %499 = vector.shape_cast %498 : vector<1x1x1x8xf32> to vector<1x8xf32>
    %500 = vector.broadcast %499 : vector<1x8xf32> to vector<16x8xf32>
    %501 = arith.addf %497, %500 : vector<16x8xf32>
    %c0_421 = arith.constant 0 : index
    %c0_422 = arith.constant 0 : index
    %c0_423 = arith.constant 0 : index
    %c0_424 = arith.constant 0 : index
    %502 = vector.load %arg6[%c0_421, %c0_422, %c0_423, %c0_424] : memref<2x4x32x8xf32, #tpu.memory_space<vmem>>, vector<1x1x32x8xf32>
    %503 = vector.shape_cast %502 : vector<1x1x32x8xf32> to vector<32x8xf32>
    %cst_425 = arith.constant dense<0.000000e+00> : vector<16x8xf32>
    %504 = tpu.matmul %494, %503, %cst_425 {dimension_numbers = #tpu.dot_dimension_numbers<[1], [0], [0], [1], [0, 0, 1, 1], [], []>} : vector<16x32xf32>, vector<32x8xf32>, vector<16x8xf32> -> vector<16x8xf32>
    %c0_426 = arith.constant 0 : index
    %c0_427 = arith.constant 0 : index
    %c0_428 = arith.constant 0 : index
    %c0_429 = arith.constant 0 : index
    %505 = vector.load %arg9[%c0_426, %c0_427, %c0_428, %c0_429] : memref<2x4x1x8xf32, #tpu.memory_space<vmem>>, vector<1x1x1x8xf32>
    %506 = vector.shape_cast %505 : vector<1x1x1x8xf32> to vector<1x8xf32>
    %507 = vector.broadcast %506 : vector<1x8xf32> to vector<16x8xf32>
    %508 = arith.addf %504, %507 : vector<16x8xf32>
    %c0_430 = arith.constant 0 : index
    %c0_431 = arith.constant 0 : index
    %c0_432 = arith.constant 0 : index
    %c0_433 = arith.constant 0 : index
    %509 = vector.load %arg7[%c0_430, %c0_431, %c0_432, %c0_433] : memref<2x4x32x8xf32, #tpu.memory_space<vmem>>, vector<1x1x32x8xf32>
    %510 = vector.shape_cast %509 : vector<1x1x32x8xf32> to vector<32x8xf32>
    %cst_434 = arith.constant dense<0.000000e+00> : vector<16x8xf32>
    %511 = tpu.matmul %494, %510, %cst_434 {dimension_numbers = #tpu.dot_dimension_numbers<[1], [0], [0], [1], [0, 0, 1, 1], [], []>} : vector<16x32xf32>, vector<32x8xf32>, vector<16x8xf32> -> vector<16x8xf32>
    %c0_435 = arith.constant 0 : index
    %c0_436 = arith.constant 0 : index
    %c0_437 = arith.constant 0 : index
    %c0_438 = arith.constant 0 : index
    %512 = vector.load %arg10[%c0_435, %c0_436, %c0_437, %c0_438] : memref<2x4x1x8xf32, #tpu.memory_space<vmem>>, vector<1x1x1x8xf32>
    %513 = vector.shape_cast %512 : vector<1x1x1x8xf32> to vector<1x8xf32>
    %514 = vector.broadcast %513 : vector<1x8xf32> to vector<16x8xf32>
    %515 = arith.addf %511, %514 : vector<16x8xf32>
    %cst_439 = arith.constant 0.353553385 : f32
    %516 = vector.broadcast %cst_439 : f32 to vector<16x8xf32>
    %517 = arith.mulf %501, %516 : vector<16x8xf32>
    %cst_440 = arith.constant dense<0.000000e+00> : vector<16x16xf32>
    %518 = tpu.matmul %517, %508, %cst_440 {dimension_numbers = #tpu.dot_dimension_numbers<[1], [1], [0], [0], [0, 0, 1, 0], [], []>} : vector<16x8xf32>, vector<16x8xf32>, vector<16x16xf32> -> vector<16x16xf32>
    %cst_441 = arith.constant dense<0xFF800000> : vector<16xf32>
    %519 = vector.multi_reduction <maximumf>, %518, %cst_441 [1] : vector<16x16xf32> to vector<16xf32>
    %520 = vector.shape_cast %519 : vector<16xf32> to vector<16x1xf32>
    %521 = vector.broadcast %520 : vector<16x1xf32> to vector<16x16xf32>
    %522 = arith.subf %518, %521 : vector<16x16xf32>
    %523 = math.exp %522 : vector<16x16xf32>
    %cst_442 = arith.constant dense<0.000000e+00> : vector<16xf32>
    %524 = vector.multi_reduction <add>, %523, %cst_442 [1] : vector<16x16xf32> to vector<16xf32>
    %525 = vector.shape_cast %524 : vector<16xf32> to vector<16x1xf32>
    %526 = tpu.reciprocal %525 : vector<16x1xf32> -> vector<16x1xf32>
    %527 = vector.broadcast %526 : vector<16x1xf32> to vector<16x16xf32>
    %528 = arith.mulf %523, %527 : vector<16x16xf32>
    %cst_443 = arith.constant dense<0.000000e+00> : vector<16x8xf32>
    %529 = tpu.matmul %528, %515, %cst_443 {dimension_numbers = #tpu.dot_dimension_numbers<[1], [0], [0], [1], [0, 0, 1, 1], [], []>} : vector<16x16xf32>, vector<16x8xf32>, vector<16x8xf32> -> vector<16x8xf32>
    %c0_444 = arith.constant 0 : index
    %c0_445 = arith.constant 0 : index
    %c0_446 = arith.constant 0 : index
    %c0_447 = arith.constant 0 : index
    %530 = vector.load %arg11[%c0_444, %c0_445, %c0_446, %c0_447] : memref<2x4x8x32xf32, #tpu.memory_space<vmem>>, vector<1x1x8x32xf32>
    %531 = vector.shape_cast %530 : vector<1x1x8x32xf32> to vector<8x32xf32>
    %cst_448 = arith.constant dense<0.000000e+00> : vector<16x32xf32>
    %532 = tpu.matmul %529, %531, %cst_448 {dimension_numbers = #tpu.dot_dimension_numbers<[1], [0], [0], [1], [0, 0, 1, 1], [], []>} : vector<16x8xf32>, vector<8x32xf32>, vector<16x32xf32> -> vector<16x32xf32>
    %c0_449 = arith.constant 0 : index
    %c1_450 = arith.constant 1 : index
    %c0_451 = arith.constant 0 : index
    %c0_452 = arith.constant 0 : index
    %533 = vector.load %arg5[%c0_449, %c1_450, %c0_451, %c0_452] : memref<2x4x32x8xf32, #tpu.memory_space<vmem>>, vector<1x1x32x8xf32>
    %534 = vector.shape_cast %533 : vector<1x1x32x8xf32> to vector<32x8xf32>
    %cst_453 = arith.constant dense<0.000000e+00> : vector<16x8xf32>
    %535 = tpu.matmul %494, %534, %cst_453 {dimension_numbers = #tpu.dot_dimension_numbers<[1], [0], [0], [1], [0, 0, 1, 1], [], []>} : vector<16x32xf32>, vector<32x8xf32>, vector<16x8xf32> -> vector<16x8xf32>
    %c0_454 = arith.constant 0 : index
    %c1_455 = arith.constant 1 : index
    %c0_456 = arith.constant 0 : index
    %c0_457 = arith.constant 0 : index
    %536 = vector.load %arg8[%c0_454, %c1_455, %c0_456, %c0_457] : memref<2x4x1x8xf32, #tpu.memory_space<vmem>>, vector<1x1x1x8xf32>
    %537 = vector.shape_cast %536 : vector<1x1x1x8xf32> to vector<1x8xf32>
    %538 = vector.broadcast %537 : vector<1x8xf32> to vector<16x8xf32>
    %539 = arith.addf %535, %538 : vector<16x8xf32>
    %c0_458 = arith.constant 0 : index
    %c1_459 = arith.constant 1 : index
    %c0_460 = arith.constant 0 : index
    %c0_461 = arith.constant 0 : index
    %540 = vector.load %arg6[%c0_458, %c1_459, %c0_460, %c0_461] : memref<2x4x32x8xf32, #tpu.memory_space<vmem>>, vector<1x1x32x8xf32>
    %541 = vector.shape_cast %540 : vector<1x1x32x8xf32> to vector<32x8xf32>
    %cst_462 = arith.constant dense<0.000000e+00> : vector<16x8xf32>
    %542 = tpu.matmul %494, %541, %cst_462 {dimension_numbers = #tpu.dot_dimension_numbers<[1], [0], [0], [1], [0, 0, 1, 1], [], []>} : vector<16x32xf32>, vector<32x8xf32>, vector<16x8xf32> -> vector<16x8xf32>
    %c0_463 = arith.constant 0 : index
    %c1_464 = arith.constant 1 : index
    %c0_465 = arith.constant 0 : index
    %c0_466 = arith.constant 0 : index
    %543 = vector.load %arg9[%c0_463, %c1_464, %c0_465, %c0_466] : memref<2x4x1x8xf32, #tpu.memory_space<vmem>>, vector<1x1x1x8xf32>
    %544 = vector.shape_cast %543 : vector<1x1x1x8xf32> to vector<1x8xf32>
    %545 = vector.broadcast %544 : vector<1x8xf32> to vector<16x8xf32>
    %546 = arith.addf %542, %545 : vector<16x8xf32>
    %c0_467 = arith.constant 0 : index
    %c1_468 = arith.constant 1 : index
    %c0_469 = arith.constant 0 : index
    %c0_470 = arith.constant 0 : index
    %547 = vector.load %arg7[%c0_467, %c1_468, %c0_469, %c0_470] : memref<2x4x32x8xf32, #tpu.memory_space<vmem>>, vector<1x1x32x8xf32>
    %548 = vector.shape_cast %547 : vector<1x1x32x8xf32> to vector<32x8xf32>
    %cst_471 = arith.constant dense<0.000000e+00> : vector<16x8xf32>
    %549 = tpu.matmul %494, %548, %cst_471 {dimension_numbers = #tpu.dot_dimension_numbers<[1], [0], [0], [1], [0, 0, 1, 1], [], []>} : vector<16x32xf32>, vector<32x8xf32>, vector<16x8xf32> -> vector<16x8xf32>
    %c0_472 = arith.constant 0 : index
    %c1_473 = arith.constant 1 : index
    %c0_474 = arith.constant 0 : index
    %c0_475 = arith.constant 0 : index
    %550 = vector.load %arg10[%c0_472, %c1_473, %c0_474, %c0_475] : memref<2x4x1x8xf32, #tpu.memory_space<vmem>>, vector<1x1x1x8xf32>
    %551 = vector.shape_cast %550 : vector<1x1x1x8xf32> to vector<1x8xf32>
    %552 = vector.broadcast %551 : vector<1x8xf32> to vector<16x8xf32>
    %553 = arith.addf %549, %552 : vector<16x8xf32>
    %cst_476 = arith.constant 0.353553385 : f32
    %554 = vector.broadcast %cst_476 : f32 to vector<16x8xf32>
    %555 = arith.mulf %539, %554 : vector<16x8xf32>
    %cst_477 = arith.constant dense<0.000000e+00> : vector<16x16xf32>
    %556 = tpu.matmul %555, %546, %cst_477 {dimension_numbers = #tpu.dot_dimension_numbers<[1], [1], [0], [0], [0, 0, 1, 0], [], []>} : vector<16x8xf32>, vector<16x8xf32>, vector<16x16xf32> -> vector<16x16xf32>
    %cst_478 = arith.constant dense<0xFF800000> : vector<16xf32>
    %557 = vector.multi_reduction <maximumf>, %556, %cst_478 [1] : vector<16x16xf32> to vector<16xf32>
    %558 = vector.shape_cast %557 : vector<16xf32> to vector<16x1xf32>
    %559 = vector.broadcast %558 : vector<16x1xf32> to vector<16x16xf32>
    %560 = arith.subf %556, %559 : vector<16x16xf32>
    %561 = math.exp %560 : vector<16x16xf32>
    %cst_479 = arith.constant dense<0.000000e+00> : vector<16xf32>
    %562 = vector.multi_reduction <add>, %561, %cst_479 [1] : vector<16x16xf32> to vector<16xf32>
    %563 = vector.shape_cast %562 : vector<16xf32> to vector<16x1xf32>
    %564 = tpu.reciprocal %563 : vector<16x1xf32> -> vector<16x1xf32>
    %565 = vector.broadcast %564 : vector<16x1xf32> to vector<16x16xf32>
    %566 = arith.mulf %561, %565 : vector<16x16xf32>
    %cst_480 = arith.constant dense<0.000000e+00> : vector<16x8xf32>
    %567 = tpu.matmul %566, %553, %cst_480 {dimension_numbers = #tpu.dot_dimension_numbers<[1], [0], [0], [1], [0, 0, 1, 1], [], []>} : vector<16x16xf32>, vector<16x8xf32>, vector<16x8xf32> -> vector<16x8xf32>
    %c0_481 = arith.constant 0 : index
    %c1_482 = arith.constant 1 : index
    %c0_483 = arith.constant 0 : index
    %c0_484 = arith.constant 0 : index
    %568 = vector.load %arg11[%c0_481, %c1_482, %c0_483, %c0_484] : memref<2x4x8x32xf32, #tpu.memory_space<vmem>>, vector<1x1x8x32xf32>
    %569 = vector.shape_cast %568 : vector<1x1x8x32xf32> to vector<8x32xf32>
    %cst_485 = arith.constant dense<0.000000e+00> : vector<16x32xf32>
    %570 = tpu.matmul %567, %569, %cst_485 {dimension_numbers = #tpu.dot_dimension_numbers<[1], [0], [0], [1], [0, 0, 1, 1], [], []>} : vector<16x8xf32>, vector<8x32xf32>, vector<16x32xf32> -> vector<16x32xf32>
    %571 = arith.addf %532, %570 : vector<16x32xf32>
    %c0_486 = arith.constant 0 : index
    %c2_487 = arith.constant 2 : index
    %c0_488 = arith.constant 0 : index
    %c0_489 = arith.constant 0 : index
    %572 = vector.load %arg5[%c0_486, %c2_487, %c0_488, %c0_489] : memref<2x4x32x8xf32, #tpu.memory_space<vmem>>, vector<1x1x32x8xf32>
    %573 = vector.shape_cast %572 : vector<1x1x32x8xf32> to vector<32x8xf32>
    %cst_490 = arith.constant dense<0.000000e+00> : vector<16x8xf32>
    %574 = tpu.matmul %494, %573, %cst_490 {dimension_numbers = #tpu.dot_dimension_numbers<[1], [0], [0], [1], [0, 0, 1, 1], [], []>} : vector<16x32xf32>, vector<32x8xf32>, vector<16x8xf32> -> vector<16x8xf32>
    %c0_491 = arith.constant 0 : index
    %c2_492 = arith.constant 2 : index
    %c0_493 = arith.constant 0 : index
    %c0_494 = arith.constant 0 : index
    %575 = vector.load %arg8[%c0_491, %c2_492, %c0_493, %c0_494] : memref<2x4x1x8xf32, #tpu.memory_space<vmem>>, vector<1x1x1x8xf32>
    %576 = vector.shape_cast %575 : vector<1x1x1x8xf32> to vector<1x8xf32>
    %577 = vector.broadcast %576 : vector<1x8xf32> to vector<16x8xf32>
    %578 = arith.addf %574, %577 : vector<16x8xf32>
    %c0_495 = arith.constant 0 : index
    %c2_496 = arith.constant 2 : index
    %c0_497 = arith.constant 0 : index
    %c0_498 = arith.constant 0 : index
    %579 = vector.load %arg6[%c0_495, %c2_496, %c0_497, %c0_498] : memref<2x4x32x8xf32, #tpu.memory_space<vmem>>, vector<1x1x32x8xf32>
    %580 = vector.shape_cast %579 : vector<1x1x32x8xf32> to vector<32x8xf32>
    %cst_499 = arith.constant dense<0.000000e+00> : vector<16x8xf32>
    %581 = tpu.matmul %494, %580, %cst_499 {dimension_numbers = #tpu.dot_dimension_numbers<[1], [0], [0], [1], [0, 0, 1, 1], [], []>} : vector<16x32xf32>, vector<32x8xf32>, vector<16x8xf32> -> vector<16x8xf32>
    %c0_500 = arith.constant 0 : index
    %c2_501 = arith.constant 2 : index
    %c0_502 = arith.constant 0 : index
    %c0_503 = arith.constant 0 : index
    %582 = vector.load %arg9[%c0_500, %c2_501, %c0_502, %c0_503] : memref<2x4x1x8xf32, #tpu.memory_space<vmem>>, vector<1x1x1x8xf32>
    %583 = vector.shape_cast %582 : vector<1x1x1x8xf32> to vector<1x8xf32>
    %584 = vector.broadcast %583 : vector<1x8xf32> to vector<16x8xf32>
    %585 = arith.addf %581, %584 : vector<16x8xf32>
    %c0_504 = arith.constant 0 : index
    %c2_505 = arith.constant 2 : index
    %c0_506 = arith.constant 0 : index
    %c0_507 = arith.constant 0 : index
    %586 = vector.load %arg7[%c0_504, %c2_505, %c0_506, %c0_507] : memref<2x4x32x8xf32, #tpu.memory_space<vmem>>, vector<1x1x32x8xf32>
    %587 = vector.shape_cast %586 : vector<1x1x32x8xf32> to vector<32x8xf32>
    %cst_508 = arith.constant dense<0.000000e+00> : vector<16x8xf32>
    %588 = tpu.matmul %494, %587, %cst_508 {dimension_numbers = #tpu.dot_dimension_numbers<[1], [0], [0], [1], [0, 0, 1, 1], [], []>} : vector<16x32xf32>, vector<32x8xf32>, vector<16x8xf32> -> vector<16x8xf32>
    %c0_509 = arith.constant 0 : index
    %c2_510 = arith.constant 2 : index
    %c0_511 = arith.constant 0 : index
    %c0_512 = arith.constant 0 : index
    %589 = vector.load %arg10[%c0_509, %c2_510, %c0_511, %c0_512] : memref<2x4x1x8xf32, #tpu.memory_space<vmem>>, vector<1x1x1x8xf32>
    %590 = vector.shape_cast %589 : vector<1x1x1x8xf32> to vector<1x8xf32>
    %591 = vector.broadcast %590 : vector<1x8xf32> to vector<16x8xf32>
    %592 = arith.addf %588, %591 : vector<16x8xf32>
    %cst_513 = arith.constant 0.353553385 : f32
    %593 = vector.broadcast %cst_513 : f32 to vector<16x8xf32>
    %594 = arith.mulf %578, %593 : vector<16x8xf32>
    %cst_514 = arith.constant dense<0.000000e+00> : vector<16x16xf32>
    %595 = tpu.matmul %594, %585, %cst_514 {dimension_numbers = #tpu.dot_dimension_numbers<[1], [1], [0], [0], [0, 0, 1, 0], [], []>} : vector<16x8xf32>, vector<16x8xf32>, vector<16x16xf32> -> vector<16x16xf32>
    %cst_515 = arith.constant dense<0xFF800000> : vector<16xf32>
    %596 = vector.multi_reduction <maximumf>, %595, %cst_515 [1] : vector<16x16xf32> to vector<16xf32>
    %597 = vector.shape_cast %596 : vector<16xf32> to vector<16x1xf32>
    %598 = vector.broadcast %597 : vector<16x1xf32> to vector<16x16xf32>
    %599 = arith.subf %595, %598 : vector<16x16xf32>
    %600 = math.exp %599 : vector<16x16xf32>
    %cst_516 = arith.constant dense<0.000000e+00> : vector<16xf32>
    %601 = vector.multi_reduction <add>, %600, %cst_516 [1] : vector<16x16xf32> to vector<16xf32>
    %602 = vector.shape_cast %601 : vector<16xf32> to vector<16x1xf32>
    %603 = tpu.reciprocal %602 : vector<16x1xf32> -> vector<16x1xf32>
    %604 = vector.broadcast %603 : vector<16x1xf32> to vector<16x16xf32>
    %605 = arith.mulf %600, %604 : vector<16x16xf32>
    %cst_517 = arith.constant dense<0.000000e+00> : vector<16x8xf32>
    %606 = tpu.matmul %605, %592, %cst_517 {dimension_numbers = #tpu.dot_dimension_numbers<[1], [0], [0], [1], [0, 0, 1, 1], [], []>} : vector<16x16xf32>, vector<16x8xf32>, vector<16x8xf32> -> vector<16x8xf32>
    %c0_518 = arith.constant 0 : index
    %c2_519 = arith.constant 2 : index
    %c0_520 = arith.constant 0 : index
    %c0_521 = arith.constant 0 : index
    %607 = vector.load %arg11[%c0_518, %c2_519, %c0_520, %c0_521] : memref<2x4x8x32xf32, #tpu.memory_space<vmem>>, vector<1x1x8x32xf32>
    %608 = vector.shape_cast %607 : vector<1x1x8x32xf32> to vector<8x32xf32>
    %cst_522 = arith.constant dense<0.000000e+00> : vector<16x32xf32>
    %609 = tpu.matmul %606, %608, %cst_522 {dimension_numbers = #tpu.dot_dimension_numbers<[1], [0], [0], [1], [0, 0, 1, 1], [], []>} : vector<16x8xf32>, vector<8x32xf32>, vector<16x32xf32> -> vector<16x32xf32>
    %610 = arith.addf %571, %609 : vector<16x32xf32>
    %c0_523 = arith.constant 0 : index
    %c3_524 = arith.constant 3 : index
    %c0_525 = arith.constant 0 : index
    %c0_526 = arith.constant 0 : index
    %611 = vector.load %arg5[%c0_523, %c3_524, %c0_525, %c0_526] : memref<2x4x32x8xf32, #tpu.memory_space<vmem>>, vector<1x1x32x8xf32>
    %612 = vector.shape_cast %611 : vector<1x1x32x8xf32> to vector<32x8xf32>
    %cst_527 = arith.constant dense<0.000000e+00> : vector<16x8xf32>
    %613 = tpu.matmul %494, %612, %cst_527 {dimension_numbers = #tpu.dot_dimension_numbers<[1], [0], [0], [1], [0, 0, 1, 1], [], []>} : vector<16x32xf32>, vector<32x8xf32>, vector<16x8xf32> -> vector<16x8xf32>
    %c0_528 = arith.constant 0 : index
    %c3_529 = arith.constant 3 : index
    %c0_530 = arith.constant 0 : index
    %c0_531 = arith.constant 0 : index
    %614 = vector.load %arg8[%c0_528, %c3_529, %c0_530, %c0_531] : memref<2x4x1x8xf32, #tpu.memory_space<vmem>>, vector<1x1x1x8xf32>
    %615 = vector.shape_cast %614 : vector<1x1x1x8xf32> to vector<1x8xf32>
    %616 = vector.broadcast %615 : vector<1x8xf32> to vector<16x8xf32>
    %617 = arith.addf %613, %616 : vector<16x8xf32>
    %c0_532 = arith.constant 0 : index
    %c3_533 = arith.constant 3 : index
    %c0_534 = arith.constant 0 : index
    %c0_535 = arith.constant 0 : index
    %618 = vector.load %arg6[%c0_532, %c3_533, %c0_534, %c0_535] : memref<2x4x32x8xf32, #tpu.memory_space<vmem>>, vector<1x1x32x8xf32>
    %619 = vector.shape_cast %618 : vector<1x1x32x8xf32> to vector<32x8xf32>
    %cst_536 = arith.constant dense<0.000000e+00> : vector<16x8xf32>
    %620 = tpu.matmul %494, %619, %cst_536 {dimension_numbers = #tpu.dot_dimension_numbers<[1], [0], [0], [1], [0, 0, 1, 1], [], []>} : vector<16x32xf32>, vector<32x8xf32>, vector<16x8xf32> -> vector<16x8xf32>
    %c0_537 = arith.constant 0 : index
    %c3_538 = arith.constant 3 : index
    %c0_539 = arith.constant 0 : index
    %c0_540 = arith.constant 0 : index
    %621 = vector.load %arg9[%c0_537, %c3_538, %c0_539, %c0_540] : memref<2x4x1x8xf32, #tpu.memory_space<vmem>>, vector<1x1x1x8xf32>
    %622 = vector.shape_cast %621 : vector<1x1x1x8xf32> to vector<1x8xf32>
    %623 = vector.broadcast %622 : vector<1x8xf32> to vector<16x8xf32>
    %624 = arith.addf %620, %623 : vector<16x8xf32>
    %c0_541 = arith.constant 0 : index
    %c3_542 = arith.constant 3 : index
    %c0_543 = arith.constant 0 : index
    %c0_544 = arith.constant 0 : index
    %625 = vector.load %arg7[%c0_541, %c3_542, %c0_543, %c0_544] : memref<2x4x32x8xf32, #tpu.memory_space<vmem>>, vector<1x1x32x8xf32>
    %626 = vector.shape_cast %625 : vector<1x1x32x8xf32> to vector<32x8xf32>
    %cst_545 = arith.constant dense<0.000000e+00> : vector<16x8xf32>
    %627 = tpu.matmul %494, %626, %cst_545 {dimension_numbers = #tpu.dot_dimension_numbers<[1], [0], [0], [1], [0, 0, 1, 1], [], []>} : vector<16x32xf32>, vector<32x8xf32>, vector<16x8xf32> -> vector<16x8xf32>
    %c0_546 = arith.constant 0 : index
    %c3_547 = arith.constant 3 : index
    %c0_548 = arith.constant 0 : index
    %c0_549 = arith.constant 0 : index
    %628 = vector.load %arg10[%c0_546, %c3_547, %c0_548, %c0_549] : memref<2x4x1x8xf32, #tpu.memory_space<vmem>>, vector<1x1x1x8xf32>
    %629 = vector.shape_cast %628 : vector<1x1x1x8xf32> to vector<1x8xf32>
    %630 = vector.broadcast %629 : vector<1x8xf32> to vector<16x8xf32>
    %631 = arith.addf %627, %630 : vector<16x8xf32>
    %cst_550 = arith.constant 0.353553385 : f32
    %632 = vector.broadcast %cst_550 : f32 to vector<16x8xf32>
    %633 = arith.mulf %617, %632 : vector<16x8xf32>
    %cst_551 = arith.constant dense<0.000000e+00> : vector<16x16xf32>
    %634 = tpu.matmul %633, %624, %cst_551 {dimension_numbers = #tpu.dot_dimension_numbers<[1], [1], [0], [0], [0, 0, 1, 0], [], []>} : vector<16x8xf32>, vector<16x8xf32>, vector<16x16xf32> -> vector<16x16xf32>
    %cst_552 = arith.constant dense<0xFF800000> : vector<16xf32>
    %635 = vector.multi_reduction <maximumf>, %634, %cst_552 [1] : vector<16x16xf32> to vector<16xf32>
    %636 = vector.shape_cast %635 : vector<16xf32> to vector<16x1xf32>
    %637 = vector.broadcast %636 : vector<16x1xf32> to vector<16x16xf32>
    %638 = arith.subf %634, %637 : vector<16x16xf32>
    %639 = math.exp %638 : vector<16x16xf32>
    %cst_553 = arith.constant dense<0.000000e+00> : vector<16xf32>
    %640 = vector.multi_reduction <add>, %639, %cst_553 [1] : vector<16x16xf32> to vector<16xf32>
    %641 = vector.shape_cast %640 : vector<16xf32> to vector<16x1xf32>
    %642 = tpu.reciprocal %641 : vector<16x1xf32> -> vector<16x1xf32>
    %643 = vector.broadcast %642 : vector<16x1xf32> to vector<16x16xf32>
    %644 = arith.mulf %639, %643 : vector<16x16xf32>
    %cst_554 = arith.constant dense<0.000000e+00> : vector<16x8xf32>
    %645 = tpu.matmul %644, %631, %cst_554 {dimension_numbers = #tpu.dot_dimension_numbers<[1], [0], [0], [1], [0, 0, 1, 1], [], []>} : vector<16x16xf32>, vector<16x8xf32>, vector<16x8xf32> -> vector<16x8xf32>
    %c0_555 = arith.constant 0 : index
    %c3_556 = arith.constant 3 : index
    %c0_557 = arith.constant 0 : index
    %c0_558 = arith.constant 0 : index
    %646 = vector.load %arg11[%c0_555, %c3_556, %c0_557, %c0_558] : memref<2x4x8x32xf32, #tpu.memory_space<vmem>>, vector<1x1x8x32xf32>
    %647 = vector.shape_cast %646 : vector<1x1x8x32xf32> to vector<8x32xf32>
    %cst_559 = arith.constant dense<0.000000e+00> : vector<16x32xf32>
    %648 = tpu.matmul %645, %647, %cst_559 {dimension_numbers = #tpu.dot_dimension_numbers<[1], [0], [0], [1], [0, 0, 1, 1], [], []>} : vector<16x8xf32>, vector<8x32xf32>, vector<16x32xf32> -> vector<16x32xf32>
    %649 = arith.addf %610, %648 : vector<16x32xf32>
    %c0_560 = arith.constant 0 : index
    %c0_561 = arith.constant 0 : index
    %c0_562 = arith.constant 0 : index
    %650 = vector.load %arg12[%c0_560, %c0_561, %c0_562] : memref<2x1x32xf32, #tpu.memory_space<vmem>>, vector<1x1x32xf32>
    %651 = vector.shape_cast %650 : vector<1x1x32xf32> to vector<1x32xf32>
    %652 = vector.broadcast %651 : vector<1x32xf32> to vector<16x32xf32>
    %653 = arith.addf %649, %652 : vector<16x32xf32>
    %654 = arith.addf %494, %653 : vector<16x32xf32>
    %cst_563 = arith.constant dense<0.000000e+00> : vector<16xf32>
    %655 = vector.multi_reduction <add>, %654, %cst_563 [1] : vector<16x32xf32> to vector<16xf32>
    %656 = vector.shape_cast %655 : vector<16xf32> to vector<16x1xf32>
    %cst_564 = arith.constant 3.200000e+01 : f32
    %657 = vector.broadcast %cst_564 : f32 to vector<16x1xf32>
    %658 = arith.divf %656, %657 : vector<16x1xf32>
    %659 = vector.broadcast %658 : vector<16x1xf32> to vector<16x32xf32>
    %660 = arith.subf %654, %659 : vector<16x32xf32>
    %661 = arith.mulf %660, %660 : vector<16x32xf32>
    %cst_565 = arith.constant dense<0.000000e+00> : vector<16xf32>
    %662 = vector.multi_reduction <add>, %661, %cst_565 [1] : vector<16x32xf32> to vector<16xf32>
    %663 = vector.shape_cast %662 : vector<16xf32> to vector<16x1xf32>
    %cst_566 = arith.constant 3.200000e+01 : f32
    %664 = vector.broadcast %cst_566 : f32 to vector<16x1xf32>
    %665 = arith.divf %663, %664 : vector<16x1xf32>
    %666 = vector.broadcast %658 : vector<16x1xf32> to vector<16x32xf32>
    %667 = arith.subf %654, %666 : vector<16x32xf32>
    %cst_567 = arith.constant 9.99999974E-6 : f32
    %668 = vector.broadcast %cst_567 : f32 to vector<16x1xf32>
    %669 = arith.addf %665, %668 : vector<16x1xf32>
    %670 = math.rsqrt %669 : vector<16x1xf32>
    %671 = vector.broadcast %670 : vector<16x1xf32> to vector<16x32xf32>
    %672 = arith.mulf %667, %671 : vector<16x32xf32>
    %c0_568 = arith.constant 0 : index
    %c0_569 = arith.constant 0 : index
    %c0_570 = arith.constant 0 : index
    %673 = vector.load %arg13[%c0_568, %c0_569, %c0_570] : memref<2x1x32xf32, #tpu.memory_space<vmem>>, vector<1x1x32xf32>
    %674 = vector.shape_cast %673 : vector<1x1x32xf32> to vector<1x32xf32>
    %675 = vector.broadcast %674 : vector<1x32xf32> to vector<16x32xf32>
    %676 = arith.mulf %672, %675 : vector<16x32xf32>
    %c0_571 = arith.constant 0 : index
    %c0_572 = arith.constant 0 : index
    %c0_573 = arith.constant 0 : index
    %677 = vector.load %arg14[%c0_571, %c0_572, %c0_573] : memref<2x1x32xf32, #tpu.memory_space<vmem>>, vector<1x1x32xf32>
    %678 = vector.shape_cast %677 : vector<1x1x32xf32> to vector<1x32xf32>
    %679 = vector.broadcast %678 : vector<1x32xf32> to vector<16x32xf32>
    %680 = arith.addf %676, %679 : vector<16x32xf32>
    %c0_574 = arith.constant 0 : index
    %c0_575 = arith.constant 0 : index
    %c0_576 = arith.constant 0 : index
    %681 = vector.load %arg15[%c0_574, %c0_575, %c0_576] : memref<2x32x32xf32, #tpu.memory_space<vmem>>, vector<1x32x32xf32>
    %682 = vector.shape_cast %681 : vector<1x32x32xf32> to vector<32x32xf32>
    %cst_577 = arith.constant dense<0.000000e+00> : vector<16x32xf32>
    %683 = tpu.matmul %680, %682, %cst_577 {dimension_numbers = #tpu.dot_dimension_numbers<[1], [0], [0], [1], [0, 0, 1, 1], [], []>} : vector<16x32xf32>, vector<32x32xf32>, vector<16x32xf32> -> vector<16x32xf32>
    %c0_578 = arith.constant 0 : index
    %c0_579 = arith.constant 0 : index
    %c0_580 = arith.constant 0 : index
    %684 = vector.load %arg16[%c0_578, %c0_579, %c0_580] : memref<2x1x32xf32, #tpu.memory_space<vmem>>, vector<1x1x32xf32>
    %685 = vector.shape_cast %684 : vector<1x1x32xf32> to vector<1x32xf32>
    %686 = vector.broadcast %685 : vector<1x32xf32> to vector<16x32xf32>
    %687 = arith.addf %683, %686 : vector<16x32xf32>
    %cst_581 = arith.constant 0.000000e+00 : f32
    %688 = vector.broadcast %cst_581 : f32 to vector<16x32xf32>
    %689 = arith.maximumf %687, %688 : vector<16x32xf32>
    %c0_582 = arith.constant 0 : index
    %c0_583 = arith.constant 0 : index
    %c0_584 = arith.constant 0 : index
    %690 = vector.load %arg17[%c0_582, %c0_583, %c0_584] : memref<2x32x32xf32, #tpu.memory_space<vmem>>, vector<1x32x32xf32>
    %691 = vector.shape_cast %690 : vector<1x32x32xf32> to vector<32x32xf32>
    %cst_585 = arith.constant dense<0.000000e+00> : vector<16x32xf32>
    %692 = tpu.matmul %689, %691, %cst_585 {dimension_numbers = #tpu.dot_dimension_numbers<[1], [0], [0], [1], [0, 0, 1, 1], [], []>} : vector<16x32xf32>, vector<32x32xf32>, vector<16x32xf32> -> vector<16x32xf32>
    %c0_586 = arith.constant 0 : index
    %c0_587 = arith.constant 0 : index
    %c0_588 = arith.constant 0 : index
    %693 = vector.load %arg18[%c0_586, %c0_587, %c0_588] : memref<2x1x32xf32, #tpu.memory_space<vmem>>, vector<1x1x32xf32>
    %694 = vector.shape_cast %693 : vector<1x1x32xf32> to vector<1x32xf32>
    %695 = vector.broadcast %694 : vector<1x32xf32> to vector<16x32xf32>
    %696 = arith.addf %692, %695 : vector<16x32xf32>
    %697 = arith.addf %680, %696 : vector<16x32xf32>
    %cst_589 = arith.constant dense<0.000000e+00> : vector<16xf32>
    %698 = vector.multi_reduction <add>, %697, %cst_589 [1] : vector<16x32xf32> to vector<16xf32>
    %699 = vector.shape_cast %698 : vector<16xf32> to vector<16x1xf32>
    %cst_590 = arith.constant 3.200000e+01 : f32
    %700 = vector.broadcast %cst_590 : f32 to vector<16x1xf32>
    %701 = arith.divf %699, %700 : vector<16x1xf32>
    %702 = vector.broadcast %701 : vector<16x1xf32> to vector<16x32xf32>
    %703 = arith.subf %697, %702 : vector<16x32xf32>
    %704 = arith.mulf %703, %703 : vector<16x32xf32>
    %cst_591 = arith.constant dense<0.000000e+00> : vector<16xf32>
    %705 = vector.multi_reduction <add>, %704, %cst_591 [1] : vector<16x32xf32> to vector<16xf32>
    %706 = vector.shape_cast %705 : vector<16xf32> to vector<16x1xf32>
    %cst_592 = arith.constant 3.200000e+01 : f32
    %707 = vector.broadcast %cst_592 : f32 to vector<16x1xf32>
    %708 = arith.divf %706, %707 : vector<16x1xf32>
    %709 = vector.broadcast %701 : vector<16x1xf32> to vector<16x32xf32>
    %710 = arith.subf %697, %709 : vector<16x32xf32>
    %cst_593 = arith.constant 9.99999974E-6 : f32
    %711 = vector.broadcast %cst_593 : f32 to vector<16x1xf32>
    %712 = arith.addf %708, %711 : vector<16x1xf32>
    %713 = math.rsqrt %712 : vector<16x1xf32>
    %714 = vector.broadcast %713 : vector<16x1xf32> to vector<16x32xf32>
    %715 = arith.mulf %710, %714 : vector<16x32xf32>
    %c0_594 = arith.constant 0 : index
    %c0_595 = arith.constant 0 : index
    %c0_596 = arith.constant 0 : index
    %716 = vector.load %arg19[%c0_594, %c0_595, %c0_596] : memref<2x1x32xf32, #tpu.memory_space<vmem>>, vector<1x1x32xf32>
    %717 = vector.shape_cast %716 : vector<1x1x32xf32> to vector<1x32xf32>
    %718 = vector.broadcast %717 : vector<1x32xf32> to vector<16x32xf32>
    %719 = arith.mulf %715, %718 : vector<16x32xf32>
    %c0_597 = arith.constant 0 : index
    %c0_598 = arith.constant 0 : index
    %c0_599 = arith.constant 0 : index
    %720 = vector.load %arg20[%c0_597, %c0_598, %c0_599] : memref<2x1x32xf32, #tpu.memory_space<vmem>>, vector<1x1x32xf32>
    %721 = vector.shape_cast %720 : vector<1x1x32xf32> to vector<1x32xf32>
    %722 = vector.broadcast %721 : vector<1x32xf32> to vector<16x32xf32>
    %723 = arith.addf %719, %722 : vector<16x32xf32>
    %c1_600 = arith.constant 1 : index
    %c0_601 = arith.constant 0 : index
    %c0_602 = arith.constant 0 : index
    %c0_603 = arith.constant 0 : index
    %724 = vector.load %arg5[%c1_600, %c0_601, %c0_602, %c0_603] : memref<2x4x32x8xf32, #tpu.memory_space<vmem>>, vector<1x1x32x8xf32>
    %725 = vector.shape_cast %724 : vector<1x1x32x8xf32> to vector<32x8xf32>
    %cst_604 = arith.constant dense<0.000000e+00> : vector<16x8xf32>
    %726 = tpu.matmul %723, %725, %cst_604 {dimension_numbers = #tpu.dot_dimension_numbers<[1], [0], [0], [1], [0, 0, 1, 1], [], []>} : vector<16x32xf32>, vector<32x8xf32>, vector<16x8xf32> -> vector<16x8xf32>
    %c1_605 = arith.constant 1 : index
    %c0_606 = arith.constant 0 : index
    %c0_607 = arith.constant 0 : index
    %c0_608 = arith.constant 0 : index
    %727 = vector.load %arg8[%c1_605, %c0_606, %c0_607, %c0_608] : memref<2x4x1x8xf32, #tpu.memory_space<vmem>>, vector<1x1x1x8xf32>
    %728 = vector.shape_cast %727 : vector<1x1x1x8xf32> to vector<1x8xf32>
    %729 = vector.broadcast %728 : vector<1x8xf32> to vector<16x8xf32>
    %730 = arith.addf %726, %729 : vector<16x8xf32>
    %c1_609 = arith.constant 1 : index
    %c0_610 = arith.constant 0 : index
    %c0_611 = arith.constant 0 : index
    %c0_612 = arith.constant 0 : index
    %731 = vector.load %arg6[%c1_609, %c0_610, %c0_611, %c0_612] : memref<2x4x32x8xf32, #tpu.memory_space<vmem>>, vector<1x1x32x8xf32>
    %732 = vector.shape_cast %731 : vector<1x1x32x8xf32> to vector<32x8xf32>
    %cst_613 = arith.constant dense<0.000000e+00> : vector<16x8xf32>
    %733 = tpu.matmul %723, %732, %cst_613 {dimension_numbers = #tpu.dot_dimension_numbers<[1], [0], [0], [1], [0, 0, 1, 1], [], []>} : vector<16x32xf32>, vector<32x8xf32>, vector<16x8xf32> -> vector<16x8xf32>
    %c1_614 = arith.constant 1 : index
    %c0_615 = arith.constant 0 : index
    %c0_616 = arith.constant 0 : index
    %c0_617 = arith.constant 0 : index
    %734 = vector.load %arg9[%c1_614, %c0_615, %c0_616, %c0_617] : memref<2x4x1x8xf32, #tpu.memory_space<vmem>>, vector<1x1x1x8xf32>
    %735 = vector.shape_cast %734 : vector<1x1x1x8xf32> to vector<1x8xf32>
    %736 = vector.broadcast %735 : vector<1x8xf32> to vector<16x8xf32>
    %737 = arith.addf %733, %736 : vector<16x8xf32>
    %c1_618 = arith.constant 1 : index
    %c0_619 = arith.constant 0 : index
    %c0_620 = arith.constant 0 : index
    %c0_621 = arith.constant 0 : index
    %738 = vector.load %arg7[%c1_618, %c0_619, %c0_620, %c0_621] : memref<2x4x32x8xf32, #tpu.memory_space<vmem>>, vector<1x1x32x8xf32>
    %739 = vector.shape_cast %738 : vector<1x1x32x8xf32> to vector<32x8xf32>
    %cst_622 = arith.constant dense<0.000000e+00> : vector<16x8xf32>
    %740 = tpu.matmul %723, %739, %cst_622 {dimension_numbers = #tpu.dot_dimension_numbers<[1], [0], [0], [1], [0, 0, 1, 1], [], []>} : vector<16x32xf32>, vector<32x8xf32>, vector<16x8xf32> -> vector<16x8xf32>
    %c1_623 = arith.constant 1 : index
    %c0_624 = arith.constant 0 : index
    %c0_625 = arith.constant 0 : index
    %c0_626 = arith.constant 0 : index
    %741 = vector.load %arg10[%c1_623, %c0_624, %c0_625, %c0_626] : memref<2x4x1x8xf32, #tpu.memory_space<vmem>>, vector<1x1x1x8xf32>
    %742 = vector.shape_cast %741 : vector<1x1x1x8xf32> to vector<1x8xf32>
    %743 = vector.broadcast %742 : vector<1x8xf32> to vector<16x8xf32>
    %744 = arith.addf %740, %743 : vector<16x8xf32>
    %cst_627 = arith.constant 0.353553385 : f32
    %745 = vector.broadcast %cst_627 : f32 to vector<16x8xf32>
    %746 = arith.mulf %730, %745 : vector<16x8xf32>
    %cst_628 = arith.constant dense<0.000000e+00> : vector<16x16xf32>
    %747 = tpu.matmul %746, %737, %cst_628 {dimension_numbers = #tpu.dot_dimension_numbers<[1], [1], [0], [0], [0, 0, 1, 0], [], []>} : vector<16x8xf32>, vector<16x8xf32>, vector<16x16xf32> -> vector<16x16xf32>
    %cst_629 = arith.constant dense<0xFF800000> : vector<16xf32>
    %748 = vector.multi_reduction <maximumf>, %747, %cst_629 [1] : vector<16x16xf32> to vector<16xf32>
    %749 = vector.shape_cast %748 : vector<16xf32> to vector<16x1xf32>
    %750 = vector.broadcast %749 : vector<16x1xf32> to vector<16x16xf32>
    %751 = arith.subf %747, %750 : vector<16x16xf32>
    %752 = math.exp %751 : vector<16x16xf32>
    %cst_630 = arith.constant dense<0.000000e+00> : vector<16xf32>
    %753 = vector.multi_reduction <add>, %752, %cst_630 [1] : vector<16x16xf32> to vector<16xf32>
    %754 = vector.shape_cast %753 : vector<16xf32> to vector<16x1xf32>
    %755 = tpu.reciprocal %754 : vector<16x1xf32> -> vector<16x1xf32>
    %756 = vector.broadcast %755 : vector<16x1xf32> to vector<16x16xf32>
    %757 = arith.mulf %752, %756 : vector<16x16xf32>
    %cst_631 = arith.constant dense<0.000000e+00> : vector<16x8xf32>
    %758 = tpu.matmul %757, %744, %cst_631 {dimension_numbers = #tpu.dot_dimension_numbers<[1], [0], [0], [1], [0, 0, 1, 1], [], []>} : vector<16x16xf32>, vector<16x8xf32>, vector<16x8xf32> -> vector<16x8xf32>
    %c1_632 = arith.constant 1 : index
    %c0_633 = arith.constant 0 : index
    %c0_634 = arith.constant 0 : index
    %c0_635 = arith.constant 0 : index
    %759 = vector.load %arg11[%c1_632, %c0_633, %c0_634, %c0_635] : memref<2x4x8x32xf32, #tpu.memory_space<vmem>>, vector<1x1x8x32xf32>
    %760 = vector.shape_cast %759 : vector<1x1x8x32xf32> to vector<8x32xf32>
    %cst_636 = arith.constant dense<0.000000e+00> : vector<16x32xf32>
    %761 = tpu.matmul %758, %760, %cst_636 {dimension_numbers = #tpu.dot_dimension_numbers<[1], [0], [0], [1], [0, 0, 1, 1], [], []>} : vector<16x8xf32>, vector<8x32xf32>, vector<16x32xf32> -> vector<16x32xf32>
    %c1_637 = arith.constant 1 : index
    %c1_638 = arith.constant 1 : index
    %c0_639 = arith.constant 0 : index
    %c0_640 = arith.constant 0 : index
    %762 = vector.load %arg5[%c1_637, %c1_638, %c0_639, %c0_640] : memref<2x4x32x8xf32, #tpu.memory_space<vmem>>, vector<1x1x32x8xf32>
    %763 = vector.shape_cast %762 : vector<1x1x32x8xf32> to vector<32x8xf32>
    %cst_641 = arith.constant dense<0.000000e+00> : vector<16x8xf32>
    %764 = tpu.matmul %723, %763, %cst_641 {dimension_numbers = #tpu.dot_dimension_numbers<[1], [0], [0], [1], [0, 0, 1, 1], [], []>} : vector<16x32xf32>, vector<32x8xf32>, vector<16x8xf32> -> vector<16x8xf32>
    %c1_642 = arith.constant 1 : index
    %c1_643 = arith.constant 1 : index
    %c0_644 = arith.constant 0 : index
    %c0_645 = arith.constant 0 : index
    %765 = vector.load %arg8[%c1_642, %c1_643, %c0_644, %c0_645] : memref<2x4x1x8xf32, #tpu.memory_space<vmem>>, vector<1x1x1x8xf32>
    %766 = vector.shape_cast %765 : vector<1x1x1x8xf32> to vector<1x8xf32>
    %767 = vector.broadcast %766 : vector<1x8xf32> to vector<16x8xf32>
    %768 = arith.addf %764, %767 : vector<16x8xf32>
    %c1_646 = arith.constant 1 : index
    %c1_647 = arith.constant 1 : index
    %c0_648 = arith.constant 0 : index
    %c0_649 = arith.constant 0 : index
    %769 = vector.load %arg6[%c1_646, %c1_647, %c0_648, %c0_649] : memref<2x4x32x8xf32, #tpu.memory_space<vmem>>, vector<1x1x32x8xf32>
    %770 = vector.shape_cast %769 : vector<1x1x32x8xf32> to vector<32x8xf32>
    %cst_650 = arith.constant dense<0.000000e+00> : vector<16x8xf32>
    %771 = tpu.matmul %723, %770, %cst_650 {dimension_numbers = #tpu.dot_dimension_numbers<[1], [0], [0], [1], [0, 0, 1, 1], [], []>} : vector<16x32xf32>, vector<32x8xf32>, vector<16x8xf32> -> vector<16x8xf32>
    %c1_651 = arith.constant 1 : index
    %c1_652 = arith.constant 1 : index
    %c0_653 = arith.constant 0 : index
    %c0_654 = arith.constant 0 : index
    %772 = vector.load %arg9[%c1_651, %c1_652, %c0_653, %c0_654] : memref<2x4x1x8xf32, #tpu.memory_space<vmem>>, vector<1x1x1x8xf32>
    %773 = vector.shape_cast %772 : vector<1x1x1x8xf32> to vector<1x8xf32>
    %774 = vector.broadcast %773 : vector<1x8xf32> to vector<16x8xf32>
    %775 = arith.addf %771, %774 : vector<16x8xf32>
    %c1_655 = arith.constant 1 : index
    %c1_656 = arith.constant 1 : index
    %c0_657 = arith.constant 0 : index
    %c0_658 = arith.constant 0 : index
    %776 = vector.load %arg7[%c1_655, %c1_656, %c0_657, %c0_658] : memref<2x4x32x8xf32, #tpu.memory_space<vmem>>, vector<1x1x32x8xf32>
    %777 = vector.shape_cast %776 : vector<1x1x32x8xf32> to vector<32x8xf32>
    %cst_659 = arith.constant dense<0.000000e+00> : vector<16x8xf32>
    %778 = tpu.matmul %723, %777, %cst_659 {dimension_numbers = #tpu.dot_dimension_numbers<[1], [0], [0], [1], [0, 0, 1, 1], [], []>} : vector<16x32xf32>, vector<32x8xf32>, vector<16x8xf32> -> vector<16x8xf32>
    %c1_660 = arith.constant 1 : index
    %c1_661 = arith.constant 1 : index
    %c0_662 = arith.constant 0 : index
    %c0_663 = arith.constant 0 : index
    %779 = vector.load %arg10[%c1_660, %c1_661, %c0_662, %c0_663] : memref<2x4x1x8xf32, #tpu.memory_space<vmem>>, vector<1x1x1x8xf32>
    %780 = vector.shape_cast %779 : vector<1x1x1x8xf32> to vector<1x8xf32>
    %781 = vector.broadcast %780 : vector<1x8xf32> to vector<16x8xf32>
    %782 = arith.addf %778, %781 : vector<16x8xf32>
    %cst_664 = arith.constant 0.353553385 : f32
    %783 = vector.broadcast %cst_664 : f32 to vector<16x8xf32>
    %784 = arith.mulf %768, %783 : vector<16x8xf32>
    %cst_665 = arith.constant dense<0.000000e+00> : vector<16x16xf32>
    %785 = tpu.matmul %784, %775, %cst_665 {dimension_numbers = #tpu.dot_dimension_numbers<[1], [1], [0], [0], [0, 0, 1, 0], [], []>} : vector<16x8xf32>, vector<16x8xf32>, vector<16x16xf32> -> vector<16x16xf32>
    %cst_666 = arith.constant dense<0xFF800000> : vector<16xf32>
    %786 = vector.multi_reduction <maximumf>, %785, %cst_666 [1] : vector<16x16xf32> to vector<16xf32>
    %787 = vector.shape_cast %786 : vector<16xf32> to vector<16x1xf32>
    %788 = vector.broadcast %787 : vector<16x1xf32> to vector<16x16xf32>
    %789 = arith.subf %785, %788 : vector<16x16xf32>
    %790 = math.exp %789 : vector<16x16xf32>
    %cst_667 = arith.constant dense<0.000000e+00> : vector<16xf32>
    %791 = vector.multi_reduction <add>, %790, %cst_667 [1] : vector<16x16xf32> to vector<16xf32>
    %792 = vector.shape_cast %791 : vector<16xf32> to vector<16x1xf32>
    %793 = tpu.reciprocal %792 : vector<16x1xf32> -> vector<16x1xf32>
    %794 = vector.broadcast %793 : vector<16x1xf32> to vector<16x16xf32>
    %795 = arith.mulf %790, %794 : vector<16x16xf32>
    %cst_668 = arith.constant dense<0.000000e+00> : vector<16x8xf32>
    %796 = tpu.matmul %795, %782, %cst_668 {dimension_numbers = #tpu.dot_dimension_numbers<[1], [0], [0], [1], [0, 0, 1, 1], [], []>} : vector<16x16xf32>, vector<16x8xf32>, vector<16x8xf32> -> vector<16x8xf32>
    %c1_669 = arith.constant 1 : index
    %c1_670 = arith.constant 1 : index
    %c0_671 = arith.constant 0 : index
    %c0_672 = arith.constant 0 : index
    %797 = vector.load %arg11[%c1_669, %c1_670, %c0_671, %c0_672] : memref<2x4x8x32xf32, #tpu.memory_space<vmem>>, vector<1x1x8x32xf32>
    %798 = vector.shape_cast %797 : vector<1x1x8x32xf32> to vector<8x32xf32>
    %cst_673 = arith.constant dense<0.000000e+00> : vector<16x32xf32>
    %799 = tpu.matmul %796, %798, %cst_673 {dimension_numbers = #tpu.dot_dimension_numbers<[1], [0], [0], [1], [0, 0, 1, 1], [], []>} : vector<16x8xf32>, vector<8x32xf32>, vector<16x32xf32> -> vector<16x32xf32>
    %800 = arith.addf %761, %799 : vector<16x32xf32>
    %c1_674 = arith.constant 1 : index
    %c2_675 = arith.constant 2 : index
    %c0_676 = arith.constant 0 : index
    %c0_677 = arith.constant 0 : index
    %801 = vector.load %arg5[%c1_674, %c2_675, %c0_676, %c0_677] : memref<2x4x32x8xf32, #tpu.memory_space<vmem>>, vector<1x1x32x8xf32>
    %802 = vector.shape_cast %801 : vector<1x1x32x8xf32> to vector<32x8xf32>
    %cst_678 = arith.constant dense<0.000000e+00> : vector<16x8xf32>
    %803 = tpu.matmul %723, %802, %cst_678 {dimension_numbers = #tpu.dot_dimension_numbers<[1], [0], [0], [1], [0, 0, 1, 1], [], []>} : vector<16x32xf32>, vector<32x8xf32>, vector<16x8xf32> -> vector<16x8xf32>
    %c1_679 = arith.constant 1 : index
    %c2_680 = arith.constant 2 : index
    %c0_681 = arith.constant 0 : index
    %c0_682 = arith.constant 0 : index
    %804 = vector.load %arg8[%c1_679, %c2_680, %c0_681, %c0_682] : memref<2x4x1x8xf32, #tpu.memory_space<vmem>>, vector<1x1x1x8xf32>
    %805 = vector.shape_cast %804 : vector<1x1x1x8xf32> to vector<1x8xf32>
    %806 = vector.broadcast %805 : vector<1x8xf32> to vector<16x8xf32>
    %807 = arith.addf %803, %806 : vector<16x8xf32>
    %c1_683 = arith.constant 1 : index
    %c2_684 = arith.constant 2 : index
    %c0_685 = arith.constant 0 : index
    %c0_686 = arith.constant 0 : index
    %808 = vector.load %arg6[%c1_683, %c2_684, %c0_685, %c0_686] : memref<2x4x32x8xf32, #tpu.memory_space<vmem>>, vector<1x1x32x8xf32>
    %809 = vector.shape_cast %808 : vector<1x1x32x8xf32> to vector<32x8xf32>
    %cst_687 = arith.constant dense<0.000000e+00> : vector<16x8xf32>
    %810 = tpu.matmul %723, %809, %cst_687 {dimension_numbers = #tpu.dot_dimension_numbers<[1], [0], [0], [1], [0, 0, 1, 1], [], []>} : vector<16x32xf32>, vector<32x8xf32>, vector<16x8xf32> -> vector<16x8xf32>
    %c1_688 = arith.constant 1 : index
    %c2_689 = arith.constant 2 : index
    %c0_690 = arith.constant 0 : index
    %c0_691 = arith.constant 0 : index
    %811 = vector.load %arg9[%c1_688, %c2_689, %c0_690, %c0_691] : memref<2x4x1x8xf32, #tpu.memory_space<vmem>>, vector<1x1x1x8xf32>
    %812 = vector.shape_cast %811 : vector<1x1x1x8xf32> to vector<1x8xf32>
    %813 = vector.broadcast %812 : vector<1x8xf32> to vector<16x8xf32>
    %814 = arith.addf %810, %813 : vector<16x8xf32>
    %c1_692 = arith.constant 1 : index
    %c2_693 = arith.constant 2 : index
    %c0_694 = arith.constant 0 : index
    %c0_695 = arith.constant 0 : index
    %815 = vector.load %arg7[%c1_692, %c2_693, %c0_694, %c0_695] : memref<2x4x32x8xf32, #tpu.memory_space<vmem>>, vector<1x1x32x8xf32>
    %816 = vector.shape_cast %815 : vector<1x1x32x8xf32> to vector<32x8xf32>
    %cst_696 = arith.constant dense<0.000000e+00> : vector<16x8xf32>
    %817 = tpu.matmul %723, %816, %cst_696 {dimension_numbers = #tpu.dot_dimension_numbers<[1], [0], [0], [1], [0, 0, 1, 1], [], []>} : vector<16x32xf32>, vector<32x8xf32>, vector<16x8xf32> -> vector<16x8xf32>
    %c1_697 = arith.constant 1 : index
    %c2_698 = arith.constant 2 : index
    %c0_699 = arith.constant 0 : index
    %c0_700 = arith.constant 0 : index
    %818 = vector.load %arg10[%c1_697, %c2_698, %c0_699, %c0_700] : memref<2x4x1x8xf32, #tpu.memory_space<vmem>>, vector<1x1x1x8xf32>
    %819 = vector.shape_cast %818 : vector<1x1x1x8xf32> to vector<1x8xf32>
    %820 = vector.broadcast %819 : vector<1x8xf32> to vector<16x8xf32>
    %821 = arith.addf %817, %820 : vector<16x8xf32>
    %cst_701 = arith.constant 0.353553385 : f32
    %822 = vector.broadcast %cst_701 : f32 to vector<16x8xf32>
    %823 = arith.mulf %807, %822 : vector<16x8xf32>
    %cst_702 = arith.constant dense<0.000000e+00> : vector<16x16xf32>
    %824 = tpu.matmul %823, %814, %cst_702 {dimension_numbers = #tpu.dot_dimension_numbers<[1], [1], [0], [0], [0, 0, 1, 0], [], []>} : vector<16x8xf32>, vector<16x8xf32>, vector<16x16xf32> -> vector<16x16xf32>
    %cst_703 = arith.constant dense<0xFF800000> : vector<16xf32>
    %825 = vector.multi_reduction <maximumf>, %824, %cst_703 [1] : vector<16x16xf32> to vector<16xf32>
    %826 = vector.shape_cast %825 : vector<16xf32> to vector<16x1xf32>
    %827 = vector.broadcast %826 : vector<16x1xf32> to vector<16x16xf32>
    %828 = arith.subf %824, %827 : vector<16x16xf32>
    %829 = math.exp %828 : vector<16x16xf32>
    %cst_704 = arith.constant dense<0.000000e+00> : vector<16xf32>
    %830 = vector.multi_reduction <add>, %829, %cst_704 [1] : vector<16x16xf32> to vector<16xf32>
    %831 = vector.shape_cast %830 : vector<16xf32> to vector<16x1xf32>
    %832 = tpu.reciprocal %831 : vector<16x1xf32> -> vector<16x1xf32>
    %833 = vector.broadcast %832 : vector<16x1xf32> to vector<16x16xf32>
    %834 = arith.mulf %829, %833 : vector<16x16xf32>
    %cst_705 = arith.constant dense<0.000000e+00> : vector<16x8xf32>
    %835 = tpu.matmul %834, %821, %cst_705 {dimension_numbers = #tpu.dot_dimension_numbers<[1], [0], [0], [1], [0, 0, 1, 1], [], []>} : vector<16x16xf32>, vector<16x8xf32>, vector<16x8xf32> -> vector<16x8xf32>
    %c1_706 = arith.constant 1 : index
    %c2_707 = arith.constant 2 : index
    %c0_708 = arith.constant 0 : index
    %c0_709 = arith.constant 0 : index
    %836 = vector.load %arg11[%c1_706, %c2_707, %c0_708, %c0_709] : memref<2x4x8x32xf32, #tpu.memory_space<vmem>>, vector<1x1x8x32xf32>
    %837 = vector.shape_cast %836 : vector<1x1x8x32xf32> to vector<8x32xf32>
    %cst_710 = arith.constant dense<0.000000e+00> : vector<16x32xf32>
    %838 = tpu.matmul %835, %837, %cst_710 {dimension_numbers = #tpu.dot_dimension_numbers<[1], [0], [0], [1], [0, 0, 1, 1], [], []>} : vector<16x8xf32>, vector<8x32xf32>, vector<16x32xf32> -> vector<16x32xf32>
    %839 = arith.addf %800, %838 : vector<16x32xf32>
    %c1_711 = arith.constant 1 : index
    %c3_712 = arith.constant 3 : index
    %c0_713 = arith.constant 0 : index
    %c0_714 = arith.constant 0 : index
    %840 = vector.load %arg5[%c1_711, %c3_712, %c0_713, %c0_714] : memref<2x4x32x8xf32, #tpu.memory_space<vmem>>, vector<1x1x32x8xf32>
    %841 = vector.shape_cast %840 : vector<1x1x32x8xf32> to vector<32x8xf32>
    %cst_715 = arith.constant dense<0.000000e+00> : vector<16x8xf32>
    %842 = tpu.matmul %723, %841, %cst_715 {dimension_numbers = #tpu.dot_dimension_numbers<[1], [0], [0], [1], [0, 0, 1, 1], [], []>} : vector<16x32xf32>, vector<32x8xf32>, vector<16x8xf32> -> vector<16x8xf32>
    %c1_716 = arith.constant 1 : index
    %c3_717 = arith.constant 3 : index
    %c0_718 = arith.constant 0 : index
    %c0_719 = arith.constant 0 : index
    %843 = vector.load %arg8[%c1_716, %c3_717, %c0_718, %c0_719] : memref<2x4x1x8xf32, #tpu.memory_space<vmem>>, vector<1x1x1x8xf32>
    %844 = vector.shape_cast %843 : vector<1x1x1x8xf32> to vector<1x8xf32>
    %845 = vector.broadcast %844 : vector<1x8xf32> to vector<16x8xf32>
    %846 = arith.addf %842, %845 : vector<16x8xf32>
    %c1_720 = arith.constant 1 : index
    %c3_721 = arith.constant 3 : index
    %c0_722 = arith.constant 0 : index
    %c0_723 = arith.constant 0 : index
    %847 = vector.load %arg6[%c1_720, %c3_721, %c0_722, %c0_723] : memref<2x4x32x8xf32, #tpu.memory_space<vmem>>, vector<1x1x32x8xf32>
    %848 = vector.shape_cast %847 : vector<1x1x32x8xf32> to vector<32x8xf32>
    %cst_724 = arith.constant dense<0.000000e+00> : vector<16x8xf32>
    %849 = tpu.matmul %723, %848, %cst_724 {dimension_numbers = #tpu.dot_dimension_numbers<[1], [0], [0], [1], [0, 0, 1, 1], [], []>} : vector<16x32xf32>, vector<32x8xf32>, vector<16x8xf32> -> vector<16x8xf32>
    %c1_725 = arith.constant 1 : index
    %c3_726 = arith.constant 3 : index
    %c0_727 = arith.constant 0 : index
    %c0_728 = arith.constant 0 : index
    %850 = vector.load %arg9[%c1_725, %c3_726, %c0_727, %c0_728] : memref<2x4x1x8xf32, #tpu.memory_space<vmem>>, vector<1x1x1x8xf32>
    %851 = vector.shape_cast %850 : vector<1x1x1x8xf32> to vector<1x8xf32>
    %852 = vector.broadcast %851 : vector<1x8xf32> to vector<16x8xf32>
    %853 = arith.addf %849, %852 : vector<16x8xf32>
    %c1_729 = arith.constant 1 : index
    %c3_730 = arith.constant 3 : index
    %c0_731 = arith.constant 0 : index
    %c0_732 = arith.constant 0 : index
    %854 = vector.load %arg7[%c1_729, %c3_730, %c0_731, %c0_732] : memref<2x4x32x8xf32, #tpu.memory_space<vmem>>, vector<1x1x32x8xf32>
    %855 = vector.shape_cast %854 : vector<1x1x32x8xf32> to vector<32x8xf32>
    %cst_733 = arith.constant dense<0.000000e+00> : vector<16x8xf32>
    %856 = tpu.matmul %723, %855, %cst_733 {dimension_numbers = #tpu.dot_dimension_numbers<[1], [0], [0], [1], [0, 0, 1, 1], [], []>} : vector<16x32xf32>, vector<32x8xf32>, vector<16x8xf32> -> vector<16x8xf32>
    %c1_734 = arith.constant 1 : index
    %c3_735 = arith.constant 3 : index
    %c0_736 = arith.constant 0 : index
    %c0_737 = arith.constant 0 : index
    %857 = vector.load %arg10[%c1_734, %c3_735, %c0_736, %c0_737] : memref<2x4x1x8xf32, #tpu.memory_space<vmem>>, vector<1x1x1x8xf32>
    %858 = vector.shape_cast %857 : vector<1x1x1x8xf32> to vector<1x8xf32>
    %859 = vector.broadcast %858 : vector<1x8xf32> to vector<16x8xf32>
    %860 = arith.addf %856, %859 : vector<16x8xf32>
    %cst_738 = arith.constant 0.353553385 : f32
    %861 = vector.broadcast %cst_738 : f32 to vector<16x8xf32>
    %862 = arith.mulf %846, %861 : vector<16x8xf32>
    %cst_739 = arith.constant dense<0.000000e+00> : vector<16x16xf32>
    %863 = tpu.matmul %862, %853, %cst_739 {dimension_numbers = #tpu.dot_dimension_numbers<[1], [1], [0], [0], [0, 0, 1, 0], [], []>} : vector<16x8xf32>, vector<16x8xf32>, vector<16x16xf32> -> vector<16x16xf32>
    %cst_740 = arith.constant dense<0xFF800000> : vector<16xf32>
    %864 = vector.multi_reduction <maximumf>, %863, %cst_740 [1] : vector<16x16xf32> to vector<16xf32>
    %865 = vector.shape_cast %864 : vector<16xf32> to vector<16x1xf32>
    %866 = vector.broadcast %865 : vector<16x1xf32> to vector<16x16xf32>
    %867 = arith.subf %863, %866 : vector<16x16xf32>
    %868 = math.exp %867 : vector<16x16xf32>
    %cst_741 = arith.constant dense<0.000000e+00> : vector<16xf32>
    %869 = vector.multi_reduction <add>, %868, %cst_741 [1] : vector<16x16xf32> to vector<16xf32>
    %870 = vector.shape_cast %869 : vector<16xf32> to vector<16x1xf32>
    %871 = tpu.reciprocal %870 : vector<16x1xf32> -> vector<16x1xf32>
    %872 = vector.broadcast %871 : vector<16x1xf32> to vector<16x16xf32>
    %873 = arith.mulf %868, %872 : vector<16x16xf32>
    %cst_742 = arith.constant dense<0.000000e+00> : vector<16x8xf32>
    %874 = tpu.matmul %873, %860, %cst_742 {dimension_numbers = #tpu.dot_dimension_numbers<[1], [0], [0], [1], [0, 0, 1, 1], [], []>} : vector<16x16xf32>, vector<16x8xf32>, vector<16x8xf32> -> vector<16x8xf32>
    %c1_743 = arith.constant 1 : index
    %c3_744 = arith.constant 3 : index
    %c0_745 = arith.constant 0 : index
    %c0_746 = arith.constant 0 : index
    %875 = vector.load %arg11[%c1_743, %c3_744, %c0_745, %c0_746] : memref<2x4x8x32xf32, #tpu.memory_space<vmem>>, vector<1x1x8x32xf32>
    %876 = vector.shape_cast %875 : vector<1x1x8x32xf32> to vector<8x32xf32>
    %cst_747 = arith.constant dense<0.000000e+00> : vector<16x32xf32>
    %877 = tpu.matmul %874, %876, %cst_747 {dimension_numbers = #tpu.dot_dimension_numbers<[1], [0], [0], [1], [0, 0, 1, 1], [], []>} : vector<16x8xf32>, vector<8x32xf32>, vector<16x32xf32> -> vector<16x32xf32>
    %878 = arith.addf %839, %877 : vector<16x32xf32>
    %c1_748 = arith.constant 1 : index
    %c0_749 = arith.constant 0 : index
    %c0_750 = arith.constant 0 : index
    %879 = vector.load %arg12[%c1_748, %c0_749, %c0_750] : memref<2x1x32xf32, #tpu.memory_space<vmem>>, vector<1x1x32xf32>
    %880 = vector.shape_cast %879 : vector<1x1x32xf32> to vector<1x32xf32>
    %881 = vector.broadcast %880 : vector<1x32xf32> to vector<16x32xf32>
    %882 = arith.addf %878, %881 : vector<16x32xf32>
    %883 = arith.addf %723, %882 : vector<16x32xf32>
    %cst_751 = arith.constant dense<0.000000e+00> : vector<16xf32>
    %884 = vector.multi_reduction <add>, %883, %cst_751 [1] : vector<16x32xf32> to vector<16xf32>
    %885 = vector.shape_cast %884 : vector<16xf32> to vector<16x1xf32>
    %cst_752 = arith.constant 3.200000e+01 : f32
    %886 = vector.broadcast %cst_752 : f32 to vector<16x1xf32>
    %887 = arith.divf %885, %886 : vector<16x1xf32>
    %888 = vector.broadcast %887 : vector<16x1xf32> to vector<16x32xf32>
    %889 = arith.subf %883, %888 : vector<16x32xf32>
    %890 = arith.mulf %889, %889 : vector<16x32xf32>
    %cst_753 = arith.constant dense<0.000000e+00> : vector<16xf32>
    %891 = vector.multi_reduction <add>, %890, %cst_753 [1] : vector<16x32xf32> to vector<16xf32>
    %892 = vector.shape_cast %891 : vector<16xf32> to vector<16x1xf32>
    %cst_754 = arith.constant 3.200000e+01 : f32
    %893 = vector.broadcast %cst_754 : f32 to vector<16x1xf32>
    %894 = arith.divf %892, %893 : vector<16x1xf32>
    %895 = vector.broadcast %887 : vector<16x1xf32> to vector<16x32xf32>
    %896 = arith.subf %883, %895 : vector<16x32xf32>
    %cst_755 = arith.constant 9.99999974E-6 : f32
    %897 = vector.broadcast %cst_755 : f32 to vector<16x1xf32>
    %898 = arith.addf %894, %897 : vector<16x1xf32>
    %899 = math.rsqrt %898 : vector<16x1xf32>
    %900 = vector.broadcast %899 : vector<16x1xf32> to vector<16x32xf32>
    %901 = arith.mulf %896, %900 : vector<16x32xf32>
    %c1_756 = arith.constant 1 : index
    %c0_757 = arith.constant 0 : index
    %c0_758 = arith.constant 0 : index
    %902 = vector.load %arg13[%c1_756, %c0_757, %c0_758] : memref<2x1x32xf32, #tpu.memory_space<vmem>>, vector<1x1x32xf32>
    %903 = vector.shape_cast %902 : vector<1x1x32xf32> to vector<1x32xf32>
    %904 = vector.broadcast %903 : vector<1x32xf32> to vector<16x32xf32>
    %905 = arith.mulf %901, %904 : vector<16x32xf32>
    %c1_759 = arith.constant 1 : index
    %c0_760 = arith.constant 0 : index
    %c0_761 = arith.constant 0 : index
    %906 = vector.load %arg14[%c1_759, %c0_760, %c0_761] : memref<2x1x32xf32, #tpu.memory_space<vmem>>, vector<1x1x32xf32>
    %907 = vector.shape_cast %906 : vector<1x1x32xf32> to vector<1x32xf32>
    %908 = vector.broadcast %907 : vector<1x32xf32> to vector<16x32xf32>
    %909 = arith.addf %905, %908 : vector<16x32xf32>
    %c1_762 = arith.constant 1 : index
    %c0_763 = arith.constant 0 : index
    %c0_764 = arith.constant 0 : index
    %910 = vector.load %arg15[%c1_762, %c0_763, %c0_764] : memref<2x32x32xf32, #tpu.memory_space<vmem>>, vector<1x32x32xf32>
    %911 = vector.shape_cast %910 : vector<1x32x32xf32> to vector<32x32xf32>
    %cst_765 = arith.constant dense<0.000000e+00> : vector<16x32xf32>
    %912 = tpu.matmul %909, %911, %cst_765 {dimension_numbers = #tpu.dot_dimension_numbers<[1], [0], [0], [1], [0, 0, 1, 1], [], []>} : vector<16x32xf32>, vector<32x32xf32>, vector<16x32xf32> -> vector<16x32xf32>
    %c1_766 = arith.constant 1 : index
    %c0_767 = arith.constant 0 : index
    %c0_768 = arith.constant 0 : index
    %913 = vector.load %arg16[%c1_766, %c0_767, %c0_768] : memref<2x1x32xf32, #tpu.memory_space<vmem>>, vector<1x1x32xf32>
    %914 = vector.shape_cast %913 : vector<1x1x32xf32> to vector<1x32xf32>
    %915 = vector.broadcast %914 : vector<1x32xf32> to vector<16x32xf32>
    %916 = arith.addf %912, %915 : vector<16x32xf32>
    %cst_769 = arith.constant 0.000000e+00 : f32
    %917 = vector.broadcast %cst_769 : f32 to vector<16x32xf32>
    %918 = arith.maximumf %916, %917 : vector<16x32xf32>
    %c1_770 = arith.constant 1 : index
    %c0_771 = arith.constant 0 : index
    %c0_772 = arith.constant 0 : index
    %919 = vector.load %arg17[%c1_770, %c0_771, %c0_772] : memref<2x32x32xf32, #tpu.memory_space<vmem>>, vector<1x32x32xf32>
    %920 = vector.shape_cast %919 : vector<1x32x32xf32> to vector<32x32xf32>
    %cst_773 = arith.constant dense<0.000000e+00> : vector<16x32xf32>
    %921 = tpu.matmul %918, %920, %cst_773 {dimension_numbers = #tpu.dot_dimension_numbers<[1], [0], [0], [1], [0, 0, 1, 1], [], []>} : vector<16x32xf32>, vector<32x32xf32>, vector<16x32xf32> -> vector<16x32xf32>
    %c1_774 = arith.constant 1 : index
    %c0_775 = arith.constant 0 : index
    %c0_776 = arith.constant 0 : index
    %922 = vector.load %arg18[%c1_774, %c0_775, %c0_776] : memref<2x1x32xf32, #tpu.memory_space<vmem>>, vector<1x1x32xf32>
    %923 = vector.shape_cast %922 : vector<1x1x32xf32> to vector<1x32xf32>
    %924 = vector.broadcast %923 : vector<1x32xf32> to vector<16x32xf32>
    %925 = arith.addf %921, %924 : vector<16x32xf32>
    %926 = arith.addf %909, %925 : vector<16x32xf32>
    %cst_777 = arith.constant dense<0.000000e+00> : vector<16xf32>
    %927 = vector.multi_reduction <add>, %926, %cst_777 [1] : vector<16x32xf32> to vector<16xf32>
    %928 = vector.shape_cast %927 : vector<16xf32> to vector<16x1xf32>
    %cst_778 = arith.constant 3.200000e+01 : f32
    %929 = vector.broadcast %cst_778 : f32 to vector<16x1xf32>
    %930 = arith.divf %928, %929 : vector<16x1xf32>
    %931 = vector.broadcast %930 : vector<16x1xf32> to vector<16x32xf32>
    %932 = arith.subf %926, %931 : vector<16x32xf32>
    %933 = arith.mulf %932, %932 : vector<16x32xf32>
    %cst_779 = arith.constant dense<0.000000e+00> : vector<16xf32>
    %934 = vector.multi_reduction <add>, %933, %cst_779 [1] : vector<16x32xf32> to vector<16xf32>
    %935 = vector.shape_cast %934 : vector<16xf32> to vector<16x1xf32>
    %cst_780 = arith.constant 3.200000e+01 : f32
    %936 = vector.broadcast %cst_780 : f32 to vector<16x1xf32>
    %937 = arith.divf %935, %936 : vector<16x1xf32>
    %938 = vector.broadcast %930 : vector<16x1xf32> to vector<16x32xf32>
    %939 = arith.subf %926, %938 : vector<16x32xf32>
    %cst_781 = arith.constant 9.99999974E-6 : f32
    %940 = vector.broadcast %cst_781 : f32 to vector<16x1xf32>
    %941 = arith.addf %937, %940 : vector<16x1xf32>
    %942 = math.rsqrt %941 : vector<16x1xf32>
    %943 = vector.broadcast %942 : vector<16x1xf32> to vector<16x32xf32>
    %944 = arith.mulf %939, %943 : vector<16x32xf32>
    %c1_782 = arith.constant 1 : index
    %c0_783 = arith.constant 0 : index
    %c0_784 = arith.constant 0 : index
    %945 = vector.load %arg19[%c1_782, %c0_783, %c0_784] : memref<2x1x32xf32, #tpu.memory_space<vmem>>, vector<1x1x32xf32>
    %946 = vector.shape_cast %945 : vector<1x1x32xf32> to vector<1x32xf32>
    %947 = vector.broadcast %946 : vector<1x32xf32> to vector<16x32xf32>
    %948 = arith.mulf %944, %947 : vector<16x32xf32>
    %c1_785 = arith.constant 1 : index
    %c0_786 = arith.constant 0 : index
    %c0_787 = arith.constant 0 : index
    %949 = vector.load %arg20[%c1_785, %c0_786, %c0_787] : memref<2x1x32xf32, #tpu.memory_space<vmem>>, vector<1x1x32xf32>
    %950 = vector.shape_cast %949 : vector<1x1x32xf32> to vector<1x32xf32>
    %951 = vector.broadcast %950 : vector<1x32xf32> to vector<16x32xf32>
    %952 = arith.addf %948, %951 : vector<16x32xf32>
    %c1_788 = arith.constant 1 : index
    %c0_789 = arith.constant 0 : index
    %c0_790 = arith.constant 0 : index
    %953 = vector.load %arg21[%c1_788, %c0_789, %c0_790] : memref<2x16x32xf32, #tpu.memory_space<vmem>>, vector<1x16x32xf32>
    %954 = vector.shape_cast %953 : vector<1x16x32xf32> to vector<16x32xf32>
    %955 = vector.shape_cast %952 : vector<16x32xf32> to vector<1x16x32xf32>
    tpu.vector_store %arg21[%c1_788, %c0_789, %c0_790], %955 {strides = array<i32>} : memref<2x16x32xf32, #tpu.memory_space<vmem>>, vector<1x16x32xf32>,
    return
  }
  func.func @transform_0(%arg0: i32) -> (i32, i32, i32) {
    %c0_i32 = arith.constant 0 : i32
    %c0_i32_0 = arith.constant 0 : i32
    %c0_i32_1 = arith.constant 0 : i32
    return %arg0, %c0_i32, %c0_i32_0 : i32, i32, i32
  }
  func.func @transform_1(%arg0: i32) -> (i32, i32) {
    %c0_i32 = arith.constant 0 : i32
    %c0_i32_0 = arith.constant 0 : i32
    %c0_i32_1 = arith.constant 0 : i32
    return %c0_i32, %c0_i32_0 : i32, i32
  }
  func.func @transform_2(%arg0: i32) -> (i32, i32) {
    %c0_i32 = arith.constant 0 : i32
    %c0_i32_0 = arith.constant 0 : i32
    %c0_i32_1 = arith.constant 0 : i32
    return %c0_i32, %c0_i32_0 : i32, i32
  }
  func.func @transform_3(%arg0: i32) -> (i32, i32) {
    %c0_i32 = arith.constant 0 : i32
    %c0_i32_0 = arith.constant 0 : i32
    %c0_i32_1 = arith.constant 0 : i32
    return %c0_i32, %c0_i32_0 : i32, i32
  }
  func.func @transform_4(%arg0: i32) -> (i32, i32, i32, i32) {
    %c0_i32 = arith.constant 0 : i32
    %c0_i32_0 = arith.constant 0 : i32
    %c0_i32_1 = arith.constant 0 : i32
    %c0_i32_2 = arith.constant 0 : i32
    %c0_i32_3 = arith.constant 0 : i32
    return %c0_i32, %c0_i32_0, %c0_i32_1, %c0_i32_2 : i32, i32, i32, i32
  }
  func.func @transform_5(%arg0: i32) -> (i32, i32, i32, i32) {
    %c0_i32 = arith.constant 0 : i32
    %c0_i32_0 = arith.constant 0 : i32
    %c0_i32_1 = arith.constant 0 : i32
    %c0_i32_2 = arith.constant 0 : i32
    %c0_i32_3 = arith.constant 0 : i32
    return %c0_i32, %c0_i32_0, %c0_i32_1, %c0_i32_2 : i32, i32, i32, i32
  }
  func.func @transform_6(%arg0: i32) -> (i32, i32, i32, i32) {
    %c0_i32 = arith.constant 0 : i32
    %c0_i32_0 = arith.constant 0 : i32
    %c0_i32_1 = arith.constant 0 : i32
    %c0_i32_2 = arith.constant 0 : i32
    %c0_i32_3 = arith.constant 0 : i32
    return %c0_i32, %c0_i32_0, %c0_i32_1, %c0_i32_2 : i32, i32, i32, i32
  }
  func.func @transform_7(%arg0: i32) -> (i32, i32, i32, i32) {
    %c0_i32 = arith.constant 0 : i32
    %c0_i32_0 = arith.constant 0 : i32
    %c0_i32_1 = arith.constant 0 : i32
    %c0_i32_2 = arith.constant 0 : i32
    %c0_i32_3 = arith.constant 0 : i32
    return %c0_i32, %c0_i32_0, %c0_i32_1, %c0_i32_2 : i32, i32, i32, i32
  }
  func.func @transform_8(%arg0: i32) -> (i32, i32, i32, i32) {
    %c0_i32 = arith.constant 0 : i32
    %c0_i32_0 = arith.constant 0 : i32
    %c0_i32_1 = arith.constant 0 : i32
    %c0_i32_2 = arith.constant 0 : i32
    %c0_i32_3 = arith.constant 0 : i32
    return %c0_i32, %c0_i32_0, %c0_i32_1, %c0_i32_2 : i32, i32, i32, i32
  }
  func.func @transform_9(%arg0: i32) -> (i32, i32, i32, i32) {
    %c0_i32 = arith.constant 0 : i32
    %c0_i32_0 = arith.constant 0 : i32
    %c0_i32_1 = arith.constant 0 : i32
    %c0_i32_2 = arith.constant 0 : i32
    %c0_i32_3 = arith.constant 0 : i32
    return %c0_i32, %c0_i32_0, %c0_i32_1, %c0_i32_2 : i32, i32, i32, i32
  }
  func.func @transform_10(%arg0: i32) -> (i32, i32, i32, i32) {
    %c0_i32 = arith.constant 0 : i32
    %c0_i32_0 = arith.constant 0 : i32
    %c0_i32_1 = arith.constant 0 : i32
    %c0_i32_2 = arith.constant 0 : i32
    %c0_i32_3 = arith.constant 0 : i32
    return %c0_i32, %c0_i32_0, %c0_i32_1, %c0_i32_2 : i32, i32, i32, i32
  }
  func.func @transform_11(%arg0: i32) -> (i32, i32, i32) {
    %c0_i32 = arith.constant 0 : i32
    %c0_i32_0 = arith.constant 0 : i32
    %c0_i32_1 = arith.constant 0 : i32
    %c0_i32_2 = arith.constant 0 : i32
    return %c0_i32, %c0_i32_0, %c0_i32_1 : i32, i32, i32
  }
  func.func @transform_12(%arg0: i32) -> (i32, i32, i32) {
    %c0_i32 = arith.constant 0 : i32
    %c0_i32_0 = arith.constant 0 : i32
    %c0_i32_1 = arith.constant 0 : i32
    %c0_i32_2 = arith.constant 0 : i32
    return %c0_i32, %c0_i32_0, %c0_i32_1 : i32, i32, i32
  }
  func.func @transform_13(%arg0: i32) -> (i32, i32, i32) {
    %c0_i32 = arith.constant 0 : i32
    %c0_i32_0 = arith.constant 0 : i32
    %c0_i32_1 = arith.constant 0 : i32
    %c0_i32_2 = arith.constant 0 : i32
    return %c0_i32, %c0_i32_0, %c0_i32_1 : i32, i32, i32
  }
  func.func @transform_14(%arg0: i32) -> (i32, i32, i32) {
    %c0_i32 = arith.constant 0 : i32
    %c0_i32_0 = arith.constant 0 : i32
    %c0_i32_1 = arith.constant 0 : i32
    %c0_i32_2 = arith.constant 0 : i32
    return %c0_i32, %c0_i32_0, %c0_i32_1 : i32, i32, i32
  }
  func.func @transform_15(%arg0: i32) -> (i32, i32, i32) {
    %c0_i32 = arith.constant 0 : i32
    %c0_i32_0 = arith.constant 0 : i32
    %c0_i32_1 = arith.constant 0 : i32
    %c0_i32_2 = arith.constant 0 : i32
    return %c0_i32, %c0_i32_0, %c0_i32_1 : i32, i32, i32
  }
  func.func @transform_16(%arg0: i32) -> (i32, i32, i32) {
    %c0_i32 = arith.constant 0 : i32
    %c0_i32_0 = arith.constant 0 : i32
    %c0_i32_1 = arith.constant 0 : i32
    %c0_i32_2 = arith.constant 0 : i32
    return %c0_i32, %c0_i32_0, %c0_i32_1 : i32, i32, i32
  }
  func.func @transform_17(%arg0: i32) -> (i32, i32, i32) {
    %c0_i32 = arith.constant 0 : i32
    %c0_i32_0 = arith.constant 0 : i32
    %c0_i32_1 = arith.constant 0 : i32
    %c0_i32_2 = arith.constant 0 : i32
    return %c0_i32, %c0_i32_0, %c0_i32_1 : i32, i32, i32
  }
  func.func @transform_18(%arg0: i32) -> (i32, i32, i32) {
    %c0_i32 = arith.constant 0 : i32
    %c0_i32_0 = arith.constant 0 : i32
    %c0_i32_1 = arith.constant 0 : i32
    %c0_i32_2 = arith.constant 0 : i32
    return %c0_i32, %c0_i32_0, %c0_i32_1 : i32, i32, i32
  }
  func.func @transform_19(%arg0: i32) -> (i32, i32, i32) {
    %c0_i32 = arith.constant 0 : i32
    %c0_i32_0 = arith.constant 0 : i32
    %c0_i32_1 = arith.constant 0 : i32
    %c0_i32_2 = arith.constant 0 : i32
    return %c0_i32, %c0_i32_0, %c0_i32_1 : i32, i32, i32
  }
  func.func @transform_20(%arg0: i32) -> (i32, i32, i32) {
    %c0_i32 = arith.constant 0 : i32
    %c0_i32_0 = arith.constant 0 : i32
    %c0_i32_1 = arith.constant 0 : i32
    return %arg0, %c0_i32, %c0_i32_0 : i32, i32, i32
  }
}

</mosaic_0001>

<bundles_post_ra>
// kernel: tpu_custom_call.1
= control target key start
LH: loop header
LB: loop body
LE: loop exit
PB: predicated region body
PF: predicated region fallthrough
CT: control target
= control target key end

     0   :  { %s15140_s0 = inlined_call_operand.vmem [shape: f32[2,18,32], index: 0, kind: input, shape index: {}]   ;;  %s15141_s1 = inlined_call_operand.vmem [shape: f32[96,32], index: 1, kind: input, shape index: {}]   ;;  %s15142_s2 = inlined_call_operand.vmem [shape: f32[1,32], index: 2, kind: input, shape index: {}]   ;;  %s15143_s3 = inlined_call_operand.vmem [shape: f32[16,32], index: 3, kind: input, shape index: {}]   ;;  %s15144_s4 = inlined_call_operand.vmem [shape: f32[2,4,32,8], index: 4, kind: input, shape index: {}]   ;;  %s15145_s5 = inlined_call_operand.vmem [shape: f32[2,4,32,8], index: 5, kind: input, shape index: {}]   ;;  %s15146_s6 = inlined_call_operand.vmem [shape: f32[2,4,32,8], index: 6, kind: input, shape index: {}]   ;;  %s15147_s7 = inlined_call_operand.vmem [shape: f32[2,4,1,8], index: 7, kind: input, shape index: {}]   ;;  %s15148_s8 = inlined_call_operand.vmem [shape: f32[2,4,1,8], index: 8, kind: input, shape index: {}]   ;;  %s15149_s9 = inlined_call_operand.vmem [shape: f32[2,4,1,8], index: 9, kind: input, shape index: {}]   ;;  %s15150_s10 = inlined_call_operand.vmem [shape: f32[2,4,8,32], index: 10, kind: input, shape index: {}]   ;;  %s15151_s11 = inlined_call_operand.vmem [shape: f32[2,1,32], index: 11, kind: input, shape index: {}]   ;;  %s15152_s12 = inlined_call_operand.vmem [shape: f32[2,1,32], index: 12, kind: input, shape index: {}]   ;;  %s15153_s13 = inlined_call_operand.vmem [shape: f32[2,1,32], index: 13, kind: input, shape index: {}]   ;;  %s15154_s14 = inlined_call_operand.vmem [shape: f32[2,32,32], index: 14, kind: input, shape index: {}]   ;;  %s15155_s15 = inlined_call_operand.vmem [shape: f32[2,1,32], index: 15, kind: input, shape index: {}]   ;;  %s15156_s16 = inlined_call_operand.vmem [shape: f32[2,32,32], index: 16, kind: input, shape index: {}]   ;;  %s15157_s17 = inlined_call_operand.vmem [shape: f32[2,1,32], index: 17, kind: input, shape index: {}]   ;;  %s15158_s18 = inlined_call_operand.vmem [shape: f32[2,1,32], index: 18, kind: input, shape index: {}]   ;;  %s15159_s19 = inlined_call_operand.vmem [shape: f32[2,1,32], index: 19, kind: input, shape index: {}]   ;;  %s15160_s20 = inlined_call_operand.hbm [shape: f32[2,16,32], index: 20, kind: output, shape index: {}]  }
   0x1   :  { %15165 = sst [smem:[#allocation5_spill]] %s15140_s0 }
   0x2   :  { %15166 = sst [smem:[#allocation6_spill]] %s15141_s1 }
   0x3   :  { %15167 = sst [smem:[#allocation7_spill]] %s15142_s2 }
   0x4   :  { %15168 = sst [smem:[#allocation8_spill]] %s15143_s3 }
   0x5   :  { %15169 = sst [smem:[#allocation9_spill]] %s15144_s4 }
   0x6   :  { %s15170_s23 = sld [smem:[#allocation6_spill]]  ;;  %vm83_vm0 = vcmask 261120   ;;  %s15171_s29 = sld [smem:[#allocation5_spill]] }
   0x7   :  { %s15172_s27 = sld [smem:[#allocation9_spill]] }
   0xc   :  { %v79_v0 = vld [vmem:[%s15170_s23] sm:$0xff]  ;;  %v80_v1 = vld [vmem:[%s15170_s23 + $0x8] sm:$0xff]  ;;  %v81_v2 = vld [vmem:[%s15170_s23 + $0x10] sm:$0xff] }
   0xd   :  { %v12518_v3 = vpack.c.bf16 %v80_v1, %v79_v0  ;;  %v82_v4 = vld [vmem:[%s15170_s23 + $0x18] sm:$0xff]  ;;  %v77_v5 = vld [vmem:[%s15171_s29] sm:$0xff]  ;;  %v170_v8 = vld [vmem:[%s15170_s23 + $0x28] sm:$0xff] }
   0xe   :  { %v12522_v6 = vpack.c.bf16 %v82_v4, %v81_v2  ;;  %11540 = vmatprep.mubr.msk.f32.mxu0 %vm83_vm0, %v77_v5  ;;  %v169_v7 = vld [vmem:[%s15170_s23 + $0x20] sm:$0xff]  ;;  %v171_v10 = vld [vmem:[%s15170_s23 + $0x30] sm:$0xff]  ;;  %v172_v11 = vld [vmem:[%s15170_s23 + $0x38] sm:$0xff] }
   0xf   :  { %12519 = vmatprep.subr.bf16.mxu0 %v12518_v3  ;;  %v12526_v9 = vpack.c.bf16 %v170_v8, %v169_v7  ;;  %v345_v12 = vld [vmem:[%s15172_s27] sm:$0xff]  ;;  %v346_v13 = vld [vmem:[%s15172_s27 + $0x8] sm:$0xff] }
  0x10   :  { %12521 = vmatpush3.bf16.msra.mxu0 %v12518_v3  ;;  %v12542_v14 = vpack.c.bf16 %v346_v13, %v345_v12 }
  0x11   :  { %12523 = vmatprep.subr.bf16.mxu0 %v12522_v6 }
  0x12   :  { %25 = vsyncpa [#allocation3], 0  ;;  %v78_v15 = vld [vmem:[%s15171_s29 + $0x8] sm:$0xff]  ;;  %v12530_v16 = vpack.c.bf16 %v172_v11, %v171_v10  ;;  %12543 = vmatprep.subr.bf16.mxu1 %v12542_v14  ;;  %v258_v18 = vld [vmem:[%s15170_s23 + $0x40] sm:$0xff]  ;;  %s15173_s22 = sld [smem:[#allocation7_spill]]  ;;  %s15174_s25 = sld [smem:[#allocation8_spill]] }
  0x13   :  { %v167_v17 = vld [vmem:[%s15171_s29 + $0x1] sm:$0xff]  ;;  %12545 = vmatpush3.bf16.msra.mxu1 %v12542_v14  ;;  %v260_v21 = vld [vmem:[%s15170_s23 + $0x50] sm:$0xff]  ;;  %v261_v22 = vld [vmem:[%s15170_s23 + $0x58] sm:$0xff]  ;;  %vm611_vm1 = vcmask 64512   ;;  %vm699_vm3 = vcmask 130048  }
  0x14   :  { %12525 = vmatpush3.bf16.msra.mxu0 %v12522_v6  ;;  %v259_v19 = vld [vmem:[%s15170_s23 + $0x48] sm:$0xff]  ;;  %v12538_v24 = vpack.c.bf16 %v261_v22, %v260_v21  ;;  %v347_v27 = vld [vmem:[%s15172_s27 + $0x10] sm:$0xff]  ;;  %v348_v28 = vld [vmem:[%s15172_s27 + $0x18] sm:$0xff] }
  0x15   :  { %12527 = vmatprep.subr.bf16.mxu0 %v12526_v9  ;;  %v12534_v20 = vpack.c.bf16 %v259_v19, %v258_v18  ;;  %v168_v23 = vld [vmem:[%s15171_s29 + $0x9] sm:$0xff]  ;;  %v12546_v29 = vpack.c.bf16 %v348_v28, %v347_v27  ;;  %v437_v30 = vld [vmem:[%s15145_s5] sm:$0xff]  ;;  %v440_v40 = vld [vmem:[%s15145_s5 + $0x18] sm:$0xff] }
  0x16   :  { %v256_v25 = vld [vmem:[%s15171_s29 + $0x2] sm:$0xff]  ;;  %v257_v26 = vld [vmem:[%s15171_s29 + $0xa] sm:$0xff]  ;;  %v526_v49 = vld [vmem:[%s15146_s6 + $0x18] sm:$0xff] }
  0x17   :  { %11541 = vmatmul.mubr.msk.f32.vlgmr.msra.gmra.mrb[0].mxu0 %vm83_vm0, %v78_v15  ;;  %12547 = vmatprep.subr.bf16.mxu1 %v12546_v29  ;;  %v438_v31 = vld [vmem:[%s15145_s5 + $0x8] sm:$0xff]  ;;  %v439_v39 = vld [vmem:[%s15145_s5 + $0x10] sm:$0xff]  ;;  %v523_v45 = vld [vmem:[%s15146_s6] sm:$0xff] }
  0x18   :  { %12529 = vmatpush3.bf16.msra.mxu0 %v12526_v9  ;;  %11551 = vmatprep.mubr.msk.f32.mxu0 %vm83_vm0, %v167_v17  ;;  %v12550_v32 = vpack.c.bf16 %v438_v31, %v437_v30  ;;  %v10395_v33 = vld [vmem:[%s15173_s22] ss:$0 sm:$0xff]  ;;  %v68_v35 = vld [vmem:[%s15174_s25 + $0x8] sm:$0xff]  ;;  %v12554_v44 = vpack.c.bf16 %v440_v40, %v439_v39  ;;  %v525_v48 = vld [vmem:[%s15146_s6 + $0x10] sm:$0xff] }
  0x19   :  { %12531 = vmatprep.subr.bf16.mxu0 %v12530_v16  ;;  %12549 = vmatpush3.bf16.msra.mxu1 %v12546_v29  ;;  %v67_v34 = vld [vmem:[%s15174_s25] sm:$0xff]  ;;  %v13594_v37 = vadd.f32 %v10395_v33, %v68_v35  ;;  %v524_v46 = vld [vmem:[%s15146_s6 + $0x8] sm:$0xff]  ;;  %v12562_v50 = vpack.c.bf16 %v526_v49, %v525_v48  ;;  %vm13647_vm2 = vmpackc.low %vm611_vm1, %vm611_vm1 }
  0x1a   :  { %12551 = vmatprep.subr.bf16.mxu1 %v12550_v32  ;;  %v13592_v36 = vadd.f32 %v10395_v33, %v67_v34  ;;  %v12558_v47 = vpack.c.bf16 %v524_v46, %v523_v45  ;;  %v10402_v51 = vld [vmem:[%s15147_s7] ss:$0 sm:$0xff]  ;;  %v10426_v61 = vld [vmem:[%s15145_s5 + $0x28] sm:$0xff]  ;;  %v10427_v7 = vld [vmem:[%s15145_s5 + $0x30] sm:$0xff] }
  0x1b   :  { %v10405_v56 = vld [vmem:[%s15148_s8] ss:$0 sm:$0xff]  ;;  %v10428_v8 = vld [vmem:[%s15145_s5 + $0x38] sm:$0xff]  ;;  %v10430_v17 = vld [vmem:[%s15148_s8 + $0x1] ss:$0 sm:$0xff] }
  0x1c   :  { %12533 = vmatpush3.bf16.msra.mxu0 %v12530_v16  ;;  %v10425_v60 = vld [vmem:[%s15145_s5 + $0x20] sm:$0xff]  ;;  %v12588_v12 = vpack.c.bf16 %v10428_v8, %v10427_v7  ;;  %v10418_v34 = vld [vmem:[%s15172_s27 + $0x28] sm:$0xff]  ;;  %v10420_v45 = vld [vmem:[%s15172_s27 + $0x38] sm:$0xff] }
  0x1d   :  { %12535 = vmatprep.subr.bf16.mxu0 %v12534_v20  ;;  %v12584_v1 = vpack.c.bf16 %v10426_v61, %v10425_v60  ;;  %v10408_v2 = vld [vmem:[%s15149_s9] ss:$0 sm:$0xff]  ;;  %v10463_v7 = vld [vmem:[%s15145_s5 + $0x58] sm:$0xff] }
  0x1e   :  { %v10417_v33 = vld [vmem:[%s15172_s27 + $0x20] sm:$0xff] }
  0x1f   :  { %11552 = vmatmul.mubr.msk.f32.vlgmr.msra.gmra.mrb[0].mxu0 %vm83_vm0, %v168_v23  ;;  %v12576_v35 = vpack.c.bf16 %v10418_v34, %v10417_v33  ;;  %v10433_v49 = vld [vmem:[%s15146_s6 + $0x20] sm:$0xff]  ;;  %v10447_v34 = vld [vmem:[%s15150_s10 + $0x8] sm:$0xff] }
  0x20   :  { %12537 = vmatpush3.bf16.msra.mxu0 %v12534_v20  ;;  %11562 = vmatprep.mubr.msk.f32.mxu0 %vm83_vm0, %v256_v25 }
  0x21   :  { %12539 = vmatprep.subr.bf16.mxu0 %v12538_v24 }
  0x24   :  { %12541 = vmatpush3.bf16.msra.mxu0 %v12538_v24 }
  0x27   :  { %11563 = vmatmul.mubr.msk.f32.vlgmr.msra.gmra.mrb[0].mxu0 %vm83_vm0, %v257_v26 }
  0xfa   :  { %v11564_v38 = vpop.f32.mrb[0].mxu0 }
  0xfb   :  { %v334_v41 = vpop.f32.mrb[1].mxu0  ;;  %v13606_v43 = vadd.f32 %v11564_v38, %v13594_v37 }
  0xfc   :  { %v13603_v42 = vadd.f32 %v334_v41, %v13592_v36 }
  0xfe   :  { %11573 = vmatprep.mubr.msk.f32.mxu1 %vm83_vm0, %v13603_v42 }
  0xff   :  { %11574 = vmatmul.mubr.msk.f32.vlgmr.msra.gmra.mrb[0].mxu1 %vm83_vm0, %v13606_v43 }
 0x100   :  { %12553 = vmatpush3.bf16.msra.mxu1 %v12550_v32  ;;  %11584 = vmatprep.mubr.msk.f32.mxu1 %vm83_vm0, %v13603_v42 }
 0x101   :  { %12555 = vmatprep.subr.bf16.mxu1 %v12554_v44 }
 0x104   :  { %12557 = vmatpush3.bf16.msra.mxu1 %v12554_v44  ;;  %v10419_v44 = vld [vmem:[%s15172_s27 + $0x30] sm:$0xff] }
 0x105   :  { %12559 = vmatprep.subr.bf16.mxu1 %v12558_v47  ;;  %v12580_v48 = vpack.c.bf16 %v10420_v45, %v10419_v44  ;;  %v10452_v45 = vld [vmem:[%s15172_s27 + $0x40] sm:$0xff] }
 0x107   :  { %11585 = vmatmul.mubr.msk.f32.vlgmr.msra.gmra.mrb[2].mxu1 %vm83_vm0, %v13606_v43 }
 0x108   :  { %12561 = vmatpush3.bf16.msra.mxu1 %v12558_v47  ;;  %11595 = vmatprep.mubr.msk.f32.mxu1 %vm83_vm0, %v13603_v42 }
 0x109   :  { %12563 = vmatprep.subr.bf16.mxu1 %v12562_v50 }
 0x10c   :  { %12565 = vmatpush3.bf16.msra.mxu1 %v12562_v50  ;;  %v10434_v50 = vld [vmem:[%s15146_s6 + $0x28] sm:$0xff] }
 0x10f   :  { %11596 = vmatmul.mubr.msk.f32.vlgmr.msra.gmra.mrb[4].mxu1 %vm83_vm0, %v13606_v43 }
 0x1d2   :  { %v11575_v52 = vpop.f32.mrb[0].mxu1 }
 0x1d3   :  { %v428_v53 = vpop.f32.mrb[1].mxu1  ;;  %v434_v3 = vadd.f32 %v11575_v52, %v10402_v51  ;;  %v10435_v52 = vld [vmem:[%s15146_s6 + $0x30] sm:$0xff] }
 0x1d4   :  { %v429_v54 = vadd.f32 %v10402_v51, %v428_v53  ;;  %v12592_v51 = vpack.c.bf16 %v10434_v50, %v10433_v49  ;;  %v10436_v53 = vld [vmem:[%s15146_s6 + $0x38] sm:$0xff] }
 0x1d5   :  { %v610_v10 = vmul.f32 0.35355338, %v434_v3  ;;  %v10455_v49 = vld [vmem:[%s15172_s27 + $0x58] sm:$0xff] }
 0x1d6   :  { %v609_v55 = vmul.f32 0.35355338, %v429_v54  ;;  %v12596_v54 = vpack.c.bf16 %v10436_v53, %v10435_v52  ;;  %v10468_v53 = vld [vmem:[%s15146_s6 + $0x40] sm:$0xff] }
 0x1d8   :  { %11602 = vmatprep.mubr.msk.f32.mxu0 %vm611_vm1, %v609_v55  ;;  %v803_v55 = vld [vmem:[%s15150_s10] sm:$0xff] }
 0x1da   :  { %v11586_v57 = vpop.f32.mrb[2].mxu1 }
 0x1db   :  { %v520_v58 = vadd.f32 %v11586_v57, %v10405_v56  ;;  %v514_v59 = vpop.f32.mrb[3].mxu1 }
 0x1dc   :  { %v515_v62 = vadd.f32 %v10405_v56, %v514_v59 }
 0x1de   :  { %v12566_v0 = vpack.c.bf16 %v520_v58, %v515_v62  ;;  %v10422_v58 = vld [vmem:[%s15147_s7 + $0x1] ss:$0 sm:$0xff] }
 0x1e0   :  { %12568 = vmatprep.subr.msk.bf16.mxu0 %vm13647_vm2, %v12566_v0 }
 0x1e1   :  { %12571 = vmatpush3.bf16.xpose.msk.msra.mxu0 %vm13647_vm2, %v12566_v0  ;;  %v10460_v0 = vld [vmem:[%s15145_s5 + $0x40] sm:$0xff] }
 0x1e2   :  { %v11597_v4 = vpop.f32.mrb[4].mxu1  ;;  %12585 = vmatprep.subr.bf16.mxu0 %v12584_v1 }
 0x1e3   :  { %v606_v5 = vadd.f32 %v11597_v4, %v10408_v2  ;;  %v600_v6 = vpop.f32.mrb[5].mxu1 }
 0x1e4   :  { %v601_v9 = vadd.f32 %v10408_v2, %v600_v6  ;;  %v10462_v6 = vld [vmem:[%s15145_s5 + $0x50] sm:$0xff] }
 0x1e6   :  { %v12572_v11 = vpack.c.bf16 %v606_v5, %v601_v9  ;;  %v10438_v5 = vld [vmem:[%s15149_s9 + $0x1] ss:$0 sm:$0xff] }
 0x1e8   :  { %11603 = vmatmul.mubr.msk.f32.vlgmr.msra.gmra.mrb[2].mxu0 %vm611_vm1, %v610_v10  ;;  %12573 = vmatprep.subr.bf16.mxu1 %v12572_v11 }
 0x1e9   :  { %12575 = vmatpush3.bf16.msra.mxu1 %v12572_v11  ;;  %12587 = vmatpush3.bf16.msra.mxu0 %v12584_v1  ;;  %v10461_v1 = vld [vmem:[%s15145_s5 + $0x48] sm:$0xff]  ;;  %v12622_v11 = vpack.c.bf16 %v10463_v7, %v10462_v6 }
 0x1ea   :  { %11631 = vmatprep.mubr.msk.f32.mxu0 %vm83_vm0, %v13603_v42  ;;  %12589 = vmatprep.subr.bf16.mxu0 %v12588_v12  ;;  %v12618_v4 = vpack.c.bf16 %v10461_v1, %v10460_v0 }
 0x1eb   :  { %12577 = vmatprep.subr.bf16.mxu1 %v12576_v35 }
 0x1ed   :  { %12591 = vmatpush3.bf16.msra.mxu0 %v12588_v12 }
 0x1f0   :  { %11632 = vmatmul.mubr.msk.f32.vlgmr.msra.gmra.mrb[4].mxu0 %vm83_vm0, %v13606_v43 }
 0x2bb   :  { %v11604_v13 = vpop.f32.mrb[2].mxu0 }
 0x2bc   :  { %v690_v14 = vpop.f32.mrb[3].mxu0  ;;  %v703_v16 = vsel %vm699_vm3, %v11604_v13, -inf }
 0x2bd   :  { %v700_v15 = vsel %vm699_vm3, %v690_v14, -inf }
 0x2be   :  { %701 = vmax.xlane.f32.xlu0 %v700_v15 }
 0x2c2   :  { %704 = vmax.xlane.f32.xlu0 %v703_v16 }
 0x2c3   :  { %v11633_v18 = vpop.f32.mrb[4].mxu0 }
 0x2c4   :  { %v977_v19 = vadd.f32 %v11633_v18, %v10430_v17  ;;  %v971_v20 = vpop.f32.mrb[5].mxu0  ;;  %v10465_v18 = vld [vmem:[%s15148_s8 + $0x2] ss:$0 sm:$0xff] }
 0x2c5   :  { %v972_v21 = vadd.f32 %v10430_v17, %v971_v20 }
 0x2c7   :  { %v12600_v22 = vpack.c.bf16 %v977_v19, %v972_v21 }
 0x2c9   :  { %12602 = vmatprep.subr.msk.bf16.mxu0 %vm13647_vm2, %v12600_v22 }
 0x2ca   :  { %12605 = vmatpush3.bf16.xpose.msk.msra.mxu0 %vm13647_vm2, %v12600_v22 }
 0x2cb   :  { %11664 = vmatprep.subr.mxu0 %v803_v55 }
 0x34b   :  { %v702_v23 = vpop.xlane.xlu0 %701 }
 0x34c   :  { %v706_v24 = vsub.f32 %v690_v14, %v702_v23 }
 0x34e   :  { %v708_v25 = vmul.f32 1.442695, %v706_v24 }
 0x34f   :  { %v705_v26 = vpop.xlane.xlu0 %704 }
 0x350   :  { %13213 = vpow2.f32 %v708_v25  ;;  %v707_v27 = vsub.f32 %v11604_v13, %v705_v26 }
 0x352   :  { %v710_v28 = vmul.f32 1.442695, %v707_v27 }
 0x354   :  { %13215 = vpow2.f32 %v710_v28 }
 0x35a   :  { %v13214_v29 = vpop.eup %13213 }
 0x35b   :  { %v712_v30 = vsel %vm699_vm3, %v13214_v29, 0.0 }
 0x35c   :  { %713 = vadd.xlane.f32.xlu1 %v712_v30 }
 0x35e   :  { %v13216_v31 = vpop.eup %13215 }
 0x35f   :  { %v715_v32 = vsel %vm699_vm3, %v13216_v31, 0.0 }
 0x360   :  { %716 = vadd.xlane.f32.xlu1 %v715_v32 }
 0x3e9   :  { %v714_v38 = vpop.xlane.xlu1 %713 }
 0x3ea   :  { %13217 = vrcp.f32 %v714_v38 }
 0x3ed   :  { %v717_v39 = vpop.xlane.xlu1 %716 }
 0x3ee   :  { %13219 = vrcp.f32 %v717_v39 }
 0x3f4   :  { %v13218_v40 = vpop.eup %13217 }
 0x3f5   :  { %v720_v41 = vmul.f32 %v13218_v40, %v13214_v29 }
 0x3f7   :  { %11609 = vmatprep.mubr.msk.f32.mxu1 %vm699_vm3, %v720_v41 }
 0x3f8   :  { %v13220_v46 = vpop.eup %13219 }
 0x3f9   :  { %v721_v47 = vmul.f32 %v13220_v46, %v13216_v31  ;;  %v10453_v46 = vld [vmem:[%s15172_s27 + $0x48] sm:$0xff] }
 0x3fb   :  { %11610 = vmatmul.mubr.msk.f32.vlgmr.msra.gmra.mrb[6].mxu1 %vm699_vm3, %v721_v47  ;;  %v12610_v47 = vpack.c.bf16 %v10453_v46, %v10452_v45  ;;  %v10503_v45 = vld [vmem:[%s15146_s6 + $0x70] sm:$0xff]  ;;  %v10504_v46 = vld [vmem:[%s15146_s6 + $0x78] sm:$0xff] }
 0x3fc   :  { %12579 = vmatpush3.bf16.msra.mxu1 %v12576_v35  ;;  %11620 = vmatprep.mubr.msk.f32.mxu1 %vm83_vm0, %v13603_v42 }
 0x3fd   :  { %12581 = vmatprep.subr.bf16.mxu1 %v12580_v48 }
 0x400   :  { %12583 = vmatpush3.bf16.msra.mxu1 %v12580_v48  ;;  %v10454_v48 = vld [vmem:[%s15172_s27 + $0x50] sm:$0xff] }
 0x401   :  { %12593 = vmatprep.subr.bf16.mxu1 %v12592_v51  ;;  %v12614_v52 = vpack.c.bf16 %v10455_v49, %v10454_v48  ;;  %v10493_v48 = vld [vmem:[%s15145_s5 + $0x60] sm:$0xff]  ;;  %v10494_v49 = vld [vmem:[%s15145_s5 + $0x68] sm:$0xff] }
 0x403   :  { %11621 = vmatmul.mubr.msk.f32.vlgmr.msra.gmra.mrb[8].mxu1 %vm83_vm0, %v13606_v43 }
 0x404   :  { %12595 = vmatpush3.bf16.msra.mxu1 %v12592_v51  ;;  %11642 = vmatprep.mubr.msk.f32.mxu1 %vm83_vm0, %v13603_v42 }
 0x405   :  { %12597 = vmatprep.subr.bf16.mxu1 %v12596_v54 }
 0x408   :  { %12599 = vmatpush3.bf16.msra.mxu1 %v12596_v54  ;;  %v10469_v54 = vld [vmem:[%s15146_s6 + $0x48] sm:$0xff] }
 0x40b   :  { %11643 = vmatmul.mubr.msk.f32.vlgmr.msra.gmra.mrb[10].mxu1 %vm83_vm0, %v13606_v43 }
 0x4ce   :  { %v11611_v56 = vpop.f32.mrb[6].mxu1 }
 0x4cf   :  { %v794_v57 = vpop.f32.mrb[7].mxu1 }
 0x4d6   :  { %v11622_v59 = vpop.f32.mrb[8].mxu1 }
 0x4d7   :  { %v889_v60 = vadd.f32 %v11622_v59, %v10422_v58  ;;  %v883_v61 = vpop.f32.mrb[9].mxu1 }
 0x4d8   :  { %v884_v62 = vadd.f32 %v10422_v58, %v883_v61  ;;  %v10457_v61 = vld [vmem:[%s15147_s7 + $0x2] ss:$0 sm:$0xff] }
 0x4d9   :  { %v1069_v3 = vmul.f32 0.35355338, %v889_v60 }
 0x4da   :  { %v1068_v2 = vmul.f32 0.35355338, %v884_v62 }
 0x4dc   :  { %11649 = vmatprep.mubr.msk.f32.mxu0 %vm611_vm1, %v1068_v2 }
 0x4dd   :  { %11650 = vmatmul.mubr.msk.f32.vlgmr.msra.gmra.mrb[6].mxu0 %vm611_vm1, %v1069_v3 }
 0x4de   :  { %v11644_v8 = vpop.f32.mrb[10].mxu1  ;;  %11666 = vmatprep.mubr.msk.f32.mxu0 %vm611_vm1, %v794_v57  ;;  %11665 = vmatpush3.msra.mxu0 %v803_v55  ;;  %v12626_v55 = vpack.c.bf16 %v10469_v54, %v10468_v53  ;;  %v10471_v57 = vld [vmem:[%s15146_s6 + $0x58] sm:$0xff] }
 0x4df   :  { %v1065_v9 = vadd.f32 %v11644_v8, %v10438_v5  ;;  %v1059_v10 = vpop.f32.mrb[11].mxu1  ;;  %12619 = vmatprep.subr.bf16.mxu0 %v12618_v4 }
 0x4e0   :  { %v1060_v12 = vadd.f32 %v10438_v5, %v1059_v10  ;;  %v10473_v5 = vld [vmem:[%s15149_s9 + $0x2] ss:$0 sm:$0xff] }
 0x4e1   :  { %11667 = vmatmul.mubr.msk.f32.vlgmr.msra.gmra.mrb[8].mxu0 %vm611_vm1, %v11611_v56  ;;  %v10470_v56 = vld [vmem:[%s15146_s6 + $0x50] sm:$0xff] }
 0x4e2   :  { %v12606_v13 = vpack.c.bf16 %v1065_v9, %v1060_v12  ;;  %12621 = vmatpush3.bf16.msra.mxu0 %v12618_v4  ;;  %11688 = vmatprep.mubr.msk.f32.mxu0 %vm83_vm0, %v13603_v42  ;;  %v12630_v58 = vpack.c.bf16 %v10471_v57, %v10470_v56  ;;  %v10490_v56 = vld [vmem:[%s15147_s7 + $0x3] ss:$0 sm:$0xff] }
 0x4e3   :  { %12623 = vmatprep.subr.bf16.mxu0 %v12622_v11 }
 0x4e4   :  { %12607 = vmatprep.subr.bf16.mxu1 %v12606_v13 }
 0x4e5   :  { %12609 = vmatpush3.bf16.msra.mxu1 %v12606_v13 }
 0x4e6   :  { %12625 = vmatpush3.bf16.msra.mxu0 %v12622_v11  ;;  %11659 = vmatprep.subr.mxu1 %v10447_v34 }
 0x4e9   :  { %11689 = vmatmul.mubr.msk.f32.vlgmr.msra.gmra.mrb[10].mxu0 %vm83_vm0, %v13606_v43 }
 0x5b0   :  { %v11651_v14 = vpop.f32.mrb[6].mxu0 }
 0x5b1   :  { %v1148_v15 = vpop.f32.mrb[7].mxu0  ;;  %v1160_v16 = vsel %vm699_vm3, %v11651_v14, -inf }
 0x5b2   :  { %1161 = vmax.xlane.f32.xlu1 %v1160_v16  ;;  %v1157_v17 = vsel %vm699_vm3, %v1148_v15, -inf }
 0x5b3   :  { %1158 = vmax.xlane.f32.xlu0 %v1157_v17 }
 0x5bc   :  { %v11690_v19 = vpop.f32.mrb[10].mxu0 }
 0x5bd   :  { %v1597_v20 = vadd.f32 %v11690_v19, %v10465_v18  ;;  %v1591_v21 = vpop.f32.mrb[11].mxu0 }
 0x5be   :  { %v1592_v22 = vadd.f32 %v10465_v18, %v1591_v21 }
 0x5c0   :  { %v12634_v23 = vpack.c.bf16 %v1597_v20, %v1592_v22 }
 0x5c2   :  { %12636 = vmatprep.subr.msk.bf16.mxu0 %vm13647_vm2, %v12634_v23 }
 0x5c3   :  { %12639 = vmatpush3.bf16.xpose.msk.msra.mxu0 %vm13647_vm2, %v12634_v23 }
 0x63f   :  { %v1162_v24 = vpop.xlane.xlu1 %1161 }
 0x640   :  { %v1164_v25 = vsub.f32 %v11651_v14, %v1162_v24  ;;  %v1159_v26 = vpop.xlane.xlu0 %1158 }
 0x641   :  { %v1163_v27 = vsub.f32 %v1148_v15, %v1159_v26  ;;  %v10486_v26 = vld [vmem:[%s15172_s27 + $0x68] sm:$0xff] }
 0x642   :  { %v1167_v28 = vmul.f32 1.442695, %v1164_v25  ;;  %v10485_v25 = vld [vmem:[%s15172_s27 + $0x60] sm:$0xff] }
 0x643   :  { %v1165_v29 = vmul.f32 1.442695, %v1163_v27  ;;  %v12644_v27 = vpack.c.bf16 %v10486_v26, %v10485_v25 }
 0x644   :  { %13221 = vpow2.f32 %v1167_v28  ;;  %v10482_v28 = vld [vmem:[%s15150_s10 + $0x10] sm:$0xff] }
 0x645   :  { %13223 = vpow2.f32 %v1165_v29  ;;  %11716 = vmatprep.subr.mxu0 %v10482_v28 }
 0x64e   :  { %v13222_v30 = vpop.eup %13221 }
 0x64f   :  { %v13224_v31 = vpop.eup %13223  ;;  %v1172_v32 = vsel %vm699_vm3, %v13222_v30, 0.0 }
 0x650   :  { %1173 = vadd.xlane.f32.xlu1 %v1172_v32  ;;  %v1169_v33 = vsel %vm699_vm3, %v13224_v31, 0.0  ;;  %v10487_v32 = vld [vmem:[%s15172_s27 + $0x70] sm:$0xff] }
 0x651   :  { %1170 = vadd.xlane.f32.xlu0 %v1169_v33  ;;  %v10488_v33 = vld [vmem:[%s15172_s27 + $0x78] sm:$0xff] }
 0x6dd   :  { %v1174_v35 = vpop.xlane.xlu1 %1173 }
 0x6de   :  { %13225 = vrcp.f32 %v1174_v35  ;;  %v1171_v38 = vpop.xlane.xlu0 %1170 }
 0x6df   :  { %13227 = vrcp.f32 %v1171_v38 }
 0x6e8   :  { %v13226_v39 = vpop.eup %13225 }
 0x6e9   :  { %v13228_v40 = vpop.eup %13227  ;;  %v1178_v44 = vmul.f32 %v13226_v39, %v13222_v30  ;;  %v12648_v39 = vpack.c.bf16 %v10488_v33, %v10487_v32 }
 0x6ea   :  { %v1177_v41 = vmul.f32 %v13228_v40, %v13224_v31  ;;  %v10501_v40 = vld [vmem:[%s15146_s6 + $0x60] sm:$0xff] }
 0x6ec   :  { %11656 = vmatprep.mubr.msk.f32.mxu1 %vm699_vm3, %v1177_v41  ;;  %v10502_v41 = vld [vmem:[%s15146_s6 + $0x68] sm:$0xff] }
 0x6ed   :  { %11657 = vmatmul.mubr.msk.f32.vlgmr.msra.gmra.mrb[12].mxu1 %vm699_vm3, %v1178_v44  ;;  %v12660_v44 = vpack.c.bf16 %v10502_v41, %v10501_v40  ;;  %v10518_v40 = vld [vmem:[%s15151_s11] ss:$0 sm:$0xff] }
 0x6ee   :  { %11660 = vmatpush3.msra.mxu1 %v10447_v34 }
 0x6ef   :  { %12611 = vmatprep.subr.bf16.mxu1 %v12610_v47 }
 0x7c0   :  { %v11658_v50 = vpop.f32.mrb[12].mxu1 }
 0x7c1   :  { %v1251_v51 = vpop.f32.mrb[13].mxu1 }
 0x7c2   :  { %11661 = vmatprep.mubr.msk.f32.mxu1 %vm611_vm1, %v1251_v51  ;;  %v10495_v51 = vld [vmem:[%s15145_s5 + $0x70] sm:$0xff] }
 0x7c3   :  { %11662 = vmatmul.mubr.msk.f32.vlgmr.msra.gmra.mrb[14].mxu1 %vm611_vm1, %v11658_v50  ;;  %v12652_v50 = vpack.c.bf16 %v10494_v49, %v10493_v48 }
 0x7c4   :  { %12613 = vmatpush3.bf16.msra.mxu1 %v12610_v47  ;;  %11677 = vmatprep.mubr.msk.f32.mxu1 %vm83_vm0, %v13603_v42  ;;  %v12664_v47 = vpack.c.bf16 %v10504_v46, %v10503_v45 }
 0x7c5   :  { %12615 = vmatprep.subr.bf16.mxu1 %v12614_v52 }
 0x7c8   :  { %12617 = vmatpush3.bf16.msra.mxu1 %v12614_v52  ;;  %v10496_v52 = vld [vmem:[%s15145_s5 + $0x78] sm:$0xff] }
 0x7c9   :  { %12627 = vmatprep.subr.bf16.mxu1 %v12626_v55 }
 0x7cb   :  { %11678 = vmatmul.mubr.msk.f32.vlgmr.msra.gmra.mrb[16].mxu1 %vm83_vm0, %v13606_v43 }
 0x7cc   :  { %12629 = vmatpush3.bf16.msra.mxu1 %v12626_v55  ;;  %11699 = vmatprep.mubr.msk.f32.mxu1 %vm83_vm0, %v13603_v42  ;;  %v12656_v55 = vpack.c.bf16 %v10496_v52, %v10495_v51 }
 0x7cd   :  { %12631 = vmatprep.subr.bf16.mxu1 %v12630_v58 }
 0x7d0   :  { %12633 = vmatpush3.bf16.msra.mxu1 %v12630_v58 }
 0x7d3   :  { %11700 = vmatmul.mubr.msk.f32.vlgmr.msra.gmra.mrb[18].mxu1 %vm83_vm0, %v13606_v43 }
 0x896   :  { %v13793_v59 = vpop.f32.mrb[14].mxu1 }
 0x897   :  { %v13795_v60 = vpop.f32.mrb[15].mxu1 }
 0x89e   :  { %v11679_v62 = vpop.f32.mrb[16].mxu1 }
 0x89f   :  { %v1509_v0 = vadd.f32 %v11679_v62, %v10457_v61  ;;  %v1503_v1 = vpop.f32.mrb[17].mxu1 }
 0x8a0   :  { %v1504_v2 = vadd.f32 %v10457_v61, %v1503_v1  ;;  %v10506_v1 = vld [vmem:[%s15149_s9 + $0x3] ss:$0 sm:$0xff] }
 0x8a1   :  { %v1689_v4 = vmul.f32 0.35355338, %v1509_v0 }
 0x8a2   :  { %v1688_v3 = vmul.f32 0.35355338, %v1504_v2 }
 0x8a4   :  { %11706 = vmatprep.mubr.msk.f32.mxu0 %vm611_vm1, %v1688_v3 }
 0x8a5   :  { %11707 = vmatmul.mubr.msk.f32.vlgmr.msra.gmra.mrb[12].mxu0 %vm611_vm1, %v1689_v4 }
 0x8a6   :  { %v11701_v6 = vpop.f32.mrb[18].mxu1  ;;  %11717 = vmatpush3.msra.mxu0 %v10482_v28  ;;  %v10515_v28 = vld [vmem:[%s15150_s10 + $0x18] sm:$0xff] }
 0x8a7   :  { %v1685_v7 = vadd.f32 %v11701_v6, %v10473_v5  ;;  %v1679_v8 = vpop.f32.mrb[19].mxu1  ;;  %12653 = vmatprep.subr.bf16.mxu0 %v12652_v50 }
 0x8a8   :  { %v1680_v9 = vadd.f32 %v10473_v5, %v1679_v8 }
 0x8aa   :  { %v12640_v10 = vpack.c.bf16 %v1685_v7, %v1680_v9  ;;  %v10498_v7 = vld [vmem:[%s15148_s8 + $0x3] ss:$0 sm:$0xff] }
 0x8ac   :  { %12641 = vmatprep.subr.bf16.mxu1 %v12640_v10 }
 0x8ad   :  { %12643 = vmatpush3.bf16.msra.mxu1 %v12640_v10 }
 0x8ae   :  { %12645 = vmatprep.subr.bf16.mxu1 %v12644_v27 }
 0x978   :  { %v11708_v11 = vpop.f32.mrb[12].mxu0 }
 0x979   :  { %v1768_v12 = vpop.f32.mrb[13].mxu0  ;;  %v1780_v13 = vsel %vm699_vm3, %v11708_v11, -inf }
 0x97a   :  { %1781 = vmax.xlane.f32.xlu1 %v1780_v13  ;;  %v1777_v14 = vsel %vm699_vm3, %v1768_v12, -inf }
 0x97b   :  { %1778 = vmax.xlane.f32.xlu0 %v1777_v14 }
 0xa07   :  { %v1782_v15 = vpop.xlane.xlu1 %1781 }
 0xa08   :  { %v1784_v16 = vsub.f32 %v11708_v11, %v1782_v15  ;;  %v1779_v17 = vpop.xlane.xlu0 %1778 }
 0xa09   :  { %v1783_v18 = vsub.f32 %v1768_v12, %v1779_v17 }
 0xa0a   :  { %v1787_v19 = vmul.f32 1.442695, %v1784_v16 }
 0xa0b   :  { %v1785_v20 = vmul.f32 1.442695, %v1783_v18 }
 0xa0c   :  { %13229 = vpow2.f32 %v1787_v19 }
 0xa0d   :  { %13231 = vpow2.f32 %v1785_v20 }
 0xa16   :  { %v13230_v21 = vpop.eup %13229 }
 0xa17   :  { %v13232_v22 = vpop.eup %13231  ;;  %v1792_v23 = vsel %vm699_vm3, %v13230_v21, 0.0 }
 0xa18   :  { %1793 = vadd.xlane.f32.xlu1 %v1792_v23  ;;  %v1789_v24 = vsel %vm699_vm3, %v13232_v22, 0.0 }
 0xa19   :  { %1790 = vadd.xlane.f32.xlu0 %v1789_v24 }
 0xaa5   :  { %v1794_v29 = vpop.xlane.xlu1 %1793 }
 0xaa6   :  { %13233 = vrcp.f32 %v1794_v29  ;;  %v1791_v30 = vpop.xlane.xlu0 %1790 }
 0xaa7   :  { %13235 = vrcp.f32 %v1791_v30 }
 0xab0   :  { %v13234_v31 = vpop.eup %13233 }
 0xab1   :  { %v13236_v34 = vpop.eup %13235  ;;  %v1798_v38 = vmul.f32 %v13234_v31, %v13230_v21 }
 0xab2   :  { %v1797_v35 = vmul.f32 %v13236_v34, %v13232_v22 }
 0xab4   :  { %11713 = vmatprep.mubr.msk.f32.mxu1 %vm699_vm3, %v1797_v35 }
 0xab5   :  { %11714 = vmatmul.mubr.msk.f32.vlgmr.msra.gmra.mrb[20].mxu1 %vm699_vm3, %v1798_v38 }
 0xab6   :  { %12647 = vmatpush3.bf16.msra.mxu1 %v12644_v27  ;;  %11729 = vmatprep.mubr.msk.f32.mxu1 %vm83_vm0, %v13603_v42 }
 0xab7   :  { %12649 = vmatprep.subr.bf16.mxu1 %v12648_v39 }
 0xaba   :  { %12651 = vmatpush3.bf16.msra.mxu1 %v12648_v39 }
 0xabb   :  { %12661 = vmatprep.subr.bf16.mxu1 %v12660_v44 }
 0xabd   :  { %11730 = vmatmul.mubr.msk.f32.vlgmr.msra.gmra.mrb[22].mxu1 %vm83_vm0, %v13606_v43 }
 0xabe   :  { %12663 = vmatpush3.bf16.msra.mxu1 %v12660_v44  ;;  %11751 = vmatprep.mubr.msk.f32.mxu1 %vm83_vm0, %v13603_v42 }
 0xabf   :  { %12665 = vmatprep.subr.bf16.mxu1 %v12664_v47 }
 0xac2   :  { %12667 = vmatpush3.bf16.msra.mxu1 %v12664_v47 }
 0xac5   :  { %11752 = vmatmul.mubr.msk.f32.vlgmr.msra.gmra.mrb[24].mxu1 %vm83_vm0, %v13606_v43 }
 0xb88   :  { %v11715_v53 = vpop.f32.mrb[20].mxu1 }
 0xb89   :  { %v1871_v54 = vpop.f32.mrb[21].mxu1 }
 0xb8a   :  { %11718 = vmatprep.mubr.msk.f32.mxu0 %vm611_vm1, %v1871_v54 }
 0xb8b   :  { %11719 = vmatmul.mubr.msk.f32.vlgmr.msra.gmra.mrb[8].mxu0 %vm611_vm1, %v11715_v53 }
 0xb8c   :  { %12655 = vmatpush3.bf16.msra.mxu0 %v12652_v50  ;;  %11740 = vmatprep.mubr.msk.f32.mxu0 %vm83_vm0, %v13603_v42 }
 0xb8d   :  { %12657 = vmatprep.subr.bf16.mxu0 %v12656_v55 }
 0xb90   :  { %v11731_v57 = vpop.f32.mrb[22].mxu1  ;;  %12659 = vmatpush3.bf16.msra.mxu0 %v12656_v55 }
 0xb91   :  { %v2050_v58 = vadd.f32 %v11731_v57, %v10490_v56  ;;  %v2044_v61 = vpop.f32.mrb[23].mxu1 }
 0xb92   :  { %v2045_v62 = vadd.f32 %v10490_v56, %v2044_v61  ;;  %v2563_v61 = vld [vmem:[%s15154_s14 + $0x8] sm:$0xff] }
 0xb93   :  { %11741 = vmatmul.mubr.msk.f32.vlgmr.msra.gmra.mrb[14].mxu0 %vm83_vm0, %v13606_v43  ;;  %v2230_v13 = vmul.f32 0.35355338, %v2050_v58 }
 0xb94   :  { %v2229_v0 = vmul.f32 0.35355338, %v2045_v62 }
 0xb96   :  { %11758 = vmatprep.mubr.msk.f32.mxu0 %vm611_vm1, %v2229_v0  ;;  %v2564_v0 = vld [vmem:[%s15154_s14 + $0x10] sm:$0xff] }
 0xb98   :  { %v11753_v2 = vpop.f32.mrb[24].mxu1 }
 0xb99   :  { %v2226_v3 = vadd.f32 %v11753_v2, %v10506_v1  ;;  %v2220_v4 = vpop.f32.mrb[25].mxu1 }
 0xb9a   :  { %v2221_v5 = vadd.f32 %v10506_v1, %v2220_v4  ;;  %v2565_v1 = vld [vmem:[%s15154_s14 + $0x18] sm:$0xff]  ;;  %v2657_v4 = vld [vmem:[%s15156_s16 + $0x8] sm:$0xff] }
 0xb9b   :  { %v12682_v2 = vpack.c.bf16 %v2565_v1, %v2564_v0  ;;  %v10540_v0 = vld [vmem:[%s15145_s5 + $0x98] sm:$0xff] }
 0xb9c   :  { %v12674_v6 = vpack.c.bf16 %v2226_v3, %v2221_v5  ;;  %v2656_v3 = vld [vmem:[%s15156_s16] sm:$0xff] }
 0xb9d   :  { %v12686_v5 = vpack.c.bf16 %v2657_v4, %v2656_v3  ;;  %v10546_v3 = vld [vmem:[%s15146_s6 + $0x88] sm:$0xff] }
 0xb9e   :  { %12675 = vmatprep.subr.bf16.mxu1 %v12674_v6 }
 0xb9f   :  { %12677 = vmatpush3.bf16.msra.mxu1 %v12674_v6 }
 0xc66   :  { %v11742_v8 = vpop.f32.mrb[14].mxu0 }
 0xc67   :  { %v2138_v9 = vadd.f32 %v11742_v8, %v10498_v7  ;;  %v2132_v10 = vpop.f32.mrb[15].mxu0 }
 0xc68   :  { %v2133_v11 = vadd.f32 %v10498_v7, %v2132_v10 }
 0xc6a   :  { %v12668_v12 = vpack.c.bf16 %v2138_v9, %v2133_v11 }
 0xc6c   :  { %12670 = vmatprep.subr.msk.bf16.mxu0 %vm13647_vm2, %v12668_v12 }
 0xc6d   :  { %12673 = vmatpush3.bf16.xpose.msk.msra.mxu0 %vm13647_vm2, %v12668_v12 }
 0xc6e   :  { %11768 = vmatprep.subr.mxu0 %v10515_v28 }
 0xc74   :  { %11759 = vmatmul.mubr.msk.f32.vlgmr.msra.gmra.mrb[16].mxu0 %vm611_vm1, %v2230_v13  ;;  %v10519_v13 = vld [vmem:[%s15152_s12] ss:$0 sm:$0xff] }
 0xc75   :  { %11769 = vmatpush3.msra.mxu0 %v10515_v28 }
 0xc76   :  { %12687 = vmatprep.subr.bf16.mxu0 %v12686_v5 }
 0xd47   :  { %v11760_v14 = vpop.f32.mrb[16].mxu0 }
 0xd48   :  { %v2309_v15 = vpop.f32.mrb[17].mxu0  ;;  %v2321_v16 = vsel %vm699_vm3, %v11760_v14, -inf }
 0xd49   :  { %2322 = vmax.xlane.f32.xlu1 %v2321_v16  ;;  %v2318_v17 = vsel %vm699_vm3, %v2309_v15, -inf }
 0xd4a   :  { %2319 = vmax.xlane.f32.xlu0 %v2318_v17 }
 0xdd6   :  { %v2323_v18 = vpop.xlane.xlu1 %2322 }
 0xdd7   :  { %v2325_v19 = vsub.f32 %v11760_v14, %v2323_v18  ;;  %v2320_v20 = vpop.xlane.xlu0 %2319  ;;  %v10520_v18 = vld [vmem:[%s15153_s13] ss:$0 sm:$0xff] }
 0xdd8   :  { %v2324_v21 = vsub.f32 %v2309_v15, %v2320_v20 }
 0xdd9   :  { %v2328_v22 = vmul.f32 1.442695, %v2325_v19 }
 0xdda   :  { %v2326_v23 = vmul.f32 1.442695, %v2324_v21 }
 0xddb   :  { %13237 = vpow2.f32 %v2328_v22  ;;  %v2658_v22 = vld [vmem:[%s15156_s16 + $0x10] sm:$0xff] }
 0xddc   :  { %13239 = vpow2.f32 %v2326_v23  ;;  %v2659_v23 = vld [vmem:[%s15156_s16 + $0x18] sm:$0xff] }
 0xde5   :  { %v13238_v24 = vpop.eup %13237 }
 0xde6   :  { %v13240_v25 = vpop.eup %13239  ;;  %v2333_v26 = vsel %vm699_vm3, %v13238_v24, 0.0 }
 0xde7   :  { %2334 = vadd.xlane.f32.xlu1 %v2333_v26  ;;  %v2330_v27 = vsel %vm699_vm3, %v13240_v25, 0.0 }
 0xde8   :  { %2331 = vadd.xlane.f32.xlu0 %v2330_v27 }
 0xe74   :  { %v2335_v29 = vpop.xlane.xlu1 %2334 }
 0xe75   :  { %13241 = vrcp.f32 %v2335_v29  ;;  %v2332_v30 = vpop.xlane.xlu0 %2331 }
 0xe76   :  { %13243 = vrcp.f32 %v2332_v30 }
 0xe7f   :  { %v13242_v31 = vpop.eup %13241 }
 0xe80   :  { %v13244_v32 = vpop.eup %13243  ;;  %v2339_v34 = vmul.f32 %v13242_v31, %v13238_v24  ;;  %v12690_v24 = vpack.c.bf16 %v2659_v23, %v2658_v22 }
 0xe81   :  { %v2338_v33 = vmul.f32 %v13244_v32, %v13240_v25  ;;  %v10521_v25 = vld [vmem:[%s15155_s15] ss:$0 sm:$0xff] }
 0xe82   :  { %v10524_v32 = vld [vmem:[%s15157_s17] ss:$0 sm:$0xff] }
 0xe83   :  { %11765 = vmatprep.mubr.msk.f32.mxu1 %vm699_vm3, %v2338_v33 }
 0xe84   :  { %11766 = vmatmul.mubr.msk.f32.vlgmr.msra.gmra.mrb[26].mxu1 %vm699_vm3, %v2339_v34 }
 0xf57   :  { %v11767_v35 = vpop.f32.mrb[26].mxu1 }
 0xf58   :  { %v2412_v38 = vpop.f32.mrb[27].mxu1 }
 0xf59   :  { %11770 = vmatprep.mubr.msk.f32.mxu0 %vm611_vm1, %v2412_v38 }
 0xf5a   :  { %11771 = vmatmul.mubr.msk.f32.vlgmr.msra.gmra.mrb[8].mxu0 %vm611_vm1, %v11767_v35 }
 0xf5b   :  { %12689 = vmatpush3.bf16.msra.mxu0 %v12686_v5 }
 0xf5c   :  { %12691 = vmatprep.subr.bf16.mxu0 %v12690_v24 }
 0xf5f   :  { %12693 = vmatpush3.bf16.msra.mxu0 %v12690_v24  ;;  %v10542_v24 = vld [vmem:[%s15148_s8 + $0x4] ss:$0 sm:$0xff] }
0x102d   :  { %v11772_v39 = vpop.f32.mrb[8].mxu0 }
0x102e   :  { %v13176_v41 = vadd.f32 %v11772_v39, %v13793_v59  ;;  %v2495_v44 = vpop.f32.mrb[9].mxu0 }
0x102f   :  { %v13177_v45 = vadd.f32 %v2495_v44, %v13795_v60 }
0x1030   :  { %v2514_v46 = vadd.f32 %v13176_v41, %v10518_v40 }
0x1031   :  { %v2513_v47 = vadd.f32 %v13177_v45, %v10518_v40 }
0x1032   :  { %v2516_v48 = vadd.f32 %v13606_v43, %v2514_v46 }
0x1033   :  { %v2515_v49 = vadd.f32 %v13603_v42, %v2513_v47  ;;  %v2562_v42 = vld [vmem:[%s15154_s14] sm:$0xff] }
0x1034   :  { %v2520_v50 = vsel %vm83_vm0, %v2516_v48, 0.0  ;;  %v12678_v62 = vpack.c.bf16 %v2563_v61, %v2562_v42  ;;  %v10532_v42 = vld [vmem:[%s15172_s27 + $0x98] sm:$0xff] }
0x1035   :  { %2521 = vadd.xlane.f32.xlu1 %v2520_v50  ;;  %v2517_v51 = vsel %vm83_vm0, %v2515_v49, 0.0 }
0x1036   :  { %2518 = vadd.xlane.f32.xlu0 %v2517_v51  ;;  %12679 = vmatprep.subr.bf16.mxu1 %v12678_v62 }
0x1037   :  { %12681 = vmatpush3.bf16.msra.mxu1 %v12678_v62  ;;  %v10539_v62 = vld [vmem:[%s15145_s5 + $0x90] sm:$0xff] }
0x1038   :  { %12683 = vmatprep.subr.bf16.mxu1 %v12682_v2  ;;  %v12706_v1 = vpack.c.bf16 %v10540_v0, %v10539_v62 }
0x103b   :  { %12685 = vmatpush3.bf16.msra.mxu1 %v12682_v2  ;;  %v10545_v2 = vld [vmem:[%s15146_s6 + $0x80] sm:$0xff] }
0x103c   :  { %v12710_v4 = vpack.c.bf16 %v10546_v3, %v10545_v2 }
0x10c2   :  { %v2522_v52 = vpop.xlane.xlu1 %2521 }
0x10c3   :  { %v2525_v53 = vmul.f32 0.03125, %v2522_v52  ;;  %v2519_v54 = vpop.xlane.xlu0 %2518 }
0x10c4   :  { %v2524_v55 = vmul.f32 0.03125, %v2519_v54 }
0x10c5   :  { %v2527_v59 = vsub.f32 %v2516_v48, %v2525_v53 }
0x10c6   :  { %v2526_v56 = vsub.f32 %v2515_v49, %v2524_v55  ;;  %v10529_v55 = vld [vmem:[%s15172_s27 + $0x80] sm:$0xff] }
0x10c7   :  { %v2529_v57 = vmul.f32 %v2527_v59, %v2527_v59 }
0x10c8   :  { %v2528_v60 = vmul.f32 %v2526_v56, %v2526_v56 }
0x10c9   :  { %v2533_v58 = vsel %vm83_vm0, %v2529_v57, 0.0  ;;  %v10537_v57 = vld [vmem:[%s15145_s5 + $0x80] sm:$0xff] }
0x10ca   :  { %2534 = vadd.xlane.f32.xlu1 %v2533_v58  ;;  %v2530_v43 = vsel %vm83_vm0, %v2528_v60, 0.0  ;;  %v10538_v60 = vld [vmem:[%s15145_s5 + $0x88] sm:$0xff] }
0x10cb   :  { %2531 = vadd.xlane.f32.xlu0 %v2530_v43  ;;  %v12702_v58 = vpack.c.bf16 %v10538_v60, %v10537_v57  ;;  %v10531_v43 = vld [vmem:[%s15172_s27 + $0x90] sm:$0xff] }
0x10cc   :  { %v12698_v61 = vpack.c.bf16 %v10532_v42, %v10531_v43 }
0x10cd   :  { %12703 = vmatprep.subr.bf16.mxu0 %v12702_v58 }
0x1157   :  { %v2535_v6 = vpop.xlane.xlu1 %2534 }
0x1158   :  { %v2537_v7 = vmul.f32 0.03125, %v2535_v6  ;;  %v2532_v8 = vpop.xlane.xlu0 %2531 }
0x1159   :  { %v2536_v9 = vmul.f32 0.03125, %v2532_v8 }
0x115a   :  { %v2539_v10 = vadd.f32 1e-05, %v2537_v7 }
0x115b   :  { %v2538_v11 = vadd.f32 1e-05, %v2536_v9 }
0x115c   :  { %13245 = vrsqrt.f32 %v2539_v10 }
0x115d   :  { %13247 = vrsqrt.f32 %v2538_v11 }
0x1166   :  { %v13246_v12 = vpop.eup %13245 }
0x1167   :  { %v13248_v14 = vpop.eup %13247  ;;  %v2543_v15 = vmul.f32 %v13246_v12, %v2527_v59  ;;  %v10530_v59 = vld [vmem:[%s15172_s27 + $0x88] sm:$0xff]  ;;  %v10527_v12 = vld [vmem:[%s15158_s18] ss:$0 sm:$0xff] }
0x1168   :  { %v2542_v16 = vmul.f32 %v13248_v14, %v2526_v56  ;;  %v12694_v56 = vpack.c.bf16 %v10530_v59, %v10529_v55 }
0x1169   :  { %v2552_v17 = vmul.f32 %v10519_v13, %v2543_v15 }
0x116a   :  { %v2551_v19 = vmul.f32 %v10519_v13, %v2542_v16  ;;  %12695 = vmatprep.subr.bf16.mxu1 %v12694_v56  ;;  %v10528_v16 = vld [vmem:[%s15159_s19] ss:$0 sm:$0xff] }
0x116b   :  { %v2561_v21 = vadd.f32 %v10520_v18, %v2552_v17 }
0x116c   :  { %v2560_v20 = vadd.f32 %v10520_v18, %v2551_v19  ;;  %v10547_v19 = vld [vmem:[%s15146_s6 + $0x90] sm:$0xff] }
0x116e   :  { %11781 = vmatprep.mubr.msk.f32.mxu1 %vm83_vm0, %v2560_v20 }
0x116f   :  { %11782 = vmatmul.mubr.msk.f32.vlgmr.msra.gmra.mrb[28].mxu1 %vm83_vm0, %v2561_v21 }
0x1170   :  { %12697 = vmatpush3.bf16.msra.mxu1 %v12694_v56  ;;  %v10573_v56 = vld [vmem:[%s15148_s8 + $0x5] ss:$0 sm:$0xff] }
0x1171   :  { %12699 = vmatprep.subr.bf16.mxu1 %v12698_v61 }
0x1174   :  { %12701 = vmatpush3.bf16.msra.mxu1 %v12698_v61 }
0x1175   :  { %12711 = vmatprep.subr.bf16.mxu1 %v12710_v4 }
0x1242   :  { %v11783_v26 = vpop.f32.mrb[28].mxu1 }
0x1243   :  { %v2651_v27 = vadd.f32 %v11783_v26, %v10521_v25  ;;  %v2645_v28 = vpop.f32.mrb[29].mxu1 }
0x1244   :  { %v2646_v29 = vadd.f32 %v10521_v25, %v2645_v28  ;;  %v10534_v25 = vld [vmem:[%s15147_s7 + $0x4] ss:$0 sm:$0xff] }
0x1245   :  { %v2655_v31 = vmax.f32 %v2651_v27, 0.0 }
0x1246   :  { %v2654_v30 = vmax.f32 %v2646_v29, 0.0 }
0x1248   :  { %11792 = vmatprep.mubr.msk.f32.mxu0 %vm83_vm0, %v2654_v30 }
0x1249   :  { %11793 = vmatmul.mubr.msk.f32.vlgmr.msra.gmra.mrb[18].mxu0 %vm83_vm0, %v2655_v31  ;;  %v10568_v31 = vld [vmem:[%s15145_s5 + $0xa0] sm:$0xff] }
0x124a   :  { %12705 = vmatpush3.bf16.msra.mxu0 %v12702_v58 }
0x124b   :  { %12707 = vmatprep.subr.bf16.mxu0 %v12706_v1 }
0x124e   :  { %12709 = vmatpush3.bf16.msra.mxu0 %v12706_v1 }
0x131c   :  { %v11794_v33 = vpop.f32.mrb[18].mxu0 }
0x131d   :  { %v2745_v34 = vadd.f32 %v11794_v33, %v10524_v32  ;;  %v2739_v35 = vpop.f32.mrb[19].mxu0 }
0x131e   :  { %v2740_v38 = vadd.f32 %v10524_v32, %v2739_v35  ;;  %v10569_v32 = vld [vmem:[%s15145_s5 + $0xa8] sm:$0xff] }
0x131f   :  { %v2749_v39 = vadd.f32 %v2745_v34, %v2561_v21 }
0x1320   :  { %v2748_v40 = vadd.f32 %v2740_v38, %v2560_v20  ;;  %v10548_v20 = vld [vmem:[%s15146_s6 + $0x98] sm:$0xff] }
0x1321   :  { %v2753_v41 = vsel %vm83_vm0, %v2749_v39, 0.0  ;;  %v12714_v23 = vpack.c.bf16 %v10548_v20, %v10547_v19  ;;  %v10576_v20 = vld [vmem:[%s15146_s6 + $0xa0] sm:$0xff] }
0x1322   :  { %2754 = vadd.xlane.f32.xlu1 %v2753_v41  ;;  %v2750_v44 = vsel %vm83_vm0, %v2748_v40, 0.0 }
0x1323   :  { %2751 = vadd.xlane.f32.xlu0 %v2750_v44 }
0x13af   :  { %v2755_v45 = vpop.xlane.xlu1 %2754 }
0x13b0   :  { %v2757_v46 = vmul.f32 0.03125, %v2755_v45  ;;  %v2752_v47 = vpop.xlane.xlu0 %2751 }
0x13b1   :  { %v2756_v48 = vmul.f32 0.03125, %v2752_v47  ;;  %v10570_v47 = vld [vmem:[%s15145_s5 + $0xb0] sm:$0xff] }
0x13b2   :  { %v2759_v49 = vsub.f32 %v2749_v39, %v2757_v46  ;;  %v12736_v39 = vpack.c.bf16 %v10569_v32, %v10568_v31 }
0x13b3   :  { %v2758_v50 = vsub.f32 %v2748_v40, %v2756_v48  ;;  %v10550_v40 = vld [vmem:[%s15149_s9 + $0x4] ss:$0 sm:$0xff]  ;;  %v10571_v48 = vld [vmem:[%s15145_s5 + $0xb8] sm:$0xff] }
0x13b4   :  { %v2761_v51 = vmul.f32 %v2759_v49, %v2759_v49 }
0x13b5   :  { %v2760_v52 = vmul.f32 %v2758_v50, %v2758_v50 }
0x13b6   :  { %v2765_v53 = vsel %vm83_vm0, %v2761_v51, 0.0 }
0x13b7   :  { %2766 = vadd.xlane.f32.xlu1 %v2765_v53  ;;  %v2762_v54 = vsel %vm83_vm0, %v2760_v52, 0.0  ;;  %v12740_v52 = vpack.c.bf16 %v10571_v48, %v10570_v47 }
0x13b8   :  { %2763 = vadd.xlane.f32.xlu0 %v2762_v54 }
0x1444   :  { %v2767_v5 = vpop.xlane.xlu1 %2766 }
0x1445   :  { %v2769_v6 = vmul.f32 0.03125, %v2767_v5  ;;  %v2764_v7 = vpop.xlane.xlu0 %2763 }
0x1446   :  { %v2768_v8 = vmul.f32 0.03125, %v2764_v7 }
0x1447   :  { %v2771_v9 = vadd.f32 1e-05, %v2769_v6 }
0x1448   :  { %v2770_v10 = vadd.f32 1e-05, %v2768_v8  ;;  %v10560_v8 = vld [vmem:[%s15172_s27 + $0xa0] sm:$0xff] }
0x1449   :  { %13249 = vrsqrt.f32 %v2771_v9  ;;  %v10561_v9 = vld [vmem:[%s15172_s27 + $0xa8] sm:$0xff] }
0x144a   :  { %13251 = vrsqrt.f32 %v2770_v10  ;;  %v12728_v10 = vpack.c.bf16 %v10561_v9, %v10560_v8  ;;  %v10611_v9 = vld [vmem:[%s15146_s6 + $0xc0] sm:$0xff] }
0x1453   :  { %v13250_v11 = vpop.eup %13249 }
0x1454   :  { %v13252_v13 = vpop.eup %13251  ;;  %v2775_v14 = vmul.f32 %v13250_v11, %v2759_v49 }
0x1455   :  { %v2774_v15 = vmul.f32 %v13252_v13, %v2758_v50 }
0x1456   :  { %v2784_v17 = vmul.f32 %v10527_v12, %v2775_v14  ;;  %v10562_v14 = vld [vmem:[%s15172_s27 + $0xb0] sm:$0xff] }
0x1457   :  { %v2783_v18 = vmul.f32 %v10527_v12, %v2774_v15  ;;  %v10563_v15 = vld [vmem:[%s15172_s27 + $0xb8] sm:$0xff] }
0x1458   :  { %v13989_v22 = vadd.f32 %v10528_v16, %v2784_v17  ;;  %v12732_v19 = vpack.c.bf16 %v10563_v15, %v10562_v14  ;;  %v10559_v15 = vld [vmem:[%s15150_s10 + $0x20] sm:$0xff] }
0x1459   :  { %v13987_v21 = vadd.f32 %v10528_v16, %v2783_v18 }
0x145b   :  { %11803 = vmatprep.mubr.msk.f32.mxu1 %vm83_vm0, %v13987_v21  ;;  %11814 = vmatprep.mubr.msk.f32.mxu0 %vm83_vm0, %v13987_v21 }
0x145c   :  { %11804 = vmatmul.mubr.msk.f32.vlgmr.msra.gmra.mrb[30].mxu1 %vm83_vm0, %v13989_v22  ;;  %11815 = vmatmul.mubr.msk.f32.vlgmr.msra.gmra.mrb[20].mxu0 %vm83_vm0, %v13989_v22 }
0x145d   :  { %12713 = vmatpush3.bf16.msra.mxu1 %v12710_v4  ;;  %11825 = vmatprep.mubr.msk.f32.mxu1 %vm83_vm0, %v13987_v21 }
0x145e   :  { %12715 = vmatprep.subr.bf16.mxu1 %v12714_v23 }
0x1461   :  { %12717 = vmatpush3.bf16.msra.mxu1 %v12714_v23  ;;  %v10577_v23 = vld [vmem:[%s15146_s6 + $0xa8] sm:$0xff] }
0x1464   :  { %11826 = vmatmul.mubr.msk.f32.vlgmr.msra.gmra.mrb[32].mxu1 %vm83_vm0, %v13989_v22 }
0x152f   :  { %v11805_v26 = vpop.f32.mrb[30].mxu1  ;;  %v11816_v27 = vpop.f32.mrb[20].mxu0 }
0x1530   :  { %v2973_v28 = vadd.f32 %v11816_v27, %v10542_v24  ;;  %v2879_v29 = vpop.f32.mrb[31].mxu1  ;;  %v2967_v30 = vpop.f32.mrb[21].mxu0  ;;  %v2885_v41 = vadd.f32 %v11805_v26, %v10534_v25  ;;  %v10579_v26 = vld [vmem:[%s15146_s6 + $0xb8] sm:$0xff] }
0x1531   :  { %v2880_v33 = vadd.f32 %v10534_v25, %v2879_v29  ;;  %v2968_v34 = vadd.f32 %v10542_v24, %v2967_v30  ;;  %v12744_v24 = vpack.c.bf16 %v10577_v23, %v10576_v20  ;;  %v10578_v25 = vld [vmem:[%s15146_s6 + $0xb0] sm:$0xff]  ;;  %v10565_v30 = vld [vmem:[%s15147_s7 + $0x5] ss:$0 sm:$0xff]  ;;  %v10600_v23 = vld [vmem:[%s15147_s7 + $0x6] ss:$0 sm:$0xff] }
0x1532   :  { %v3065_v50 = vmul.f32 0.35355338, %v2885_v41  ;;  %v12748_v27 = vpack.c.bf16 %v10579_v26, %v10578_v25  ;;  %v10606_v25 = vld [vmem:[%s15145_s5 + $0xd8] sm:$0xff] }
0x1533   :  { %v3064_v35 = vmul.f32 0.35355338, %v2880_v33  ;;  %v12718_v38 = vpack.c.bf16 %v2973_v28, %v2968_v34 }
0x1535   :  { %12720 = vmatprep.subr.msk.bf16.mxu0 %vm13647_vm2, %v12718_v38  ;;  %11832 = vmatprep.mubr.msk.f32.mxu0 %vm611_vm1, %v3064_v35 }
0x1536   :  { %12723 = vmatpush3.bf16.xpose.msk.msra.mxu0 %vm13647_vm2, %v12718_v38 }
0x1537   :  { %v11827_v44 = vpop.f32.mrb[32].mxu1  ;;  %12737 = vmatprep.subr.bf16.mxu0 %v12736_v39 }
0x1538   :  { %v3061_v45 = vadd.f32 %v11827_v44, %v10550_v40  ;;  %v3055_v46 = vpop.f32.mrb[33].mxu1 }
0x1539   :  { %v3056_v49 = vadd.f32 %v10550_v40, %v3055_v46 }
0x153b   :  { %v12724_v51 = vpack.c.bf16 %v3061_v45, %v3056_v49 }
0x153d   :  { %12725 = vmatprep.subr.bf16.mxu1 %v12724_v51  ;;  %11833 = vmatmul.mubr.msk.f32.vlgmr.msra.gmra.mrb[22].mxu0 %vm611_vm1, %v3065_v50 }
0x153e   :  { %12727 = vmatpush3.bf16.msra.mxu1 %v12724_v51  ;;  %12739 = vmatpush3.bf16.msra.mxu0 %v12736_v39  ;;  %v10581_v39 = vld [vmem:[%s15149_s9 + $0x5] ss:$0 sm:$0xff] }
0x153f   :  { %11861 = vmatprep.mubr.msk.f32.mxu0 %vm83_vm0, %v13987_v21  ;;  %12741 = vmatprep.subr.bf16.mxu0 %v12740_v52 }
0x1540   :  { %12729 = vmatprep.subr.bf16.mxu1 %v12728_v10 }
0x1542   :  { %12743 = vmatpush3.bf16.msra.mxu0 %v12740_v52 }
0x1545   :  { %11862 = vmatmul.mubr.msk.f32.vlgmr.msra.gmra.mrb[24].mxu0 %vm83_vm0, %v13989_v22 }
0x1610   :  { %v11834_v53 = vpop.f32.mrb[22].mxu0 }
0x1611   :  { %v3144_v54 = vpop.f32.mrb[23].mxu0  ;;  %v3156_v55 = vsel %vm699_vm3, %v11834_v53, -inf }
0x1612   :  { %3157 = vmax.xlane.f32.xlu1 %v3156_v55  ;;  %v3153_v59 = vsel %vm699_vm3, %v3144_v54, -inf }
0x1613   :  { %3154 = vmax.xlane.f32.xlu0 %v3153_v59 }
0x1618   :  { %v11863_v57 = vpop.f32.mrb[24].mxu0 }
0x1619   :  { %v3431_v60 = vadd.f32 %v11863_v57, %v10573_v56  ;;  %v3425_v58 = vpop.f32.mrb[25].mxu0 }
0x161a   :  { %v3426_v43 = vadd.f32 %v10573_v56, %v3425_v58 }
0x161c   :  { %v12752_v42 = vpack.c.bf16 %v3431_v60, %v3426_v43  ;;  %v10595_v43 = vld [vmem:[%s15172_s27 + $0xc0] sm:$0xff] }
0x161e   :  { %12754 = vmatprep.subr.msk.bf16.mxu0 %vm13647_vm2, %v12752_v42 }
0x161f   :  { %12757 = vmatpush3.bf16.xpose.msk.msra.mxu0 %vm13647_vm2, %v12752_v42  ;;  %v10596_v42 = vld [vmem:[%s15172_s27 + $0xc8] sm:$0xff] }
0x169f   :  { %v3158_v61 = vpop.xlane.xlu1 %3157 }
0x16a0   :  { %v3160_v62 = vsub.f32 %v11834_v53, %v3158_v61  ;;  %v3155_v0 = vpop.xlane.xlu0 %3154  ;;  %v12762_v61 = vpack.c.bf16 %v10596_v42, %v10595_v43 }
0x16a1   :  { %v3159_v1 = vsub.f32 %v3144_v54, %v3155_v0 }
0x16a2   :  { %v3163_v2 = vmul.f32 1.442695, %v3160_v62  ;;  %v10590_v62 = vld [vmem:[%s15150_s10 + $0x28] sm:$0xff] }
0x16a3   :  { %v3161_v3 = vmul.f32 1.442695, %v3159_v1  ;;  %11889 = vmatprep.subr.mxu0 %v10590_v62 }
0x16a4   :  { %13253 = vpow2.f32 %v3163_v2 }
0x16a5   :  { %13255 = vpow2.f32 %v3161_v3  ;;  %v10597_v3 = vld [vmem:[%s15172_s27 + $0xd0] sm:$0xff] }
0x16ae   :  { %v13254_v4 = vpop.eup %13253 }
0x16af   :  { %v13256_v5 = vpop.eup %13255  ;;  %v3168_v6 = vsel %vm699_vm3, %v13254_v4, 0.0 }
0x16b0   :  { %3169 = vadd.xlane.f32.xlu1 %v3168_v6  ;;  %v3165_v7 = vsel %vm699_vm3, %v13256_v5, 0.0 }
0x16b1   :  { %3166 = vadd.xlane.f32.xlu0 %v3165_v7 }
0x173d   :  { %v3170_v11 = vpop.xlane.xlu1 %3169 }
0x173e   :  { %13257 = vrcp.f32 %v3170_v11  ;;  %v3167_v12 = vpop.xlane.xlu0 %3166 }
0x173f   :  { %13259 = vrcp.f32 %v3167_v12  ;;  %v10613_v12 = vld [vmem:[%s15146_s6 + $0xd0] sm:$0xff] }
0x1748   :  { %v13258_v13 = vpop.eup %13257 }
0x1749   :  { %v13260_v16 = vpop.eup %13259  ;;  %v3174_v18 = vmul.f32 %v13258_v13, %v13254_v4  ;;  %v10598_v4 = vld [vmem:[%s15172_s27 + $0xd8] sm:$0xff] }
0x174a   :  { %v3173_v17 = vmul.f32 %v13260_v16, %v13256_v5  ;;  %v12766_v8 = vpack.c.bf16 %v10598_v4, %v10597_v3  ;;  %v10614_v13 = vld [vmem:[%s15146_s6 + $0xd8] sm:$0xff]  ;;  %v10603_v16 = vld [vmem:[%s15145_s5 + $0xc0] sm:$0xff] }
0x174b   :  { %v12782_v14 = vpack.c.bf16 %v10614_v13, %v10613_v12  ;;  %v10645_v12 = vld [vmem:[%s15146_s6 + $0xe8] sm:$0xff] }
0x174c   :  { %11839 = vmatprep.mubr.msk.f32.mxu1 %vm699_vm3, %v3173_v17  ;;  %v10604_v17 = vld [vmem:[%s15145_s5 + $0xc8] sm:$0xff] }
0x174d   :  { %11840 = vmatmul.mubr.msk.f32.vlgmr.msra.gmra.mrb[34].mxu1 %vm699_vm3, %v3174_v18  ;;  %v12770_v20 = vpack.c.bf16 %v10604_v17, %v10603_v16  ;;  %v10636_v17 = vld [vmem:[%s15145_s5 + $0xe0] sm:$0xff] }
0x174e   :  { %12731 = vmatpush3.bf16.msra.mxu1 %v12728_v10  ;;  %11850 = vmatprep.mubr.msk.f32.mxu1 %vm83_vm0, %v13987_v21  ;;  %v10612_v10 = vld [vmem:[%s15146_s6 + $0xc8] sm:$0xff] }
0x174f   :  { %12733 = vmatprep.subr.bf16.mxu1 %v12732_v19  ;;  %v12778_v11 = vpack.c.bf16 %v10612_v10, %v10611_v9 }
0x1752   :  { %12735 = vmatpush3.bf16.msra.mxu1 %v12732_v19 }
0x1753   :  { %12745 = vmatprep.subr.bf16.mxu1 %v12744_v24 }
0x1755   :  { %11851 = vmatmul.mubr.msk.f32.vlgmr.msra.gmra.mrb[36].mxu1 %vm83_vm0, %v13989_v22 }
0x1756   :  { %12747 = vmatpush3.bf16.msra.mxu1 %v12744_v24  ;;  %11872 = vmatprep.mubr.msk.f32.mxu1 %vm83_vm0, %v13987_v21  ;;  %v10605_v24 = vld [vmem:[%s15145_s5 + $0xd0] sm:$0xff] }
0x1757   :  { %12749 = vmatprep.subr.bf16.mxu1 %v12748_v27 }
0x175a   :  { %12751 = vmatpush3.bf16.msra.mxu1 %v12748_v27 }
0x175d   :  { %11873 = vmatmul.mubr.msk.f32.vlgmr.msra.gmra.mrb[38].mxu1 %vm83_vm0, %v13989_v22 }
0x1820   :  { %v14079_v28 = vpop.f32.mrb[34].mxu1 }
0x1821   :  { %v14081_v29 = vpop.f32.mrb[35].mxu1 }
0x1828   :  { %v11852_v31 = vpop.f32.mrb[36].mxu1 }
0x1829   :  { %v3343_v32 = vadd.f32 %v11852_v31, %v10565_v30  ;;  %v3337_v33 = vpop.f32.mrb[37].mxu1  ;;  %v12774_v31 = vpack.c.bf16 %v10606_v25, %v10605_v24 }
0x182a   :  { %v3338_v34 = vadd.f32 %v10565_v30, %v3337_v33 }
0x182b   :  { %v3523_v38 = vmul.f32 0.35355338, %v3343_v32  ;;  %v10616_v32 = vld [vmem:[%s15149_s9 + $0x6] ss:$0 sm:$0xff] }
0x182c   :  { %v3522_v35 = vmul.f32 0.35355338, %v3338_v34 }
0x182e   :  { %11879 = vmatprep.mubr.msk.f32.mxu0 %vm611_vm1, %v3522_v35 }
0x182f   :  { %11880 = vmatmul.mubr.msk.f32.vlgmr.msra.gmra.mrb[26].mxu0 %vm611_vm1, %v3523_v38 }
0x1830   :  { %v11874_v40 = vpop.f32.mrb[38].mxu1  ;;  %11890 = vmatpush3.msra.mxu0 %v10590_v62  ;;  %v10629_v62 = vld [vmem:[%s15172_s27 + $0xe8] sm:$0xff] }
0x1831   :  { %v3519_v41 = vadd.f32 %v11874_v40, %v10581_v39  ;;  %v3513_v44 = vpop.f32.mrb[39].mxu1  ;;  %11894 = vmatprep.subr.mxu0 %v10559_v15  ;;  %v10608_v40 = vld [vmem:[%s15148_s8 + $0x6] ss:$0 sm:$0xff] }
0x1832   :  { %v3514_v45 = vadd.f32 %v10581_v39, %v3513_v44 }
0x1834   :  { %v12758_v46 = vpack.c.bf16 %v3519_v41, %v3514_v45 }
0x1836   :  { %12759 = vmatprep.subr.bf16.mxu1 %v12758_v46 }
0x1837   :  { %12761 = vmatpush3.bf16.msra.mxu1 %v12758_v46 }
0x1838   :  { %12763 = vmatprep.subr.bf16.mxu1 %v12762_v61 }
0x1902   :  { %v11881_v47 = vpop.f32.mrb[26].mxu0 }
0x1903   :  { %v3602_v48 = vpop.f32.mrb[27].mxu0  ;;  %v3614_v49 = vsel %vm699_vm3, %v11881_v47, -inf }
0x1904   :  { %3615 = vmax.xlane.f32.xlu1 %v3614_v49  ;;  %v3611_v50 = vsel %vm699_vm3, %v3602_v48, -inf }
0x1905   :  { %3612 = vmax.xlane.f32.xlu0 %v3611_v50 }
0x1991   :  { %v3616_v51 = vpop.xlane.xlu1 %3615 }
0x1992   :  { %v3618_v52 = vsub.f32 %v11881_v47, %v3616_v51  ;;  %v3613_v53 = vpop.xlane.xlu0 %3612 }
0x1993   :  { %v3617_v54 = vsub.f32 %v3602_v48, %v3613_v53 }
0x1994   :  { %v3621_v55 = vmul.f32 1.442695, %v3618_v52 }
0x1995   :  { %v3619_v59 = vmul.f32 1.442695, %v3617_v54 }
0x1996   :  { %13261 = vpow2.f32 %v3621_v55 }
0x1997   :  { %13263 = vpow2.f32 %v3619_v59 }
0x19a0   :  { %v13262_v56 = vpop.eup %13261 }
0x19a1   :  { %v13264_v57 = vpop.eup %13263  ;;  %v3626_v60 = vsel %vm699_vm3, %v13262_v56, 0.0 }
0x19a2   :  { %3627 = vadd.xlane.f32.xlu1 %v3626_v60  ;;  %v3623_v58 = vsel %vm699_vm3, %v13264_v57, 0.0 }
0x19a3   :  { %3624 = vadd.xlane.f32.xlu0 %v3623_v58 }
0x1a2f   :  { %v3628_v0 = vpop.xlane.xlu1 %3627 }
0x1a30   :  { %13265 = vrcp.f32 %v3628_v0  ;;  %v3625_v1 = vpop.xlane.xlu0 %3624 }
0x1a31   :  { %13267 = vrcp.f32 %v3625_v1  ;;  %v10625_v1 = vld [vmem:[%s15150_s10 + $0x30] sm:$0xff] }
0x1a3a   :  { %v13266_v2 = vpop.eup %13265 }
0x1a3b   :  { %v13268_v5 = vpop.eup %13267  ;;  %v3632_v7 = vmul.f32 %v13266_v2, %v13262_v56 }
0x1a3c   :  { %v3631_v6 = vmul.f32 %v13268_v5, %v13264_v57  ;;  %v10630_v5 = vld [vmem:[%s15172_s27 + $0xf0] sm:$0xff] }
0x1a3e   :  { %11886 = vmatprep.mubr.msk.f32.mxu1 %vm699_vm3, %v3631_v6  ;;  %v10631_v6 = vld [vmem:[%s15172_s27 + $0xf8] sm:$0xff] }
0x1a3f   :  { %11887 = vmatmul.mubr.msk.f32.vlgmr.msra.gmra.mrb[40].mxu1 %vm699_vm3, %v3632_v7  ;;  %v12800_v10 = vpack.c.bf16 %v10631_v6, %v10630_v5 }
0x1a40   :  { %12765 = vmatpush3.bf16.msra.mxu1 %v12762_v61  ;;  %11907 = vmatprep.mubr.msk.f32.mxu1 %vm83_vm0, %v13987_v21  ;;  %v10628_v61 = vld [vmem:[%s15172_s27 + $0xe0] sm:$0xff] }
0x1a41   :  { %12767 = vmatprep.subr.bf16.mxu1 %v12766_v8  ;;  %v12796_v0 = vpack.c.bf16 %v10629_v62, %v10628_v61  ;;  %v10658_v62 = vld [vmem:[%s15150_s10 + $0x38] sm:$0xff] }
0x1a44   :  { %12769 = vmatpush3.bf16.msra.mxu1 %v12766_v8 }
0x1a45   :  { %12779 = vmatprep.subr.bf16.mxu1 %v12778_v11 }
0x1a47   :  { %11908 = vmatmul.mubr.msk.f32.vlgmr.msra.gmra.mrb[42].mxu1 %vm83_vm0, %v13989_v22 }
0x1a48   :  { %12781 = vmatpush3.bf16.msra.mxu1 %v12778_v11  ;;  %11929 = vmatprep.mubr.msk.f32.mxu1 %vm83_vm0, %v13987_v21  ;;  %v10644_v11 = vld [vmem:[%s15146_s6 + $0xe0] sm:$0xff] }
0x1a49   :  { %12783 = vmatprep.subr.bf16.mxu1 %v12782_v14  ;;  %v12812_v13 = vpack.c.bf16 %v10645_v12, %v10644_v11 }
0x1a4c   :  { %12785 = vmatpush3.bf16.msra.mxu1 %v12782_v14  ;;  %v10646_v14 = vld [vmem:[%s15146_s6 + $0xf0] sm:$0xff] }
0x1a4f   :  { %11930 = vmatmul.mubr.msk.f32.vlgmr.msra.gmra.mrb[44].mxu1 %vm83_vm0, %v13989_v22 }
0x1b12   :  { %v11888_v18 = vpop.f32.mrb[40].mxu1 }
0x1b13   :  { %v3705_v19 = vpop.f32.mrb[41].mxu1 }
0x1b14   :  { %11891 = vmatprep.mubr.msk.f32.mxu0 %vm611_vm1, %v3705_v19 }
0x1b15   :  { %11892 = vmatmul.mubr.msk.f32.vlgmr.msra.gmra.mrb[28].mxu0 %vm611_vm1, %v11888_v18  ;;  %v10637_v18 = vld [vmem:[%s15145_s5 + $0xe8] sm:$0xff] }
0x1b16   :  { %11895 = vmatpush3.msra.mxu0 %v10559_v15  ;;  %11896 = vmatprep.mubr.msk.f32.mxu0 %vm611_vm1, %v14081_v29  ;;  %v10647_v15 = vld [vmem:[%s15146_s6 + $0xf8] sm:$0xff]  ;;  %v12804_v19 = vpack.c.bf16 %v10637_v18, %v10636_v17 }
0x1b17   :  { %12771 = vmatprep.subr.bf16.mxu0 %v12770_v20  ;;  %v12816_v16 = vpack.c.bf16 %v10647_v15, %v10646_v14 }
0x1b1a   :  { %v11909_v26 = vpop.f32.mrb[42].mxu1 }
0x1b1b   :  { %v3963_v27 = vadd.f32 %v11909_v26, %v10600_v23  ;;  %v3957_v30 = vpop.f32.mrb[43].mxu1 }
0x1b1c   :  { %v3958_v29 = vadd.f32 %v10600_v23, %v3957_v30  ;;  %v10639_v23 = vld [vmem:[%s15145_s5 + $0xf8] sm:$0xff] }
0x1b1d   :  { %11897 = vmatmul.mubr.msk.f32.vlgmr.msra.gmra.mrb[28].mxu0 %vm611_vm1, %v14079_v28  ;;  %v4143_v48 = vmul.f32 0.35355338, %v3963_v27  ;;  %v10633_v27 = vld [vmem:[%s15147_s7 + $0x7] ss:$0 sm:$0xff] }
0x1b1e   :  { %12773 = vmatpush3.bf16.msra.mxu0 %v12770_v20  ;;  %11918 = vmatprep.mubr.msk.f32.mxu0 %vm83_vm0, %v13987_v21  ;;  %v4142_v38 = vmul.f32 0.35355338, %v3958_v29  ;;  %v10638_v20 = vld [vmem:[%s15145_s5 + $0xf0] sm:$0xff] }
0x1b1f   :  { %12775 = vmatprep.subr.bf16.mxu0 %v12774_v31  ;;  %v12808_v26 = vpack.c.bf16 %v10639_v23, %v10638_v20 }
0x1b22   :  { %12777 = vmatpush3.bf16.msra.mxu0 %v12774_v31  ;;  %v11931_v33 = vpop.f32.mrb[44].mxu1 }
0x1b23   :  { %v4139_v34 = vadd.f32 %v11931_v33, %v10616_v32  ;;  %v4133_v35 = vpop.f32.mrb[45].mxu1 }
0x1b24   :  { %v4134_v39 = vadd.f32 %v10616_v32, %v4133_v35 }
0x1b25   :  { %11919 = vmatmul.mubr.msk.f32.vlgmr.msra.gmra.mrb[30].mxu0 %vm83_vm0, %v13989_v22 }
0x1b26   :  { %v12792_v28 = vpack.c.bf16 %v4139_v34, %v4134_v39  ;;  %11936 = vmatprep.mubr.msk.f32.mxu0 %vm611_vm1, %v4142_v38  ;;  %v10649_v34 = vld [vmem:[%s15149_s9 + $0x7] ss:$0 sm:$0xff] }
0x1b28   :  { %12793 = vmatprep.subr.bf16.mxu1 %v12792_v28 }
0x1b29   :  { %12795 = vmatpush3.bf16.msra.mxu1 %v12792_v28 }
0x1b2a   :  { %12797 = vmatprep.subr.bf16.mxu1 %v12796_v0 }
0x1bf8   :  { %v11920_v41 = vpop.f32.mrb[30].mxu0 }
0x1bf9   :  { %v4051_v44 = vadd.f32 %v11920_v41, %v10608_v40  ;;  %v4045_v45 = vpop.f32.mrb[31].mxu0  ;;  %v10641_v41 = vld [vmem:[%s15148_s8 + $0x7] ss:$0 sm:$0xff] }
0x1bfa   :  { %v4046_v46 = vadd.f32 %v10608_v40, %v4045_v45 }
0x1bfc   :  { %v12786_v47 = vpack.c.bf16 %v4051_v44, %v4046_v46 }
0x1bfe   :  { %12788 = vmatprep.subr.msk.bf16.mxu0 %vm13647_vm2, %v12786_v47 }
0x1bff   :  { %12791 = vmatpush3.bf16.xpose.msk.msra.mxu0 %vm13647_vm2, %v12786_v47 }
0x1c00   :  { %11946 = vmatprep.subr.mxu0 %v10625_v1 }
0x1c06   :  { %11937 = vmatmul.mubr.msk.f32.vlgmr.msra.gmra.mrb[32].mxu0 %vm611_vm1, %v4143_v48 }
0x1c07   :  { %11947 = vmatpush3.msra.mxu0 %v10625_v1 }
0x1c08   :  { %12805 = vmatprep.subr.bf16.mxu0 %v12804_v19 }
0x1cd9   :  { %v11938_v49 = vpop.f32.mrb[32].mxu0 }
0x1cda   :  { %v4222_v50 = vpop.f32.mrb[33].mxu0  ;;  %v4234_v51 = vsel %vm699_vm3, %v11938_v49, -inf }
0x1cdb   :  { %4235 = vmax.xlane.f32.xlu1 %v4234_v51  ;;  %v4231_v52 = vsel %vm699_vm3, %v4222_v50, -inf }
0x1cdc   :  { %4232 = vmax.xlane.f32.xlu0 %v4231_v52 }
0x1d68   :  { %v4236_v53 = vpop.xlane.xlu1 %4235 }
0x1d69   :  { %v4238_v54 = vsub.f32 %v11938_v49, %v4236_v53  ;;  %v4233_v55 = vpop.xlane.xlu0 %4232 }
0x1d6a   :  { %v4237_v59 = vsub.f32 %v4222_v50, %v4233_v55 }
0x1d6b   :  { %v4241_v56 = vmul.f32 1.442695, %v4238_v54 }
0x1d6c   :  { %v4239_v57 = vmul.f32 1.442695, %v4237_v59 }
0x1d6d   :  { %13269 = vpow2.f32 %v4241_v56 }
0x1d6e   :  { %13271 = vpow2.f32 %v4239_v57 }
0x1d77   :  { %v13270_v60 = vpop.eup %13269 }
0x1d78   :  { %v13272_v58 = vpop.eup %13271  ;;  %v4246_v43 = vsel %vm699_vm3, %v13270_v60, 0.0 }
0x1d79   :  { %4247 = vadd.xlane.f32.xlu1 %v4246_v43  ;;  %v4243_v42 = vsel %vm699_vm3, %v13272_v58, 0.0 }
0x1d7a   :  { %4244 = vadd.xlane.f32.xlu0 %v4243_v42 }
0x1e06   :  { %v4248_v2 = vpop.xlane.xlu1 %4247 }
0x1e07   :  { %13273 = vrcp.f32 %v4248_v2  ;;  %v4245_v3 = vpop.xlane.xlu0 %4244 }
0x1e08   :  { %13275 = vrcp.f32 %v4245_v3 }
0x1e11   :  { %v13274_v4 = vpop.eup %13273 }
0x1e12   :  { %v13276_v7 = vpop.eup %13275  ;;  %v4252_v9 = vmul.f32 %v13274_v4, %v13270_v60 }
0x1e13   :  { %v4251_v8 = vmul.f32 %v13276_v7, %v13272_v58 }
0x1e15   :  { %11943 = vmatprep.mubr.msk.f32.mxu1 %vm699_vm3, %v4251_v8  ;;  %v10662_v8 = vld [vmem:[%s15151_s11 + $0x1] ss:$0 sm:$0xff] }
0x1e16   :  { %11944 = vmatmul.mubr.msk.f32.vlgmr.msra.gmra.mrb[46].mxu1 %vm699_vm3, %v4252_v9 }
0x1e17   :  { %12799 = vmatpush3.bf16.msra.mxu1 %v12796_v0  ;;  %11959 = vmatprep.mubr.msk.f32.mxu1 %vm83_vm0, %v13987_v21 }
0x1e18   :  { %12801 = vmatprep.subr.bf16.mxu1 %v12800_v10 }
0x1e1b   :  { %12803 = vmatpush3.bf16.msra.mxu1 %v12800_v10 }
0x1e1c   :  { %12813 = vmatprep.subr.bf16.mxu1 %v12812_v13 }
0x1e1e   :  { %11960 = vmatmul.mubr.msk.f32.vlgmr.msra.gmra.mrb[48].mxu1 %vm83_vm0, %v13989_v22 }
0x1e1f   :  { %12815 = vmatpush3.bf16.msra.mxu1 %v12812_v13  ;;  %11981 = vmatprep.mubr.msk.f32.mxu1 %vm83_vm0, %v13987_v21 }
0x1e20   :  { %12817 = vmatprep.subr.bf16.mxu1 %v12816_v16 }
0x1e23   :  { %12819 = vmatpush3.bf16.msra.mxu1 %v12816_v16 }
0x1e26   :  { %11982 = vmatmul.mubr.msk.f32.vlgmr.msra.gmra.mrb[50].mxu1 %vm83_vm0, %v13989_v22 }
0x1ee9   :  { %v11945_v24 = vpop.f32.mrb[46].mxu1 }
0x1eea   :  { %v4325_v25 = vpop.f32.mrb[47].mxu1 }
0x1eeb   :  { %11948 = vmatprep.mubr.msk.f32.mxu0 %vm611_vm1, %v4325_v25 }
0x1eec   :  { %11949 = vmatmul.mubr.msk.f32.vlgmr.msra.gmra.mrb[28].mxu0 %vm611_vm1, %v11945_v24 }
0x1eed   :  { %12807 = vmatpush3.bf16.msra.mxu0 %v12804_v19  ;;  %11970 = vmatprep.mubr.msk.f32.mxu0 %vm83_vm0, %v13987_v21 }
0x1eee   :  { %12809 = vmatprep.subr.bf16.mxu0 %v12808_v26 }
0x1ef1   :  { %v11961_v30 = vpop.f32.mrb[48].mxu1  ;;  %12811 = vmatpush3.bf16.msra.mxu0 %v12808_v26 }
0x1ef2   :  { %v4504_v31 = vadd.f32 %v11961_v30, %v10633_v27  ;;  %v4498_v29 = vpop.f32.mrb[49].mxu1  ;;  %v10668_v30 = vld [vmem:[%s15154_s14 + $0x28] sm:$0xff] }
0x1ef3   :  { %v4499_v32 = vadd.f32 %v10633_v27, %v4498_v29  ;;  %v10669_v29 = vld [vmem:[%s15154_s14 + $0x30] sm:$0xff] }
0x1ef4   :  { %11971 = vmatmul.mubr.msk.f32.vlgmr.msra.gmra.mrb[34].mxu0 %vm83_vm0, %v13989_v22  ;;  %v4684_v49 = vmul.f32 0.35355338, %v4504_v31 }
0x1ef5   :  { %v4683_v33 = vmul.f32 0.35355338, %v4499_v32  ;;  %v10670_v32 = vld [vmem:[%s15154_s14 + $0x38] sm:$0xff] }
0x1ef7   :  { %11988 = vmatprep.mubr.msk.f32.mxu0 %vm611_vm1, %v4683_v33  ;;  %v12834_v33 = vpack.c.bf16 %v10670_v32, %v10669_v29  ;;  %v5618_v32 = vld [vmem:[%s15145_s5] sm:$0xff] }
0x1ef9   :  { %v11983_v35 = vpop.f32.mrb[50].mxu1 }
0x1efa   :  { %v4680_v38 = vadd.f32 %v11983_v35, %v10649_v34  ;;  %v4674_v39 = vpop.f32.mrb[51].mxu1  ;;  %v5262_v35 = vld [vmem:[%s15170_s23 + $0x8] sm:$0xff] }
0x1efb   :  { %v4675_v28 = vadd.f32 %v10649_v34, %v4674_v39  ;;  %v5261_v34 = vld [vmem:[%s15170_s23] sm:$0xff] }
0x1efc   :  { %v10675_v39 = vld [vmem:[%s15156_s16 + $0x20] sm:$0xff] }
0x1efd   :  { %v12826_v40 = vpack.c.bf16 %v4680_v38, %v4675_v28  ;;  %v12846_v38 = vpack.c.bf16 %v5262_v35, %v5261_v34  ;;  %v10676_v28 = vld [vmem:[%s15156_s16 + $0x28] sm:$0xff] }
0x1eff   :  { %12827 = vmatprep.subr.bf16.mxu1 %v12826_v40 }
0x1f00   :  { %12829 = vmatpush3.bf16.msra.mxu1 %v12826_v40  ;;  %v12838_v40 = vpack.c.bf16 %v10676_v28, %v10675_v39  ;;  %v5621_v39 = vld [vmem:[%s15145_s5 + $0x18] sm:$0xff] }
0x1fc7   :  { %v11972_v44 = vpop.f32.mrb[34].mxu0 }
0x1fc8   :  { %v4592_v45 = vadd.f32 %v11972_v44, %v10641_v41  ;;  %v4586_v46 = vpop.f32.mrb[35].mxu0 }
0x1fc9   :  { %v4587_v47 = vadd.f32 %v10641_v41, %v4586_v46 }
0x1fcb   :  { %v12820_v48 = vpack.c.bf16 %v4592_v45, %v4587_v47 }
0x1fcd   :  { %12822 = vmatprep.subr.msk.bf16.mxu0 %vm13647_vm2, %v12820_v48 }
0x1fce   :  { %12825 = vmatpush3.bf16.xpose.msk.msra.mxu0 %vm13647_vm2, %v12820_v48 }
0x1fcf   :  { %11998 = vmatprep.subr.mxu0 %v10658_v62 }
0x1fd5   :  { %11989 = vmatmul.mubr.msk.f32.vlgmr.msra.gmra.mrb[36].mxu0 %vm611_vm1, %v4684_v49 }
0x1fd6   :  { %11999 = vmatpush3.msra.mxu0 %v10658_v62  ;;  %v5351_v62 = vld [vmem:[%s15170_s23 + $0x28] sm:$0xff] }
0x1fd7   :  { %12839 = vmatprep.subr.bf16.mxu0 %v12838_v40 }
0x20a8   :  { %v11990_v50 = vpop.f32.mrb[36].mxu0 }
0x20a9   :  { %v4763_v51 = vpop.f32.mrb[37].mxu0  ;;  %v4775_v52 = vsel %vm699_vm3, %v11990_v50, -inf }
0x20aa   :  { %4776 = vmax.xlane.f32.xlu1 %v4775_v52  ;;  %v4772_v53 = vsel %vm699_vm3, %v4763_v51, -inf }
0x20ab   :  { %4773 = vmax.xlane.f32.xlu0 %v4772_v53 }
0x2137   :  { %v4777_v54 = vpop.xlane.xlu1 %4776 }
0x2138   :  { %v4779_v55 = vsub.f32 %v11990_v50, %v4777_v54  ;;  %v4774_v59 = vpop.xlane.xlu0 %4773  ;;  %v10664_v50 = vld [vmem:[%s15152_s12 + $0x1] ss:$0 sm:$0xff] }
0x2139   :  { %v4778_v56 = vsub.f32 %v4763_v51, %v4774_v59 }
0x213a   :  { %v4782_v57 = vmul.f32 1.442695, %v4779_v55  ;;  %v10666_v55 = vld [vmem:[%s15153_s13 + $0x1] ss:$0 sm:$0xff] }
0x213b   :  { %v4780_v60 = vmul.f32 1.442695, %v4778_v56  ;;  %v5263_v56 = vld [vmem:[%s15170_s23 + $0x10] sm:$0xff] }
0x213c   :  { %13277 = vpow2.f32 %v4782_v57  ;;  %v5264_v57 = vld [vmem:[%s15170_s23 + $0x18] sm:$0xff] }
0x213d   :  { %13279 = vpow2.f32 %v4780_v60 }
0x2146   :  { %v13278_v58 = vpop.eup %13277 }
0x2147   :  { %v13280_v43 = vpop.eup %13279  ;;  %v4787_v42 = vsel %vm699_vm3, %v13278_v58, 0.0 }
0x2148   :  { %4788 = vadd.xlane.f32.xlu1 %v4787_v42  ;;  %v4784_v61 = vsel %vm699_vm3, %v13280_v43, 0.0  ;;  %v10687_v42 = vld [vmem:[%s15171_s29 + $0x18] sm:$0xff] }
0x2149   :  { %4785 = vadd.xlane.f32.xlu0 %v4784_v61  ;;  %v5350_v61 = vld [vmem:[%s15170_s23 + $0x20] sm:$0xff] }
0x21d5   :  { %v4789_v0 = vpop.xlane.xlu1 %4788 }
0x21d6   :  { %13281 = vrcp.f32 %v4789_v0  ;;  %v4786_v1 = vpop.xlane.xlu0 %4785  ;;  %v12854_v0 = vpack.c.bf16 %v5351_v62, %v5350_v61  ;;  %v10715_v61 = vld [vmem:[%s15172_s27 + $0x28] sm:$0xff] }
0x21d7   :  { %13283 = vrcp.f32 %v4786_v1  ;;  %v5352_v1 = vld [vmem:[%s15170_s23 + $0x30] sm:$0xff] }
0x21e0   :  { %v13282_v2 = vpop.eup %13281 }
0x21e1   :  { %v13284_v3 = vpop.eup %13283  ;;  %v4793_v5 = vmul.f32 %v13282_v2, %v13278_v58  ;;  %v5353_v2 = vld [vmem:[%s15170_s23 + $0x38] sm:$0xff] }
0x21e2   :  { %v4792_v4 = vmul.f32 %v13284_v3, %v13280_v43  ;;  %v12850_v43 = vpack.c.bf16 %v5264_v57, %v5263_v56  ;;  %v10688_v3 = vld [vmem:[%s15171_s29 + $0x20] sm:$0xff] }
0x21e4   :  { %11995 = vmatprep.mubr.msk.f32.mxu1 %vm699_vm3, %v4792_v4  ;;  %v12858_v4 = vpack.c.bf16 %v5353_v2, %v5352_v1  ;;  %v10705_v2 = vld [vmem:[%s15149_s9] ss:$0 sm:$0xff] }
0x21e5   :  { %11996 = vmatmul.mubr.msk.f32.vlgmr.msra.gmra.mrb[52].mxu1 %vm699_vm3, %v4793_v5  ;;  %v10691_v5 = vld [vmem:[%s15171_s29 + $0x19] sm:$0xff] }
0x22b8   :  { %v11997_v6 = vpop.f32.mrb[52].mxu1 }
0x22b9   :  { %v4866_v7 = vpop.f32.mrb[53].mxu1 }
0x22ba   :  { %12000 = vmatprep.mubr.msk.f32.mxu0 %vm611_vm1, %v4866_v7  ;;  %v5440_v7 = vld [vmem:[%s15170_s23 + $0x48] sm:$0xff] }
0x22bb   :  { %12001 = vmatmul.mubr.msk.f32.vlgmr.msra.gmra.mrb[28].mxu0 %vm611_vm1, %v11997_v6  ;;  %v5439_v6 = vld [vmem:[%s15170_s23 + $0x40] sm:$0xff] }
0x22bc   :  { %12841 = vmatpush3.bf16.msra.mxu0 %v12838_v40 }
0x238e   :  { %v12002_v9 = vpop.f32.mrb[28].mxu0 }
0x238f   :  { %v4969_v10 = vadd.f32 %v12002_v9, %v10662_v8  ;;  %v4949_v11 = vpop.f32.mrb[29].mxu0  ;;  %v5441_v9 = vld [vmem:[%s15170_s23 + $0x50] sm:$0xff] }
0x2390   :  { %v4968_v12 = vadd.f32 %v10662_v8, %v4949_v11  ;;  %v12862_v8 = vpack.c.bf16 %v5440_v7, %v5439_v6  ;;  %v10692_v11 = vld [vmem:[%s15171_s29 + $0x21] sm:$0xff]  ;;  %v10716_v7 = vld [vmem:[%s15172_s27 + $0x30] sm:$0xff] }
0x2391   :  { %v4971_v13 = vadd.f32 %v4969_v10, %v13989_v22  ;;  %v5442_v10 = vld [vmem:[%s15170_s23 + $0x58] sm:$0xff] }
0x2392   :  { %v4970_v14 = vadd.f32 %v4968_v12, %v13987_v21  ;;  %v10667_v21 = vld [vmem:[%s15154_s14 + $0x20] sm:$0xff]  ;;  %v12866_v12 = vpack.c.bf16 %v5442_v10, %v5441_v9 }
0x2393   :  { %v4975_v15 = vsel %vm83_vm0, %v4971_v13, 0.0  ;;  %v12830_v31 = vpack.c.bf16 %v10668_v30, %v10667_v21  ;;  %v5529_v21 = vld [vmem:[%s15172_s27 + $0x18] sm:$0xff] }
0x2394   :  { %4976 = vadd.xlane.f32.xlu1 %v4975_v15  ;;  %v4972_v16 = vsel %vm83_vm0, %v4970_v14, 0.0  ;;  %v10677_v15 = vld [vmem:[%s15156_s16 + $0x30] sm:$0xff] }
0x2395   :  { %4973 = vadd.xlane.f32.xlu0 %v4972_v16  ;;  %12831 = vmatprep.subr.bf16.mxu1 %v12830_v31  ;;  %v10678_v16 = vld [vmem:[%s15156_s16 + $0x38] sm:$0xff] }
0x2396   :  { %12833 = vmatpush3.bf16.msra.mxu1 %v12830_v31 }
0x2397   :  { %12835 = vmatprep.subr.bf16.mxu1 %v12834_v33 }
0x239a   :  { %12837 = vmatpush3.bf16.msra.mxu1 %v12834_v33  ;;  %v5619_v33 = vld [vmem:[%s15145_s5 + $0x8] sm:$0xff] }
0x239b   :  { %12847 = vmatprep.subr.bf16.mxu1 %v12846_v38  ;;  %v12878_v34 = vpack.c.bf16 %v5619_v33, %v5618_v32 }
0x2421   :  { %v4977_v17 = vpop.xlane.xlu1 %4976 }
0x2422   :  { %v4979_v18 = vmul.f32 0.03125, %v4977_v17  ;;  %v4974_v19 = vpop.xlane.xlu0 %4973  ;;  %v12842_v17 = vpack.c.bf16 %v10678_v16, %v10677_v15  ;;  %v10732_v16 = vld [vmem:[%s15146_s6 + $0x30] sm:$0xff] }
0x2423   :  { %v4978_v20 = vmul.f32 0.03125, %v4974_v19  ;;  %v5527_v19 = vld [vmem:[%s15172_s27 + $0x8] sm:$0xff] }
0x2424   :  { %v4981_v23 = vsub.f32 %v4971_v13, %v4979_v18  ;;  %v10695_v13 = vld [vmem:[%s15171_s29 + $0x1a] sm:$0xff]  ;;  %12843 = vmatprep.subr.bf16.mxu0 %v12842_v17 }
0x2425   :  { %v4980_v24 = vsub.f32 %v4970_v14, %v4978_v20  ;;  %v10696_v14 = vld [vmem:[%s15171_s29 + $0x22] sm:$0xff]  ;;  %12845 = vmatpush3.bf16.msra.mxu0 %v12842_v17  ;;  %v10733_v17 = vld [vmem:[%s15146_s6 + $0x38] sm:$0xff] }
0x2426   :  { %v4983_v25 = vmul.f32 %v4981_v23, %v4981_v23  ;;  %v5526_v18 = vld [vmem:[%s15172_s27] sm:$0xff] }
0x2427   :  { %v4982_v26 = vmul.f32 %v4980_v24, %v4980_v24  ;;  %v12870_v20 = vpack.c.bf16 %v5527_v19, %v5526_v18  ;;  %v12924_v18 = vpack.c.bf16 %v10733_v17, %v10732_v16 }
0x2428   :  { %v4987_v27 = vsel %vm83_vm0, %v4983_v25, 0.0 }
0x2429   :  { %4988 = vadd.xlane.f32.xlu1 %v4987_v27  ;;  %v4984_v22 = vsel %vm83_vm0, %v4982_v26, 0.0  ;;  %12871 = vmatprep.subr.bf16.mxu0 %v12870_v20 }
0x242a   :  { %4985 = vadd.xlane.f32.xlu0 %v4984_v22  ;;  %v5528_v22 = vld [vmem:[%s15172_s27 + $0x10] sm:$0xff] }
0x242b   :  { %v12874_v29 = vpack.c.bf16 %v5529_v21, %v5528_v22  ;;  %v10735_v21 = vld [vmem:[%s15149_s9 + $0x1] ss:$0 sm:$0xff] }
0x24b6   :  { %v4989_v41 = vpop.xlane.xlu1 %4988 }
0x24b7   :  { %v4991_v44 = vmul.f32 0.03125, %v4989_v41  ;;  %v4986_v45 = vpop.xlane.xlu0 %4985 }
0x24b8   :  { %v4990_v46 = vmul.f32 0.03125, %v4986_v45  ;;  %v5704_v45 = vld [vmem:[%s15146_s6] sm:$0xff] }
0x24b9   :  { %v4993_v47 = vadd.f32 1e-05, %v4991_v44 }
0x24ba   :  { %v4992_v48 = vadd.f32 1e-05, %v4990_v46  ;;  %v5705_v46 = vld [vmem:[%s15146_s6 + $0x8] sm:$0xff] }
0x24bb   :  { %13285 = vrsqrt.f32 %v4993_v47  ;;  %v5707_v47 = vld [vmem:[%s15146_s6 + $0x18] sm:$0xff] }
0x24bc   :  { %13287 = vrsqrt.f32 %v4992_v48 }
0x24c5   :  { %v13286_v49 = vpop.eup %13285 }
0x24c6   :  { %v13288_v51 = vpop.eup %13287  ;;  %v4997_v52 = vmul.f32 %v13286_v49, %v4981_v23  ;;  %v10672_v23 = vld [vmem:[%s15155_s15 + $0x1] ss:$0 sm:$0xff] }
0x24c7   :  { %v4996_v53 = vmul.f32 %v13288_v51, %v4980_v24  ;;  %v10699_v51 = vld [vmem:[%s15147_s7] ss:$0 sm:$0xff] }
0x24c8   :  { %v5007_v54 = vmul.f32 %v10664_v50, %v4997_v52 }
0x24c9   :  { %v5006_v59 = vmul.f32 %v10664_v50, %v4996_v53 }
0x24ca   :  { %v14304_v58 = vadd.f32 %v10666_v55, %v5007_v54 }
0x24cb   :  { %v14302_v60 = vadd.f32 %v10666_v55, %v5006_v59  ;;  %v10702_v59 = vld [vmem:[%s15148_s8] ss:$0 sm:$0xff] }
0x24cd   :  { %12011 = vmatprep.mubr.msk.f32.mxu1 %vm83_vm0, %v14302_v60 }
0x24ce   :  { %12012 = vmatmul.mubr.msk.f32.vlgmr.msra.gmra.mrb[54].mxu1 %vm83_vm0, %v14304_v58 }
0x24cf   :  { %12849 = vmatpush3.bf16.msra.mxu1 %v12846_v38  ;;  %12033 = vmatprep.mubr.msk.f32.mxu1 %vm83_vm0, %v10687_v42  ;;  %v5620_v38 = vld [vmem:[%s15145_s5 + $0x10] sm:$0xff]  ;;  %v10714_v42 = vld [vmem:[%s15172_s27 + $0x20] sm:$0xff] }
0x24d0   :  { %12851 = vmatprep.subr.bf16.mxu1 %v12850_v43  ;;  %v12882_v44 = vpack.c.bf16 %v5621_v39, %v5620_v38  ;;  %v12904_v1 = vpack.c.bf16 %v10715_v61, %v10714_v42 }
0x24d3   :  { %12853 = vmatpush3.bf16.msra.mxu1 %v12850_v43 }
0x24d4   :  { %12855 = vmatprep.subr.bf16.mxu1 %v12854_v0 }
0x24d6   :  { %12034 = vmatmul.mubr.msk.f32.vlgmr.msra.gmra.mrb[56].mxu1 %vm83_vm0, %v10688_v3 }
0x24d7   :  { %12857 = vmatpush3.bf16.msra.mxu1 %v12854_v0  ;;  %12044 = vmatprep.mubr.msk.f32.mxu1 %vm83_vm0, %v10691_v5 }
0x24d8   :  { %12859 = vmatprep.subr.bf16.mxu1 %v12858_v4 }
0x24db   :  { %12861 = vmatpush3.bf16.msra.mxu1 %v12858_v4 }
0x24dc   :  { %12863 = vmatprep.subr.bf16.mxu1 %v12862_v8 }
0x24de   :  { %12045 = vmatmul.mubr.msk.f32.vlgmr.msra.gmra.mrb[56].mxu1 %vm83_vm0, %v10692_v11 }
0x24df   :  { %12865 = vmatpush3.bf16.msra.mxu1 %v12862_v8  ;;  %12055 = vmatprep.mubr.msk.f32.mxu1 %vm83_vm0, %v10695_v13  ;;  %v10717_v8 = vld [vmem:[%s15172_s27 + $0x38] sm:$0xff]  ;;  %v10730_v13 = vld [vmem:[%s15146_s6 + $0x20] sm:$0xff] }
0x24e0   :  { %12867 = vmatprep.subr.bf16.mxu1 %v12866_v12 }
0x24e3   :  { %12869 = vmatpush3.bf16.msra.mxu1 %v12866_v12  ;;  %v12908_v12 = vpack.c.bf16 %v10717_v8, %v10716_v7 }
0x24e6   :  { %12056 = vmatmul.mubr.msk.f32.vlgmr.msra.gmra.mrb[56].mxu1 %vm83_vm0, %v10696_v14  ;;  %v10731_v14 = vld [vmem:[%s15146_s6 + $0x28] sm:$0xff] }
0x24e7   :  { %v12920_v15 = vpack.c.bf16 %v10731_v14, %v10730_v13 }
0x25a1   :  { %v12013_v24 = vpop.f32.mrb[54].mxu1 }
0x25a2   :  { %v5109_v25 = vadd.f32 %v12013_v24, %v10672_v23  ;;  %v5103_v26 = vpop.f32.mrb[55].mxu1 }
0x25a3   :  { %v5104_v27 = vadd.f32 %v10672_v23, %v5103_v26 }
0x25a4   :  { %v5113_v31 = vmax.f32 %v5109_v25, 0.0  ;;  %v10719_v25 = vld [vmem:[%s15147_s7 + $0x1] ss:$0 sm:$0xff] }
0x25a5   :  { %v5112_v30 = vmax.f32 %v5104_v27, 0.0 }
0x25a7   :  { %12022 = vmatprep.mubr.msk.f32.mxu0 %vm83_vm0, %v5112_v30 }
0x25a8   :  { %12023 = vmatmul.mubr.msk.f32.vlgmr.msra.gmra.mrb[38].mxu0 %vm83_vm0, %v5113_v31 }
0x25a9   :  { %12873 = vmatpush3.bf16.msra.mxu0 %v12870_v20 }
0x25aa   :  { %12875 = vmatprep.subr.bf16.mxu0 %v12874_v29 }
0x25ad   :  { %12877 = vmatpush3.bf16.msra.mxu0 %v12874_v29 }
0x25ae   :  { %12879 = vmatprep.subr.bf16.mxu0 %v12878_v34 }
0x25b9   :  { %v12057_v35 = vpop.f32.mrb[56].mxu1 }
0x25ba   :  { %v5515_v28 = vpop.f32.mrb[57].mxu1  ;;  %v14397_v41 = vadd.f32 %v12057_v35, %v13594_v37  ;;  %v5706_v37 = vld [vmem:[%s15146_s6 + $0x10] sm:$0xff] }
0x25bb   :  { %v14394_v40 = vadd.f32 %v5515_v28, %v13592_v36  ;;  %v12886_v36 = vpack.c.bf16 %v5705_v46, %v5704_v45  ;;  %v12890_v48 = vpack.c.bf16 %v5707_v47, %v5706_v37  ;;  %v10722_v47 = vld [vmem:[%s15145_s5 + $0x20] sm:$0xff] }
0x25bd   :  { %12066 = vmatprep.mubr.msk.f32.mxu0 %vm83_vm0, %v14394_v40 }
0x25be   :  { %12067 = vmatmul.mubr.msk.f32.vlgmr.msra.gmra.mrb[40].mxu0 %vm83_vm0, %v14397_v41 }
0x25bf   :  { %12881 = vmatpush3.bf16.msra.mxu0 %v12878_v34  ;;  %12077 = vmatprep.mubr.msk.f32.mxu0 %vm83_vm0, %v14394_v40 }
0x25c0   :  { %12883 = vmatprep.subr.bf16.mxu0 %v12882_v44 }
0x25c3   :  { %12885 = vmatpush3.bf16.msra.mxu0 %v12882_v44 }
0x25c4   :  { %12887 = vmatprep.subr.bf16.mxu0 %v12886_v36 }
0x25c6   :  { %12078 = vmatmul.mubr.msk.f32.vlgmr.msra.gmra.mrb[42].mxu0 %vm83_vm0, %v14397_v41 }
0x25c7   :  { %12889 = vmatpush3.bf16.msra.mxu0 %v12886_v36  ;;  %12088 = vmatprep.mubr.msk.f32.mxu0 %vm83_vm0, %v14394_v40 }
0x25c8   :  { %12891 = vmatprep.subr.bf16.mxu0 %v12890_v48 }
0x25cb   :  { %12893 = vmatpush3.bf16.msra.mxu0 %v12890_v48  ;;  %v10723_v48 = vld [vmem:[%s15145_s5 + $0x28] sm:$0xff] }
0x25ce   :  { %12089 = vmatmul.mubr.msk.f32.vlgmr.msra.gmra.mrb[44].mxu0 %vm83_vm0, %v14397_v41 }
0x267b   :  { %v14423_v49 = vpop.f32.mrb[38].mxu0 }
0x267c   :  { %v14425_v50 = vpop.f32.mrb[39].mxu0 }
0x2691   :  { %v12068_v52 = vpop.f32.mrb[40].mxu0 }
0x2692   :  { %v5609_v53 = vpop.f32.mrb[41].mxu0  ;;  %v5615_v3 = vadd.f32 %v12068_v52, %v10699_v51 }
0x2693   :  { %v5610_v54 = vadd.f32 %v10699_v51, %v5609_v53  ;;  %v12912_v51 = vpack.c.bf16 %v10723_v48, %v10722_v47  ;;  %v10757_v47 = vld [vmem:[%s15145_s5 + $0x40] sm:$0xff]  ;;  %v10758_v48 = vld [vmem:[%s15145_s5 + $0x48] sm:$0xff] }
0x2694   :  { %v5791_v10 = vmul.f32 0.35355338, %v5615_v3 }
0x2695   :  { %v5790_v55 = vmul.f32 0.35355338, %v5610_v54 }
0x2697   :  { %12095 = vmatprep.mubr.msk.f32.mxu1 %vm611_vm1, %v5790_v55  ;;  %v10724_v55 = vld [vmem:[%s15145_s5 + $0x30] sm:$0xff] }
0x2699   :  { %v12079_v56 = vpop.f32.mrb[42].mxu0 }
0x269a   :  { %v5701_v57 = vadd.f32 %v12079_v56, %v10702_v59  ;;  %v5695_v43 = vpop.f32.mrb[43].mxu0 }
0x269b   :  { %v5696_v62 = vadd.f32 %v10702_v59, %v5695_v43  ;;  %v10725_v59 = vld [vmem:[%s15145_s5 + $0x38] sm:$0xff] }
0x269c   :  { %v12916_v42 = vpack.c.bf16 %v10725_v59, %v10724_v55  ;;  %v10759_v55 = vld [vmem:[%s15145_s5 + $0x50] sm:$0xff]  ;;  %v10760_v59 = vld [vmem:[%s15145_s5 + $0x58] sm:$0xff] }
0x269d   :  { %v12894_v0 = vpack.c.bf16 %v5701_v57, %v5696_v62 }
0x269f   :  { %12896 = vmatprep.subr.msk.bf16.mxu1 %vm13647_vm2, %v12894_v0 }
0x26a0   :  { %12899 = vmatpush3.bf16.xpose.msk.msra.mxu1 %vm13647_vm2, %v12894_v0 }
0x26a1   :  { %v12090_v4 = vpop.f32.mrb[44].mxu0  ;;  %12905 = vmatprep.subr.bf16.mxu1 %v12904_v1 }
0x26a2   :  { %v5787_v5 = vadd.f32 %v12090_v4, %v10705_v2  ;;  %v5781_v6 = vpop.f32.mrb[45].mxu0 }
0x26a3   :  { %v5782_v9 = vadd.f32 %v10705_v2, %v5781_v6  ;;  %v10727_v2 = vld [vmem:[%s15148_s8 + $0x1] ss:$0 sm:$0xff] }
0x26a5   :  { %v12900_v11 = vpack.c.bf16 %v5787_v5, %v5782_v9 }
0x26a7   :  { %12096 = vmatmul.mubr.msk.f32.vlgmr.msra.gmra.mrb[58].mxu1 %vm611_vm1, %v5791_v10  ;;  %12901 = vmatprep.subr.bf16.mxu0 %v12900_v11 }
0x26a8   :  { %12903 = vmatpush3.bf16.msra.mxu0 %v12900_v11  ;;  %12907 = vmatpush3.bf16.msra.mxu1 %v12904_v1 }
0x26a9   :  { %12113 = vmatprep.mubr.msk.f32.mxu1 %vm83_vm0, %v14394_v40  ;;  %12909 = vmatprep.subr.bf16.mxu1 %v12908_v12 }
0x26aa   :  { %12913 = vmatprep.subr.bf16.mxu0 %v12912_v51 }
0x26ac   :  { %12911 = vmatpush3.bf16.msra.mxu1 %v12908_v12 }
0x26ad   :  { %12921 = vmatprep.subr.bf16.mxu1 %v12920_v15 }
0x26af   :  { %12114 = vmatmul.mubr.msk.f32.vlgmr.msra.gmra.mrb[60].mxu1 %vm83_vm0, %v14397_v41 }
0x26b0   :  { %12923 = vmatpush3.bf16.msra.mxu1 %v12920_v15  ;;  %12135 = vmatprep.mubr.msk.f32.mxu1 %vm83_vm0, %v14394_v40 }
0x26b1   :  { %12925 = vmatprep.subr.bf16.mxu1 %v12924_v18 }
0x26b4   :  { %12927 = vmatpush3.bf16.msra.mxu1 %v12924_v18 }
0x26b7   :  { %12136 = vmatmul.mubr.msk.f32.vlgmr.msra.gmra.mrb[62].mxu1 %vm83_vm0, %v14397_v41 }
0x277a   :  { %v12097_v19 = vpop.f32.mrb[58].mxu1 }
0x277b   :  { %v5870_v20 = vpop.f32.mrb[59].mxu1  ;;  %v5882_v23 = vsel %vm699_vm3, %v12097_v19, -inf }
0x277c   :  { %5883 = vmax.xlane.f32.xlu1 %v5882_v23  ;;  %v5879_v24 = vsel %vm699_vm3, %v5870_v20, -inf }
0x277d   :  { %5880 = vmax.xlane.f32.xlu0 %v5879_v24 }
0x2782   :  { %v12115_v26 = vpop.f32.mrb[60].mxu1 }
0x2783   :  { %v6066_v27 = vadd.f32 %v12115_v26, %v10719_v25  ;;  %v6060_v22 = vpop.f32.mrb[61].mxu1  ;;  %v10750_v26 = vld [vmem:[%s15172_s27 + $0x48] sm:$0xff] }
0x2784   :  { %v6061_v61 = vadd.f32 %v10719_v25, %v6060_v22  ;;  %v10749_v25 = vld [vmem:[%s15172_s27 + $0x40] sm:$0xff]  ;;  %v10744_v22 = vld [vmem:[%s15150_s10 + $0x8] sm:$0xff] }
0x2785   :  { %v6242_v8 = vmul.f32 0.35355338, %v6066_v27  ;;  %v12938_v27 = vpack.c.bf16 %v10750_v26, %v10749_v25 }
0x2786   :  { %v6241_v62 = vmul.f32 0.35355338, %v6061_v61 }
0x278a   :  { %v12137_v30 = vpop.f32.mrb[62].mxu1 }
0x278b   :  { %v6238_v31 = vadd.f32 %v12137_v30, %v10735_v21  ;;  %v6232_v29 = vpop.f32.mrb[63].mxu1 }
0x278c   :  { %v6233_v32 = vadd.f32 %v10735_v21, %v6232_v29  ;;  %v10751_v29 = vld [vmem:[%s15172_s27 + $0x50] sm:$0xff] }
0x278e   :  { %v12934_v33 = vpack.c.bf16 %v6238_v31, %v6233_v32  ;;  %v10752_v32 = vld [vmem:[%s15172_s27 + $0x58] sm:$0xff] }
0x2790   :  { %12935 = vmatprep.subr.bf16.mxu1 %v12934_v33 }
0x2791   :  { %12937 = vmatpush3.bf16.msra.mxu1 %v12934_v33 }
0x2792   :  { %12939 = vmatprep.subr.bf16.mxu1 %v12938_v27 }
0x2809   :  { %v5884_v34 = vpop.xlane.xlu1 %5883 }
0x280a   :  { %v5886_v35 = vsub.f32 %v12097_v19, %v5884_v34  ;;  %v5881_v38 = vpop.xlane.xlu0 %5880 }
0x280b   :  { %v5885_v39 = vsub.f32 %v5870_v20, %v5881_v38  ;;  %v12942_v38 = vpack.c.bf16 %v10752_v32, %v10751_v29  ;;  %v10779_v29 = vld [vmem:[%s15150_s10 + $0x10] sm:$0xff] }
0x280c   :  { %v5889_v28 = vmul.f32 1.442695, %v5886_v35 }
0x280d   :  { %v5887_v44 = vmul.f32 1.442695, %v5885_v39  ;;  %v10765_v39 = vld [vmem:[%s15146_s6 + $0x40] sm:$0xff] }
0x280e   :  { %13289 = vpow2.f32 %v5889_v28  ;;  %v10766_v28 = vld [vmem:[%s15146_s6 + $0x48] sm:$0xff] }
0x280f   :  { %13291 = vpow2.f32 %v5887_v44  ;;  %v12954_v44 = vpack.c.bf16 %v10766_v28, %v10765_v39 }
0x2818   :  { %v13290_v45 = vpop.eup %13289 }
0x2819   :  { %v13292_v46 = vpop.eup %13291  ;;  %v5894_v36 = vsel %vm699_vm3, %v13290_v45, 0.0 }
0x281a   :  { %5895 = vadd.xlane.f32.xlu1 %v5894_v36  ;;  %v5891_v37 = vsel %vm699_vm3, %v13292_v46, 0.0 }
0x281b   :  { %5892 = vadd.xlane.f32.xlu0 %v5891_v37  ;;  %v5982_v37 = vld [vmem:[%s15150_s10] sm:$0xff] }
0x28a7   :  { %v5896_v52 = vpop.xlane.xlu1 %5895 }
0x28a8   :  { %13293 = vrcp.f32 %v5896_v52  ;;  %v5893_v53 = vpop.xlane.xlu0 %5892 }
0x28a9   :  { %13295 = vrcp.f32 %v5893_v53  ;;  %v12946_v53 = vpack.c.bf16 %v10758_v48, %v10757_v47  ;;  %v10800_v47 = vld [vmem:[%s15146_s6 + $0x70] sm:$0xff]  ;;  %v10801_v48 = vld [vmem:[%s15146_s6 + $0x78] sm:$0xff] }
0x28b2   :  { %v13294_v54 = vpop.eup %13293 }
0x28b3   :  { %v13296_v56 = vpop.eup %13295  ;;  %v5900_v43 = vmul.f32 %v13294_v54, %v13290_v45  ;;  %v10767_v45 = vld [vmem:[%s15146_s6 + $0x50] sm:$0xff]  ;;  %v10754_v54 = vld [vmem:[%s15147_s7 + $0x2] ss:$0 sm:$0xff] }
0x28b4   :  { %v5899_v57 = vmul.f32 %v13296_v56, %v13292_v46  ;;  %v10768_v46 = vld [vmem:[%s15146_s6 + $0x58] sm:$0xff] }
0x28b5   :  { %v12958_v36 = vpack.c.bf16 %v10768_v46, %v10767_v45  ;;  %v10798_v46 = vld [vmem:[%s15146_s6 + $0x60] sm:$0xff] }
0x28b6   :  { %12102 = vmatprep.mubr.msk.f32.mxu0 %vm699_vm3, %v5899_v57 }
0x28b7   :  { %12103 = vmatmul.mubr.msk.f32.vlgmr.msra.gmra.mrb[46].mxu0 %vm699_vm3, %v5900_v43 }
0x28b8   :  { %12915 = vmatpush3.bf16.msra.mxu0 %v12912_v51  ;;  %12124 = vmatprep.mubr.msk.f32.mxu0 %vm83_vm0, %v14394_v40 }
0x28b9   :  { %12917 = vmatprep.subr.bf16.mxu0 %v12916_v42 }
0x28bc   :  { %12919 = vmatpush3.bf16.msra.mxu0 %v12916_v42  ;;  %v12950_v42 = vpack.c.bf16 %v10760_v59, %v10759_v55  ;;  %v10792_v55 = vld [vmem:[%s15145_s5 + $0x70] sm:$0xff]  ;;  %v10793_v59 = vld [vmem:[%s15145_s5 + $0x78] sm:$0xff] }
0x28bf   :  { %12125 = vmatmul.mubr.msk.f32.vlgmr.msra.gmra.mrb[48].mxu0 %vm83_vm0, %v14397_v41 }
0x28c0   :  { %12142 = vmatprep.mubr.msk.f32.mxu0 %vm611_vm1, %v6241_v62  ;;  %v10770_v62 = vld [vmem:[%s15149_s9 + $0x2] ss:$0 sm:$0xff] }
0x298a   :  { %v14503_v0 = vpop.f32.mrb[46].mxu0 }
0x298b   :  { %v14505_v1 = vpop.f32.mrb[47].mxu0 }
0x2992   :  { %v12126_v3 = vpop.f32.mrb[48].mxu0 }
0x2993   :  { %v6152_v4 = vadd.f32 %v12126_v3, %v10727_v2  ;;  %v6146_v5 = vpop.f32.mrb[49].mxu0 }
0x2994   :  { %v6147_v6 = vadd.f32 %v10727_v2, %v6146_v5 }
0x2996   :  { %v12928_v7 = vpack.c.bf16 %v6152_v4, %v6147_v6  ;;  %v10762_v6 = vld [vmem:[%s15148_s8 + $0x2] ss:$0 sm:$0xff] }
0x2998   :  { %12930 = vmatprep.subr.msk.bf16.mxu0 %vm13647_vm2, %v12928_v7 }
0x2999   :  { %12933 = vmatpush3.bf16.xpose.msk.msra.mxu0 %vm13647_vm2, %v12928_v7 }
0x299a   :  { %12152 = vmatprep.subr.mxu0 %v10744_v22 }
0x29a0   :  { %12143 = vmatmul.mubr.msk.f32.vlgmr.msra.gmra.mrb[50].mxu0 %vm611_vm1, %v6242_v8 }
0x29a1   :  { %12153 = vmatpush3.msra.mxu0 %v10744_v22 }
0x29a2   :  { %12157 = vmatprep.subr.mxu0 %v5982_v37 }
0x2a73   :  { %v12144_v9 = vpop.f32.mrb[50].mxu0 }
0x2a74   :  { %v6321_v10 = vpop.f32.mrb[51].mxu0  ;;  %v6333_v11 = vsel %vm699_vm3, %v12144_v9, -inf }
0x2a75   :  { %6334 = vmax.xlane.f32.xlu1 %v6333_v11  ;;  %v6330_v12 = vsel %vm699_vm3, %v6321_v10, -inf }
0x2a76   :  { %6331 = vmax.xlane.f32.xlu0 %v6330_v12 }
0x2b02   :  { %v6335_v13 = vpop.xlane.xlu1 %6334 }
0x2b03   :  { %v6337_v14 = vsub.f32 %v12144_v9, %v6335_v13  ;;  %v6332_v15 = vpop.xlane.xlu0 %6331 }
0x2b04   :  { %v6336_v16 = vsub.f32 %v6321_v10, %v6332_v15 }
0x2b05   :  { %v6340_v17 = vmul.f32 1.442695, %v6337_v14 }
0x2b06   :  { %v6338_v18 = vmul.f32 1.442695, %v6336_v16 }
0x2b07   :  { %13297 = vpow2.f32 %v6340_v17 }
0x2b08   :  { %13299 = vpow2.f32 %v6338_v18 }
0x2b11   :  { %v13298_v19 = vpop.eup %13297 }
0x2b12   :  { %v13300_v20 = vpop.eup %13299  ;;  %v6345_v23 = vsel %vm699_vm3, %v13298_v19, 0.0 }
0x2b13   :  { %6346 = vadd.xlane.f32.xlu1 %v6345_v23  ;;  %v6342_v24 = vsel %vm699_vm3, %v13300_v20, 0.0 }
0x2b14   :  { %6343 = vadd.xlane.f32.xlu0 %v6342_v24 }
0x2ba0   :  { %v6347_v21 = vpop.xlane.xlu1 %6346 }
0x2ba1   :  { %13301 = vrcp.f32 %v6347_v21  ;;  %v6344_v30 = vpop.xlane.xlu0 %6343  ;;  %v10782_v21 = vld [vmem:[%s15172_s27 + $0x60] sm:$0xff] }
0x2ba2   :  { %13303 = vrcp.f32 %v6344_v30  ;;  %v10783_v30 = vld [vmem:[%s15172_s27 + $0x68] sm:$0xff] }
0x2bab   :  { %v13302_v31 = vpop.eup %13301 }
0x2bac   :  { %v13304_v33 = vpop.eup %13303  ;;  %v6351_v35 = vmul.f32 %v13302_v31, %v13298_v19  ;;  %v12972_v31 = vpack.c.bf16 %v10783_v30, %v10782_v21 }
0x2bad   :  { %v6350_v34 = vmul.f32 %v13304_v33, %v13300_v20 }
0x2baf   :  { %12149 = vmatprep.mubr.msk.f32.mxu1 %vm699_vm3, %v6350_v34 }
0x2bb0   :  { %12150 = vmatmul.mubr.msk.f32.vlgmr.msra.gmra.mrb[64].mxu1 %vm699_vm3, %v6351_v35  ;;  %v10784_v35 = vld [vmem:[%s15172_s27 + $0x70] sm:$0xff] }
0x2bb1   :  { %12941 = vmatpush3.bf16.msra.mxu1 %v12938_v27  ;;  %12170 = vmatprep.mubr.msk.f32.mxu1 %vm83_vm0, %v14394_v40 }
0x2bb2   :  { %12943 = vmatprep.subr.bf16.mxu1 %v12942_v38 }
0x2bb5   :  { %12945 = vmatpush3.bf16.msra.mxu1 %v12942_v38  ;;  %v10785_v38 = vld [vmem:[%s15172_s27 + $0x78] sm:$0xff] }
0x2bb6   :  { %12955 = vmatprep.subr.bf16.mxu1 %v12954_v44  ;;  %v12976_v45 = vpack.c.bf16 %v10785_v38, %v10784_v35 }
0x2bb8   :  { %12171 = vmatmul.mubr.msk.f32.vlgmr.msra.gmra.mrb[66].mxu1 %vm83_vm0, %v14397_v41 }
0x2bb9   :  { %12957 = vmatpush3.bf16.msra.mxu1 %v12954_v44  ;;  %12192 = vmatprep.mubr.msk.f32.mxu1 %vm83_vm0, %v14394_v40 }
0x2bba   :  { %12959 = vmatprep.subr.bf16.mxu1 %v12958_v36 }
0x2bbd   :  { %12961 = vmatpush3.bf16.msra.mxu1 %v12958_v36  ;;  %v10799_v36 = vld [vmem:[%s15146_s6 + $0x68] sm:$0xff] }
0x2bc0   :  { %12193 = vmatmul.mubr.msk.f32.vlgmr.msra.gmra.mrb[68].mxu1 %vm83_vm0, %v14397_v41 }
0x2c83   :  { %v12151_v51 = vpop.f32.mrb[64].mxu1 }
0x2c84   :  { %v6424_v52 = vpop.f32.mrb[65].mxu1 }
0x2c85   :  { %12154 = vmatprep.mubr.msk.f32.mxu0 %vm611_vm1, %v6424_v52  ;;  %v10790_v52 = vld [vmem:[%s15145_s5 + $0x60] sm:$0xff] }
0x2c86   :  { %12155 = vmatmul.mubr.msk.f32.vlgmr.msra.gmra.mrb[52].mxu0 %vm611_vm1, %v12151_v51  ;;  %v12992_v51 = vpack.c.bf16 %v10801_v48, %v10800_v47 }
0x2c87   :  { %12158 = vmatpush3.msra.mxu0 %v5982_v37  ;;  %12159 = vmatprep.mubr.msk.f32.mxu0 %vm611_vm1, %v14505_v1  ;;  %v12988_v37 = vpack.c.bf16 %v10799_v36, %v10798_v46 }
0x2c88   :  { %12947 = vmatprep.subr.bf16.mxu0 %v12946_v53 }
0x2c8b   :  { %v12172_v56 = vpop.f32.mrb[66].mxu1 }
0x2c8c   :  { %v6679_v57 = vadd.f32 %v12172_v56, %v10754_v54  ;;  %v6673_v43 = vpop.f32.mrb[67].mxu1 }
0x2c8d   :  { %v6674_v61 = vadd.f32 %v10754_v54, %v6673_v43  ;;  %v12984_v43 = vpack.c.bf16 %v10793_v59, %v10792_v55 }
0x2c8e   :  { %12160 = vmatmul.mubr.msk.f32.vlgmr.msra.gmra.mrb[52].mxu0 %vm611_vm1, %v14503_v0  ;;  %v6855_v12 = vmul.f32 0.35355338, %v6679_v57 }
0x2c8f   :  { %12949 = vmatpush3.bf16.msra.mxu0 %v12946_v53  ;;  %12181 = vmatprep.mubr.msk.f32.mxu0 %vm83_vm0, %v14394_v40  ;;  %v6854_v4 = vmul.f32 0.35355338, %v6674_v61  ;;  %v10791_v53 = vld [vmem:[%s15145_s5 + $0x68] sm:$0xff] }
0x2c90   :  { %12951 = vmatprep.subr.bf16.mxu0 %v12950_v42  ;;  %v12980_v54 = vpack.c.bf16 %v10791_v53, %v10790_v52 }
0x2c93   :  { %12953 = vmatpush3.bf16.msra.mxu0 %v12950_v42  ;;  %v12194_v1 = vpop.f32.mrb[68].mxu1  ;;  %v10787_v42 = vld [vmem:[%s15147_s7 + $0x3] ss:$0 sm:$0xff] }
0x2c94   :  { %v6851_v2 = vadd.f32 %v12194_v1, %v10770_v62  ;;  %v6845_v3 = vpop.f32.mrb[69].mxu1 }
0x2c95   :  { %v6846_v5 = vadd.f32 %v10770_v62, %v6845_v3 }
0x2c96   :  { %12182 = vmatmul.mubr.msk.f32.vlgmr.msra.gmra.mrb[54].mxu0 %vm83_vm0, %v14397_v41 }
0x2c97   :  { %v12968_v0 = vpack.c.bf16 %v6851_v2, %v6846_v5  ;;  %12199 = vmatprep.mubr.msk.f32.mxu0 %vm611_vm1, %v6854_v4  ;;  %v10803_v4 = vld [vmem:[%s15149_s9 + $0x3] ss:$0 sm:$0xff] }
0x2c99   :  { %12969 = vmatprep.subr.bf16.mxu1 %v12968_v0 }
0x2c9a   :  { %12971 = vmatpush3.bf16.msra.mxu1 %v12968_v0 }
0x2c9b   :  { %12973 = vmatprep.subr.bf16.mxu1 %v12972_v31 }
0x2d69   :  { %v12183_v7 = vpop.f32.mrb[54].mxu0 }
0x2d6a   :  { %v6765_v8 = vadd.f32 %v12183_v7, %v10762_v6  ;;  %v6759_v9 = vpop.f32.mrb[55].mxu0 }
0x2d6b   :  { %v6760_v10 = vadd.f32 %v10762_v6, %v6759_v9  ;;  %v10795_v9 = vld [vmem:[%s15148_s8 + $0x3] ss:$0 sm:$0xff] }
0x2d6d   :  { %v12962_v11 = vpack.c.bf16 %v6765_v8, %v6760_v10 }
0x2d6f   :  { %12964 = vmatprep.subr.msk.bf16.mxu0 %vm13647_vm2, %v12962_v11 }
0x2d70   :  { %12967 = vmatpush3.bf16.xpose.msk.msra.mxu0 %vm13647_vm2, %v12962_v11 }
0x2d71   :  { %12209 = vmatprep.subr.mxu0 %v10779_v29 }
0x2d77   :  { %12200 = vmatmul.mubr.msk.f32.vlgmr.msra.gmra.mrb[56].mxu0 %vm611_vm1, %v6855_v12 }
0x2d78   :  { %12210 = vmatpush3.msra.mxu0 %v10779_v29  ;;  %v10812_v29 = vld [vmem:[%s15150_s10 + $0x18] sm:$0xff] }
0x2d79   :  { %12981 = vmatprep.subr.bf16.mxu0 %v12980_v54 }
0x2e4a   :  { %v12201_v13 = vpop.f32.mrb[56].mxu0 }
0x2e4b   :  { %v6934_v14 = vpop.f32.mrb[57].mxu0  ;;  %v6946_v15 = vsel %vm699_vm3, %v12201_v13, -inf }
0x2e4c   :  { %6947 = vmax.xlane.f32.xlu1 %v6946_v15  ;;  %v6943_v16 = vsel %vm699_vm3, %v6934_v14, -inf }
0x2e4d   :  { %6944 = vmax.xlane.f32.xlu0 %v6943_v16 }
0x2ed9   :  { %v6948_v17 = vpop.xlane.xlu1 %6947 }
0x2eda   :  { %v6950_v18 = vsub.f32 %v12201_v13, %v6948_v17  ;;  %v6945_v19 = vpop.xlane.xlu0 %6944 }
0x2edb   :  { %v6949_v20 = vsub.f32 %v6934_v14, %v6945_v19 }
0x2edc   :  { %v6953_v23 = vmul.f32 1.442695, %v6950_v18 }
0x2edd   :  { %v6951_v24 = vmul.f32 1.442695, %v6949_v20 }
0x2ede   :  { %13305 = vpow2.f32 %v6953_v23 }
0x2edf   :  { %13307 = vpow2.f32 %v6951_v24 }
0x2ee8   :  { %v13306_v25 = vpop.eup %13305 }
0x2ee9   :  { %v13308_v26 = vpop.eup %13307  ;;  %v6958_v27 = vsel %vm699_vm3, %v13306_v25, 0.0 }
0x2eea   :  { %6959 = vadd.xlane.f32.xlu1 %v6958_v27  ;;  %v6955_v22 = vsel %vm699_vm3, %v13308_v26, 0.0 }
0x2eeb   :  { %6956 = vadd.xlane.f32.xlu0 %v6955_v22 }
0x2f77   :  { %v6960_v32 = vpop.xlane.xlu1 %6959 }
0x2f78   :  { %13309 = vrcp.f32 %v6960_v32  ;;  %v6957_v33 = vpop.xlane.xlu0 %6956 }
0x2f79   :  { %13311 = vrcp.f32 %v6957_v33 }
0x2f82   :  { %v13310_v34 = vpop.eup %13309 }
0x2f83   :  { %v13312_v39 = vpop.eup %13311  ;;  %v6964_v44 = vmul.f32 %v13310_v34, %v13306_v25 }
0x2f84   :  { %v6963_v28 = vmul.f32 %v13312_v39, %v13308_v26 }
0x2f86   :  { %12206 = vmatprep.mubr.msk.f32.mxu1 %vm699_vm3, %v6963_v28 }
0x2f87   :  { %12207 = vmatmul.mubr.msk.f32.vlgmr.msra.gmra.mrb[70].mxu1 %vm699_vm3, %v6964_v44 }
0x2f88   :  { %12975 = vmatpush3.bf16.msra.mxu1 %v12972_v31  ;;  %12222 = vmatprep.mubr.msk.f32.mxu1 %vm83_vm0, %v14394_v40 }
0x2f89   :  { %12977 = vmatprep.subr.bf16.mxu1 %v12976_v45 }
0x2f8c   :  { %12979 = vmatpush3.bf16.msra.mxu1 %v12976_v45  ;;  %v10815_v45 = vld [vmem:[%s15151_s11] ss:$0 sm:$0xff] }
0x2f8d   :  { %12989 = vmatprep.subr.bf16.mxu1 %v12988_v37 }
0x2f8f   :  { %12223 = vmatmul.mubr.msk.f32.vlgmr.msra.gmra.mrb[72].mxu1 %vm83_vm0, %v14397_v41 }
0x2f90   :  { %12991 = vmatpush3.bf16.msra.mxu1 %v12988_v37  ;;  %12244 = vmatprep.mubr.msk.f32.mxu1 %vm83_vm0, %v14394_v40 }
0x2f91   :  { %12993 = vmatprep.subr.bf16.mxu1 %v12992_v51 }
0x2f94   :  { %12995 = vmatpush3.bf16.msra.mxu1 %v12992_v51 }
0x2f97   :  { %12245 = vmatmul.mubr.msk.f32.vlgmr.msra.gmra.mrb[74].mxu1 %vm83_vm0, %v14397_v41 }
0x305a   :  { %v12208_v56 = vpop.f32.mrb[70].mxu1 }
0x305b   :  { %v7037_v57 = vpop.f32.mrb[71].mxu1 }
0x305c   :  { %12211 = vmatprep.mubr.msk.f32.mxu0 %vm611_vm1, %v7037_v57 }
0x305d   :  { %12212 = vmatmul.mubr.msk.f32.vlgmr.msra.gmra.mrb[52].mxu0 %vm611_vm1, %v12208_v56 }
0x305e   :  { %12983 = vmatpush3.bf16.msra.mxu0 %v12980_v54  ;;  %12233 = vmatprep.mubr.msk.f32.mxu0 %vm83_vm0, %v14394_v40 }
0x305f   :  { %12985 = vmatprep.subr.bf16.mxu0 %v12984_v43 }
0x3062   :  { %v12224_v61 = vpop.f32.mrb[72].mxu1  ;;  %12987 = vmatpush3.bf16.msra.mxu0 %v12984_v43 }
0x3063   :  { %v7213_v62 = vadd.f32 %v12224_v61, %v10787_v42  ;;  %v7207_v1 = vpop.f32.mrb[73].mxu1 }
0x3064   :  { %v7208_v2 = vadd.f32 %v10787_v42, %v7207_v1  ;;  %v7720_v1 = vld [vmem:[%s15154_s14 + $0x8] sm:$0xff] }
0x3065   :  { %12234 = vmatmul.mubr.msk.f32.vlgmr.msra.gmra.mrb[58].mxu0 %vm83_vm0, %v14397_v41  ;;  %v7389_v15 = vmul.f32 0.35355338, %v7213_v62 }
0x3066   :  { %v7388_v3 = vmul.f32 0.35355338, %v7208_v2 }
0x3068   :  { %12251 = vmatprep.mubr.msk.f32.mxu0 %vm611_vm1, %v7388_v3  ;;  %v7721_v3 = vld [vmem:[%s15154_s14 + $0x10] sm:$0xff] }
0x306a   :  { %v12246_v5 = vpop.f32.mrb[74].mxu1 }
0x306b   :  { %v7385_v0 = vadd.f32 %v12246_v5, %v10803_v4  ;;  %v7379_v6 = vpop.f32.mrb[75].mxu1 }
0x306c   :  { %v7380_v7 = vadd.f32 %v10803_v4, %v7379_v6  ;;  %v7722_v4 = vld [vmem:[%s15154_s14 + $0x18] sm:$0xff]  ;;  %v7814_v6 = vld [vmem:[%s15156_s16 + $0x8] sm:$0xff] }
0x306d   :  { %v13010_v5 = vpack.c.bf16 %v7722_v4, %v7721_v3  ;;  %v10836_v4 = vld [vmem:[%s15145_s5 + $0x90] sm:$0xff] }
0x306e   :  { %v13002_v8 = vpack.c.bf16 %v7385_v0, %v7380_v7  ;;  %v7813_v0 = vld [vmem:[%s15156_s16] sm:$0xff] }
0x306f   :  { %v13014_v7 = vpack.c.bf16 %v7814_v6, %v7813_v0  ;;  %v10842_v6 = vld [vmem:[%s15146_s6 + $0x80] sm:$0xff] }
0x3070   :  { %13003 = vmatprep.subr.bf16.mxu1 %v13002_v8 }
0x3071   :  { %13005 = vmatpush3.bf16.msra.mxu1 %v13002_v8 }
0x3138   :  { %v12235_v10 = vpop.f32.mrb[58].mxu0 }
0x3139   :  { %v7299_v11 = vadd.f32 %v12235_v10, %v10795_v9  ;;  %v7293_v12 = vpop.f32.mrb[59].mxu0 }
0x313a   :  { %v7294_v13 = vadd.f32 %v10795_v9, %v7293_v12 }
0x313c   :  { %v12996_v14 = vpack.c.bf16 %v7299_v11, %v7294_v13 }
0x313e   :  { %12998 = vmatprep.subr.msk.bf16.mxu0 %vm13647_vm2, %v12996_v14 }
0x313f   :  { %13001 = vmatpush3.bf16.xpose.msk.msra.mxu0 %vm13647_vm2, %v12996_v14 }
0x3140   :  { %12261 = vmatprep.subr.mxu0 %v10812_v29 }
0x3146   :  { %12252 = vmatmul.mubr.msk.f32.vlgmr.msra.gmra.mrb[60].mxu0 %vm611_vm1, %v7389_v15  ;;  %v10816_v15 = vld [vmem:[%s15152_s12] ss:$0 sm:$0xff] }
0x3147   :  { %12262 = vmatpush3.msra.mxu0 %v10812_v29 }
0x3148   :  { %13015 = vmatprep.subr.bf16.mxu0 %v13014_v7 }
0x3219   :  { %v12253_v16 = vpop.f32.mrb[60].mxu0 }
0x321a   :  { %v7468_v17 = vpop.f32.mrb[61].mxu0  ;;  %v7480_v18 = vsel %vm699_vm3, %v12253_v16, -inf }
0x321b   :  { %7481 = vmax.xlane.f32.xlu1 %v7480_v18  ;;  %v7477_v19 = vsel %vm699_vm3, %v7468_v17, -inf }
0x321c   :  { %7478 = vmax.xlane.f32.xlu0 %v7477_v19 }
0x32a8   :  { %v7482_v20 = vpop.xlane.xlu1 %7481 }
0x32a9   :  { %v7484_v23 = vsub.f32 %v12253_v16, %v7482_v20  ;;  %v7479_v24 = vpop.xlane.xlu0 %7478  ;;  %v10817_v20 = vld [vmem:[%s15153_s13] ss:$0 sm:$0xff] }
0x32aa   :  { %v7483_v25 = vsub.f32 %v7468_v17, %v7479_v24 }
0x32ab   :  { %v7487_v26 = vmul.f32 1.442695, %v7484_v23 }
0x32ac   :  { %v7485_v27 = vmul.f32 1.442695, %v7483_v25 }
0x32ad   :  { %13313 = vpow2.f32 %v7487_v26  ;;  %v7815_v26 = vld [vmem:[%s15156_s16 + $0x10] sm:$0xff] }
0x32ae   :  { %13315 = vpow2.f32 %v7485_v27  ;;  %v7816_v27 = vld [vmem:[%s15156_s16 + $0x18] sm:$0xff] }
0x32b7   :  { %v13314_v22 = vpop.eup %13313 }
0x32b8   :  { %v13316_v21 = vpop.eup %13315  ;;  %v7492_v30 = vsel %vm699_vm3, %v13314_v22, 0.0 }
0x32b9   :  { %7493 = vadd.xlane.f32.xlu1 %v7492_v30  ;;  %v7489_v31 = vsel %vm699_vm3, %v13316_v21, 0.0 }
0x32ba   :  { %7490 = vadd.xlane.f32.xlu0 %v7489_v31 }
0x3346   :  { %v7494_v32 = vpop.xlane.xlu1 %7493 }
0x3347   :  { %13317 = vrcp.f32 %v7494_v32  ;;  %v7491_v33 = vpop.xlane.xlu0 %7490 }
0x3348   :  { %13319 = vrcp.f32 %v7491_v33 }
0x3351   :  { %v13318_v34 = vpop.eup %13317 }
0x3352   :  { %v13320_v35 = vpop.eup %13319  ;;  %v7498_v39 = vmul.f32 %v13318_v34, %v13314_v22  ;;  %v13018_v22 = vpack.c.bf16 %v7816_v27, %v7815_v26  ;;  %v10845_v26 = vld [vmem:[%s15146_s6 + $0x98] sm:$0xff] }
0x3353   :  { %v7497_v38 = vmul.f32 %v13320_v35, %v13316_v21  ;;  %v10818_v21 = vld [vmem:[%s15155_s15] ss:$0 sm:$0xff] }
0x3354   :  { %v10821_v35 = vld [vmem:[%s15157_s17] ss:$0 sm:$0xff] }
0x3355   :  { %12258 = vmatprep.mubr.msk.f32.mxu1 %vm699_vm3, %v7497_v38 }
0x3356   :  { %12259 = vmatmul.mubr.msk.f32.vlgmr.msra.gmra.mrb[76].mxu1 %vm699_vm3, %v7498_v39 }
0x3429   :  { %v12260_v28 = vpop.f32.mrb[76].mxu1 }
0x342a   :  { %v7571_v44 = vpop.f32.mrb[77].mxu1 }
0x342b   :  { %12263 = vmatprep.mubr.msk.f32.mxu0 %vm611_vm1, %v7571_v44 }
0x342c   :  { %12264 = vmatmul.mubr.msk.f32.vlgmr.msra.gmra.mrb[52].mxu0 %vm611_vm1, %v12260_v28 }
0x342d   :  { %13017 = vmatpush3.bf16.msra.mxu0 %v13014_v7  ;;  %v10843_v7 = vld [vmem:[%s15146_s6 + $0x88] sm:$0xff] }
0x342e   :  { %13019 = vmatprep.subr.bf16.mxu0 %v13018_v22 }
0x3431   :  { %13021 = vmatpush3.bf16.msra.mxu0 %v13018_v22 }
0x34ff   :  { %v12265_v46 = vpop.f32.mrb[52].mxu0 }
0x3500   :  { %v7672_v36 = vadd.f32 %v12265_v46, %v10815_v45  ;;  %v7653_v37 = vpop.f32.mrb[53].mxu0 }
0x3501   :  { %v7671_v47 = vadd.f32 %v10815_v45, %v7653_v37 }
0x3502   :  { %v7674_v48 = vadd.f32 %v14397_v41, %v7672_v36 }
0x3503   :  { %v7673_v51 = vadd.f32 %v14394_v40, %v7671_v47  ;;  %v7719_v40 = vld [vmem:[%s15154_s14] sm:$0xff] }
0x3504   :  { %v7678_v52 = vsel %vm83_vm0, %v7674_v48, 0.0  ;;  %v13006_v2 = vpack.c.bf16 %v7720_v1, %v7719_v40  ;;  %v10828_v1 = vld [vmem:[%s15172_s27 + $0x90] sm:$0xff] }
0x3505   :  { %7679 = vadd.xlane.f32.xlu1 %v7678_v52  ;;  %v7675_v53 = vsel %vm83_vm0, %v7673_v51, 0.0 }
0x3506   :  { %7676 = vadd.xlane.f32.xlu0 %v7675_v53  ;;  %13007 = vmatprep.subr.bf16.mxu1 %v13006_v2 }
0x3507   :  { %13009 = vmatpush3.bf16.msra.mxu1 %v13006_v2  ;;  %v10829_v2 = vld [vmem:[%s15172_s27 + $0x98] sm:$0xff] }
0x3508   :  { %13011 = vmatprep.subr.bf16.mxu1 %v13010_v5  ;;  %v13026_v3 = vpack.c.bf16 %v10829_v2, %v10828_v1 }
0x350b   :  { %13013 = vmatpush3.bf16.msra.mxu1 %v13010_v5  ;;  %v10837_v5 = vld [vmem:[%s15145_s5 + $0x98] sm:$0xff] }
0x350c   :  { %v13034_v0 = vpack.c.bf16 %v10837_v5, %v10836_v4 }
0x3592   :  { %v7680_v54 = vpop.xlane.xlu1 %7679 }
0x3593   :  { %v7682_v55 = vmul.f32 0.03125, %v7680_v54  ;;  %v7677_v59 = vpop.xlane.xlu0 %7676 }
0x3594   :  { %v7681_v56 = vmul.f32 0.03125, %v7677_v59 }
0x3595   :  { %v7684_v57 = vsub.f32 %v7674_v48, %v7682_v55 }
0x3596   :  { %v7683_v43 = vsub.f32 %v7673_v51, %v7681_v56 }
0x3597   :  { %v7686_v42 = vmul.f32 %v7684_v57, %v7684_v57 }
0x3598   :  { %v7685_v61 = vmul.f32 %v7683_v43, %v7683_v43 }
0x3599   :  { %v7690_v62 = vsel %vm83_vm0, %v7686_v42, 0.0  ;;  %v10827_v42 = vld [vmem:[%s15172_s27 + $0x88] sm:$0xff] }
0x359a   :  { %7691 = vadd.xlane.f32.xlu1 %v7690_v62  ;;  %v7687_v41 = vsel %vm83_vm0, %v7685_v61, 0.0  ;;  %v10834_v62 = vld [vmem:[%s15145_s5 + $0x80] sm:$0xff] }
0x359b   :  { %7688 = vadd.xlane.f32.xlu0 %v7687_v41  ;;  %v10835_v41 = vld [vmem:[%s15145_s5 + $0x88] sm:$0xff] }
0x359c   :  { %v13030_v40 = vpack.c.bf16 %v10835_v41, %v10834_v62  ;;  %v10870_v41 = vld [vmem:[%s15148_s8 + $0x5] ss:$0 sm:$0xff] }
0x359e   :  { %13031 = vmatprep.subr.bf16.mxu0 %v13030_v40 }
0x3627   :  { %v7692_v8 = vpop.xlane.xlu1 %7691 }
0x3628   :  { %v7694_v9 = vmul.f32 0.03125, %v7692_v8  ;;  %v7689_v10 = vpop.xlane.xlu0 %7688  ;;  %v13038_v8 = vpack.c.bf16 %v10843_v7, %v10842_v6 }
0x3629   :  { %v7693_v11 = vmul.f32 0.03125, %v7689_v10 }
0x362a   :  { %v7696_v12 = vadd.f32 1e-05, %v7694_v9 }
0x362b   :  { %v7695_v13 = vadd.f32 1e-05, %v7693_v11 }
0x362c   :  { %13321 = vrsqrt.f32 %v7696_v12 }
0x362d   :  { %13323 = vrsqrt.f32 %v7695_v13 }
0x3636   :  { %v13322_v14 = vpop.eup %13321 }
0x3637   :  { %v13324_v16 = vpop.eup %13323  ;;  %v7700_v17 = vmul.f32 %v13322_v14, %v7684_v57 }
0x3638   :  { %v7699_v18 = vmul.f32 %v13324_v16, %v7683_v43  ;;  %v10826_v43 = vld [vmem:[%s15172_s27 + $0x80] sm:$0xff] }
0x3639   :  { %v7709_v19 = vmul.f32 %v10816_v15, %v7700_v17  ;;  %v13022_v61 = vpack.c.bf16 %v10827_v42, %v10826_v43  ;;  %v10824_v16 = vld [vmem:[%s15158_s18] ss:$0 sm:$0xff] }
0x363a   :  { %v7708_v23 = vmul.f32 %v10816_v15, %v7699_v18 }
0x363b   :  { %v7718_v25 = vadd.f32 %v10817_v20, %v7709_v19  ;;  %13023 = vmatprep.subr.bf16.mxu1 %v13022_v61 }
0x363c   :  { %v7717_v24 = vadd.f32 %v10817_v20, %v7708_v23  ;;  %v10825_v20 = vld [vmem:[%s15159_s19] ss:$0 sm:$0xff] }
0x363e   :  { %12274 = vmatprep.mubr.msk.f32.mxu1 %vm83_vm0, %v7717_v24 }
0x363f   :  { %12275 = vmatmul.mubr.msk.f32.vlgmr.msra.gmra.mrb[78].mxu1 %vm83_vm0, %v7718_v25 }
0x3640   :  { %13025 = vmatpush3.bf16.msra.mxu1 %v13022_v61 }
0x3641   :  { %13027 = vmatprep.subr.bf16.mxu1 %v13026_v3 }
0x3644   :  { %13029 = vmatpush3.bf16.msra.mxu1 %v13026_v3 }
0x3645   :  { %13039 = vmatprep.subr.bf16.mxu1 %v13038_v8 }
0x3712   :  { %v12276_v30 = vpop.f32.mrb[78].mxu1 }
0x3713   :  { %v7808_v31 = vadd.f32 %v12276_v30, %v10818_v21  ;;  %v7802_v29 = vpop.f32.mrb[79].mxu1  ;;  %v10839_v30 = vld [vmem:[%s15148_s8 + $0x4] ss:$0 sm:$0xff] }
0x3714   :  { %v7803_v32 = vadd.f32 %v10818_v21, %v7802_v29 }
0x3715   :  { %v7812_v34 = vmax.f32 %v7808_v31, 0.0  ;;  %v10831_v31 = vld [vmem:[%s15147_s7 + $0x4] ss:$0 sm:$0xff] }
0x3716   :  { %v7811_v33 = vmax.f32 %v7803_v32, 0.0 }
0x3718   :  { %12285 = vmatprep.mubr.msk.f32.mxu0 %vm83_vm0, %v7811_v33 }
0x3719   :  { %12286 = vmatmul.mubr.msk.f32.vlgmr.msra.gmra.mrb[62].mxu0 %vm83_vm0, %v7812_v34 }
0x371a   :  { %13033 = vmatpush3.bf16.msra.mxu0 %v13030_v40 }
0x371b   :  { %13035 = vmatprep.subr.bf16.mxu0 %v13034_v0 }
0x371e   :  { %13037 = vmatpush3.bf16.msra.mxu0 %v13034_v0 }
0x37ec   :  { %v12287_v38 = vpop.f32.mrb[62].mxu0 }
0x37ed   :  { %v7902_v39 = vadd.f32 %v12287_v38, %v10821_v35  ;;  %v7896_v28 = vpop.f32.mrb[63].mxu0  ;;  %v10865_v38 = vld [vmem:[%s15145_s5 + $0xa0] sm:$0xff] }
0x37ee   :  { %v7897_v44 = vadd.f32 %v10821_v35, %v7896_v28 }
0x37ef   :  { %v7906_v45 = vadd.f32 %v7902_v39, %v7718_v25  ;;  %v10844_v25 = vld [vmem:[%s15146_s6 + $0x90] sm:$0xff]  ;;  %v10866_v39 = vld [vmem:[%s15145_s5 + $0xa8] sm:$0xff] }
0x37f0   :  { %v7905_v46 = vadd.f32 %v7897_v44, %v7717_v24  ;;  %v13042_v21 = vpack.c.bf16 %v10845_v26, %v10844_v25 }
0x37f1   :  { %v7910_v36 = vsel %vm83_vm0, %v7906_v45, 0.0 }
0x37f2   :  { %7911 = vadd.xlane.f32.xlu1 %v7910_v36  ;;  %v7907_v37 = vsel %vm83_vm0, %v7905_v46, 0.0  ;;  %v13064_v36 = vpack.c.bf16 %v10866_v39, %v10865_v38  ;;  %v10862_v39 = vld [vmem:[%s15147_s7 + $0x5] ss:$0 sm:$0xff] }
0x37f3   :  { %7908 = vadd.xlane.f32.xlu0 %v7907_v37  ;;  %v10847_v37 = vld [vmem:[%s15149_s9 + $0x4] ss:$0 sm:$0xff] }
0x387f   :  { %v7912_v47 = vpop.xlane.xlu1 %7911 }
0x3880   :  { %v7914_v48 = vmul.f32 0.03125, %v7912_v47  ;;  %v7909_v51 = vpop.xlane.xlu0 %7908 }
0x3881   :  { %v7913_v52 = vmul.f32 0.03125, %v7909_v51 }
0x3882   :  { %v7916_v53 = vsub.f32 %v7906_v45, %v7914_v48 }
0x3883   :  { %v7915_v54 = vsub.f32 %v7905_v46, %v7913_v52 }
0x3884   :  { %v7918_v55 = vmul.f32 %v7916_v53, %v7916_v53 }
0x3885   :  { %v7917_v59 = vmul.f32 %v7915_v54, %v7915_v54 }
0x3886   :  { %v7922_v56 = vsel %vm83_vm0, %v7918_v55, 0.0 }
0x3887   :  { %7923 = vadd.xlane.f32.xlu1 %v7922_v56  ;;  %v7919_v57 = vsel %vm83_vm0, %v7917_v59, 0.0 }
0x3888   :  { %7920 = vadd.xlane.f32.xlu0 %v7919_v57 }
0x3914   :  { %v7924_v9 = vpop.xlane.xlu1 %7923 }
0x3915   :  { %v7926_v10 = vmul.f32 0.03125, %v7924_v9  ;;  %v7921_v11 = vpop.xlane.xlu0 %7920 }
0x3916   :  { %v7925_v12 = vmul.f32 0.03125, %v7921_v11 }
0x3917   :  { %v7928_v13 = vadd.f32 1e-05, %v7926_v10 }
0x3918   :  { %v7927_v14 = vadd.f32 1e-05, %v7925_v12 }
0x3919   :  { %13325 = vrsqrt.f32 %v7928_v13 }
0x391a   :  { %13327 = vrsqrt.f32 %v7927_v14  ;;  %v10857_v14 = vld [vmem:[%s15172_s27 + $0xa0] sm:$0xff] }
0x3923   :  { %v13326_v15 = vpop.eup %13325 }
0x3924   :  { %v13328_v17 = vpop.eup %13327  ;;  %v7932_v18 = vmul.f32 %v13326_v15, %v7916_v53  ;;  %v10867_v53 = vld [vmem:[%s15145_s5 + $0xb0] sm:$0xff]  ;;  %v10858_v15 = vld [vmem:[%s15172_s27 + $0xa8] sm:$0xff] }
0x3925   :  { %v7931_v19 = vmul.f32 %v13328_v17, %v7915_v54  ;;  %v10868_v54 = vld [vmem:[%s15145_s5 + $0xb8] sm:$0xff] }
0x3926   :  { %v7941_v23 = vmul.f32 %v10824_v16, %v7932_v18  ;;  %v13068_v57 = vpack.c.bf16 %v10868_v54, %v10867_v53 }
0x3927   :  { %v7940_v24 = vmul.f32 %v10824_v16, %v7931_v19  ;;  %v13056_v16 = vpack.c.bf16 %v10858_v15, %v10857_v14 }
0x3928   :  { %v14778_v22 = vadd.f32 %v10825_v20, %v7941_v23  ;;  %v10860_v23 = vld [vmem:[%s15172_s27 + $0xb8] sm:$0xff] }
0x3929   :  { %v14776_v27 = vadd.f32 %v10825_v20, %v7940_v24  ;;  %v10859_v20 = vld [vmem:[%s15172_s27 + $0xb0] sm:$0xff] }
0x392b   :  { %12296 = vmatprep.mubr.msk.f32.mxu1 %vm83_vm0, %v14776_v27  ;;  %12307 = vmatprep.mubr.msk.f32.mxu0 %vm83_vm0, %v14776_v27 }
0x392c   :  { %12297 = vmatmul.mubr.msk.f32.vlgmr.msra.gmra.mrb[80].mxu1 %vm83_vm0, %v14778_v22  ;;  %12308 = vmatmul.mubr.msk.f32.vlgmr.msra.gmra.mrb[64].mxu0 %vm83_vm0, %v14778_v22 }
0x392d   :  { %13041 = vmatpush3.bf16.msra.mxu1 %v13038_v8  ;;  %12318 = vmatprep.mubr.msk.f32.mxu1 %vm83_vm0, %v14776_v27 }
0x392e   :  { %13043 = vmatprep.subr.bf16.mxu1 %v13042_v21 }
0x3931   :  { %13045 = vmatpush3.bf16.msra.mxu1 %v13042_v21  ;;  %v13060_v21 = vpack.c.bf16 %v10860_v23, %v10859_v20  ;;  %v10910_v20 = vld [vmem:[%s15146_s6 + $0xd0] sm:$0xff]  ;;  %v10911_v23 = vld [vmem:[%s15146_s6 + $0xd8] sm:$0xff] }
0x3934   :  { %12319 = vmatmul.mubr.msk.f32.vlgmr.msra.gmra.mrb[82].mxu1 %vm83_vm0, %v14778_v22 }
0x39ff   :  { %v12298_v29 = vpop.f32.mrb[80].mxu1  ;;  %v12309_v32 = vpop.f32.mrb[64].mxu0 }
0x3a00   :  { %v8126_v33 = vadd.f32 %v12309_v32, %v10839_v30  ;;  %v8034_v34 = vpop.f32.mrb[81].mxu1  ;;  %v8120_v35 = vpop.f32.mrb[65].mxu0  ;;  %v8040_v47 = vadd.f32 %v12298_v29, %v10831_v31  ;;  %v10875_v32 = vld [vmem:[%s15146_s6 + $0xb0] sm:$0xff] }
0x3a01   :  { %v8035_v28 = vadd.f32 %v10831_v31, %v8034_v34  ;;  %v8121_v44 = vadd.f32 %v10839_v30, %v8120_v35  ;;  %v10873_v30 = vld [vmem:[%s15146_s6 + $0xa0] sm:$0xff]  ;;  %v10874_v31 = vld [vmem:[%s15146_s6 + $0xa8] sm:$0xff] }
0x3a02   :  { %v8216_v59 = vmul.f32 0.35355338, %v8040_v47  ;;  %v13072_v29 = vpack.c.bf16 %v10874_v31, %v10873_v30  ;;  %v10878_v47 = vld [vmem:[%s15149_s9 + $0x5] ss:$0 sm:$0xff] }
0x3a03   :  { %v8215_v45 = vmul.f32 0.35355338, %v8035_v28  ;;  %v13046_v46 = vpack.c.bf16 %v8126_v33, %v8121_v44  ;;  %v10876_v33 = vld [vmem:[%s15146_s6 + $0xb8] sm:$0xff] }
0x3a04   :  { %v13076_v34 = vpack.c.bf16 %v10876_v33, %v10875_v32  ;;  %v10897_v32 = vld [vmem:[%s15147_s7 + $0x6] ss:$0 sm:$0xff]  ;;  %v10902_v33 = vld [vmem:[%s15145_s5 + $0xd0] sm:$0xff] }
0x3a05   :  { %13048 = vmatprep.subr.msk.bf16.mxu0 %vm13647_vm2, %v13046_v46  ;;  %12325 = vmatprep.mubr.msk.f32.mxu0 %vm611_vm1, %v8215_v45 }
0x3a06   :  { %13051 = vmatpush3.bf16.xpose.msk.msra.mxu0 %vm13647_vm2, %v13046_v46 }
0x3a07   :  { %v12320_v48 = vpop.f32.mrb[82].mxu1  ;;  %13065 = vmatprep.subr.bf16.mxu0 %v13064_v36 }
0x3a08   :  { %v8212_v51 = vadd.f32 %v12320_v48, %v10847_v37  ;;  %v8206_v52 = vpop.f32.mrb[83].mxu1 }
0x3a09   :  { %v8207_v55 = vadd.f32 %v10847_v37, %v8206_v52 }
0x3a0b   :  { %v13052_v56 = vpack.c.bf16 %v8212_v51, %v8207_v55 }
0x3a0d   :  { %13053 = vmatprep.subr.bf16.mxu1 %v13052_v56  ;;  %12326 = vmatmul.mubr.msk.f32.vlgmr.msra.gmra.mrb[66].mxu0 %vm611_vm1, %v8216_v59 }
0x3a0e   :  { %13055 = vmatpush3.bf16.msra.mxu1 %v13052_v56  ;;  %13067 = vmatpush3.bf16.msra.mxu0 %v13064_v36 }
0x3a0f   :  { %12354 = vmatprep.mubr.msk.f32.mxu0 %vm83_vm0, %v14776_v27  ;;  %13069 = vmatprep.subr.bf16.mxu0 %v13068_v57 }
0x3a10   :  { %13057 = vmatprep.subr.bf16.mxu1 %v13056_v16 }
0x3a12   :  { %13071 = vmatpush3.bf16.msra.mxu0 %v13068_v57 }
0x3a15   :  { %12355 = vmatmul.mubr.msk.f32.vlgmr.msra.gmra.mrb[68].mxu0 %vm83_vm0, %v14778_v22 }
0x3ae0   :  { %v12327_v43 = vpop.f32.mrb[66].mxu0 }
0x3ae1   :  { %v8295_v42 = vpop.f32.mrb[67].mxu0  ;;  %v8307_v61 = vsel %vm699_vm3, %v12327_v43, -inf }
0x3ae2   :  { %8308 = vmax.xlane.f32.xlu1 %v8307_v61  ;;  %v8304_v62 = vsel %vm699_vm3, %v8295_v42, -inf }
0x3ae3   :  { %8305 = vmax.xlane.f32.xlu0 %v8304_v62 }
0x3ae8   :  { %v12356_v40 = vpop.f32.mrb[68].mxu0 }
0x3ae9   :  { %v8577_v1 = vadd.f32 %v12356_v40, %v10870_v41  ;;  %v8571_v2 = vpop.f32.mrb[69].mxu0 }
0x3aea   :  { %v8572_v3 = vadd.f32 %v10870_v41, %v8571_v2 }
0x3aec   :  { %v13080_v4 = vpack.c.bf16 %v8577_v1, %v8572_v3 }
0x3aee   :  { %13082 = vmatprep.subr.msk.bf16.mxu0 %vm13647_vm2, %v13080_v4 }
0x3aef   :  { %13085 = vmatpush3.bf16.xpose.msk.msra.mxu0 %vm13647_vm2, %v13080_v4 }
0x3b6f   :  { %v8309_v5 = vpop.xlane.xlu1 %8308 }
0x3b70   :  { %v8311_v0 = vsub.f32 %v12327_v43, %v8309_v5  ;;  %v8306_v6 = vpop.xlane.xlu0 %8305  ;;  %v10892_v5 = vld [vmem:[%s15172_s27 + $0xc0] sm:$0xff] }
0x3b71   :  { %v8310_v7 = vsub.f32 %v8295_v42, %v8306_v6 }
0x3b72   :  { %v8314_v8 = vmul.f32 1.442695, %v8311_v0  ;;  %v10893_v0 = vld [vmem:[%s15172_s27 + $0xc8] sm:$0xff] }
0x3b73   :  { %v8312_v9 = vmul.f32 1.442695, %v8310_v7  ;;  %v13090_v6 = vpack.c.bf16 %v10893_v0, %v10892_v5  ;;  %v10887_v7 = vld [vmem:[%s15150_s10 + $0x28] sm:$0xff] }
0x3b74   :  { %13329 = vpow2.f32 %v8314_v8  ;;  %12382 = vmatprep.subr.mxu0 %v10887_v7 }
0x3b75   :  { %13331 = vpow2.f32 %v8312_v9 }
0x3b7e   :  { %v13330_v10 = vpop.eup %13329 }
0x3b7f   :  { %v13332_v11 = vpop.eup %13331  ;;  %v8319_v12 = vsel %vm699_vm3, %v13330_v10, 0.0 }
0x3b80   :  { %8320 = vadd.xlane.f32.xlu1 %v8319_v12  ;;  %v8316_v13 = vsel %vm699_vm3, %v13332_v11, 0.0  ;;  %v10895_v12 = vld [vmem:[%s15172_s27 + $0xd8] sm:$0xff] }
0x3b81   :  { %8317 = vadd.xlane.f32.xlu0 %v8316_v13 }
0x3c0d   :  { %v8321_v17 = vpop.xlane.xlu1 %8320 }
0x3c0e   :  { %13333 = vrcp.f32 %v8321_v17  ;;  %v8318_v18 = vpop.xlane.xlu0 %8317  ;;  %v10908_v17 = vld [vmem:[%s15146_s6 + $0xc0] sm:$0xff] }
0x3c0f   :  { %13335 = vrcp.f32 %v8318_v18  ;;  %v10909_v18 = vld [vmem:[%s15146_s6 + $0xc8] sm:$0xff] }
0x3c18   :  { %v13334_v19 = vpop.eup %13333 }
0x3c19   :  { %v13336_v24 = vpop.eup %13335  ;;  %v8325_v26 = vmul.f32 %v13334_v19, %v13330_v10  ;;  %v13106_v19 = vpack.c.bf16 %v10909_v18, %v10908_v17 }
0x3c1a   :  { %v8324_v25 = vmul.f32 %v13336_v24, %v13332_v11  ;;  %v10894_v11 = vld [vmem:[%s15172_s27 + $0xd0] sm:$0xff]  ;;  %v13110_v24 = vpack.c.bf16 %v10911_v23, %v10910_v20  ;;  %v10941_v23 = vld [vmem:[%s15146_s6 + $0xe0] sm:$0xff] }
0x3c1c   :  { %12332 = vmatprep.mubr.msk.f32.mxu1 %vm699_vm3, %v8324_v25  ;;  %v10856_v25 = vld [vmem:[%s15150_s10 + $0x20] sm:$0xff] }
0x3c1d   :  { %12333 = vmatmul.mubr.msk.f32.vlgmr.msra.gmra.mrb[84].mxu1 %vm699_vm3, %v8325_v26  ;;  %v10900_v26 = vld [vmem:[%s15145_s5 + $0xc0] sm:$0xff] }
0x3c1e   :  { %13059 = vmatpush3.bf16.msra.mxu1 %v13056_v16  ;;  %12343 = vmatprep.mubr.msk.f32.mxu1 %vm83_vm0, %v14776_v27  ;;  %v13094_v16 = vpack.c.bf16 %v10895_v12, %v10894_v11  ;;  %v10922_v11 = vld [vmem:[%s15150_s10 + $0x30] sm:$0xff] }
0x3c1f   :  { %13061 = vmatprep.subr.bf16.mxu1 %v13060_v21 }
0x3c22   :  { %13063 = vmatpush3.bf16.msra.mxu1 %v13060_v21  ;;  %v10901_v21 = vld [vmem:[%s15145_s5 + $0xc8] sm:$0xff] }
0x3c23   :  { %13073 = vmatprep.subr.bf16.mxu1 %v13072_v29 }
0x3c25   :  { %12344 = vmatmul.mubr.msk.f32.vlgmr.msra.gmra.mrb[86].mxu1 %vm83_vm0, %v14778_v22 }
0x3c26   :  { %13075 = vmatpush3.bf16.msra.mxu1 %v13072_v29  ;;  %12365 = vmatprep.mubr.msk.f32.mxu1 %vm83_vm0, %v14776_v27  ;;  %v13098_v29 = vpack.c.bf16 %v10901_v21, %v10900_v26  ;;  %v10943_v26 = vld [vmem:[%s15146_s6 + $0xf0] sm:$0xff]  ;;  %v10944_v21 = vld [vmem:[%s15146_s6 + $0xf8] sm:$0xff] }
0x3c27   :  { %13077 = vmatprep.subr.bf16.mxu1 %v13076_v34 }
0x3c2a   :  { %13079 = vmatpush3.bf16.msra.mxu1 %v13076_v34  ;;  %v10903_v34 = vld [vmem:[%s15145_s5 + $0xd8] sm:$0xff] }
0x3c2d   :  { %12366 = vmatmul.mubr.msk.f32.vlgmr.msra.gmra.mrb[88].mxu1 %vm83_vm0, %v14778_v22 }
0x3cf0   :  { %v14868_v35 = vpop.f32.mrb[84].mxu1 }
0x3cf1   :  { %v14870_v38 = vpop.f32.mrb[85].mxu1 }
0x3cf8   :  { %v12345_v28 = vpop.f32.mrb[86].mxu1 }
0x3cf9   :  { %v8491_v44 = vadd.f32 %v12345_v28, %v10862_v39  ;;  %v8485_v45 = vpop.f32.mrb[87].mxu1 }
0x3cfa   :  { %v8486_v46 = vadd.f32 %v10862_v39, %v8485_v45  ;;  %v13102_v45 = vpack.c.bf16 %v10903_v34, %v10902_v33  ;;  %v10935_v33 = vld [vmem:[%s15145_s5 + $0xf0] sm:$0xff]  ;;  %v10936_v34 = vld [vmem:[%s15145_s5 + $0xf8] sm:$0xff] }
0x3cfb   :  { %v8667_v37 = vmul.f32 0.35355338, %v8491_v44 }
0x3cfc   :  { %v8666_v36 = vmul.f32 0.35355338, %v8486_v46  ;;  %v10913_v46 = vld [vmem:[%s15149_s9 + $0x6] ss:$0 sm:$0xff] }
0x3cfe   :  { %12372 = vmatprep.mubr.msk.f32.mxu0 %vm611_vm1, %v8666_v36 }
0x3cff   :  { %12373 = vmatmul.mubr.msk.f32.vlgmr.msra.gmra.mrb[70].mxu0 %vm611_vm1, %v8667_v37 }
0x3d00   :  { %v12367_v48 = vpop.f32.mrb[88].mxu1  ;;  %12383 = vmatpush3.msra.mxu0 %v10887_v7 }
0x3d01   :  { %v8663_v51 = vadd.f32 %v12367_v48, %v10878_v47  ;;  %v8657_v52 = vpop.f32.mrb[89].mxu1  ;;  %12387 = vmatprep.subr.mxu0 %v10856_v25 }
0x3d02   :  { %v8658_v53 = vadd.f32 %v10878_v47, %v8657_v52  ;;  %v10905_v52 = vld [vmem:[%s15148_s8 + $0x6] ss:$0 sm:$0xff] }
0x3d04   :  { %v13086_v54 = vpack.c.bf16 %v8663_v51, %v8658_v53 }
0x3d06   :  { %13087 = vmatprep.subr.bf16.mxu1 %v13086_v54 }
0x3d07   :  { %13089 = vmatpush3.bf16.msra.mxu1 %v13086_v54 }
0x3d08   :  { %13091 = vmatprep.subr.bf16.mxu1 %v13090_v6 }
0x3dd2   :  { %v12374_v55 = vpop.f32.mrb[70].mxu0 }
0x3dd3   :  { %v8746_v59 = vpop.f32.mrb[71].mxu0  ;;  %v8758_v56 = vsel %vm699_vm3, %v12374_v55, -inf }
0x3dd4   :  { %8759 = vmax.xlane.f32.xlu1 %v8758_v56  ;;  %v8755_v57 = vsel %vm699_vm3, %v8746_v59, -inf }
0x3dd5   :  { %8756 = vmax.xlane.f32.xlu0 %v8755_v57 }
0x3e61   :  { %v8760_v43 = vpop.xlane.xlu1 %8759 }
0x3e62   :  { %v8762_v42 = vsub.f32 %v12374_v55, %v8760_v43  ;;  %v8757_v61 = vpop.xlane.xlu0 %8756 }
0x3e63   :  { %v8761_v62 = vsub.f32 %v8746_v59, %v8757_v61 }
0x3e64   :  { %v8765_v41 = vmul.f32 1.442695, %v8762_v42 }
0x3e65   :  { %v8763_v40 = vmul.f32 1.442695, %v8761_v62 }
0x3e66   :  { %13337 = vpow2.f32 %v8765_v41 }
0x3e67   :  { %13339 = vpow2.f32 %v8763_v40 }
0x3e70   :  { %v13338_v1 = vpop.eup %13337 }
0x3e71   :  { %v13340_v2 = vpop.eup %13339  ;;  %v8770_v3 = vsel %vm699_vm3, %v13338_v1, 0.0 }
0x3e72   :  { %8771 = vadd.xlane.f32.xlu1 %v8770_v3  ;;  %v8767_v4 = vsel %vm699_vm3, %v13340_v2, 0.0 }
0x3e73   :  { %8768 = vadd.xlane.f32.xlu0 %v8767_v4 }
0x3eff   :  { %v8772_v8 = vpop.xlane.xlu1 %8771 }
0x3f00   :  { %13341 = vrcp.f32 %v8772_v8  ;;  %v8769_v9 = vpop.xlane.xlu0 %8768  ;;  %v10925_v8 = vld [vmem:[%s15172_s27 + $0xe0] sm:$0xff] }
0x3f01   :  { %13343 = vrcp.f32 %v8769_v9  ;;  %v10926_v9 = vld [vmem:[%s15172_s27 + $0xe8] sm:$0xff] }
0x3f0a   :  { %v13342_v10 = vpop.eup %13341 }
0x3f0b   :  { %v13344_v13 = vpop.eup %13343  ;;  %v8776_v15 = vmul.f32 %v13342_v10, %v13338_v1  ;;  %v13124_v10 = vpack.c.bf16 %v10926_v9, %v10925_v8 }
0x3f0c   :  { %v8775_v14 = vmul.f32 %v13344_v13, %v13340_v2 }
0x3f0e   :  { %12379 = vmatprep.mubr.msk.f32.mxu1 %vm699_vm3, %v8775_v14 }
0x3f0f   :  { %12380 = vmatmul.mubr.msk.f32.vlgmr.msra.gmra.mrb[90].mxu1 %vm699_vm3, %v8776_v15  ;;  %v10927_v15 = vld [vmem:[%s15172_s27 + $0xf0] sm:$0xff] }
0x3f10   :  { %13093 = vmatpush3.bf16.msra.mxu1 %v13090_v6  ;;  %12400 = vmatprep.mubr.msk.f32.mxu1 %vm83_vm0, %v14776_v27 }
0x3f11   :  { %13095 = vmatprep.subr.bf16.mxu1 %v13094_v16 }
0x3f14   :  { %13097 = vmatpush3.bf16.msra.mxu1 %v13094_v16  ;;  %v10928_v16 = vld [vmem:[%s15172_s27 + $0xf8] sm:$0xff] }
0x3f15   :  { %13107 = vmatprep.subr.bf16.mxu1 %v13106_v19  ;;  %v13128_v20 = vpack.c.bf16 %v10928_v16, %v10927_v15 }
0x3f17   :  { %12401 = vmatmul.mubr.msk.f32.vlgmr.msra.gmra.mrb[92].mxu1 %vm83_vm0, %v14778_v22 }
0x3f18   :  { %13109 = vmatpush3.bf16.msra.mxu1 %v13106_v19  ;;  %12422 = vmatprep.mubr.msk.f32.mxu1 %vm83_vm0, %v14776_v27 }
0x3f19   :  { %13111 = vmatprep.subr.bf16.mxu1 %v13110_v24 }
0x3f1c   :  { %13113 = vmatpush3.bf16.msra.mxu1 %v13110_v24  ;;  %v10942_v24 = vld [vmem:[%s15146_s6 + $0xe8] sm:$0xff] }
0x3f1f   :  { %12423 = vmatmul.mubr.msk.f32.vlgmr.msra.gmra.mrb[94].mxu1 %vm83_vm0, %v14778_v22 }
0x3fe2   :  { %v12381_v30 = vpop.f32.mrb[90].mxu1 }
0x3fe3   :  { %v8849_v31 = vpop.f32.mrb[91].mxu1 }
0x3fe4   :  { %12384 = vmatprep.mubr.msk.f32.mxu0 %vm611_vm1, %v8849_v31  ;;  %v10933_v31 = vld [vmem:[%s15145_s5 + $0xe0] sm:$0xff] }
0x3fe5   :  { %12385 = vmatmul.mubr.msk.f32.vlgmr.msra.gmra.mrb[72].mxu0 %vm611_vm1, %v12381_v30  ;;  %v13144_v30 = vpack.c.bf16 %v10944_v21, %v10943_v26 }
0x3fe6   :  { %12388 = vmatpush3.msra.mxu0 %v10856_v25  ;;  %12389 = vmatprep.mubr.msk.f32.mxu0 %vm611_vm1, %v14870_v38  ;;  %v13140_v25 = vpack.c.bf16 %v10942_v24, %v10941_v23 }
0x3fe7   :  { %13099 = vmatprep.subr.bf16.mxu0 %v13098_v29 }
0x3fea   :  { %v12402_v39 = vpop.f32.mrb[92].mxu1 }
0x3feb   :  { %v9104_v28 = vadd.f32 %v12402_v39, %v10897_v32  ;;  %v9098_v44 = vpop.f32.mrb[93].mxu1 }
0x3fec   :  { %v9099_v38 = vadd.f32 %v10897_v32, %v9098_v44  ;;  %v13136_v44 = vpack.c.bf16 %v10936_v34, %v10935_v33 }
0x3fed   :  { %12390 = vmatmul.mubr.msk.f32.vlgmr.msra.gmra.mrb[72].mxu0 %vm611_vm1, %v14868_v35  ;;  %v9280_v57 = vmul.f32 0.35355338, %v9104_v28 }
0x3fee   :  { %13101 = vmatpush3.bf16.msra.mxu0 %v13098_v29  ;;  %12411 = vmatprep.mubr.msk.f32.mxu0 %vm83_vm0, %v14776_v27  ;;  %v9279_v48 = vmul.f32 0.35355338, %v9099_v38  ;;  %v10934_v29 = vld [vmem:[%s15145_s5 + $0xe8] sm:$0xff] }
0x3fef   :  { %13103 = vmatprep.subr.bf16.mxu0 %v13102_v45  ;;  %v13132_v32 = vpack.c.bf16 %v10934_v29, %v10933_v31  ;;  %v10680_v29 = vld [vmem:[%s15157_s17 + $0x1] ss:$0 sm:$0xff] }
0x3ff2   :  { %13105 = vmatpush3.bf16.msra.mxu0 %v13102_v45  ;;  %v12424_v36 = vpop.f32.mrb[94].mxu1  ;;  %v10930_v45 = vld [vmem:[%s15147_s7 + $0x7] ss:$0 sm:$0xff] }
0x3ff3   :  { %v9276_v37 = vadd.f32 %v12424_v36, %v10913_v46  ;;  %v9270_v47 = vpop.f32.mrb[95].mxu1 }
0x3ff4   :  { %v9271_v51 = vadd.f32 %v10913_v46, %v9270_v47 }
0x3ff5   :  { %12412 = vmatmul.mubr.msk.f32.vlgmr.msra.gmra.mrb[74].mxu0 %vm83_vm0, %v14778_v22 }
0x3ff6   :  { %v13120_v35 = vpack.c.bf16 %v9276_v37, %v9271_v51  ;;  %12429 = vmatprep.mubr.msk.f32.mxu0 %vm611_vm1, %v9279_v48  ;;  %v10946_v48 = vld [vmem:[%s15149_s9 + $0x7] ss:$0 sm:$0xff] }
0x3ff8   :  { %13121 = vmatprep.subr.bf16.mxu1 %v13120_v35 }
0x3ff9   :  { %13123 = vmatpush3.bf16.msra.mxu1 %v13120_v35 }
0x3ffa   :  { %13125 = vmatprep.subr.bf16.mxu1 %v13124_v10 }
0x40c8   :  { %v12413_v53 = vpop.f32.mrb[74].mxu0 }
0x40c9   :  { %v9190_v54 = vadd.f32 %v12413_v53, %v10905_v52  ;;  %v9184_v55 = vpop.f32.mrb[75].mxu0 }
0x40ca   :  { %v9185_v59 = vadd.f32 %v10905_v52, %v9184_v55  ;;  %v10938_v55 = vld [vmem:[%s15148_s8 + $0x7] ss:$0 sm:$0xff] }
0x40cc   :  { %v13114_v56 = vpack.c.bf16 %v9190_v54, %v9185_v59 }
0x40ce   :  { %13116 = vmatprep.subr.msk.bf16.mxu0 %vm13647_vm2, %v13114_v56 }
0x40cf   :  { %13119 = vmatpush3.bf16.xpose.msk.msra.mxu0 %vm13647_vm2, %v13114_v56 }
0x40d0   :  { %12439 = vmatprep.subr.mxu0 %v10922_v11 }
0x40d6   :  { %12430 = vmatmul.mubr.msk.f32.vlgmr.msra.gmra.mrb[76].mxu0 %vm611_vm1, %v9280_v57 }
0x40d7   :  { %12440 = vmatpush3.msra.mxu0 %v10922_v11 }
0x40d8   :  { %13133 = vmatprep.subr.bf16.mxu0 %v13132_v32 }
0x41a9   :  { %v12431_v43 = vpop.f32.mrb[76].mxu0 }
0x41aa   :  { %v9359_v42 = vpop.f32.mrb[77].mxu0  ;;  %v9371_v61 = vsel %vm699_vm3, %v12431_v43, -inf }
0x41ab   :  { %9372 = vmax.xlane.f32.xlu1 %v9371_v61  ;;  %v9368_v62 = vsel %vm699_vm3, %v9359_v42, -inf }
0x41ac   :  { %9369 = vmax.xlane.f32.xlu0 %v9368_v62 }
0x4238   :  { %v9373_v41 = vpop.xlane.xlu1 %9372 }
0x4239   :  { %v9375_v40 = vsub.f32 %v12431_v43, %v9373_v41  ;;  %v9370_v1 = vpop.xlane.xlu0 %9369 }
0x423a   :  { %v9374_v2 = vsub.f32 %v9359_v42, %v9370_v1 }
0x423b   :  { %v9378_v3 = vmul.f32 1.442695, %v9375_v40 }
0x423c   :  { %v9376_v4 = vmul.f32 1.442695, %v9374_v2 }
0x423d   :  { %13345 = vpow2.f32 %v9378_v3 }
0x423e   :  { %13347 = vpow2.f32 %v9376_v4 }
0x4247   :  { %v13346_v5 = vpop.eup %13345 }
0x4248   :  { %v13348_v0 = vpop.eup %13347  ;;  %v9383_v6 = vsel %vm699_vm3, %v13346_v5, 0.0 }
0x4249   :  { %9384 = vadd.xlane.f32.xlu1 %v9383_v6  ;;  %v9380_v7 = vsel %vm699_vm3, %v13348_v0, 0.0 }
0x424a   :  { %9381 = vadd.xlane.f32.xlu0 %v9380_v7 }
0x42d6   :  { %v9385_v12 = vpop.xlane.xlu1 %9384 }
0x42d7   :  { %13349 = vrcp.f32 %v9385_v12  ;;  %v9382_v13 = vpop.xlane.xlu0 %9381 }
0x42d8   :  { %13351 = vrcp.f32 %v9382_v13 }
0x42e1   :  { %v13350_v14 = vpop.eup %13349 }
0x42e2   :  { %v13352_v17 = vpop.eup %13351  ;;  %v9389_v19 = vmul.f32 %v13350_v14, %v13346_v5 }
0x42e3   :  { %v9388_v18 = vmul.f32 %v13352_v17, %v13348_v0 }
0x42e5   :  { %12436 = vmatprep.mubr.msk.f32.mxu1 %vm699_vm3, %v9388_v18 }
0x42e6   :  { %12437 = vmatmul.mubr.msk.f32.vlgmr.msra.gmra.mrb[96].mxu1 %vm699_vm3, %v9389_v19  ;;  %v10959_v19 = vld [vmem:[%s15151_s11 + $0x1] ss:$0 sm:$0xff] }
0x42e7   :  { %13127 = vmatpush3.bf16.msra.mxu1 %v13124_v10  ;;  %12452 = vmatprep.mubr.msk.f32.mxu1 %vm83_vm0, %v14776_v27  ;;  %v10955_v10 = vld [vmem:[%s15150_s10 + $0x38] sm:$0xff] }
0x42e8   :  { %13129 = vmatprep.subr.bf16.mxu1 %v13128_v20 }
0x42eb   :  { %13131 = vmatpush3.bf16.msra.mxu1 %v13128_v20 }
0x42ec   :  { %13141 = vmatprep.subr.bf16.mxu1 %v13140_v25 }
0x42ee   :  { %12453 = vmatmul.mubr.msk.f32.vlgmr.msra.gmra.mrb[98].mxu1 %vm83_vm0, %v14778_v22 }
0x42ef   :  { %13143 = vmatpush3.bf16.msra.mxu1 %v13140_v25  ;;  %12474 = vmatprep.mubr.msk.f32.mxu1 %vm83_vm0, %v14776_v27 }
0x42f0   :  { %13145 = vmatprep.subr.bf16.mxu1 %v13144_v30 }
0x42f3   :  { %13147 = vmatpush3.bf16.msra.mxu1 %v13144_v30 }
0x42f6   :  { %12475 = vmatmul.mubr.msk.f32.vlgmr.msra.gmra.mrb[100].mxu1 %vm83_vm0, %v14778_v22 }
0x43b9   :  { %v12438_v39 = vpop.f32.mrb[96].mxu1 }
0x43ba   :  { %v9462_v28 = vpop.f32.mrb[97].mxu1 }
0x43bb   :  { %12441 = vmatprep.mubr.msk.f32.mxu0 %vm611_vm1, %v9462_v28  ;;  %v5205_v28 = vadd.f32 %v14423_v49, %v10680_v29 }
0x43bc   :  { %12442 = vmatmul.mubr.msk.f32.vlgmr.msra.gmra.mrb[72].mxu0 %vm611_vm1, %v12438_v39 }
0x43bd   :  { %13135 = vmatpush3.bf16.msra.mxu0 %v13132_v32  ;;  %12463 = vmatprep.mubr.msk.f32.mxu0 %vm83_vm0, %v14776_v27 }
0x43be   :  { %13137 = vmatprep.subr.bf16.mxu0 %v13136_v44 }
0x43c1   :  { %v12454_v38 = vpop.f32.mrb[98].mxu1  ;;  %13139 = vmatpush3.bf16.msra.mxu0 %v13136_v44 }
0x43c2   :  { %v9638_v46 = vadd.f32 %v12454_v38, %v10930_v45  ;;  %v9632_v36 = vpop.f32.mrb[99].mxu1 }
0x43c3   :  { %v9633_v37 = vadd.f32 %v10930_v45, %v9632_v36  ;;  %v15060_v36 = vadd.f32 %v5205_v28, %v14304_v58  ;;  %v10964_v58 = vld [vmem:[%s15154_s14 + $0x20] sm:$0xff] }
0x43c4   :  { %12464 = vmatmul.mubr.msk.f32.vlgmr.msra.gmra.mrb[78].mxu0 %vm83_vm0, %v14778_v22  ;;  %v9814_v61 = vmul.f32 0.35355338, %v9638_v46 }
0x43c5   :  { %v9813_v47 = vmul.f32 0.35355338, %v9633_v37  ;;  %v5213_v49 = vsel %vm83_vm0, %v15060_v36, 0.0 }
0x43c7   :  { %12481 = vmatprep.mubr.msk.f32.mxu0 %vm611_vm1, %v9813_v47 }
0x43c9   :  { %v12476_v51 = vpop.f32.mrb[100].mxu1 }
0x43ca   :  { %v9810_v35 = vadd.f32 %v12476_v51, %v10946_v48  ;;  %v9804_v52 = vpop.f32.mrb[101].mxu1 }
0x43cb   :  { %v9805_v53 = vadd.f32 %v10946_v48, %v9804_v52  ;;  %v10965_v48 = vld [vmem:[%s15154_s14 + $0x28] sm:$0xff] }
0x43cc   :  { %v13158_v51 = vpack.c.bf16 %v10965_v48, %v10964_v58 }
0x43cd   :  { %v13154_v54 = vpack.c.bf16 %v9810_v35, %v9805_v53  ;;  %v10967_v35 = vld [vmem:[%s15154_s14 + $0x38] sm:$0xff]  ;;  %v10972_v53 = vld [vmem:[%s15156_s16 + $0x20] sm:$0xff] }
0x43cf   :  { %13155 = vmatprep.subr.bf16.mxu1 %v13154_v54 }
0x43d0   :  { %13157 = vmatpush3.bf16.msra.mxu1 %v13154_v54  ;;  %v10973_v54 = vld [vmem:[%s15156_s16 + $0x28] sm:$0xff] }
0x43d1   :  { %13159 = vmatprep.subr.bf16.mxu1 %v13158_v51 }
0x4497   :  { %v12465_v59 = vpop.f32.mrb[78].mxu0 }
0x4498   :  { %v9724_v56 = vadd.f32 %v12465_v59, %v10938_v55  ;;  %v9718_v57 = vpop.f32.mrb[79].mxu0 }
0x4499   :  { %v9719_v43 = vadd.f32 %v10938_v55, %v9718_v57  ;;  %v13166_v55 = vpack.c.bf16 %v10973_v54, %v10972_v53  ;;  %v10684_v54 = vld [vmem:[%s15158_s18 + $0x1] ss:$0 sm:$0xff]  ;;  %s13397_s18 = smov [#allocation2]  }
0x449b   :  { %v13148_v42 = vpack.c.bf16 %v9724_v56, %v9719_v43 }
0x449d   :  { %13150 = vmatprep.subr.msk.bf16.mxu0 %vm13647_vm2, %v13148_v42 }
0x449e   :  { %13153 = vmatpush3.bf16.xpose.msk.msra.mxu0 %vm13647_vm2, %v13148_v42 }
0x449f   :  { %12491 = vmatprep.subr.mxu0 %v10955_v10 }
0x44a5   :  { %12482 = vmatmul.mubr.msk.f32.vlgmr.msra.gmra.mrb[80].mxu0 %vm611_vm1, %v9814_v61 }
0x44a6   :  { %12492 = vmatpush3.msra.mxu0 %v10955_v10 }
0x44a7   :  { %13167 = vmatprep.subr.bf16.mxu0 %v13166_v55 }
0x4578   :  { %v12483_v62 = vpop.f32.mrb[80].mxu0 }
0x4579   :  { %v9893_v41 = vpop.f32.mrb[81].mxu0  ;;  %v9905_v40 = vsel %vm699_vm3, %v12483_v62, -inf }
0x457a   :  { %9906 = vmax.xlane.f32.xlu1 %v9905_v40  ;;  %v9902_v1 = vsel %vm699_vm3, %v9893_v41, -inf }
0x457b   :  { %9903 = vmax.xlane.f32.xlu0 %v9902_v1 }
0x4607   :  { %v9907_v2 = vpop.xlane.xlu1 %9906 }
0x4608   :  { %v9909_v3 = vsub.f32 %v12483_v62, %v9907_v2  ;;  %v9904_v4 = vpop.xlane.xlu0 %9903 }
0x4609   :  { %v9908_v5 = vsub.f32 %v9893_v41, %v9904_v4  ;;  %v10961_v41 = vld [vmem:[%s15152_s12 + $0x1] ss:$0 sm:$0xff] }
0x460a   :  { %v9912_v0 = vmul.f32 1.442695, %v9909_v3  ;;  %v10963_v4 = vld [vmem:[%s15153_s13 + $0x1] ss:$0 sm:$0xff] }
0x460b   :  { %v9910_v6 = vmul.f32 1.442695, %v9908_v5 }
0x460c   :  { %13353 = vpow2.f32 %v9912_v0 }
0x460d   :  { %13355 = vpow2.f32 %v9910_v6 }
0x4616   :  { %v13354_v63 = vpop.eup %13353 }
0x4617   :  { %v13356_v7 = vpop.eup %13355  ;;  %v9917_v8 = vsel %vm699_vm3, %v13354_v63, 0.0 }
0x4618   :  { %9918 = vadd.xlane.f32.xlu1 %v9917_v8  ;;  %v9914_v9 = vsel %vm699_vm3, %v13356_v7, 0.0 }
0x4619   :  { %9915 = vadd.xlane.f32.xlu0 %v9914_v9  ;;  %v10969_v9 = vld [vmem:[%s15155_s15 + $0x1] ss:$0 sm:$0xff] }
0x46a5   :  { %v9919_v11 = vpop.xlane.xlu1 %9918 }
0x46a6   :  { %13357 = vrcp.f32 %v9919_v11  ;;  %v9916_v12 = vpop.xlane.xlu0 %9915 }
0x46a7   :  { %13359 = vrcp.f32 %v9916_v12 }
0x46b0   :  { %v13358_v13 = vpop.eup %13357 }
0x46b1   :  { %v13360_v14 = vpop.eup %13359  ;;  %v9923_v16 = vmul.f32 %v13358_v13, %v13354_v63  ;;  %v10974_v63 = vld [vmem:[%s15156_s16 + $0x30] sm:$0xff] }
0x46b2   :  { %v9922_v15 = vmul.f32 %v13360_v14, %v13356_v7  ;;  %v10975_v7 = vld [vmem:[%s15156_s16 + $0x38] sm:$0xff] }
0x46b3   :  { %v13170_v8 = vpack.c.bf16 %v10975_v7, %v10974_v63 }
0x46b4   :  { %12488 = vmatprep.mubr.msk.f32.mxu1 %vm699_vm3, %v9922_v15 }
0x46b5   :  { %12489 = vmatmul.mubr.msk.f32.vlgmr.msra.gmra.mrb[102].mxu1 %vm699_vm3, %v9923_v16 }
0x46b6   :  { %13161 = vmatpush3.bf16.msra.mxu1 %v13158_v51 }
0x4788   :  { %v12490_v17 = vpop.f32.mrb[102].mxu1 }
0x4789   :  { %v9996_v18 = vpop.f32.mrb[103].mxu1 }
0x478a   :  { %12493 = vmatprep.mubr.msk.f32.mxu0 %vm611_vm1, %v9996_v18 }
0x478b   :  { %12494 = vmatmul.mubr.msk.f32.vlgmr.msra.gmra.mrb[72].mxu0 %vm611_vm1, %v12490_v17 }
0x478c   :  { %13169 = vmatpush3.bf16.msra.mxu0 %v13166_v55 }
0x478d   :  { %13171 = vmatprep.subr.bf16.mxu0 %v13170_v8 }
0x4790   :  { %13173 = vmatpush3.bf16.msra.mxu0 %v13170_v8 }
0x485e   :  { %v12495_v20 = vpop.f32.mrb[72].mxu0 }
0x485f   :  { %v10097_v23 = vadd.f32 %v12495_v20, %v10959_v19  ;;  %v10078_v24 = vpop.f32.mrb[73].mxu0  ;;  %v10977_v20 = vld [vmem:[%s15157_s17 + $0x1] ss:$0 sm:$0xff] }
0x4860   :  { %v10096_v25 = vadd.f32 %v10959_v19, %v10078_v24 }
0x4861   :  { %v10099_v26 = vadd.f32 %v10097_v23, %v14778_v22  ;;  %v5200_v22 = vadd.f32 %v10680_v29, %v14425_v50 }
0x4862   :  { %v10098_v21 = vadd.f32 %v10096_v25, %v14776_v27 }
0x4863   :  { %v10103_v30 = vsel %vm83_vm0, %v10099_v26, 0.0  ;;  %v15064_v47 = vadd.f32 %v5200_v22, %v14302_v60  ;;  %v10966_v60 = vld [vmem:[%s15154_s14 + $0x30] sm:$0xff] }
0x4864   :  { %10104 = vadd.xlane.f32.xlu1 %v10103_v30  ;;  %v10100_v31 = vsel %vm83_vm0, %v10098_v21, 0.0  ;;  %v13162_v52 = vpack.c.bf16 %v10967_v35, %v10966_v60 }
0x4865   :  { %10101 = vadd.xlane.f32.xlu0 %v10100_v31  ;;  %v5210_v50 = vsel %vm83_vm0, %v15064_v47, 0.0 }
0x4866   :  { %13163 = vmatprep.subr.bf16.mxu1 %v13162_v52 }
0x4867   :  { %13165 = vmatpush3.bf16.msra.mxu1 %v13162_v52 }
0x48f1   :  { %v10105_v32 = vpop.xlane.xlu1 %10104 }
0x48f2   :  { %v10107_v33 = vmul.f32 0.03125, %v10105_v32  ;;  %v10102_v34 = vpop.xlane.xlu0 %10101 }
0x48f3   :  { %v10106_v39 = vmul.f32 0.03125, %v10102_v34 }
0x48f4   :  { %v10109_v44 = vsub.f32 %v10099_v26, %v10107_v33 }
0x48f5   :  { %v10108_v27 = vsub.f32 %v10098_v21, %v10106_v39 }
0x48f6   :  { %v10111_v45 = vmul.f32 %v10109_v44, %v10109_v44 }
0x48f7   :  { %v10110_v38 = vmul.f32 %v10108_v27, %v10108_v27 }
0x48f8   :  { %v10115_v46 = vsel %vm83_vm0, %v10111_v45, 0.0 }
0x48f9   :  { %10116 = vadd.xlane.f32.xlu1 %v10115_v46  ;;  %v10112_v37 = vsel %vm83_vm0, %v10110_v38, 0.0 }
0x48fa   :  { %10113 = vadd.xlane.f32.xlu0 %v10112_v37 }
0x48fd   :  { %5214 = vadd.xlane.f32.xlu1 %v5213_v49 }
0x48fe   :  { %5211 = vadd.xlane.f32.xlu0 %v5210_v50 }
0x4986   :  { %v10117_v59 = vpop.xlane.xlu1 %10116 }
0x4987   :  { %v10119_v56 = vmul.f32 0.03125, %v10117_v59  ;;  %v10114_v57 = vpop.xlane.xlu0 %10113 }
0x4988   :  { %v10118_v43 = vmul.f32 0.03125, %v10114_v57 }
0x4989   :  { %v10121_v42 = vadd.f32 1e-05, %v10119_v56  ;;  %v10686_v56 = vld [vmem:[%s15159_s19 + $0x1] ss:$0 sm:$0xff]  ;;  %s10384_s19 = sshll.u32 %s13397_s18, 4  ;;  %s10385_s19 = int_to_ptr.vmem [resolvable:$true] %s10384_s19 }
0x498a   :  { %v10120_v61 = vadd.f32 1e-05, %v10118_v43  ;;  %v5215_v16 = vpop.xlane.xlu1 %5214  ;;  %s13373_s11 = scalar_lea.vmem %s10385_s19, 512  ;;  %p13378_p1 = scmp.lt.s32.totalorder %s10385_s19, %s10385_s19 }
0x498b   :  { %13361 = vrsqrt.f32 %v10121_v42  ;;  %v5212_v17 = vpop.xlane.xlu0 %5211  ;;  %v5217_v18 = vmul.f32 0.03125, %v5215_v16  ;;  %p13374_p0 = scmp.ne.s32.totalorder %s10385_s19, %s13373_s11  ;;  %p13379_p2 = scmp.lt.s32.totalorder %s13373_s11, %s13373_s11 }
0x498c   :  { %13363 = vrsqrt.f32 %v10120_v61  ;;  %v5216_v19 = vmul.f32 0.03125, %v5212_v17 }
0x498d   :  { %v5219_v24 = vsub.f32 %v15060_v36, %v5217_v18  ;;  %p13380_p3 = por %p13379_p2, %p13378_p1 }
0x498e   :  { %v5218_v21 = vsub.f32 %v15064_v47, %v5216_v19 }
0x498f   :  { %v5221_v33 = vmul.f32 %v5219_v24, %v5219_v24  ;;  %p13381_p4 = pnand %p13380_p3, %p13374_p0 }
0x4990   :  { %v5220_v39 = vmul.f32 %v5218_v21, %v5218_v21 }
0x4991   :  { %v5225_v28 = vsel %vm83_vm0, %v5221_v33, 0.0 }
0x4995   :  { %v13362_v62 = vpop.eup %13361 }
0x4996   :  { %v13364_v40 = vpop.eup %13363  ;;  %v10125_v1 = vmul.f32 %v13362_v62, %v10109_v44  ;;  %v5222_v44 = vsel %vm83_vm0, %v5220_v39, 0.0 }
0x4997   :  { %v10124_v2 = vmul.f32 %v13364_v40, %v10108_v27 }
0x4998   :  { %v10134_v3 = vmul.f32 %v10961_v41, %v10125_v1 }
0x4999   :  { %v10133_v5 = vmul.f32 %v10961_v41, %v10124_v2 }
0x499a   :  { %v10143_v6 = vadd.f32 %v10963_v4, %v10134_v3 }
0x499b   :  { %v10142_v0 = vadd.f32 %v10963_v4, %v10133_v5 }
0x499d   :  { %12504 = vmatprep.mubr.msk.f32.mxu1 %vm83_vm0, %v10142_v0 }
0x499e   :  { %12505 = vmatmul.mubr.msk.f32.vlgmr.msra.gmra.mrb[104].mxu1 %vm83_vm0, %v10143_v6 }
0x4a71   :  { %v12506_v10 = vpop.f32.mrb[104].mxu1 }
0x4a72   :  { %v10233_v11 = vadd.f32 %v12506_v10, %v10969_v9  ;;  %v10227_v12 = vpop.f32.mrb[105].mxu1 }
0x4a73   :  { %v10228_v13 = vadd.f32 %v10969_v9, %v10227_v12 }
0x4a74   :  { %v10237_v15 = vmax.f32 %v10233_v11, 0.0 }
0x4a75   :  { %v10236_v14 = vmax.f32 %v10228_v13, 0.0 }
0x4a77   :  { %12515 = vmatprep.mubr.msk.f32.mxu0 %vm83_vm0, %v10236_v14 }
0x4a78   :  { %12516 = vmatmul.mubr.msk.f32.vlgmr.msra.gmra.mrb[82].mxu0 %vm83_vm0, %v10237_v15 }
0x4b4b   :  { %v12517_v23 = vpop.f32.mrb[82].mxu0 }
0x4b4c   :  { %v10327_v25 = vadd.f32 %v12517_v23, %v10977_v20  ;;  %v10321_v26 = vpop.f32.mrb[83].mxu0 }
0x4b4d   :  { %v10322_v30 = vadd.f32 %v10977_v20, %v10321_v26 }
0x4b4e   :  { %v10331_v31 = vadd.f32 %v10327_v25, %v10143_v6 }
0x4b4f   :  { %v10330_v29 = vadd.f32 %v10322_v30, %v10142_v0 }
0x4b50   :  { %v10335_v32 = vsel %vm83_vm0, %v10331_v31, 0.0 }
0x4b51   :  { %10336 = vadd.xlane.f32.xlu1 %v10335_v32  ;;  %v10332_v34 = vsel %vm83_vm0, %v10330_v29, 0.0 }
0x4b52   :  { %10333 = vadd.xlane.f32.xlu0 %v10332_v34 }
0x4b55   :  { %5226 = vadd.xlane.f32.xlu1 %v5225_v28 }
0x4b56   :  { %5223 = vadd.xlane.f32.xlu0 %v5222_v44 }
0x4bde   :  { %v10337_v22 = vpop.xlane.xlu1 %10336 }
0x4bdf   :  { %v10339_v27 = vmul.f32 0.03125, %v10337_v22  ;;  %v10334_v45 = vpop.xlane.xlu0 %10333 }
0x4be0   :  { %v10338_v38 = vmul.f32 0.03125, %v10334_v45 }
0x4be1   :  { %v10341_v46 = vsub.f32 %v10331_v31, %v10339_v27 }
0x4be2   :  { %v10340_v36 = vsub.f32 %v10330_v29, %v10338_v38  ;;  %v5227_v37 = vpop.xlane.xlu1 %5226 }
0x4be3   :  { %v5229_v47 = vmul.f32 0.03125, %v5227_v37  ;;  %v5224_v49 = vpop.xlane.xlu0 %5223  ;;  %v10343_v50 = vmul.f32 %v10341_v46, %v10341_v46 }
0x4be4   :  { %v5228_v58 = vmul.f32 0.03125, %v5224_v49  ;;  %v10342_v48 = vmul.f32 %v10340_v36, %v10340_v36 }
0x4be5   :  { %v5231_v51 = vadd.f32 1e-05, %v5229_v47  ;;  %v10347_v60 = vsel %vm83_vm0, %v10343_v50, 0.0 }
0x4be6   :  { %v5230_v35 = vadd.f32 1e-05, %v5228_v58  ;;  %10348 = vadd.xlane.f32.xlu1 %v10347_v60  ;;  %v10344_v52 = vsel %vm83_vm0, %v10342_v48, 0.0 }
0x4be7   :  { %13365 = vrsqrt.f32 %v5231_v51  ;;  %10345 = vadd.xlane.f32.xlu0 %v10344_v52 }
0x4be8   :  { %13367 = vrsqrt.f32 %v5230_v35 }
0x4bf1   :  { %v13366_v53 = vpop.eup %13365 }
0x4bf2   :  { %v13368_v55 = vpop.eup %13367  ;;  %v5235_v59 = vmul.f32 %v13366_v53, %v5219_v24 }
0x4bf3   :  { %v5234_v57 = vmul.f32 %v13368_v55, %v5218_v21 }
0x4bf4   :  { %v5245_v43 = vmul.f32 %v10684_v54, %v5235_v59 }
0x4bf5   :  { %v5244_v42 = vmul.f32 %v10684_v54, %v5234_v57 }
0x4bf6   :  { %v5255_v61 = vadd.f32 %v10686_v56, %v5245_v43 }
0x4bf7   :  { %v5254_v62 = vadd.f32 %v10686_v56, %v5244_v42 }
0x4bf8   :  { %5257 = vst.msk [vmem:[#allocation2 + $0x8] sm:$0xff] %vm83_vm0, %v5255_v61 }
0x4bf9   :  { %5256 = vst.msk [vmem:[#allocation2] sm:$0xff] %vm83_vm0, %v5254_v62 }
0x4c73   :  { %v10349_v41 = vpop.xlane.xlu1 %10348 }
0x4c74   :  { %v10351_v40 = vmul.f32 0.03125, %v10349_v41  ;;  %v10346_v1 = vpop.xlane.xlu0 %10345 }
0x4c75   :  { %v10350_v2 = vmul.f32 0.03125, %v10346_v1 }
0x4c76   :  { %v10353_v3 = vadd.f32 1e-05, %v10351_v40 }
0x4c77   :  { %v10352_v4 = vadd.f32 1e-05, %v10350_v2 }
0x4c78   :  { %13369 = vrsqrt.f32 %v10353_v3 }
0x4c79   :  { %13371 = vrsqrt.f32 %v10352_v4 }
0x4c82   :  { %v13370_v5 = vpop.eup %13369 }
0x4c83   :  { %v13372_v0 = vpop.eup %13371  ;;  %v10357_v6 = vmul.f32 %v13370_v5, %v10341_v46 }
0x4c84   :  { %v10356_v63 = vmul.f32 %v13372_v0, %v10340_v36 }
0x4c85   :  { %v10366_v7 = vmul.f32 %v10684_v54, %v10357_v6 }
0x4c86   :  { %v10365_v8 = vmul.f32 %v10684_v54, %v10356_v63 }
0x4c87   :  { %v10375_v9 = vadd.f32 %v10686_v56, %v10366_v7 }
0x4c88   :  { %v10374_v10 = vadd.f32 %v10686_v56, %v10365_v8 }
0x4c89   :  { %10378 = vst.msk [vmem:[#allocation2 + $0x18] sm:$0xff] %vm83_vm0, %v10375_v9 }
0x4c8a   :  { %10377 = vst.msk [vmem:[#allocation2 + $0x10] sm:$0xff] %vm83_vm0, %v10374_v10 }
0x4c8b   :  { %13384 = shalt.err (!%p13381_p4)
}
0x4c8c   :  { %s13385_s28 = scalar_lea.hbm %s15160_s20, 512 }
0x4c8d   :  { %p13386_p5 = scmp.ne.s32.totalorder %s15160_s20, %s13385_s28  ;;  %p13389_p6 = scmp.lt.u32.totalorder %s13385_s28, %s15160_s20 }
0x4c8f   :  { %p13391_p7 = pnand %p13389_p6, %p13386_p5 }
0x4c91   :  { %13394 = shalt.err (!%p13391_p7)
}
0x4c92   :  { %s13398_s0 = smov 128   ;;  %s13399_s21 = smov 8  }
0x4c93   :  { %10390 = dma.vmem_to_hbm [thread:$0]  %s10385_s19, 512, %s15160_s20, [#allocation3], %s13398_s0, %s13398_s0, %s13399_s21  }
0x4c94   :  { %13395 = dma.done.wait [#allocation3], 512  }
0x4c95   :  { %13396 = vsyncadd [#allocation3], 4294966784 }
0x4c96   :  { %10394 = vsyncpa [#allocation3], 1 }

</bundles_post_ra>
